<compile_context>
chip_gen: v7x
topology: tpu7x:2x2x1
jax: 0.10.0
libtpu: 0.0.40
codegen_flags: <defaults>
</compile_context>

<pallas_src>
import numpy as np

import jax
import jax.numpy as jnp
from jax.experimental import pallas as pl
from jax.experimental.pallas import tpu as pltpu

_BN_EPS = 1e-5
_ENC_CH = [(3, 16), (16, 32), (32, 64), (64, 128)]
_DEC_CH = [(128, 64), (64, 32), (32, 16), (16, 3)]

# Stride^2 sub-kernel decomposition of ConvTranspose2d(k=3, s=2, p=1, op=1):
# entries (parity p = 2*ph + pw, tap t = 2*di + dj, kh, kw).  Fine output pixel
# (2i+ph, 2j+pw) = sum over listed taps of x[i+di, j+dj] @ w[:, :, kh, kw].
_DEC_TAPS = (
    (0, 0, 1, 1),
    (1, 0, 1, 2), (1, 1, 1, 0),
    (2, 0, 2, 1), (2, 2, 0, 1),
    (3, 0, 2, 2), (3, 1, 2, 0), (3, 2, 0, 2), (3, 3, 0, 0),
)


# ----------------------------------------------------------------------------
# Host-side (numpy) builders for the one-hot gather matrices
# ----------------------------------------------------------------------------
def _enc_gather(h_in, w_in):
    """Per-sample gather mats for Conv2d(k3, s2, p1): S[9, M_out, M_in]."""
    h_out, w_out = (h_in + 1) // 2, (w_in + 1) // 2
    S = np.zeros((9, h_out * w_out, h_in * w_in), np.float32)
    for ki in range(3):
        for kj in range(3):
            t = ki * 3 + kj
            for ho in range(h_out):
                hi = 2 * ho + ki - 1
                if not 0 <= hi < h_in:
                    continue
                for wo in range(w_out):
                    wi = 2 * wo + kj - 1
                    if not 0 <= wi < w_in:
                        continue
                    S[t, ho * w_out + wo, hi * w_in + wi] = 1.0
    return S, h_out, w_out


def _parity_block_pos(h, w):
    """Positions (on the 2h x 2w grid) of the 4 parity output blocks."""
    blocks = []
    for ph in range(2):
        for pw in range(2):
            blocks.append(np.array([(2 * i + ph, 2 * j + pw)
                                    for i in range(h) for j in range(w)],
                                   np.int64))
    return blocks


def _dec_gather(h, w, block_pos):
    """Gather mats for a decoder layer with input grid (h, w) supplied as the
    given parity blocks: S[4 taps, n_blocks, h*w, rows_per_block]."""
    n_blk = len(block_pos)
    m_prev = block_pos[0].shape[0]
    S = np.zeros((4, n_blk, h * w, m_prev), np.float32)
    loc = {}
    for b, pos in enumerate(block_pos):
        for r, (hi, wi) in enumerate(pos):
            loc[(int(hi), int(wi))] = (b, r)
    for di in range(2):
        for dj in range(2):
            t = di * 2 + dj
            for i in range(h):
                for j in range(w):
                    hi, wi = i + di, j + dj
                    if hi < h and wi < w:
                        b, r = loc[(hi, wi)]
                        S[t, b, i * w + j, r] = 1.0
    return S


# ----------------------------------------------------------------------------
# Parameter init (PyTorch-like layouts) + one-time kernel-ready prep
# ----------------------------------------------------------------------------
def _init_raw_layer(key, c_in, c_out, transpose, has_bn):
    ks = jax.random.split(key, 6)
    w_shape = (c_in, c_out, 3, 3) if transpose else (c_out, c_in, 3, 3)
    w = 0.1 * jax.random.normal(ks[0], w_shape, jnp.float32)
    conv_b = 0.1 * jax.random.normal(ks[1], (c_out,), jnp.float32)
    if has_bn:
        gamma = 1.0 + 0.1 * jax.random.normal(ks[2], (c_out,), jnp.float32)
        beta = 0.1 * jax.random.normal(ks[3], (c_out,), jnp.float32)
        rmean = 0.1 * jax.random.normal(ks[4], (c_out,), jnp.float32)
        rvar = jax.random.uniform(ks[5], (c_out,), jnp.float32, 0.5, 1.5)
        scale = gamma / jnp.sqrt(rvar + _BN_EPS)
        bias = beta - rmean * scale + conv_b * scale
    else:
        scale = jnp.ones((c_out,), jnp.float32)
        bias = conv_b
    return w, scale, bias


def _prep_conv_taps(w, scale):
    # w: [C_out, C_in, 3, 3] -> [9, C_in, C_out] bf16, BN scale folded.
    c_out, c_in = w.shape[0], w.shape[1]
    wt = jnp.transpose(w, (2, 3, 1, 0)).reshape(9, c_in, c_out)
    return (wt * scale[None, None, :]).astype(jnp.bfloat16)


def _prep_convT_taps(w, scale):
    # w: [C_in, C_out, 3, 3] -> [9, C_in, C_out] bf16 sub-kernel taps (_DEC_TAPS order).
    mats = [w[:, :, kh, kw] * scale[None, :] for (_, _, kh, kw) in _DEC_TAPS]
    return jnp.stack(mats, 0).astype(jnp.bfloat16)


def init_cae_params(key, h=16, w=16):
    assert h % 16 == 0 and w % 16 == 0
    keys = jax.random.split(key, 8)

    enc, raw_enc = [], []
    hh, ww = h, w
    for i, (ci, co) in enumerate(_ENC_CH):
        wt, scale, bias = _init_raw_layer(keys[i], ci, co,
                                          transpose=False, has_bn=True)
        S, hh, ww = _enc_gather(hh, ww)
        enc.append({
            "s": jnp.asarray(S, jnp.bfloat16),
            "w": _prep_conv_taps(wt, scale),
            "b": bias.reshape(1, co).astype(jnp.float32),
        })
        raw_enc.append((wt, scale, bias))

    dec, raw_dec = [], []
    block_pos = [np.array([(i, j) for i in range(hh) for j in range(ww)],
                          np.int64)]
    for i, (ci, co) in enumerate(_DEC_CH):
        wt, scale, bias = _init_raw_layer(keys[4 + i], ci, co, transpose=True,
                                          has_bn=(i < len(_DEC_CH) - 1))
        S = _dec_gather(hh, ww, block_pos)
        dec.append({
            "s": jnp.asarray(S, jnp.bfloat16),
            "w": _prep_convT_taps(wt, scale),
            "b": bias.reshape(1, co).astype(jnp.float32),
        })
        raw_dec.append((wt, scale, bias))
        block_pos = _parity_block_pos(hh, ww)
        hh, ww = 2 * hh, 2 * ww

    return {"enc": enc, "dec": dec}, {"enc": raw_enc, "dec": raw_dec}


# ----------------------------------------------------------------------------
# The fused Pallas kernel: whole CAE forward for one batch sample per grid step
# ----------------------------------------------------------------------------
def _cae_kernel(x_ref, *refs):
    o_ref = refs[-1]
    p_refs = refs[:-1]

    y = x_ref[0].astype(jnp.bfloat16)                      # [H*W, 3]

    # Encoder: 4 x (Conv2d k3 s2 p1 + BN(eval) + ReLU) as 9 gather+weight matmuls.
    for l in range(4):
        s_ref, w_ref, b_ref = p_refs[3 * l: 3 * l + 3]
        acc = None
        for t in range(9):
            g = jnp.dot(s_ref[t], y,
                        preferred_element_type=jnp.float32).astype(jnp.bfloat16)
            d = jnp.dot(g, w_ref[t], preferred_element_type=jnp.float32)
            acc = d if acc is None else acc + d
        y = jnp.maximum(acc + b_ref[...], 0.0).astype(jnp.bfloat16)

    # Decoder: 4 x ConvTranspose2d(k3 s2 p1 op1) via stride^2 sub-kernels.
    # Activations carried as 4 parity blocks; interleave is folded into the
    # next layer's gather matrices (no transpose/reshape passes).
    blocks = [y]
    for l in range(4):
        s_ref, w_ref, b_ref = p_refs[12 + 3 * l: 15 + 3 * l]
        g = []
        for t in range(4):
            acc = None
            for b in range(len(blocks)):
                d = jnp.dot(s_ref[t, b], blocks[b],
                            preferred_element_type=jnp.float32)
                acc = d if acc is None else acc + d
            g.append(acc.astype(jnp.bfloat16))
        outs = [None] * 4
        for k, (p, t, _, _) in enumerate(_DEC_TAPS):
            d = jnp.dot(g[t], w_ref[k], preferred_element_type=jnp.float32)
            outs[p] = d if outs[p] is None else outs[p] + d
        if l < 3:
            blocks = [jnp.maximum(o + b_ref[...], 0.0).astype(jnp.bfloat16)
                      for o in outs]
        else:
            for p in range(4):
                o_ref[p] = jax.nn.sigmoid(outs[p] + b_ref[...])


def _const_spec(arr):
    zeros = (0,) * arr.ndim
    return pl.BlockSpec(tuple(arr.shape), lambda i: zeros)


def cae_forward(params, x):
    # x: [N, 3, H, W] (NCHW, matching PyTorch) -> [N, 3, H, W]
    n, c, h, w = x.shape
    x_flat = x.transpose(0, 2, 3, 1).reshape(n, h * w, c).astype(jnp.bfloat16)

    ops = [x_flat]
    specs = [pl.BlockSpec((1, h * w, c), lambda i: (i, 0, 0))]
    for layer in params["enc"] + params["dec"]:
        for name in ("s", "w", "b"):
            ops.append(layer[name])
            specs.append(_const_spec(layer[name]))

    m_last = (h // 2) * (w // 2)
    out = pl.pallas_call(
        _cae_kernel,
        grid=(n,),
        in_specs=specs,
        out_specs=pl.BlockSpec((4, m_last, 3), lambda i: (0, i, 0)),
        out_shape=jax.ShapeDtypeStruct((4, n * m_last, 3), jnp.float32),
        compiler_params=pltpu.CompilerParams(
            dimension_semantics=("parallel",)),
    )(*ops)

    # Boundary-only glue: un-interleave the final 4 parity blocks (~6 KB).
    out = out.reshape(2, 2, n, h // 2, w // 2, 3)
    out = out.transpose(2, 3, 0, 4, 1, 5).reshape(n, h, w, 3)
    return out.transpose(0, 3, 1, 2)


# ----------------------------------------------------------------------------
# Pure-JAX f32 reference (same folded BN math) for a correctness check
# ----------------------------------------------------------------------------
def cae_reference(raw, x):
    y = x.transpose(0, 2, 3, 1)                             # NHWC
    for w, scale, bias in raw["enc"]:
        k = w.transpose(2, 3, 1, 0)                         # HWIO
        y = jax.lax.conv_general_dilated(
            y, k, window_strides=(2, 2), padding=((1, 1), (1, 1)),
            dimension_numbers=("NHWC", "HWIO", "NHWC"))
        y = jnp.maximum(y * scale + bias, 0.0)
    for i, (w, scale, bias) in enumerate(raw["dec"]):
        k = w.transpose(2, 3, 0, 1)[::-1, ::-1, :, :]       # flipped, HWIO
        y = jax.lax.conv_general_dilated(
            y, k, window_strides=(1, 1), padding=((1, 2), (1, 2)),
            lhs_dilation=(2, 2),
            dimension_numbers=("NHWC", "HWIO", "NHWC"))
        y = y * scale + bias
        y = jax.nn.sigmoid(y) if i == 3 else jnp.maximum(y, 0.0)
    return y.transpose(0, 3, 1, 2)


if __name__ == "__main__":
    key = jax.random.PRNGKey(0)
    k_param, k_x = jax.random.split(key)
    params, raw = init_cae_params(k_param, h=16, w=16)
    x = jax.random.uniform(k_x, (2, 3, 16, 16), jnp.float32)

    out = jax.jit(cae_forward)(params, x)
    out = jax.block_until_ready(out)

    assert out.shape == (2, 3, 16, 16), out.shape
    assert out.dtype == jnp.float32
    assert bool(jnp.all(jnp.isfinite(out)))
    assert bool(jnp.all((out >= 0.0) & (out <= 1.0)))       # sigmoid range

    ref = cae_reference(raw, x)
    err = float(jnp.max(jnp.abs(out - ref)))
    assert err < 5e-2, f"max abs err vs f32 reference: {err}"

    print("KERNEL_OK")
</pallas_src>

<mosaic_0001>
module attributes {stable_mosaic.version = 11 : i64} {
  func.func @_cae_kernel(%arg0: i32, %arg1: memref<1x256x3xbf16, #tpu.memory_space<vmem>>, %arg2: memref<9x64x256xbf16, #tpu.memory_space<vmem>>, %arg3: memref<9x3x16xbf16, #tpu.memory_space<vmem>>, %arg4: memref<1x16xf32, #tpu.memory_space<vmem>>, %arg5: memref<9x16x64xbf16, #tpu.memory_space<vmem>>, %arg6: memref<9x16x32xbf16, #tpu.memory_space<vmem>>, %arg7: memref<1x32xf32, #tpu.memory_space<vmem>>, %arg8: memref<9x4x16xbf16, #tpu.memory_space<vmem>>, %arg9: memref<9x32x64xbf16, #tpu.memory_space<vmem>>, %arg10: memref<1x64xf32, #tpu.memory_space<vmem>>, %arg11: memref<9x1x4xbf16, #tpu.memory_space<vmem>>, %arg12: memref<9x64x128xbf16, #tpu.memory_space<vmem>>, %arg13: memref<1x128xf32, #tpu.memory_space<vmem>>, %arg14: memref<4x1x1x1xbf16, #tpu.memory_space<vmem>>, %arg15: memref<9x128x64xbf16, #tpu.memory_space<vmem>>, %arg16: memref<1x64xf32, #tpu.memory_space<vmem>>, %arg17: memref<4x4x4x1xbf16, #tpu.memory_space<vmem>>, %arg18: memref<9x64x32xbf16, #tpu.memory_space<vmem>>, %arg19: memref<1x32xf32, #tpu.memory_space<vmem>>, %arg20: memref<4x4x16x4xbf16, #tpu.memory_space<vmem>>, %arg21: memref<9x32x16xbf16, #tpu.memory_space<vmem>>, %arg22: memref<1x16xf32, #tpu.memory_space<vmem>>, %arg23: memref<4x4x64x16xbf16, #tpu.memory_space<vmem>>, %arg24: memref<9x16x3xbf16, #tpu.memory_space<vmem>>, %arg25: memref<1x3xf32, #tpu.memory_space<vmem>>, %arg26: memref<4x64x3xf32, #tpu.memory_space<vmem>>) attributes {dimension_semantics = [#tpu.dimension_semantics<parallel>], iteration_bounds = array<i64: 2>, scalar_prefetch = 0 : i64, scratch_operands = 0 : i64, tpu.core_type = #tpu.core_type<tc>, window_params = [{transform_indices = @transform_0, window_bounds = array<i64: 1, 256, 3>}, {pipeline_mode = #tpu.pipeline_mode<synchronous>, transform_indices = @transform_1, window_bounds = array<i64: 9, 64, 256>}, {pipeline_mode = #tpu.pipeline_mode<synchronous>, transform_indices = @transform_2, window_bounds = array<i64: 9, 3, 16>}, {pipeline_mode = #tpu.pipeline_mode<synchronous>, transform_indices = @transform_3, window_bounds = array<i64: 1, 16>}, {pipeline_mode = #tpu.pipeline_mode<synchronous>, transform_indices = @transform_4, window_bounds = array<i64: 9, 16, 64>}, {pipeline_mode = #tpu.pipeline_mode<synchronous>, transform_indices = @transform_5, window_bounds = array<i64: 9, 16, 32>}, {pipeline_mode = #tpu.pipeline_mode<synchronous>, transform_indices = @transform_6, window_bounds = array<i64: 1, 32>}, {pipeline_mode = #tpu.pipeline_mode<synchronous>, transform_indices = @transform_7, window_bounds = array<i64: 9, 4, 16>}, {pipeline_mode = #tpu.pipeline_mode<synchronous>, transform_indices = @transform_8, window_bounds = array<i64: 9, 32, 64>}, {pipeline_mode = #tpu.pipeline_mode<synchronous>, transform_indices = @transform_9, window_bounds = array<i64: 1, 64>}, {pipeline_mode = #tpu.pipeline_mode<synchronous>, transform_indices = @transform_10, window_bounds = array<i64: 9, 1, 4>}, {pipeline_mode = #tpu.pipeline_mode<synchronous>, transform_indices = @transform_11, window_bounds = array<i64: 9, 64, 128>}, {pipeline_mode = #tpu.pipeline_mode<synchronous>, transform_indices = @transform_12, window_bounds = array<i64: 1, 128>}, {pipeline_mode = #tpu.pipeline_mode<synchronous>, transform_indices = @transform_13, window_bounds = array<i64: 4, 1, 1, 1>}, {pipeline_mode = #tpu.pipeline_mode<synchronous>, transform_indices = @transform_14, window_bounds = array<i64: 9, 128, 64>}, {pipeline_mode = #tpu.pipeline_mode<synchronous>, transform_indices = @transform_15, window_bounds = array<i64: 1, 64>}, {pipeline_mode = #tpu.pipeline_mode<synchronous>, transform_indices = @transform_16, window_bounds = array<i64: 4, 4, 4, 1>}, {pipeline_mode = #tpu.pipeline_mode<synchronous>, transform_indices = @transform_17, window_bounds = array<i64: 9, 64, 32>}, {pipeline_mode = #tpu.pipeline_mode<synchronous>, transform_indices = @transform_18, window_bounds = array<i64: 1, 32>}, {pipeline_mode = #tpu.pipeline_mode<synchronous>, transform_indices = @transform_19, window_bounds = array<i64: 4, 4, 16, 4>}, {pipeline_mode = #tpu.pipeline_mode<synchronous>, transform_indices = @transform_20, window_bounds = array<i64: 9, 32, 16>}, {pipeline_mode = #tpu.pipeline_mode<synchronous>, transform_indices = @transform_21, window_bounds = array<i64: 1, 16>}, {pipeline_mode = #tpu.pipeline_mode<synchronous>, transform_indices = @transform_22, window_bounds = array<i64: 4, 4, 64, 16>}, {pipeline_mode = #tpu.pipeline_mode<synchronous>, transform_indices = @transform_23, window_bounds = array<i64: 9, 16, 3>}, {pipeline_mode = #tpu.pipeline_mode<synchronous>, transform_indices = @transform_24, window_bounds = array<i64: 1, 3>}, {transform_indices = @transform_25, window_bounds = array<i64: 4, 64, 3>}]} {
    %c0 = arith.constant 0 : index
    %c0_0 = arith.constant 0 : index
    %c0_1 = arith.constant 0 : index
    %0 = vector.load %arg1[%c0, %c0_0, %c0_1] : memref<1x256x3xbf16, #tpu.memory_space<vmem>>, vector<1x256x3xbf16>
    %1 = vector.shape_cast %0 : vector<1x256x3xbf16> to vector<256x3xbf16>
    %c0_2 = arith.constant 0 : index
    %c0_3 = arith.constant 0 : index
    %c0_4 = arith.constant 0 : index
    %2 = vector.load %arg2[%c0_2, %c0_3, %c0_4] : memref<9x64x256xbf16, #tpu.memory_space<vmem>>, vector<1x64x256xbf16>
    %3 = vector.shape_cast %2 : vector<1x64x256xbf16> to vector<64x256xbf16>
    %cst = arith.constant dense<0.000000e+00> : vector<64x3xf32>
    %4 = tpu.matmul %3, %1, %cst {dimension_numbers = #tpu.dot_dimension_numbers<[1], [0], [0], [1], [0, 0, 1, 1], [], []>} : vector<64x256xbf16>, vector<256x3xbf16>, vector<64x3xf32> -> vector<64x3xf32>
    %5 = arith.truncf %4 : vector<64x3xf32> to vector<64x3xbf16>
    %c0_5 = arith.constant 0 : index
    %c0_6 = arith.constant 0 : index
    %c0_7 = arith.constant 0 : index
    %6 = vector.load %arg3[%c0_5, %c0_6, %c0_7] : memref<9x3x16xbf16, #tpu.memory_space<vmem>>, vector<1x3x16xbf16>
    %7 = vector.shape_cast %6 : vector<1x3x16xbf16> to vector<3x16xbf16>
    %cst_8 = arith.constant dense<0.000000e+00> : vector<64x16xf32>
    %8 = tpu.matmul %5, %7, %cst_8 {dimension_numbers = #tpu.dot_dimension_numbers<[1], [0], [0], [1], [0, 0, 1, 1], [], []>} : vector<64x3xbf16>, vector<3x16xbf16>, vector<64x16xf32> -> vector<64x16xf32>
    %c1 = arith.constant 1 : index
    %c0_9 = arith.constant 0 : index
    %c0_10 = arith.constant 0 : index
    %9 = vector.load %arg2[%c1, %c0_9, %c0_10] : memref<9x64x256xbf16, #tpu.memory_space<vmem>>, vector<1x64x256xbf16>
    %10 = vector.shape_cast %9 : vector<1x64x256xbf16> to vector<64x256xbf16>
    %cst_11 = arith.constant dense<0.000000e+00> : vector<64x3xf32>
    %11 = tpu.matmul %10, %1, %cst_11 {dimension_numbers = #tpu.dot_dimension_numbers<[1], [0], [0], [1], [0, 0, 1, 1], [], []>} : vector<64x256xbf16>, vector<256x3xbf16>, vector<64x3xf32> -> vector<64x3xf32>
    %12 = arith.truncf %11 : vector<64x3xf32> to vector<64x3xbf16>
    %c1_12 = arith.constant 1 : index
    %c0_13 = arith.constant 0 : index
    %c0_14 = arith.constant 0 : index
    %13 = vector.load %arg3[%c1_12, %c0_13, %c0_14] : memref<9x3x16xbf16, #tpu.memory_space<vmem>>, vector<1x3x16xbf16>
    %14 = vector.shape_cast %13 : vector<1x3x16xbf16> to vector<3x16xbf16>
    %cst_15 = arith.constant dense<0.000000e+00> : vector<64x16xf32>
    %15 = tpu.matmul %12, %14, %cst_15 {dimension_numbers = #tpu.dot_dimension_numbers<[1], [0], [0], [1], [0, 0, 1, 1], [], []>} : vector<64x3xbf16>, vector<3x16xbf16>, vector<64x16xf32> -> vector<64x16xf32>
    %16 = arith.addf %8, %15 : vector<64x16xf32>
    %c2 = arith.constant 2 : index
    %c0_16 = arith.constant 0 : index
    %c0_17 = arith.constant 0 : index
    %17 = vector.load %arg2[%c2, %c0_16, %c0_17] : memref<9x64x256xbf16, #tpu.memory_space<vmem>>, vector<1x64x256xbf16>
    %18 = vector.shape_cast %17 : vector<1x64x256xbf16> to vector<64x256xbf16>
    %cst_18 = arith.constant dense<0.000000e+00> : vector<64x3xf32>
    %19 = tpu.matmul %18, %1, %cst_18 {dimension_numbers = #tpu.dot_dimension_numbers<[1], [0], [0], [1], [0, 0, 1, 1], [], []>} : vector<64x256xbf16>, vector<256x3xbf16>, vector<64x3xf32> -> vector<64x3xf32>
    %20 = arith.truncf %19 : vector<64x3xf32> to vector<64x3xbf16>
    %c2_19 = arith.constant 2 : index
    %c0_20 = arith.constant 0 : index
    %c0_21 = arith.constant 0 : index
    %21 = vector.load %arg3[%c2_19, %c0_20, %c0_21] : memref<9x3x16xbf16, #tpu.memory_space<vmem>>, vector<1x3x16xbf16>
    %22 = vector.shape_cast %21 : vector<1x3x16xbf16> to vector<3x16xbf16>
    %cst_22 = arith.constant dense<0.000000e+00> : vector<64x16xf32>
    %23 = tpu.matmul %20, %22, %cst_22 {dimension_numbers = #tpu.dot_dimension_numbers<[1], [0], [0], [1], [0, 0, 1, 1], [], []>} : vector<64x3xbf16>, vector<3x16xbf16>, vector<64x16xf32> -> vector<64x16xf32>
    %24 = arith.addf %16, %23 : vector<64x16xf32>
    %c3 = arith.constant 3 : index
    %c0_23 = arith.constant 0 : index
    %c0_24 = arith.constant 0 : index
    %25 = vector.load %arg2[%c3, %c0_23, %c0_24] : memref<9x64x256xbf16, #tpu.memory_space<vmem>>, vector<1x64x256xbf16>
    %26 = vector.shape_cast %25 : vector<1x64x256xbf16> to vector<64x256xbf16>
    %cst_25 = arith.constant dense<0.000000e+00> : vector<64x3xf32>
    %27 = tpu.matmul %26, %1, %cst_25 {dimension_numbers = #tpu.dot_dimension_numbers<[1], [0], [0], [1], [0, 0, 1, 1], [], []>} : vector<64x256xbf16>, vector<256x3xbf16>, vector<64x3xf32> -> vector<64x3xf32>
    %28 = arith.truncf %27 : vector<64x3xf32> to vector<64x3xbf16>
    %c3_26 = arith.constant 3 : index
    %c0_27 = arith.constant 0 : index
    %c0_28 = arith.constant 0 : index
    %29 = vector.load %arg3[%c3_26, %c0_27, %c0_28] : memref<9x3x16xbf16, #tpu.memory_space<vmem>>, vector<1x3x16xbf16>
    %30 = vector.shape_cast %29 : vector<1x3x16xbf16> to vector<3x16xbf16>
    %cst_29 = arith.constant dense<0.000000e+00> : vector<64x16xf32>
    %31 = tpu.matmul %28, %30, %cst_29 {dimension_numbers = #tpu.dot_dimension_numbers<[1], [0], [0], [1], [0, 0, 1, 1], [], []>} : vector<64x3xbf16>, vector<3x16xbf16>, vector<64x16xf32> -> vector<64x16xf32>
    %32 = arith.addf %24, %31 : vector<64x16xf32>
    %c4 = arith.constant 4 : index
    %c0_30 = arith.constant 0 : index
    %c0_31 = arith.constant 0 : index
    %33 = vector.load %arg2[%c4, %c0_30, %c0_31] : memref<9x64x256xbf16, #tpu.memory_space<vmem>>, vector<1x64x256xbf16>
    %34 = vector.shape_cast %33 : vector<1x64x256xbf16> to vector<64x256xbf16>
    %cst_32 = arith.constant dense<0.000000e+00> : vector<64x3xf32>
    %35 = tpu.matmul %34, %1, %cst_32 {dimension_numbers = #tpu.dot_dimension_numbers<[1], [0], [0], [1], [0, 0, 1, 1], [], []>} : vector<64x256xbf16>, vector<256x3xbf16>, vector<64x3xf32> -> vector<64x3xf32>
    %36 = arith.truncf %35 : vector<64x3xf32> to vector<64x3xbf16>
    %c4_33 = arith.constant 4 : index
    %c0_34 = arith.constant 0 : index
    %c0_35 = arith.constant 0 : index
    %37 = vector.load %arg3[%c4_33, %c0_34, %c0_35] : memref<9x3x16xbf16, #tpu.memory_space<vmem>>, vector<1x3x16xbf16>
    %38 = vector.shape_cast %37 : vector<1x3x16xbf16> to vector<3x16xbf16>
    %cst_36 = arith.constant dense<0.000000e+00> : vector<64x16xf32>
    %39 = tpu.matmul %36, %38, %cst_36 {dimension_numbers = #tpu.dot_dimension_numbers<[1], [0], [0], [1], [0, 0, 1, 1], [], []>} : vector<64x3xbf16>, vector<3x16xbf16>, vector<64x16xf32> -> vector<64x16xf32>
    %40 = arith.addf %32, %39 : vector<64x16xf32>
    %c5 = arith.constant 5 : index
    %c0_37 = arith.constant 0 : index
    %c0_38 = arith.constant 0 : index
    %41 = vector.load %arg2[%c5, %c0_37, %c0_38] : memref<9x64x256xbf16, #tpu.memory_space<vmem>>, vector<1x64x256xbf16>
    %42 = vector.shape_cast %41 : vector<1x64x256xbf16> to vector<64x256xbf16>
    %cst_39 = arith.constant dense<0.000000e+00> : vector<64x3xf32>
    %43 = tpu.matmul %42, %1, %cst_39 {dimension_numbers = #tpu.dot_dimension_numbers<[1], [0], [0], [1], [0, 0, 1, 1], [], []>} : vector<64x256xbf16>, vector<256x3xbf16>, vector<64x3xf32> -> vector<64x3xf32>
    %44 = arith.truncf %43 : vector<64x3xf32> to vector<64x3xbf16>
    %c5_40 = arith.constant 5 : index
    %c0_41 = arith.constant 0 : index
    %c0_42 = arith.constant 0 : index
    %45 = vector.load %arg3[%c5_40, %c0_41, %c0_42] : memref<9x3x16xbf16, #tpu.memory_space<vmem>>, vector<1x3x16xbf16>
    %46 = vector.shape_cast %45 : vector<1x3x16xbf16> to vector<3x16xbf16>
    %cst_43 = arith.constant dense<0.000000e+00> : vector<64x16xf32>
    %47 = tpu.matmul %44, %46, %cst_43 {dimension_numbers = #tpu.dot_dimension_numbers<[1], [0], [0], [1], [0, 0, 1, 1], [], []>} : vector<64x3xbf16>, vector<3x16xbf16>, vector<64x16xf32> -> vector<64x16xf32>
    %48 = arith.addf %40, %47 : vector<64x16xf32>
    %c6 = arith.constant 6 : index
    %c0_44 = arith.constant 0 : index
    %c0_45 = arith.constant 0 : index
    %49 = vector.load %arg2[%c6, %c0_44, %c0_45] : memref<9x64x256xbf16, #tpu.memory_space<vmem>>, vector<1x64x256xbf16>
    %50 = vector.shape_cast %49 : vector<1x64x256xbf16> to vector<64x256xbf16>
    %cst_46 = arith.constant dense<0.000000e+00> : vector<64x3xf32>
    %51 = tpu.matmul %50, %1, %cst_46 {dimension_numbers = #tpu.dot_dimension_numbers<[1], [0], [0], [1], [0, 0, 1, 1], [], []>} : vector<64x256xbf16>, vector<256x3xbf16>, vector<64x3xf32> -> vector<64x3xf32>
    %52 = arith.truncf %51 : vector<64x3xf32> to vector<64x3xbf16>
    %c6_47 = arith.constant 6 : index
    %c0_48 = arith.constant 0 : index
    %c0_49 = arith.constant 0 : index
    %53 = vector.load %arg3[%c6_47, %c0_48, %c0_49] : memref<9x3x16xbf16, #tpu.memory_space<vmem>>, vector<1x3x16xbf16>
    %54 = vector.shape_cast %53 : vector<1x3x16xbf16> to vector<3x16xbf16>
    %cst_50 = arith.constant dense<0.000000e+00> : vector<64x16xf32>
    %55 = tpu.matmul %52, %54, %cst_50 {dimension_numbers = #tpu.dot_dimension_numbers<[1], [0], [0], [1], [0, 0, 1, 1], [], []>} : vector<64x3xbf16>, vector<3x16xbf16>, vector<64x16xf32> -> vector<64x16xf32>
    %56 = arith.addf %48, %55 : vector<64x16xf32>
    %c7 = arith.constant 7 : index
    %c0_51 = arith.constant 0 : index
    %c0_52 = arith.constant 0 : index
    %57 = vector.load %arg2[%c7, %c0_51, %c0_52] : memref<9x64x256xbf16, #tpu.memory_space<vmem>>, vector<1x64x256xbf16>
    %58 = vector.shape_cast %57 : vector<1x64x256xbf16> to vector<64x256xbf16>
    %cst_53 = arith.constant dense<0.000000e+00> : vector<64x3xf32>
    %59 = tpu.matmul %58, %1, %cst_53 {dimension_numbers = #tpu.dot_dimension_numbers<[1], [0], [0], [1], [0, 0, 1, 1], [], []>} : vector<64x256xbf16>, vector<256x3xbf16>, vector<64x3xf32> -> vector<64x3xf32>
    %60 = arith.truncf %59 : vector<64x3xf32> to vector<64x3xbf16>
    %c7_54 = arith.constant 7 : index
    %c0_55 = arith.constant 0 : index
    %c0_56 = arith.constant 0 : index
    %61 = vector.load %arg3[%c7_54, %c0_55, %c0_56] : memref<9x3x16xbf16, #tpu.memory_space<vmem>>, vector<1x3x16xbf16>
    %62 = vector.shape_cast %61 : vector<1x3x16xbf16> to vector<3x16xbf16>
    %cst_57 = arith.constant dense<0.000000e+00> : vector<64x16xf32>
    %63 = tpu.matmul %60, %62, %cst_57 {dimension_numbers = #tpu.dot_dimension_numbers<[1], [0], [0], [1], [0, 0, 1, 1], [], []>} : vector<64x3xbf16>, vector<3x16xbf16>, vector<64x16xf32> -> vector<64x16xf32>
    %64 = arith.addf %56, %63 : vector<64x16xf32>
    %c8 = arith.constant 8 : index
    %c0_58 = arith.constant 0 : index
    %c0_59 = arith.constant 0 : index
    %65 = vector.load %arg2[%c8, %c0_58, %c0_59] : memref<9x64x256xbf16, #tpu.memory_space<vmem>>, vector<1x64x256xbf16>
    %66 = vector.shape_cast %65 : vector<1x64x256xbf16> to vector<64x256xbf16>
    %cst_60 = arith.constant dense<0.000000e+00> : vector<64x3xf32>
    %67 = tpu.matmul %66, %1, %cst_60 {dimension_numbers = #tpu.dot_dimension_numbers<[1], [0], [0], [1], [0, 0, 1, 1], [], []>} : vector<64x256xbf16>, vector<256x3xbf16>, vector<64x3xf32> -> vector<64x3xf32>
    %68 = arith.truncf %67 : vector<64x3xf32> to vector<64x3xbf16>
    %c8_61 = arith.constant 8 : index
    %c0_62 = arith.constant 0 : index
    %c0_63 = arith.constant 0 : index
    %69 = vector.load %arg3[%c8_61, %c0_62, %c0_63] : memref<9x3x16xbf16, #tpu.memory_space<vmem>>, vector<1x3x16xbf16>
    %70 = vector.shape_cast %69 : vector<1x3x16xbf16> to vector<3x16xbf16>
    %cst_64 = arith.constant dense<0.000000e+00> : vector<64x16xf32>
    %71 = tpu.matmul %68, %70, %cst_64 {dimension_numbers = #tpu.dot_dimension_numbers<[1], [0], [0], [1], [0, 0, 1, 1], [], []>} : vector<64x3xbf16>, vector<3x16xbf16>, vector<64x16xf32> -> vector<64x16xf32>
    %72 = arith.addf %64, %71 : vector<64x16xf32>
    %c0_65 = arith.constant 0 : index
    %c0_66 = arith.constant 0 : index
    %73 = vector.load %arg4[%c0_65, %c0_66] : memref<1x16xf32, #tpu.memory_space<vmem>>, vector<1x16xf32>
    %74 = vector.broadcast %73 : vector<1x16xf32> to vector<64x16xf32>
    %75 = arith.addf %72, %74 : vector<64x16xf32>
    %cst_67 = arith.constant 0.000000e+00 : f32
    %76 = vector.broadcast %cst_67 : f32 to vector<64x16xf32>
    %77 = arith.maximumf %75, %76 : vector<64x16xf32>
    %78 = arith.truncf %77 : vector<64x16xf32> to vector<64x16xbf16>
    %c0_68 = arith.constant 0 : index
    %c0_69 = arith.constant 0 : index
    %c0_70 = arith.constant 0 : index
    %79 = vector.load %arg5[%c0_68, %c0_69, %c0_70] : memref<9x16x64xbf16, #tpu.memory_space<vmem>>, vector<1x16x64xbf16>
    %80 = vector.shape_cast %79 : vector<1x16x64xbf16> to vector<16x64xbf16>
    %cst_71 = arith.constant dense<0.000000e+00> : vector<16x16xf32>
    %81 = tpu.matmul %80, %78, %cst_71 {dimension_numbers = #tpu.dot_dimension_numbers<[1], [0], [0], [1], [0, 0, 1, 1], [], []>} : vector<16x64xbf16>, vector<64x16xbf16>, vector<16x16xf32> -> vector<16x16xf32>
    %82 = arith.truncf %81 : vector<16x16xf32> to vector<16x16xbf16>
    %c0_72 = arith.constant 0 : index
    %c0_73 = arith.constant 0 : index
    %c0_74 = arith.constant 0 : index
    %83 = vector.load %arg6[%c0_72, %c0_73, %c0_74] : memref<9x16x32xbf16, #tpu.memory_space<vmem>>, vector<1x16x32xbf16>
    %84 = vector.shape_cast %83 : vector<1x16x32xbf16> to vector<16x32xbf16>
    %cst_75 = arith.constant dense<0.000000e+00> : vector<16x32xf32>
    %85 = tpu.matmul %82, %84, %cst_75 {dimension_numbers = #tpu.dot_dimension_numbers<[1], [0], [0], [1], [0, 0, 1, 1], [], []>} : vector<16x16xbf16>, vector<16x32xbf16>, vector<16x32xf32> -> vector<16x32xf32>
    %c1_76 = arith.constant 1 : index
    %c0_77 = arith.constant 0 : index
    %c0_78 = arith.constant 0 : index
    %86 = vector.load %arg5[%c1_76, %c0_77, %c0_78] : memref<9x16x64xbf16, #tpu.memory_space<vmem>>, vector<1x16x64xbf16>
    %87 = vector.shape_cast %86 : vector<1x16x64xbf16> to vector<16x64xbf16>
    %cst_79 = arith.constant dense<0.000000e+00> : vector<16x16xf32>
    %88 = tpu.matmul %87, %78, %cst_79 {dimension_numbers = #tpu.dot_dimension_numbers<[1], [0], [0], [1], [0, 0, 1, 1], [], []>} : vector<16x64xbf16>, vector<64x16xbf16>, vector<16x16xf32> -> vector<16x16xf32>
    %89 = arith.truncf %88 : vector<16x16xf32> to vector<16x16xbf16>
    %c1_80 = arith.constant 1 : index
    %c0_81 = arith.constant 0 : index
    %c0_82 = arith.constant 0 : index
    %90 = vector.load %arg6[%c1_80, %c0_81, %c0_82] : memref<9x16x32xbf16, #tpu.memory_space<vmem>>, vector<1x16x32xbf16>
    %91 = vector.shape_cast %90 : vector<1x16x32xbf16> to vector<16x32xbf16>
    %cst_83 = arith.constant dense<0.000000e+00> : vector<16x32xf32>
    %92 = tpu.matmul %89, %91, %cst_83 {dimension_numbers = #tpu.dot_dimension_numbers<[1], [0], [0], [1], [0, 0, 1, 1], [], []>} : vector<16x16xbf16>, vector<16x32xbf16>, vector<16x32xf32> -> vector<16x32xf32>
    %93 = arith.addf %85, %92 : vector<16x32xf32>
    %c2_84 = arith.constant 2 : index
    %c0_85 = arith.constant 0 : index
    %c0_86 = arith.constant 0 : index
    %94 = vector.load %arg5[%c2_84, %c0_85, %c0_86] : memref<9x16x64xbf16, #tpu.memory_space<vmem>>, vector<1x16x64xbf16>
    %95 = vector.shape_cast %94 : vector<1x16x64xbf16> to vector<16x64xbf16>
    %cst_87 = arith.constant dense<0.000000e+00> : vector<16x16xf32>
    %96 = tpu.matmul %95, %78, %cst_87 {dimension_numbers = #tpu.dot_dimension_numbers<[1], [0], [0], [1], [0, 0, 1, 1], [], []>} : vector<16x64xbf16>, vector<64x16xbf16>, vector<16x16xf32> -> vector<16x16xf32>
    %97 = arith.truncf %96 : vector<16x16xf32> to vector<16x16xbf16>
    %c2_88 = arith.constant 2 : index
    %c0_89 = arith.constant 0 : index
    %c0_90 = arith.constant 0 : index
    %98 = vector.load %arg6[%c2_88, %c0_89, %c0_90] : memref<9x16x32xbf16, #tpu.memory_space<vmem>>, vector<1x16x32xbf16>
    %99 = vector.shape_cast %98 : vector<1x16x32xbf16> to vector<16x32xbf16>
    %cst_91 = arith.constant dense<0.000000e+00> : vector<16x32xf32>
    %100 = tpu.matmul %97, %99, %cst_91 {dimension_numbers = #tpu.dot_dimension_numbers<[1], [0], [0], [1], [0, 0, 1, 1], [], []>} : vector<16x16xbf16>, vector<16x32xbf16>, vector<16x32xf32> -> vector<16x32xf32>
    %101 = arith.addf %93, %100 : vector<16x32xf32>
    %c3_92 = arith.constant 3 : index
    %c0_93 = arith.constant 0 : index
    %c0_94 = arith.constant 0 : index
    %102 = vector.load %arg5[%c3_92, %c0_93, %c0_94] : memref<9x16x64xbf16, #tpu.memory_space<vmem>>, vector<1x16x64xbf16>
    %103 = vector.shape_cast %102 : vector<1x16x64xbf16> to vector<16x64xbf16>
    %cst_95 = arith.constant dense<0.000000e+00> : vector<16x16xf32>
    %104 = tpu.matmul %103, %78, %cst_95 {dimension_numbers = #tpu.dot_dimension_numbers<[1], [0], [0], [1], [0, 0, 1, 1], [], []>} : vector<16x64xbf16>, vector<64x16xbf16>, vector<16x16xf32> -> vector<16x16xf32>
    %105 = arith.truncf %104 : vector<16x16xf32> to vector<16x16xbf16>
    %c3_96 = arith.constant 3 : index
    %c0_97 = arith.constant 0 : index
    %c0_98 = arith.constant 0 : index
    %106 = vector.load %arg6[%c3_96, %c0_97, %c0_98] : memref<9x16x32xbf16, #tpu.memory_space<vmem>>, vector<1x16x32xbf16>
    %107 = vector.shape_cast %106 : vector<1x16x32xbf16> to vector<16x32xbf16>
    %cst_99 = arith.constant dense<0.000000e+00> : vector<16x32xf32>
    %108 = tpu.matmul %105, %107, %cst_99 {dimension_numbers = #tpu.dot_dimension_numbers<[1], [0], [0], [1], [0, 0, 1, 1], [], []>} : vector<16x16xbf16>, vector<16x32xbf16>, vector<16x32xf32> -> vector<16x32xf32>
    %109 = arith.addf %101, %108 : vector<16x32xf32>
    %c4_100 = arith.constant 4 : index
    %c0_101 = arith.constant 0 : index
    %c0_102 = arith.constant 0 : index
    %110 = vector.load %arg5[%c4_100, %c0_101, %c0_102] : memref<9x16x64xbf16, #tpu.memory_space<vmem>>, vector<1x16x64xbf16>
    %111 = vector.shape_cast %110 : vector<1x16x64xbf16> to vector<16x64xbf16>
    %cst_103 = arith.constant dense<0.000000e+00> : vector<16x16xf32>
    %112 = tpu.matmul %111, %78, %cst_103 {dimension_numbers = #tpu.dot_dimension_numbers<[1], [0], [0], [1], [0, 0, 1, 1], [], []>} : vector<16x64xbf16>, vector<64x16xbf16>, vector<16x16xf32> -> vector<16x16xf32>
    %113 = arith.truncf %112 : vector<16x16xf32> to vector<16x16xbf16>
    %c4_104 = arith.constant 4 : index
    %c0_105 = arith.constant 0 : index
    %c0_106 = arith.constant 0 : index
    %114 = vector.load %arg6[%c4_104, %c0_105, %c0_106] : memref<9x16x32xbf16, #tpu.memory_space<vmem>>, vector<1x16x32xbf16>
    %115 = vector.shape_cast %114 : vector<1x16x32xbf16> to vector<16x32xbf16>
    %cst_107 = arith.constant dense<0.000000e+00> : vector<16x32xf32>
    %116 = tpu.matmul %113, %115, %cst_107 {dimension_numbers = #tpu.dot_dimension_numbers<[1], [0], [0], [1], [0, 0, 1, 1], [], []>} : vector<16x16xbf16>, vector<16x32xbf16>, vector<16x32xf32> -> vector<16x32xf32>
    %117 = arith.addf %109, %116 : vector<16x32xf32>
    %c5_108 = arith.constant 5 : index
    %c0_109 = arith.constant 0 : index
    %c0_110 = arith.constant 0 : index
    %118 = vector.load %arg5[%c5_108, %c0_109, %c0_110] : memref<9x16x64xbf16, #tpu.memory_space<vmem>>, vector<1x16x64xbf16>
    %119 = vector.shape_cast %118 : vector<1x16x64xbf16> to vector<16x64xbf16>
    %cst_111 = arith.constant dense<0.000000e+00> : vector<16x16xf32>
    %120 = tpu.matmul %119, %78, %cst_111 {dimension_numbers = #tpu.dot_dimension_numbers<[1], [0], [0], [1], [0, 0, 1, 1], [], []>} : vector<16x64xbf16>, vector<64x16xbf16>, vector<16x16xf32> -> vector<16x16xf32>
    %121 = arith.truncf %120 : vector<16x16xf32> to vector<16x16xbf16>
    %c5_112 = arith.constant 5 : index
    %c0_113 = arith.constant 0 : index
    %c0_114 = arith.constant 0 : index
    %122 = vector.load %arg6[%c5_112, %c0_113, %c0_114] : memref<9x16x32xbf16, #tpu.memory_space<vmem>>, vector<1x16x32xbf16>
    %123 = vector.shape_cast %122 : vector<1x16x32xbf16> to vector<16x32xbf16>
    %cst_115 = arith.constant dense<0.000000e+00> : vector<16x32xf32>
    %124 = tpu.matmul %121, %123, %cst_115 {dimension_numbers = #tpu.dot_dimension_numbers<[1], [0], [0], [1], [0, 0, 1, 1], [], []>} : vector<16x16xbf16>, vector<16x32xbf16>, vector<16x32xf32> -> vector<16x32xf32>
    %125 = arith.addf %117, %124 : vector<16x32xf32>
    %c6_116 = arith.constant 6 : index
    %c0_117 = arith.constant 0 : index
    %c0_118 = arith.constant 0 : index
    %126 = vector.load %arg5[%c6_116, %c0_117, %c0_118] : memref<9x16x64xbf16, #tpu.memory_space<vmem>>, vector<1x16x64xbf16>
    %127 = vector.shape_cast %126 : vector<1x16x64xbf16> to vector<16x64xbf16>
    %cst_119 = arith.constant dense<0.000000e+00> : vector<16x16xf32>
    %128 = tpu.matmul %127, %78, %cst_119 {dimension_numbers = #tpu.dot_dimension_numbers<[1], [0], [0], [1], [0, 0, 1, 1], [], []>} : vector<16x64xbf16>, vector<64x16xbf16>, vector<16x16xf32> -> vector<16x16xf32>
    %129 = arith.truncf %128 : vector<16x16xf32> to vector<16x16xbf16>
    %c6_120 = arith.constant 6 : index
    %c0_121 = arith.constant 0 : index
    %c0_122 = arith.constant 0 : index
    %130 = vector.load %arg6[%c6_120, %c0_121, %c0_122] : memref<9x16x32xbf16, #tpu.memory_space<vmem>>, vector<1x16x32xbf16>
    %131 = vector.shape_cast %130 : vector<1x16x32xbf16> to vector<16x32xbf16>
    %cst_123 = arith.constant dense<0.000000e+00> : vector<16x32xf32>
    %132 = tpu.matmul %129, %131, %cst_123 {dimension_numbers = #tpu.dot_dimension_numbers<[1], [0], [0], [1], [0, 0, 1, 1], [], []>} : vector<16x16xbf16>, vector<16x32xbf16>, vector<16x32xf32> -> vector<16x32xf32>
    %133 = arith.addf %125, %132 : vector<16x32xf32>
    %c7_124 = arith.constant 7 : index
    %c0_125 = arith.constant 0 : index
    %c0_126 = arith.constant 0 : index
    %134 = vector.load %arg5[%c7_124, %c0_125, %c0_126] : memref<9x16x64xbf16, #tpu.memory_space<vmem>>, vector<1x16x64xbf16>
    %135 = vector.shape_cast %134 : vector<1x16x64xbf16> to vector<16x64xbf16>
    %cst_127 = arith.constant dense<0.000000e+00> : vector<16x16xf32>
    %136 = tpu.matmul %135, %78, %cst_127 {dimension_numbers = #tpu.dot_dimension_numbers<[1], [0], [0], [1], [0, 0, 1, 1], [], []>} : vector<16x64xbf16>, vector<64x16xbf16>, vector<16x16xf32> -> vector<16x16xf32>
    %137 = arith.truncf %136 : vector<16x16xf32> to vector<16x16xbf16>
    %c7_128 = arith.constant 7 : index
    %c0_129 = arith.constant 0 : index
    %c0_130 = arith.constant 0 : index
    %138 = vector.load %arg6[%c7_128, %c0_129, %c0_130] : memref<9x16x32xbf16, #tpu.memory_space<vmem>>, vector<1x16x32xbf16>
    %139 = vector.shape_cast %138 : vector<1x16x32xbf16> to vector<16x32xbf16>
    %cst_131 = arith.constant dense<0.000000e+00> : vector<16x32xf32>
    %140 = tpu.matmul %137, %139, %cst_131 {dimension_numbers = #tpu.dot_dimension_numbers<[1], [0], [0], [1], [0, 0, 1, 1], [], []>} : vector<16x16xbf16>, vector<16x32xbf16>, vector<16x32xf32> -> vector<16x32xf32>
    %141 = arith.addf %133, %140 : vector<16x32xf32>
    %c8_132 = arith.constant 8 : index
    %c0_133 = arith.constant 0 : index
    %c0_134 = arith.constant 0 : index
    %142 = vector.load %arg5[%c8_132, %c0_133, %c0_134] : memref<9x16x64xbf16, #tpu.memory_space<vmem>>, vector<1x16x64xbf16>
    %143 = vector.shape_cast %142 : vector<1x16x64xbf16> to vector<16x64xbf16>
    %cst_135 = arith.constant dense<0.000000e+00> : vector<16x16xf32>
    %144 = tpu.matmul %143, %78, %cst_135 {dimension_numbers = #tpu.dot_dimension_numbers<[1], [0], [0], [1], [0, 0, 1, 1], [], []>} : vector<16x64xbf16>, vector<64x16xbf16>, vector<16x16xf32> -> vector<16x16xf32>
    %145 = arith.truncf %144 : vector<16x16xf32> to vector<16x16xbf16>
    %c8_136 = arith.constant 8 : index
    %c0_137 = arith.constant 0 : index
    %c0_138 = arith.constant 0 : index
    %146 = vector.load %arg6[%c8_136, %c0_137, %c0_138] : memref<9x16x32xbf16, #tpu.memory_space<vmem>>, vector<1x16x32xbf16>
    %147 = vector.shape_cast %146 : vector<1x16x32xbf16> to vector<16x32xbf16>
    %cst_139 = arith.constant dense<0.000000e+00> : vector<16x32xf32>
    %148 = tpu.matmul %145, %147, %cst_139 {dimension_numbers = #tpu.dot_dimension_numbers<[1], [0], [0], [1], [0, 0, 1, 1], [], []>} : vector<16x16xbf16>, vector<16x32xbf16>, vector<16x32xf32> -> vector<16x32xf32>
    %149 = arith.addf %141, %148 : vector<16x32xf32>
    %c0_140 = arith.constant 0 : index
    %c0_141 = arith.constant 0 : index
    %150 = vector.load %arg7[%c0_140, %c0_141] : memref<1x32xf32, #tpu.memory_space<vmem>>, vector<1x32xf32>
    %151 = vector.broadcast %150 : vector<1x32xf32> to vector<16x32xf32>
    %152 = arith.addf %149, %151 : vector<16x32xf32>
    %cst_142 = arith.constant 0.000000e+00 : f32
    %153 = vector.broadcast %cst_142 : f32 to vector<16x32xf32>
    %154 = arith.maximumf %152, %153 : vector<16x32xf32>
    %155 = arith.truncf %154 : vector<16x32xf32> to vector<16x32xbf16>
    %c0_143 = arith.constant 0 : index
    %c0_144 = arith.constant 0 : index
    %c0_145 = arith.constant 0 : index
    %156 = vector.load %arg8[%c0_143, %c0_144, %c0_145] : memref<9x4x16xbf16, #tpu.memory_space<vmem>>, vector<1x4x16xbf16>
    %157 = vector.shape_cast %156 : vector<1x4x16xbf16> to vector<4x16xbf16>
    %cst_146 = arith.constant dense<0.000000e+00> : vector<4x32xf32>
    %158 = tpu.matmul %157, %155, %cst_146 {dimension_numbers = #tpu.dot_dimension_numbers<[1], [0], [0], [1], [0, 0, 1, 1], [], []>} : vector<4x16xbf16>, vector<16x32xbf16>, vector<4x32xf32> -> vector<4x32xf32>
    %159 = arith.truncf %158 : vector<4x32xf32> to vector<4x32xbf16>
    %c0_147 = arith.constant 0 : index
    %c0_148 = arith.constant 0 : index
    %c0_149 = arith.constant 0 : index
    %160 = vector.load %arg9[%c0_147, %c0_148, %c0_149] : memref<9x32x64xbf16, #tpu.memory_space<vmem>>, vector<1x32x64xbf16>
    %161 = vector.shape_cast %160 : vector<1x32x64xbf16> to vector<32x64xbf16>
    %cst_150 = arith.constant dense<0.000000e+00> : vector<4x64xf32>
    %162 = tpu.matmul %159, %161, %cst_150 {dimension_numbers = #tpu.dot_dimension_numbers<[1], [0], [0], [1], [0, 0, 1, 1], [], []>} : vector<4x32xbf16>, vector<32x64xbf16>, vector<4x64xf32> -> vector<4x64xf32>
    %c1_151 = arith.constant 1 : index
    %c0_152 = arith.constant 0 : index
    %c0_153 = arith.constant 0 : index
    %163 = vector.load %arg8[%c1_151, %c0_152, %c0_153] : memref<9x4x16xbf16, #tpu.memory_space<vmem>>, vector<1x4x16xbf16>
    %164 = vector.shape_cast %163 : vector<1x4x16xbf16> to vector<4x16xbf16>
    %cst_154 = arith.constant dense<0.000000e+00> : vector<4x32xf32>
    %165 = tpu.matmul %164, %155, %cst_154 {dimension_numbers = #tpu.dot_dimension_numbers<[1], [0], [0], [1], [0, 0, 1, 1], [], []>} : vector<4x16xbf16>, vector<16x32xbf16>, vector<4x32xf32> -> vector<4x32xf32>
    %166 = arith.truncf %165 : vector<4x32xf32> to vector<4x32xbf16>
    %c1_155 = arith.constant 1 : index
    %c0_156 = arith.constant 0 : index
    %c0_157 = arith.constant 0 : index
    %167 = vector.load %arg9[%c1_155, %c0_156, %c0_157] : memref<9x32x64xbf16, #tpu.memory_space<vmem>>, vector<1x32x64xbf16>
    %168 = vector.shape_cast %167 : vector<1x32x64xbf16> to vector<32x64xbf16>
    %cst_158 = arith.constant dense<0.000000e+00> : vector<4x64xf32>
    %169 = tpu.matmul %166, %168, %cst_158 {dimension_numbers = #tpu.dot_dimension_numbers<[1], [0], [0], [1], [0, 0, 1, 1], [], []>} : vector<4x32xbf16>, vector<32x64xbf16>, vector<4x64xf32> -> vector<4x64xf32>
    %170 = arith.addf %162, %169 : vector<4x64xf32>
    %c2_159 = arith.constant 2 : index
    %c0_160 = arith.constant 0 : index
    %c0_161 = arith.constant 0 : index
    %171 = vector.load %arg8[%c2_159, %c0_160, %c0_161] : memref<9x4x16xbf16, #tpu.memory_space<vmem>>, vector<1x4x16xbf16>
    %172 = vector.shape_cast %171 : vector<1x4x16xbf16> to vector<4x16xbf16>
    %cst_162 = arith.constant dense<0.000000e+00> : vector<4x32xf32>
    %173 = tpu.matmul %172, %155, %cst_162 {dimension_numbers = #tpu.dot_dimension_numbers<[1], [0], [0], [1], [0, 0, 1, 1], [], []>} : vector<4x16xbf16>, vector<16x32xbf16>, vector<4x32xf32> -> vector<4x32xf32>
    %174 = arith.truncf %173 : vector<4x32xf32> to vector<4x32xbf16>
    %c2_163 = arith.constant 2 : index
    %c0_164 = arith.constant 0 : index
    %c0_165 = arith.constant 0 : index
    %175 = vector.load %arg9[%c2_163, %c0_164, %c0_165] : memref<9x32x64xbf16, #tpu.memory_space<vmem>>, vector<1x32x64xbf16>
    %176 = vector.shape_cast %175 : vector<1x32x64xbf16> to vector<32x64xbf16>
    %cst_166 = arith.constant dense<0.000000e+00> : vector<4x64xf32>
    %177 = tpu.matmul %174, %176, %cst_166 {dimension_numbers = #tpu.dot_dimension_numbers<[1], [0], [0], [1], [0, 0, 1, 1], [], []>} : vector<4x32xbf16>, vector<32x64xbf16>, vector<4x64xf32> -> vector<4x64xf32>
    %178 = arith.addf %170, %177 : vector<4x64xf32>
    %c3_167 = arith.constant 3 : index
    %c0_168 = arith.constant 0 : index
    %c0_169 = arith.constant 0 : index
    %179 = vector.load %arg8[%c3_167, %c0_168, %c0_169] : memref<9x4x16xbf16, #tpu.memory_space<vmem>>, vector<1x4x16xbf16>
    %180 = vector.shape_cast %179 : vector<1x4x16xbf16> to vector<4x16xbf16>
    %cst_170 = arith.constant dense<0.000000e+00> : vector<4x32xf32>
    %181 = tpu.matmul %180, %155, %cst_170 {dimension_numbers = #tpu.dot_dimension_numbers<[1], [0], [0], [1], [0, 0, 1, 1], [], []>} : vector<4x16xbf16>, vector<16x32xbf16>, vector<4x32xf32> -> vector<4x32xf32>
    %182 = arith.truncf %181 : vector<4x32xf32> to vector<4x32xbf16>
    %c3_171 = arith.constant 3 : index
    %c0_172 = arith.constant 0 : index
    %c0_173 = arith.constant 0 : index
    %183 = vector.load %arg9[%c3_171, %c0_172, %c0_173] : memref<9x32x64xbf16, #tpu.memory_space<vmem>>, vector<1x32x64xbf16>
    %184 = vector.shape_cast %183 : vector<1x32x64xbf16> to vector<32x64xbf16>
    %cst_174 = arith.constant dense<0.000000e+00> : vector<4x64xf32>
    %185 = tpu.matmul %182, %184, %cst_174 {dimension_numbers = #tpu.dot_dimension_numbers<[1], [0], [0], [1], [0, 0, 1, 1], [], []>} : vector<4x32xbf16>, vector<32x64xbf16>, vector<4x64xf32> -> vector<4x64xf32>
    %186 = arith.addf %178, %185 : vector<4x64xf32>
    %c4_175 = arith.constant 4 : index
    %c0_176 = arith.constant 0 : index
    %c0_177 = arith.constant 0 : index
    %187 = vector.load %arg8[%c4_175, %c0_176, %c0_177] : memref<9x4x16xbf16, #tpu.memory_space<vmem>>, vector<1x4x16xbf16>
    %188 = vector.shape_cast %187 : vector<1x4x16xbf16> to vector<4x16xbf16>
    %cst_178 = arith.constant dense<0.000000e+00> : vector<4x32xf32>
    %189 = tpu.matmul %188, %155, %cst_178 {dimension_numbers = #tpu.dot_dimension_numbers<[1], [0], [0], [1], [0, 0, 1, 1], [], []>} : vector<4x16xbf16>, vector<16x32xbf16>, vector<4x32xf32> -> vector<4x32xf32>
    %190 = arith.truncf %189 : vector<4x32xf32> to vector<4x32xbf16>
    %c4_179 = arith.constant 4 : index
    %c0_180 = arith.constant 0 : index
    %c0_181 = arith.constant 0 : index
    %191 = vector.load %arg9[%c4_179, %c0_180, %c0_181] : memref<9x32x64xbf16, #tpu.memory_space<vmem>>, vector<1x32x64xbf16>
    %192 = vector.shape_cast %191 : vector<1x32x64xbf16> to vector<32x64xbf16>
    %cst_182 = arith.constant dense<0.000000e+00> : vector<4x64xf32>
    %193 = tpu.matmul %190, %192, %cst_182 {dimension_numbers = #tpu.dot_dimension_numbers<[1], [0], [0], [1], [0, 0, 1, 1], [], []>} : vector<4x32xbf16>, vector<32x64xbf16>, vector<4x64xf32> -> vector<4x64xf32>
    %194 = arith.addf %186, %193 : vector<4x64xf32>
    %c5_183 = arith.constant 5 : index
    %c0_184 = arith.constant 0 : index
    %c0_185 = arith.constant 0 : index
    %195 = vector.load %arg8[%c5_183, %c0_184, %c0_185] : memref<9x4x16xbf16, #tpu.memory_space<vmem>>, vector<1x4x16xbf16>
    %196 = vector.shape_cast %195 : vector<1x4x16xbf16> to vector<4x16xbf16>
    %cst_186 = arith.constant dense<0.000000e+00> : vector<4x32xf32>
    %197 = tpu.matmul %196, %155, %cst_186 {dimension_numbers = #tpu.dot_dimension_numbers<[1], [0], [0], [1], [0, 0, 1, 1], [], []>} : vector<4x16xbf16>, vector<16x32xbf16>, vector<4x32xf32> -> vector<4x32xf32>
    %198 = arith.truncf %197 : vector<4x32xf32> to vector<4x32xbf16>
    %c5_187 = arith.constant 5 : index
    %c0_188 = arith.constant 0 : index
    %c0_189 = arith.constant 0 : index
    %199 = vector.load %arg9[%c5_187, %c0_188, %c0_189] : memref<9x32x64xbf16, #tpu.memory_space<vmem>>, vector<1x32x64xbf16>
    %200 = vector.shape_cast %199 : vector<1x32x64xbf16> to vector<32x64xbf16>
    %cst_190 = arith.constant dense<0.000000e+00> : vector<4x64xf32>
    %201 = tpu.matmul %198, %200, %cst_190 {dimension_numbers = #tpu.dot_dimension_numbers<[1], [0], [0], [1], [0, 0, 1, 1], [], []>} : vector<4x32xbf16>, vector<32x64xbf16>, vector<4x64xf32> -> vector<4x64xf32>
    %202 = arith.addf %194, %201 : vector<4x64xf32>
    %c6_191 = arith.constant 6 : index
    %c0_192 = arith.constant 0 : index
    %c0_193 = arith.constant 0 : index
    %203 = vector.load %arg8[%c6_191, %c0_192, %c0_193] : memref<9x4x16xbf16, #tpu.memory_space<vmem>>, vector<1x4x16xbf16>
    %204 = vector.shape_cast %203 : vector<1x4x16xbf16> to vector<4x16xbf16>
    %cst_194 = arith.constant dense<0.000000e+00> : vector<4x32xf32>
    %205 = tpu.matmul %204, %155, %cst_194 {dimension_numbers = #tpu.dot_dimension_numbers<[1], [0], [0], [1], [0, 0, 1, 1], [], []>} : vector<4x16xbf16>, vector<16x32xbf16>, vector<4x32xf32> -> vector<4x32xf32>
    %206 = arith.truncf %205 : vector<4x32xf32> to vector<4x32xbf16>
    %c6_195 = arith.constant 6 : index
    %c0_196 = arith.constant 0 : index
    %c0_197 = arith.constant 0 : index
    %207 = vector.load %arg9[%c6_195, %c0_196, %c0_197] : memref<9x32x64xbf16, #tpu.memory_space<vmem>>, vector<1x32x64xbf16>
    %208 = vector.shape_cast %207 : vector<1x32x64xbf16> to vector<32x64xbf16>
    %cst_198 = arith.constant dense<0.000000e+00> : vector<4x64xf32>
    %209 = tpu.matmul %206, %208, %cst_198 {dimension_numbers = #tpu.dot_dimension_numbers<[1], [0], [0], [1], [0, 0, 1, 1], [], []>} : vector<4x32xbf16>, vector<32x64xbf16>, vector<4x64xf32> -> vector<4x64xf32>
    %210 = arith.addf %202, %209 : vector<4x64xf32>
    %c7_199 = arith.constant 7 : index
    %c0_200 = arith.constant 0 : index
    %c0_201 = arith.constant 0 : index
    %211 = vector.load %arg8[%c7_199, %c0_200, %c0_201] : memref<9x4x16xbf16, #tpu.memory_space<vmem>>, vector<1x4x16xbf16>
    %212 = vector.shape_cast %211 : vector<1x4x16xbf16> to vector<4x16xbf16>
    %cst_202 = arith.constant dense<0.000000e+00> : vector<4x32xf32>
    %213 = tpu.matmul %212, %155, %cst_202 {dimension_numbers = #tpu.dot_dimension_numbers<[1], [0], [0], [1], [0, 0, 1, 1], [], []>} : vector<4x16xbf16>, vector<16x32xbf16>, vector<4x32xf32> -> vector<4x32xf32>
    %214 = arith.truncf %213 : vector<4x32xf32> to vector<4x32xbf16>
    %c7_203 = arith.constant 7 : index
    %c0_204 = arith.constant 0 : index
    %c0_205 = arith.constant 0 : index
    %215 = vector.load %arg9[%c7_203, %c0_204, %c0_205] : memref<9x32x64xbf16, #tpu.memory_space<vmem>>, vector<1x32x64xbf16>
    %216 = vector.shape_cast %215 : vector<1x32x64xbf16> to vector<32x64xbf16>
    %cst_206 = arith.constant dense<0.000000e+00> : vector<4x64xf32>
    %217 = tpu.matmul %214, %216, %cst_206 {dimension_numbers = #tpu.dot_dimension_numbers<[1], [0], [0], [1], [0, 0, 1, 1], [], []>} : vector<4x32xbf16>, vector<32x64xbf16>, vector<4x64xf32> -> vector<4x64xf32>
    %218 = arith.addf %210, %217 : vector<4x64xf32>
    %c8_207 = arith.constant 8 : index
    %c0_208 = arith.constant 0 : index
    %c0_209 = arith.constant 0 : index
    %219 = vector.load %arg8[%c8_207, %c0_208, %c0_209] : memref<9x4x16xbf16, #tpu.memory_space<vmem>>, vector<1x4x16xbf16>
    %220 = vector.shape_cast %219 : vector<1x4x16xbf16> to vector<4x16xbf16>
    %cst_210 = arith.constant dense<0.000000e+00> : vector<4x32xf32>
    %221 = tpu.matmul %220, %155, %cst_210 {dimension_numbers = #tpu.dot_dimension_numbers<[1], [0], [0], [1], [0, 0, 1, 1], [], []>} : vector<4x16xbf16>, vector<16x32xbf16>, vector<4x32xf32> -> vector<4x32xf32>
    %222 = arith.truncf %221 : vector<4x32xf32> to vector<4x32xbf16>
    %c8_211 = arith.constant 8 : index
    %c0_212 = arith.constant 0 : index
    %c0_213 = arith.constant 0 : index
    %223 = vector.load %arg9[%c8_211, %c0_212, %c0_213] : memref<9x32x64xbf16, #tpu.memory_space<vmem>>, vector<1x32x64xbf16>
    %224 = vector.shape_cast %223 : vector<1x32x64xbf16> to vector<32x64xbf16>
    %cst_214 = arith.constant dense<0.000000e+00> : vector<4x64xf32>
    %225 = tpu.matmul %222, %224, %cst_214 {dimension_numbers = #tpu.dot_dimension_numbers<[1], [0], [0], [1], [0, 0, 1, 1], [], []>} : vector<4x32xbf16>, vector<32x64xbf16>, vector<4x64xf32> -> vector<4x64xf32>
    %226 = arith.addf %218, %225 : vector<4x64xf32>
    %c0_215 = arith.constant 0 : index
    %c0_216 = arith.constant 0 : index
    %227 = vector.load %arg10[%c0_215, %c0_216] : memref<1x64xf32, #tpu.memory_space<vmem>>, vector<1x64xf32>
    %228 = vector.broadcast %227 : vector<1x64xf32> to vector<4x64xf32>
    %229 = arith.addf %226, %228 : vector<4x64xf32>
    %cst_217 = arith.constant 0.000000e+00 : f32
    %230 = vector.broadcast %cst_217 : f32 to vector<4x64xf32>
    %231 = arith.maximumf %229, %230 : vector<4x64xf32>
    %232 = arith.truncf %231 : vector<4x64xf32> to vector<4x64xbf16>
    %c0_218 = arith.constant 0 : index
    %c0_219 = arith.constant 0 : index
    %c0_220 = arith.constant 0 : index
    %233 = vector.load %arg11[%c0_218, %c0_219, %c0_220] : memref<9x1x4xbf16, #tpu.memory_space<vmem>>, vector<1x1x4xbf16>
    %234 = vector.shape_cast %233 : vector<1x1x4xbf16> to vector<1x4xbf16>
    %cst_221 = arith.constant dense<0.000000e+00> : vector<1x64xf32>
    %235 = tpu.matmul %234, %232, %cst_221 {dimension_numbers = #tpu.dot_dimension_numbers<[1], [0], [0], [1], [0, 0, 1, 1], [], []>} : vector<1x4xbf16>, vector<4x64xbf16>, vector<1x64xf32> -> vector<1x64xf32>
    %236 = arith.truncf %235 : vector<1x64xf32> to vector<1x64xbf16>
    %c0_222 = arith.constant 0 : index
    %c0_223 = arith.constant 0 : index
    %c0_224 = arith.constant 0 : index
    %237 = vector.load %arg12[%c0_222, %c0_223, %c0_224] : memref<9x64x128xbf16, #tpu.memory_space<vmem>>, vector<1x64x128xbf16>
    %238 = vector.shape_cast %237 : vector<1x64x128xbf16> to vector<64x128xbf16>
    %cst_225 = arith.constant dense<0.000000e+00> : vector<1x128xf32>
    %239 = tpu.matmul %236, %238, %cst_225 {dimension_numbers = #tpu.dot_dimension_numbers<[1], [0], [0], [1], [0, 0, 1, 1], [], []>} : vector<1x64xbf16>, vector<64x128xbf16>, vector<1x128xf32> -> vector<1x128xf32>
    %c1_226 = arith.constant 1 : index
    %c0_227 = arith.constant 0 : index
    %c0_228 = arith.constant 0 : index
    %240 = vector.load %arg11[%c1_226, %c0_227, %c0_228] : memref<9x1x4xbf16, #tpu.memory_space<vmem>>, vector<1x1x4xbf16>
    %241 = vector.shape_cast %240 : vector<1x1x4xbf16> to vector<1x4xbf16>
    %cst_229 = arith.constant dense<0.000000e+00> : vector<1x64xf32>
    %242 = tpu.matmul %241, %232, %cst_229 {dimension_numbers = #tpu.dot_dimension_numbers<[1], [0], [0], [1], [0, 0, 1, 1], [], []>} : vector<1x4xbf16>, vector<4x64xbf16>, vector<1x64xf32> -> vector<1x64xf32>
    %243 = arith.truncf %242 : vector<1x64xf32> to vector<1x64xbf16>
    %c1_230 = arith.constant 1 : index
    %c0_231 = arith.constant 0 : index
    %c0_232 = arith.constant 0 : index
    %244 = vector.load %arg12[%c1_230, %c0_231, %c0_232] : memref<9x64x128xbf16, #tpu.memory_space<vmem>>, vector<1x64x128xbf16>
    %245 = vector.shape_cast %244 : vector<1x64x128xbf16> to vector<64x128xbf16>
    %cst_233 = arith.constant dense<0.000000e+00> : vector<1x128xf32>
    %246 = tpu.matmul %243, %245, %cst_233 {dimension_numbers = #tpu.dot_dimension_numbers<[1], [0], [0], [1], [0, 0, 1, 1], [], []>} : vector<1x64xbf16>, vector<64x128xbf16>, vector<1x128xf32> -> vector<1x128xf32>
    %247 = arith.addf %239, %246 : vector<1x128xf32>
    %c2_234 = arith.constant 2 : index
    %c0_235 = arith.constant 0 : index
    %c0_236 = arith.constant 0 : index
    %248 = vector.load %arg11[%c2_234, %c0_235, %c0_236] : memref<9x1x4xbf16, #tpu.memory_space<vmem>>, vector<1x1x4xbf16>
    %249 = vector.shape_cast %248 : vector<1x1x4xbf16> to vector<1x4xbf16>
    %cst_237 = arith.constant dense<0.000000e+00> : vector<1x64xf32>
    %250 = tpu.matmul %249, %232, %cst_237 {dimension_numbers = #tpu.dot_dimension_numbers<[1], [0], [0], [1], [0, 0, 1, 1], [], []>} : vector<1x4xbf16>, vector<4x64xbf16>, vector<1x64xf32> -> vector<1x64xf32>
    %251 = arith.truncf %250 : vector<1x64xf32> to vector<1x64xbf16>
    %c2_238 = arith.constant 2 : index
    %c0_239 = arith.constant 0 : index
    %c0_240 = arith.constant 0 : index
    %252 = vector.load %arg12[%c2_238, %c0_239, %c0_240] : memref<9x64x128xbf16, #tpu.memory_space<vmem>>, vector<1x64x128xbf16>
    %253 = vector.shape_cast %252 : vector<1x64x128xbf16> to vector<64x128xbf16>
    %cst_241 = arith.constant dense<0.000000e+00> : vector<1x128xf32>
    %254 = tpu.matmul %251, %253, %cst_241 {dimension_numbers = #tpu.dot_dimension_numbers<[1], [0], [0], [1], [0, 0, 1, 1], [], []>} : vector<1x64xbf16>, vector<64x128xbf16>, vector<1x128xf32> -> vector<1x128xf32>
    %255 = arith.addf %247, %254 : vector<1x128xf32>
    %c3_242 = arith.constant 3 : index
    %c0_243 = arith.constant 0 : index
    %c0_244 = arith.constant 0 : index
    %256 = vector.load %arg11[%c3_242, %c0_243, %c0_244] : memref<9x1x4xbf16, #tpu.memory_space<vmem>>, vector<1x1x4xbf16>
    %257 = vector.shape_cast %256 : vector<1x1x4xbf16> to vector<1x4xbf16>
    %cst_245 = arith.constant dense<0.000000e+00> : vector<1x64xf32>
    %258 = tpu.matmul %257, %232, %cst_245 {dimension_numbers = #tpu.dot_dimension_numbers<[1], [0], [0], [1], [0, 0, 1, 1], [], []>} : vector<1x4xbf16>, vector<4x64xbf16>, vector<1x64xf32> -> vector<1x64xf32>
    %259 = arith.truncf %258 : vector<1x64xf32> to vector<1x64xbf16>
    %c3_246 = arith.constant 3 : index
    %c0_247 = arith.constant 0 : index
    %c0_248 = arith.constant 0 : index
    %260 = vector.load %arg12[%c3_246, %c0_247, %c0_248] : memref<9x64x128xbf16, #tpu.memory_space<vmem>>, vector<1x64x128xbf16>
    %261 = vector.shape_cast %260 : vector<1x64x128xbf16> to vector<64x128xbf16>
    %cst_249 = arith.constant dense<0.000000e+00> : vector<1x128xf32>
    %262 = tpu.matmul %259, %261, %cst_249 {dimension_numbers = #tpu.dot_dimension_numbers<[1], [0], [0], [1], [0, 0, 1, 1], [], []>} : vector<1x64xbf16>, vector<64x128xbf16>, vector<1x128xf32> -> vector<1x128xf32>
    %263 = arith.addf %255, %262 : vector<1x128xf32>
    %c4_250 = arith.constant 4 : index
    %c0_251 = arith.constant 0 : index
    %c0_252 = arith.constant 0 : index
    %264 = vector.load %arg11[%c4_250, %c0_251, %c0_252] : memref<9x1x4xbf16, #tpu.memory_space<vmem>>, vector<1x1x4xbf16>
    %265 = vector.shape_cast %264 : vector<1x1x4xbf16> to vector<1x4xbf16>
    %cst_253 = arith.constant dense<0.000000e+00> : vector<1x64xf32>
    %266 = tpu.matmul %265, %232, %cst_253 {dimension_numbers = #tpu.dot_dimension_numbers<[1], [0], [0], [1], [0, 0, 1, 1], [], []>} : vector<1x4xbf16>, vector<4x64xbf16>, vector<1x64xf32> -> vector<1x64xf32>
    %267 = arith.truncf %266 : vector<1x64xf32> to vector<1x64xbf16>
    %c4_254 = arith.constant 4 : index
    %c0_255 = arith.constant 0 : index
    %c0_256 = arith.constant 0 : index
    %268 = vector.load %arg12[%c4_254, %c0_255, %c0_256] : memref<9x64x128xbf16, #tpu.memory_space<vmem>>, vector<1x64x128xbf16>
    %269 = vector.shape_cast %268 : vector<1x64x128xbf16> to vector<64x128xbf16>
    %cst_257 = arith.constant dense<0.000000e+00> : vector<1x128xf32>
    %270 = tpu.matmul %267, %269, %cst_257 {dimension_numbers = #tpu.dot_dimension_numbers<[1], [0], [0], [1], [0, 0, 1, 1], [], []>} : vector<1x64xbf16>, vector<64x128xbf16>, vector<1x128xf32> -> vector<1x128xf32>
    %271 = arith.addf %263, %270 : vector<1x128xf32>
    %c5_258 = arith.constant 5 : index
    %c0_259 = arith.constant 0 : index
    %c0_260 = arith.constant 0 : index
    %272 = vector.load %arg11[%c5_258, %c0_259, %c0_260] : memref<9x1x4xbf16, #tpu.memory_space<vmem>>, vector<1x1x4xbf16>
    %273 = vector.shape_cast %272 : vector<1x1x4xbf16> to vector<1x4xbf16>
    %cst_261 = arith.constant dense<0.000000e+00> : vector<1x64xf32>
    %274 = tpu.matmul %273, %232, %cst_261 {dimension_numbers = #tpu.dot_dimension_numbers<[1], [0], [0], [1], [0, 0, 1, 1], [], []>} : vector<1x4xbf16>, vector<4x64xbf16>, vector<1x64xf32> -> vector<1x64xf32>
    %275 = arith.truncf %274 : vector<1x64xf32> to vector<1x64xbf16>
    %c5_262 = arith.constant 5 : index
    %c0_263 = arith.constant 0 : index
    %c0_264 = arith.constant 0 : index
    %276 = vector.load %arg12[%c5_262, %c0_263, %c0_264] : memref<9x64x128xbf16, #tpu.memory_space<vmem>>, vector<1x64x128xbf16>
    %277 = vector.shape_cast %276 : vector<1x64x128xbf16> to vector<64x128xbf16>
    %cst_265 = arith.constant dense<0.000000e+00> : vector<1x128xf32>
    %278 = tpu.matmul %275, %277, %cst_265 {dimension_numbers = #tpu.dot_dimension_numbers<[1], [0], [0], [1], [0, 0, 1, 1], [], []>} : vector<1x64xbf16>, vector<64x128xbf16>, vector<1x128xf32> -> vector<1x128xf32>
    %279 = arith.addf %271, %278 : vector<1x128xf32>
    %c6_266 = arith.constant 6 : index
    %c0_267 = arith.constant 0 : index
    %c0_268 = arith.constant 0 : index
    %280 = vector.load %arg11[%c6_266, %c0_267, %c0_268] : memref<9x1x4xbf16, #tpu.memory_space<vmem>>, vector<1x1x4xbf16>
    %281 = vector.shape_cast %280 : vector<1x1x4xbf16> to vector<1x4xbf16>
    %cst_269 = arith.constant dense<0.000000e+00> : vector<1x64xf32>
    %282 = tpu.matmul %281, %232, %cst_269 {dimension_numbers = #tpu.dot_dimension_numbers<[1], [0], [0], [1], [0, 0, 1, 1], [], []>} : vector<1x4xbf16>, vector<4x64xbf16>, vector<1x64xf32> -> vector<1x64xf32>
    %283 = arith.truncf %282 : vector<1x64xf32> to vector<1x64xbf16>
    %c6_270 = arith.constant 6 : index
    %c0_271 = arith.constant 0 : index
    %c0_272 = arith.constant 0 : index
    %284 = vector.load %arg12[%c6_270, %c0_271, %c0_272] : memref<9x64x128xbf16, #tpu.memory_space<vmem>>, vector<1x64x128xbf16>
    %285 = vector.shape_cast %284 : vector<1x64x128xbf16> to vector<64x128xbf16>
    %cst_273 = arith.constant dense<0.000000e+00> : vector<1x128xf32>
    %286 = tpu.matmul %283, %285, %cst_273 {dimension_numbers = #tpu.dot_dimension_numbers<[1], [0], [0], [1], [0, 0, 1, 1], [], []>} : vector<1x64xbf16>, vector<64x128xbf16>, vector<1x128xf32> -> vector<1x128xf32>
    %287 = arith.addf %279, %286 : vector<1x128xf32>
    %c7_274 = arith.constant 7 : index
    %c0_275 = arith.constant 0 : index
    %c0_276 = arith.constant 0 : index
    %288 = vector.load %arg11[%c7_274, %c0_275, %c0_276] : memref<9x1x4xbf16, #tpu.memory_space<vmem>>, vector<1x1x4xbf16>
    %289 = vector.shape_cast %288 : vector<1x1x4xbf16> to vector<1x4xbf16>
    %cst_277 = arith.constant dense<0.000000e+00> : vector<1x64xf32>
    %290 = tpu.matmul %289, %232, %cst_277 {dimension_numbers = #tpu.dot_dimension_numbers<[1], [0], [0], [1], [0, 0, 1, 1], [], []>} : vector<1x4xbf16>, vector<4x64xbf16>, vector<1x64xf32> -> vector<1x64xf32>
    %291 = arith.truncf %290 : vector<1x64xf32> to vector<1x64xbf16>
    %c7_278 = arith.constant 7 : index
    %c0_279 = arith.constant 0 : index
    %c0_280 = arith.constant 0 : index
    %292 = vector.load %arg12[%c7_278, %c0_279, %c0_280] : memref<9x64x128xbf16, #tpu.memory_space<vmem>>, vector<1x64x128xbf16>
    %293 = vector.shape_cast %292 : vector<1x64x128xbf16> to vector<64x128xbf16>
    %cst_281 = arith.constant dense<0.000000e+00> : vector<1x128xf32>
    %294 = tpu.matmul %291, %293, %cst_281 {dimension_numbers = #tpu.dot_dimension_numbers<[1], [0], [0], [1], [0, 0, 1, 1], [], []>} : vector<1x64xbf16>, vector<64x128xbf16>, vector<1x128xf32> -> vector<1x128xf32>
    %295 = arith.addf %287, %294 : vector<1x128xf32>
    %c8_282 = arith.constant 8 : index
    %c0_283 = arith.constant 0 : index
    %c0_284 = arith.constant 0 : index
    %296 = vector.load %arg11[%c8_282, %c0_283, %c0_284] : memref<9x1x4xbf16, #tpu.memory_space<vmem>>, vector<1x1x4xbf16>
    %297 = vector.shape_cast %296 : vector<1x1x4xbf16> to vector<1x4xbf16>
    %cst_285 = arith.constant dense<0.000000e+00> : vector<1x64xf32>
    %298 = tpu.matmul %297, %232, %cst_285 {dimension_numbers = #tpu.dot_dimension_numbers<[1], [0], [0], [1], [0, 0, 1, 1], [], []>} : vector<1x4xbf16>, vector<4x64xbf16>, vector<1x64xf32> -> vector<1x64xf32>
    %299 = arith.truncf %298 : vector<1x64xf32> to vector<1x64xbf16>
    %c8_286 = arith.constant 8 : index
    %c0_287 = arith.constant 0 : index
    %c0_288 = arith.constant 0 : index
    %300 = vector.load %arg12[%c8_286, %c0_287, %c0_288] : memref<9x64x128xbf16, #tpu.memory_space<vmem>>, vector<1x64x128xbf16>
    %301 = vector.shape_cast %300 : vector<1x64x128xbf16> to vector<64x128xbf16>
    %cst_289 = arith.constant dense<0.000000e+00> : vector<1x128xf32>
    %302 = tpu.matmul %299, %301, %cst_289 {dimension_numbers = #tpu.dot_dimension_numbers<[1], [0], [0], [1], [0, 0, 1, 1], [], []>} : vector<1x64xbf16>, vector<64x128xbf16>, vector<1x128xf32> -> vector<1x128xf32>
    %303 = arith.addf %295, %302 : vector<1x128xf32>
    %c0_290 = arith.constant 0 : index
    %c0_291 = arith.constant 0 : index
    %304 = vector.load %arg13[%c0_290, %c0_291] : memref<1x128xf32, #tpu.memory_space<vmem>>, vector<1x128xf32>
    %305 = arith.addf %303, %304 : vector<1x128xf32>
    %cst_292 = arith.constant 0.000000e+00 : f32
    %306 = vector.broadcast %cst_292 : f32 to vector<1x128xf32>
    %307 = arith.maximumf %305, %306 : vector<1x128xf32>
    %308 = arith.truncf %307 : vector<1x128xf32> to vector<1x128xbf16>
    %c0_293 = arith.constant 0 : index
    %c0_294 = arith.constant 0 : index
    %c0_295 = arith.constant 0 : index
    %c0_296 = arith.constant 0 : index
    %309 = vector.load %arg14[%c0_293, %c0_294, %c0_295, %c0_296] : memref<4x1x1x1xbf16, #tpu.memory_space<vmem>>, vector<1x1x1x1xbf16>
    %310 = vector.shape_cast %309 : vector<1x1x1x1xbf16> to vector<1x1xbf16>
    %cst_297 = arith.constant dense<0.000000e+00> : vector<1x128xf32>
    %311 = tpu.matmul %310, %308, %cst_297 {dimension_numbers = #tpu.dot_dimension_numbers<[1], [0], [0], [1], [0, 0, 1, 1], [], []>} : vector<1x1xbf16>, vector<1x128xbf16>, vector<1x128xf32> -> vector<1x128xf32>
    %312 = arith.truncf %311 : vector<1x128xf32> to vector<1x128xbf16>
    %c1_298 = arith.constant 1 : index
    %c0_299 = arith.constant 0 : index
    %c0_300 = arith.constant 0 : index
    %c0_301 = arith.constant 0 : index
    %313 = vector.load %arg14[%c1_298, %c0_299, %c0_300, %c0_301] : memref<4x1x1x1xbf16, #tpu.memory_space<vmem>>, vector<1x1x1x1xbf16>
    %314 = vector.shape_cast %313 : vector<1x1x1x1xbf16> to vector<1x1xbf16>
    %cst_302 = arith.constant dense<0.000000e+00> : vector<1x128xf32>
    %315 = tpu.matmul %314, %308, %cst_302 {dimension_numbers = #tpu.dot_dimension_numbers<[1], [0], [0], [1], [0, 0, 1, 1], [], []>} : vector<1x1xbf16>, vector<1x128xbf16>, vector<1x128xf32> -> vector<1x128xf32>
    %316 = arith.truncf %315 : vector<1x128xf32> to vector<1x128xbf16>
    %c2_303 = arith.constant 2 : index
    %c0_304 = arith.constant 0 : index
    %c0_305 = arith.constant 0 : index
    %c0_306 = arith.constant 0 : index
    %317 = vector.load %arg14[%c2_303, %c0_304, %c0_305, %c0_306] : memref<4x1x1x1xbf16, #tpu.memory_space<vmem>>, vector<1x1x1x1xbf16>
    %318 = vector.shape_cast %317 : vector<1x1x1x1xbf16> to vector<1x1xbf16>
    %cst_307 = arith.constant dense<0.000000e+00> : vector<1x128xf32>
    %319 = tpu.matmul %318, %308, %cst_307 {dimension_numbers = #tpu.dot_dimension_numbers<[1], [0], [0], [1], [0, 0, 1, 1], [], []>} : vector<1x1xbf16>, vector<1x128xbf16>, vector<1x128xf32> -> vector<1x128xf32>
    %320 = arith.truncf %319 : vector<1x128xf32> to vector<1x128xbf16>
    %c3_308 = arith.constant 3 : index
    %c0_309 = arith.constant 0 : index
    %c0_310 = arith.constant 0 : index
    %c0_311 = arith.constant 0 : index
    %321 = vector.load %arg14[%c3_308, %c0_309, %c0_310, %c0_311] : memref<4x1x1x1xbf16, #tpu.memory_space<vmem>>, vector<1x1x1x1xbf16>
    %322 = vector.shape_cast %321 : vector<1x1x1x1xbf16> to vector<1x1xbf16>
    %cst_312 = arith.constant dense<0.000000e+00> : vector<1x128xf32>
    %323 = tpu.matmul %322, %308, %cst_312 {dimension_numbers = #tpu.dot_dimension_numbers<[1], [0], [0], [1], [0, 0, 1, 1], [], []>} : vector<1x1xbf16>, vector<1x128xbf16>, vector<1x128xf32> -> vector<1x128xf32>
    %324 = arith.truncf %323 : vector<1x128xf32> to vector<1x128xbf16>
    %c0_313 = arith.constant 0 : index
    %c0_314 = arith.constant 0 : index
    %c0_315 = arith.constant 0 : index
    %325 = vector.load %arg15[%c0_313, %c0_314, %c0_315] : memref<9x128x64xbf16, #tpu.memory_space<vmem>>, vector<1x128x64xbf16>
    %326 = vector.shape_cast %325 : vector<1x128x64xbf16> to vector<128x64xbf16>
    %cst_316 = arith.constant dense<0.000000e+00> : vector<1x64xf32>
    %327 = tpu.matmul %312, %326, %cst_316 {dimension_numbers = #tpu.dot_dimension_numbers<[1], [0], [0], [1], [0, 0, 1, 1], [], []>} : vector<1x128xbf16>, vector<128x64xbf16>, vector<1x64xf32> -> vector<1x64xf32>
    %c1_317 = arith.constant 1 : index
    %c0_318 = arith.constant 0 : index
    %c0_319 = arith.constant 0 : index
    %328 = vector.load %arg15[%c1_317, %c0_318, %c0_319] : memref<9x128x64xbf16, #tpu.memory_space<vmem>>, vector<1x128x64xbf16>
    %329 = vector.shape_cast %328 : vector<1x128x64xbf16> to vector<128x64xbf16>
    %cst_320 = arith.constant dense<0.000000e+00> : vector<1x64xf32>
    %330 = tpu.matmul %312, %329, %cst_320 {dimension_numbers = #tpu.dot_dimension_numbers<[1], [0], [0], [1], [0, 0, 1, 1], [], []>} : vector<1x128xbf16>, vector<128x64xbf16>, vector<1x64xf32> -> vector<1x64xf32>
    %c2_321 = arith.constant 2 : index
    %c0_322 = arith.constant 0 : index
    %c0_323 = arith.constant 0 : index
    %331 = vector.load %arg15[%c2_321, %c0_322, %c0_323] : memref<9x128x64xbf16, #tpu.memory_space<vmem>>, vector<1x128x64xbf16>
    %332 = vector.shape_cast %331 : vector<1x128x64xbf16> to vector<128x64xbf16>
    %cst_324 = arith.constant dense<0.000000e+00> : vector<1x64xf32>
    %333 = tpu.matmul %316, %332, %cst_324 {dimension_numbers = #tpu.dot_dimension_numbers<[1], [0], [0], [1], [0, 0, 1, 1], [], []>} : vector<1x128xbf16>, vector<128x64xbf16>, vector<1x64xf32> -> vector<1x64xf32>
    %334 = arith.addf %330, %333 : vector<1x64xf32>
    %c3_325 = arith.constant 3 : index
    %c0_326 = arith.constant 0 : index
    %c0_327 = arith.constant 0 : index
    %335 = vector.load %arg15[%c3_325, %c0_326, %c0_327] : memref<9x128x64xbf16, #tpu.memory_space<vmem>>, vector<1x128x64xbf16>
    %336 = vector.shape_cast %335 : vector<1x128x64xbf16> to vector<128x64xbf16>
    %cst_328 = arith.constant dense<0.000000e+00> : vector<1x64xf32>
    %337 = tpu.matmul %312, %336, %cst_328 {dimension_numbers = #tpu.dot_dimension_numbers<[1], [0], [0], [1], [0, 0, 1, 1], [], []>} : vector<1x128xbf16>, vector<128x64xbf16>, vector<1x64xf32> -> vector<1x64xf32>
    %c4_329 = arith.constant 4 : index
    %c0_330 = arith.constant 0 : index
    %c0_331 = arith.constant 0 : index
    %338 = vector.load %arg15[%c4_329, %c0_330, %c0_331] : memref<9x128x64xbf16, #tpu.memory_space<vmem>>, vector<1x128x64xbf16>
    %339 = vector.shape_cast %338 : vector<1x128x64xbf16> to vector<128x64xbf16>
    %cst_332 = arith.constant dense<0.000000e+00> : vector<1x64xf32>
    %340 = tpu.matmul %320, %339, %cst_332 {dimension_numbers = #tpu.dot_dimension_numbers<[1], [0], [0], [1], [0, 0, 1, 1], [], []>} : vector<1x128xbf16>, vector<128x64xbf16>, vector<1x64xf32> -> vector<1x64xf32>
    %341 = arith.addf %337, %340 : vector<1x64xf32>
    %c5_333 = arith.constant 5 : index
    %c0_334 = arith.constant 0 : index
    %c0_335 = arith.constant 0 : index
    %342 = vector.load %arg15[%c5_333, %c0_334, %c0_335] : memref<9x128x64xbf16, #tpu.memory_space<vmem>>, vector<1x128x64xbf16>
    %343 = vector.shape_cast %342 : vector<1x128x64xbf16> to vector<128x64xbf16>
    %cst_336 = arith.constant dense<0.000000e+00> : vector<1x64xf32>
    %344 = tpu.matmul %312, %343, %cst_336 {dimension_numbers = #tpu.dot_dimension_numbers<[1], [0], [0], [1], [0, 0, 1, 1], [], []>} : vector<1x128xbf16>, vector<128x64xbf16>, vector<1x64xf32> -> vector<1x64xf32>
    %c6_337 = arith.constant 6 : index
    %c0_338 = arith.constant 0 : index
    %c0_339 = arith.constant 0 : index
    %345 = vector.load %arg15[%c6_337, %c0_338, %c0_339] : memref<9x128x64xbf16, #tpu.memory_space<vmem>>, vector<1x128x64xbf16>
    %346 = vector.shape_cast %345 : vector<1x128x64xbf16> to vector<128x64xbf16>
    %cst_340 = arith.constant dense<0.000000e+00> : vector<1x64xf32>
    %347 = tpu.matmul %316, %346, %cst_340 {dimension_numbers = #tpu.dot_dimension_numbers<[1], [0], [0], [1], [0, 0, 1, 1], [], []>} : vector<1x128xbf16>, vector<128x64xbf16>, vector<1x64xf32> -> vector<1x64xf32>
    %348 = arith.addf %344, %347 : vector<1x64xf32>
    %c7_341 = arith.constant 7 : index
    %c0_342 = arith.constant 0 : index
    %c0_343 = arith.constant 0 : index
    %349 = vector.load %arg15[%c7_341, %c0_342, %c0_343] : memref<9x128x64xbf16, #tpu.memory_space<vmem>>, vector<1x128x64xbf16>
    %350 = vector.shape_cast %349 : vector<1x128x64xbf16> to vector<128x64xbf16>
    %cst_344 = arith.constant dense<0.000000e+00> : vector<1x64xf32>
    %351 = tpu.matmul %320, %350, %cst_344 {dimension_numbers = #tpu.dot_dimension_numbers<[1], [0], [0], [1], [0, 0, 1, 1], [], []>} : vector<1x128xbf16>, vector<128x64xbf16>, vector<1x64xf32> -> vector<1x64xf32>
    %352 = arith.addf %348, %351 : vector<1x64xf32>
    %c8_345 = arith.constant 8 : index
    %c0_346 = arith.constant 0 : index
    %c0_347 = arith.constant 0 : index
    %353 = vector.load %arg15[%c8_345, %c0_346, %c0_347] : memref<9x128x64xbf16, #tpu.memory_space<vmem>>, vector<1x128x64xbf16>
    %354 = vector.shape_cast %353 : vector<1x128x64xbf16> to vector<128x64xbf16>
    %cst_348 = arith.constant dense<0.000000e+00> : vector<1x64xf32>
    %355 = tpu.matmul %324, %354, %cst_348 {dimension_numbers = #tpu.dot_dimension_numbers<[1], [0], [0], [1], [0, 0, 1, 1], [], []>} : vector<1x128xbf16>, vector<128x64xbf16>, vector<1x64xf32> -> vector<1x64xf32>
    %356 = arith.addf %352, %355 : vector<1x64xf32>
    %c0_349 = arith.constant 0 : index
    %c0_350 = arith.constant 0 : index
    %357 = vector.load %arg16[%c0_349, %c0_350] : memref<1x64xf32, #tpu.memory_space<vmem>>, vector<1x64xf32>
    %358 = arith.addf %327, %357 : vector<1x64xf32>
    %cst_351 = arith.constant 0.000000e+00 : f32
    %359 = vector.broadcast %cst_351 : f32 to vector<1x64xf32>
    %360 = arith.maximumf %358, %359 : vector<1x64xf32>
    %361 = arith.truncf %360 : vector<1x64xf32> to vector<1x64xbf16>
    %c0_352 = arith.constant 0 : index
    %c0_353 = arith.constant 0 : index
    %362 = vector.load %arg16[%c0_352, %c0_353] : memref<1x64xf32, #tpu.memory_space<vmem>>, vector<1x64xf32>
    %363 = arith.addf %334, %362 : vector<1x64xf32>
    %cst_354 = arith.constant 0.000000e+00 : f32
    %364 = vector.broadcast %cst_354 : f32 to vector<1x64xf32>
    %365 = arith.maximumf %363, %364 : vector<1x64xf32>
    %366 = arith.truncf %365 : vector<1x64xf32> to vector<1x64xbf16>
    %c0_355 = arith.constant 0 : index
    %c0_356 = arith.constant 0 : index
    %367 = vector.load %arg16[%c0_355, %c0_356] : memref<1x64xf32, #tpu.memory_space<vmem>>, vector<1x64xf32>
    %368 = arith.addf %341, %367 : vector<1x64xf32>
    %cst_357 = arith.constant 0.000000e+00 : f32
    %369 = vector.broadcast %cst_357 : f32 to vector<1x64xf32>
    %370 = arith.maximumf %368, %369 : vector<1x64xf32>
    %371 = arith.truncf %370 : vector<1x64xf32> to vector<1x64xbf16>
    %c0_358 = arith.constant 0 : index
    %c0_359 = arith.constant 0 : index
    %372 = vector.load %arg16[%c0_358, %c0_359] : memref<1x64xf32, #tpu.memory_space<vmem>>, vector<1x64xf32>
    %373 = arith.addf %356, %372 : vector<1x64xf32>
    %cst_360 = arith.constant 0.000000e+00 : f32
    %374 = vector.broadcast %cst_360 : f32 to vector<1x64xf32>
    %375 = arith.maximumf %373, %374 : vector<1x64xf32>
    %376 = arith.truncf %375 : vector<1x64xf32> to vector<1x64xbf16>
    %c0_361 = arith.constant 0 : index
    %c0_362 = arith.constant 0 : index
    %c0_363 = arith.constant 0 : index
    %c0_364 = arith.constant 0 : index
    %377 = vector.load %arg17[%c0_361, %c0_362, %c0_363, %c0_364] : memref<4x4x4x1xbf16, #tpu.memory_space<vmem>>, vector<1x1x4x1xbf16>
    %378 = vector.shape_cast %377 : vector<1x1x4x1xbf16> to vector<4x1xbf16>
    %cst_365 = arith.constant dense<0.000000e+00> : vector<4x64xf32>
    %379 = tpu.matmul %378, %361, %cst_365 {dimension_numbers = #tpu.dot_dimension_numbers<[1], [0], [0], [1], [0, 0, 1, 1], [], []>} : vector<4x1xbf16>, vector<1x64xbf16>, vector<4x64xf32> -> vector<4x64xf32>
    %c0_366 = arith.constant 0 : index
    %c1_367 = arith.constant 1 : index
    %c0_368 = arith.constant 0 : index
    %c0_369 = arith.constant 0 : index
    %380 = vector.load %arg17[%c0_366, %c1_367, %c0_368, %c0_369] : memref<4x4x4x1xbf16, #tpu.memory_space<vmem>>, vector<1x1x4x1xbf16>
    %381 = vector.shape_cast %380 : vector<1x1x4x1xbf16> to vector<4x1xbf16>
    %cst_370 = arith.constant dense<0.000000e+00> : vector<4x64xf32>
    %382 = tpu.matmul %381, %366, %cst_370 {dimension_numbers = #tpu.dot_dimension_numbers<[1], [0], [0], [1], [0, 0, 1, 1], [], []>} : vector<4x1xbf16>, vector<1x64xbf16>, vector<4x64xf32> -> vector<4x64xf32>
    %383 = arith.addf %379, %382 : vector<4x64xf32>
    %c0_371 = arith.constant 0 : index
    %c2_372 = arith.constant 2 : index
    %c0_373 = arith.constant 0 : index
    %c0_374 = arith.constant 0 : index
    %384 = vector.load %arg17[%c0_371, %c2_372, %c0_373, %c0_374] : memref<4x4x4x1xbf16, #tpu.memory_space<vmem>>, vector<1x1x4x1xbf16>
    %385 = vector.shape_cast %384 : vector<1x1x4x1xbf16> to vector<4x1xbf16>
    %cst_375 = arith.constant dense<0.000000e+00> : vector<4x64xf32>
    %386 = tpu.matmul %385, %371, %cst_375 {dimension_numbers = #tpu.dot_dimension_numbers<[1], [0], [0], [1], [0, 0, 1, 1], [], []>} : vector<4x1xbf16>, vector<1x64xbf16>, vector<4x64xf32> -> vector<4x64xf32>
    %387 = arith.addf %383, %386 : vector<4x64xf32>
    %c0_376 = arith.constant 0 : index
    %c3_377 = arith.constant 3 : index
    %c0_378 = arith.constant 0 : index
    %c0_379 = arith.constant 0 : index
    %388 = vector.load %arg17[%c0_376, %c3_377, %c0_378, %c0_379] : memref<4x4x4x1xbf16, #tpu.memory_space<vmem>>, vector<1x1x4x1xbf16>
    %389 = vector.shape_cast %388 : vector<1x1x4x1xbf16> to vector<4x1xbf16>
    %cst_380 = arith.constant dense<0.000000e+00> : vector<4x64xf32>
    %390 = tpu.matmul %389, %376, %cst_380 {dimension_numbers = #tpu.dot_dimension_numbers<[1], [0], [0], [1], [0, 0, 1, 1], [], []>} : vector<4x1xbf16>, vector<1x64xbf16>, vector<4x64xf32> -> vector<4x64xf32>
    %391 = arith.addf %387, %390 : vector<4x64xf32>
    %392 = arith.truncf %391 : vector<4x64xf32> to vector<4x64xbf16>
    %c1_381 = arith.constant 1 : index
    %c0_382 = arith.constant 0 : index
    %c0_383 = arith.constant 0 : index
    %c0_384 = arith.constant 0 : index
    %393 = vector.load %arg17[%c1_381, %c0_382, %c0_383, %c0_384] : memref<4x4x4x1xbf16, #tpu.memory_space<vmem>>, vector<1x1x4x1xbf16>
    %394 = vector.shape_cast %393 : vector<1x1x4x1xbf16> to vector<4x1xbf16>
    %cst_385 = arith.constant dense<0.000000e+00> : vector<4x64xf32>
    %395 = tpu.matmul %394, %361, %cst_385 {dimension_numbers = #tpu.dot_dimension_numbers<[1], [0], [0], [1], [0, 0, 1, 1], [], []>} : vector<4x1xbf16>, vector<1x64xbf16>, vector<4x64xf32> -> vector<4x64xf32>
    %c1_386 = arith.constant 1 : index
    %c1_387 = arith.constant 1 : index
    %c0_388 = arith.constant 0 : index
    %c0_389 = arith.constant 0 : index
    %396 = vector.load %arg17[%c1_386, %c1_387, %c0_388, %c0_389] : memref<4x4x4x1xbf16, #tpu.memory_space<vmem>>, vector<1x1x4x1xbf16>
    %397 = vector.shape_cast %396 : vector<1x1x4x1xbf16> to vector<4x1xbf16>
    %cst_390 = arith.constant dense<0.000000e+00> : vector<4x64xf32>
    %398 = tpu.matmul %397, %366, %cst_390 {dimension_numbers = #tpu.dot_dimension_numbers<[1], [0], [0], [1], [0, 0, 1, 1], [], []>} : vector<4x1xbf16>, vector<1x64xbf16>, vector<4x64xf32> -> vector<4x64xf32>
    %399 = arith.addf %395, %398 : vector<4x64xf32>
    %c1_391 = arith.constant 1 : index
    %c2_392 = arith.constant 2 : index
    %c0_393 = arith.constant 0 : index
    %c0_394 = arith.constant 0 : index
    %400 = vector.load %arg17[%c1_391, %c2_392, %c0_393, %c0_394] : memref<4x4x4x1xbf16, #tpu.memory_space<vmem>>, vector<1x1x4x1xbf16>
    %401 = vector.shape_cast %400 : vector<1x1x4x1xbf16> to vector<4x1xbf16>
    %cst_395 = arith.constant dense<0.000000e+00> : vector<4x64xf32>
    %402 = tpu.matmul %401, %371, %cst_395 {dimension_numbers = #tpu.dot_dimension_numbers<[1], [0], [0], [1], [0, 0, 1, 1], [], []>} : vector<4x1xbf16>, vector<1x64xbf16>, vector<4x64xf32> -> vector<4x64xf32>
    %403 = arith.addf %399, %402 : vector<4x64xf32>
    %c1_396 = arith.constant 1 : index
    %c3_397 = arith.constant 3 : index
    %c0_398 = arith.constant 0 : index
    %c0_399 = arith.constant 0 : index
    %404 = vector.load %arg17[%c1_396, %c3_397, %c0_398, %c0_399] : memref<4x4x4x1xbf16, #tpu.memory_space<vmem>>, vector<1x1x4x1xbf16>
    %405 = vector.shape_cast %404 : vector<1x1x4x1xbf16> to vector<4x1xbf16>
    %cst_400 = arith.constant dense<0.000000e+00> : vector<4x64xf32>
    %406 = tpu.matmul %405, %376, %cst_400 {dimension_numbers = #tpu.dot_dimension_numbers<[1], [0], [0], [1], [0, 0, 1, 1], [], []>} : vector<4x1xbf16>, vector<1x64xbf16>, vector<4x64xf32> -> vector<4x64xf32>
    %407 = arith.addf %403, %406 : vector<4x64xf32>
    %408 = arith.truncf %407 : vector<4x64xf32> to vector<4x64xbf16>
    %c2_401 = arith.constant 2 : index
    %c0_402 = arith.constant 0 : index
    %c0_403 = arith.constant 0 : index
    %c0_404 = arith.constant 0 : index
    %409 = vector.load %arg17[%c2_401, %c0_402, %c0_403, %c0_404] : memref<4x4x4x1xbf16, #tpu.memory_space<vmem>>, vector<1x1x4x1xbf16>
    %410 = vector.shape_cast %409 : vector<1x1x4x1xbf16> to vector<4x1xbf16>
    %cst_405 = arith.constant dense<0.000000e+00> : vector<4x64xf32>
    %411 = tpu.matmul %410, %361, %cst_405 {dimension_numbers = #tpu.dot_dimension_numbers<[1], [0], [0], [1], [0, 0, 1, 1], [], []>} : vector<4x1xbf16>, vector<1x64xbf16>, vector<4x64xf32> -> vector<4x64xf32>
    %c2_406 = arith.constant 2 : index
    %c1_407 = arith.constant 1 : index
    %c0_408 = arith.constant 0 : index
    %c0_409 = arith.constant 0 : index
    %412 = vector.load %arg17[%c2_406, %c1_407, %c0_408, %c0_409] : memref<4x4x4x1xbf16, #tpu.memory_space<vmem>>, vector<1x1x4x1xbf16>
    %413 = vector.shape_cast %412 : vector<1x1x4x1xbf16> to vector<4x1xbf16>
    %cst_410 = arith.constant dense<0.000000e+00> : vector<4x64xf32>
    %414 = tpu.matmul %413, %366, %cst_410 {dimension_numbers = #tpu.dot_dimension_numbers<[1], [0], [0], [1], [0, 0, 1, 1], [], []>} : vector<4x1xbf16>, vector<1x64xbf16>, vector<4x64xf32> -> vector<4x64xf32>
    %415 = arith.addf %411, %414 : vector<4x64xf32>
    %c2_411 = arith.constant 2 : index
    %c2_412 = arith.constant 2 : index
    %c0_413 = arith.constant 0 : index
    %c0_414 = arith.constant 0 : index
    %416 = vector.load %arg17[%c2_411, %c2_412, %c0_413, %c0_414] : memref<4x4x4x1xbf16, #tpu.memory_space<vmem>>, vector<1x1x4x1xbf16>
    %417 = vector.shape_cast %416 : vector<1x1x4x1xbf16> to vector<4x1xbf16>
    %cst_415 = arith.constant dense<0.000000e+00> : vector<4x64xf32>
    %418 = tpu.matmul %417, %371, %cst_415 {dimension_numbers = #tpu.dot_dimension_numbers<[1], [0], [0], [1], [0, 0, 1, 1], [], []>} : vector<4x1xbf16>, vector<1x64xbf16>, vector<4x64xf32> -> vector<4x64xf32>
    %419 = arith.addf %415, %418 : vector<4x64xf32>
    %c2_416 = arith.constant 2 : index
    %c3_417 = arith.constant 3 : index
    %c0_418 = arith.constant 0 : index
    %c0_419 = arith.constant 0 : index
    %420 = vector.load %arg17[%c2_416, %c3_417, %c0_418, %c0_419] : memref<4x4x4x1xbf16, #tpu.memory_space<vmem>>, vector<1x1x4x1xbf16>
    %421 = vector.shape_cast %420 : vector<1x1x4x1xbf16> to vector<4x1xbf16>
    %cst_420 = arith.constant dense<0.000000e+00> : vector<4x64xf32>
    %422 = tpu.matmul %421, %376, %cst_420 {dimension_numbers = #tpu.dot_dimension_numbers<[1], [0], [0], [1], [0, 0, 1, 1], [], []>} : vector<4x1xbf16>, vector<1x64xbf16>, vector<4x64xf32> -> vector<4x64xf32>
    %423 = arith.addf %419, %422 : vector<4x64xf32>
    %424 = arith.truncf %423 : vector<4x64xf32> to vector<4x64xbf16>
    %c3_421 = arith.constant 3 : index
    %c0_422 = arith.constant 0 : index
    %c0_423 = arith.constant 0 : index
    %c0_424 = arith.constant 0 : index
    %425 = vector.load %arg17[%c3_421, %c0_422, %c0_423, %c0_424] : memref<4x4x4x1xbf16, #tpu.memory_space<vmem>>, vector<1x1x4x1xbf16>
    %426 = vector.shape_cast %425 : vector<1x1x4x1xbf16> to vector<4x1xbf16>
    %cst_425 = arith.constant dense<0.000000e+00> : vector<4x64xf32>
    %427 = tpu.matmul %426, %361, %cst_425 {dimension_numbers = #tpu.dot_dimension_numbers<[1], [0], [0], [1], [0, 0, 1, 1], [], []>} : vector<4x1xbf16>, vector<1x64xbf16>, vector<4x64xf32> -> vector<4x64xf32>
    %c3_426 = arith.constant 3 : index
    %c1_427 = arith.constant 1 : index
    %c0_428 = arith.constant 0 : index
    %c0_429 = arith.constant 0 : index
    %428 = vector.load %arg17[%c3_426, %c1_427, %c0_428, %c0_429] : memref<4x4x4x1xbf16, #tpu.memory_space<vmem>>, vector<1x1x4x1xbf16>
    %429 = vector.shape_cast %428 : vector<1x1x4x1xbf16> to vector<4x1xbf16>
    %cst_430 = arith.constant dense<0.000000e+00> : vector<4x64xf32>
    %430 = tpu.matmul %429, %366, %cst_430 {dimension_numbers = #tpu.dot_dimension_numbers<[1], [0], [0], [1], [0, 0, 1, 1], [], []>} : vector<4x1xbf16>, vector<1x64xbf16>, vector<4x64xf32> -> vector<4x64xf32>
    %431 = arith.addf %427, %430 : vector<4x64xf32>
    %c3_431 = arith.constant 3 : index
    %c2_432 = arith.constant 2 : index
    %c0_433 = arith.constant 0 : index
    %c0_434 = arith.constant 0 : index
    %432 = vector.load %arg17[%c3_431, %c2_432, %c0_433, %c0_434] : memref<4x4x4x1xbf16, #tpu.memory_space<vmem>>, vector<1x1x4x1xbf16>
    %433 = vector.shape_cast %432 : vector<1x1x4x1xbf16> to vector<4x1xbf16>
    %cst_435 = arith.constant dense<0.000000e+00> : vector<4x64xf32>
    %434 = tpu.matmul %433, %371, %cst_435 {dimension_numbers = #tpu.dot_dimension_numbers<[1], [0], [0], [1], [0, 0, 1, 1], [], []>} : vector<4x1xbf16>, vector<1x64xbf16>, vector<4x64xf32> -> vector<4x64xf32>
    %435 = arith.addf %431, %434 : vector<4x64xf32>
    %c3_436 = arith.constant 3 : index
    %c3_437 = arith.constant 3 : index
    %c0_438 = arith.constant 0 : index
    %c0_439 = arith.constant 0 : index
    %436 = vector.load %arg17[%c3_436, %c3_437, %c0_438, %c0_439] : memref<4x4x4x1xbf16, #tpu.memory_space<vmem>>, vector<1x1x4x1xbf16>
    %437 = vector.shape_cast %436 : vector<1x1x4x1xbf16> to vector<4x1xbf16>
    %cst_440 = arith.constant dense<0.000000e+00> : vector<4x64xf32>
    %438 = tpu.matmul %437, %376, %cst_440 {dimension_numbers = #tpu.dot_dimension_numbers<[1], [0], [0], [1], [0, 0, 1, 1], [], []>} : vector<4x1xbf16>, vector<1x64xbf16>, vector<4x64xf32> -> vector<4x64xf32>
    %439 = arith.addf %435, %438 : vector<4x64xf32>
    %440 = arith.truncf %439 : vector<4x64xf32> to vector<4x64xbf16>
    %c0_441 = arith.constant 0 : index
    %c0_442 = arith.constant 0 : index
    %c0_443 = arith.constant 0 : index
    %441 = vector.load %arg18[%c0_441, %c0_442, %c0_443] : memref<9x64x32xbf16, #tpu.memory_space<vmem>>, vector<1x64x32xbf16>
    %442 = vector.shape_cast %441 : vector<1x64x32xbf16> to vector<64x32xbf16>
    %cst_444 = arith.constant dense<0.000000e+00> : vector<4x32xf32>
    %443 = tpu.matmul %392, %442, %cst_444 {dimension_numbers = #tpu.dot_dimension_numbers<[1], [0], [0], [1], [0, 0, 1, 1], [], []>} : vector<4x64xbf16>, vector<64x32xbf16>, vector<4x32xf32> -> vector<4x32xf32>
    %c1_445 = arith.constant 1 : index
    %c0_446 = arith.constant 0 : index
    %c0_447 = arith.constant 0 : index
    %444 = vector.load %arg18[%c1_445, %c0_446, %c0_447] : memref<9x64x32xbf16, #tpu.memory_space<vmem>>, vector<1x64x32xbf16>
    %445 = vector.shape_cast %444 : vector<1x64x32xbf16> to vector<64x32xbf16>
    %cst_448 = arith.constant dense<0.000000e+00> : vector<4x32xf32>
    %446 = tpu.matmul %392, %445, %cst_448 {dimension_numbers = #tpu.dot_dimension_numbers<[1], [0], [0], [1], [0, 0, 1, 1], [], []>} : vector<4x64xbf16>, vector<64x32xbf16>, vector<4x32xf32> -> vector<4x32xf32>
    %c2_449 = arith.constant 2 : index
    %c0_450 = arith.constant 0 : index
    %c0_451 = arith.constant 0 : index
    %447 = vector.load %arg18[%c2_449, %c0_450, %c0_451] : memref<9x64x32xbf16, #tpu.memory_space<vmem>>, vector<1x64x32xbf16>
    %448 = vector.shape_cast %447 : vector<1x64x32xbf16> to vector<64x32xbf16>
    %cst_452 = arith.constant dense<0.000000e+00> : vector<4x32xf32>
    %449 = tpu.matmul %408, %448, %cst_452 {dimension_numbers = #tpu.dot_dimension_numbers<[1], [0], [0], [1], [0, 0, 1, 1], [], []>} : vector<4x64xbf16>, vector<64x32xbf16>, vector<4x32xf32> -> vector<4x32xf32>
    %450 = arith.addf %446, %449 : vector<4x32xf32>
    %c3_453 = arith.constant 3 : index
    %c0_454 = arith.constant 0 : index
    %c0_455 = arith.constant 0 : index
    %451 = vector.load %arg18[%c3_453, %c0_454, %c0_455] : memref<9x64x32xbf16, #tpu.memory_space<vmem>>, vector<1x64x32xbf16>
    %452 = vector.shape_cast %451 : vector<1x64x32xbf16> to vector<64x32xbf16>
    %cst_456 = arith.constant dense<0.000000e+00> : vector<4x32xf32>
    %453 = tpu.matmul %392, %452, %cst_456 {dimension_numbers = #tpu.dot_dimension_numbers<[1], [0], [0], [1], [0, 0, 1, 1], [], []>} : vector<4x64xbf16>, vector<64x32xbf16>, vector<4x32xf32> -> vector<4x32xf32>
    %c4_457 = arith.constant 4 : index
    %c0_458 = arith.constant 0 : index
    %c0_459 = arith.constant 0 : index
    %454 = vector.load %arg18[%c4_457, %c0_458, %c0_459] : memref<9x64x32xbf16, #tpu.memory_space<vmem>>, vector<1x64x32xbf16>
    %455 = vector.shape_cast %454 : vector<1x64x32xbf16> to vector<64x32xbf16>
    %cst_460 = arith.constant dense<0.000000e+00> : vector<4x32xf32>
    %456 = tpu.matmul %424, %455, %cst_460 {dimension_numbers = #tpu.dot_dimension_numbers<[1], [0], [0], [1], [0, 0, 1, 1], [], []>} : vector<4x64xbf16>, vector<64x32xbf16>, vector<4x32xf32> -> vector<4x32xf32>
    %457 = arith.addf %453, %456 : vector<4x32xf32>
    %c5_461 = arith.constant 5 : index
    %c0_462 = arith.constant 0 : index
    %c0_463 = arith.constant 0 : index
    %458 = vector.load %arg18[%c5_461, %c0_462, %c0_463] : memref<9x64x32xbf16, #tpu.memory_space<vmem>>, vector<1x64x32xbf16>
    %459 = vector.shape_cast %458 : vector<1x64x32xbf16> to vector<64x32xbf16>
    %cst_464 = arith.constant dense<0.000000e+00> : vector<4x32xf32>
    %460 = tpu.matmul %392, %459, %cst_464 {dimension_numbers = #tpu.dot_dimension_numbers<[1], [0], [0], [1], [0, 0, 1, 1], [], []>} : vector<4x64xbf16>, vector<64x32xbf16>, vector<4x32xf32> -> vector<4x32xf32>
    %c6_465 = arith.constant 6 : index
    %c0_466 = arith.constant 0 : index
    %c0_467 = arith.constant 0 : index
    %461 = vector.load %arg18[%c6_465, %c0_466, %c0_467] : memref<9x64x32xbf16, #tpu.memory_space<vmem>>, vector<1x64x32xbf16>
    %462 = vector.shape_cast %461 : vector<1x64x32xbf16> to vector<64x32xbf16>
    %cst_468 = arith.constant dense<0.000000e+00> : vector<4x32xf32>
    %463 = tpu.matmul %408, %462, %cst_468 {dimension_numbers = #tpu.dot_dimension_numbers<[1], [0], [0], [1], [0, 0, 1, 1], [], []>} : vector<4x64xbf16>, vector<64x32xbf16>, vector<4x32xf32> -> vector<4x32xf32>
    %464 = arith.addf %460, %463 : vector<4x32xf32>
    %c7_469 = arith.constant 7 : index
    %c0_470 = arith.constant 0 : index
    %c0_471 = arith.constant 0 : index
    %465 = vector.load %arg18[%c7_469, %c0_470, %c0_471] : memref<9x64x32xbf16, #tpu.memory_space<vmem>>, vector<1x64x32xbf16>
    %466 = vector.shape_cast %465 : vector<1x64x32xbf16> to vector<64x32xbf16>
    %cst_472 = arith.constant dense<0.000000e+00> : vector<4x32xf32>
    %467 = tpu.matmul %424, %466, %cst_472 {dimension_numbers = #tpu.dot_dimension_numbers<[1], [0], [0], [1], [0, 0, 1, 1], [], []>} : vector<4x64xbf16>, vector<64x32xbf16>, vector<4x32xf32> -> vector<4x32xf32>
    %468 = arith.addf %464, %467 : vector<4x32xf32>
    %c8_473 = arith.constant 8 : index
    %c0_474 = arith.constant 0 : index
    %c0_475 = arith.constant 0 : index
    %469 = vector.load %arg18[%c8_473, %c0_474, %c0_475] : memref<9x64x32xbf16, #tpu.memory_space<vmem>>, vector<1x64x32xbf16>
    %470 = vector.shape_cast %469 : vector<1x64x32xbf16> to vector<64x32xbf16>
    %cst_476 = arith.constant dense<0.000000e+00> : vector<4x32xf32>
    %471 = tpu.matmul %440, %470, %cst_476 {dimension_numbers = #tpu.dot_dimension_numbers<[1], [0], [0], [1], [0, 0, 1, 1], [], []>} : vector<4x64xbf16>, vector<64x32xbf16>, vector<4x32xf32> -> vector<4x32xf32>
    %472 = arith.addf %468, %471 : vector<4x32xf32>
    %c0_477 = arith.constant 0 : index
    %c0_478 = arith.constant 0 : index
    %473 = vector.load %arg19[%c0_477, %c0_478] : memref<1x32xf32, #tpu.memory_space<vmem>>, vector<1x32xf32>
    %474 = vector.broadcast %473 : vector<1x32xf32> to vector<4x32xf32>
    %475 = arith.addf %443, %474 : vector<4x32xf32>
    %cst_479 = arith.constant 0.000000e+00 : f32
    %476 = vector.broadcast %cst_479 : f32 to vector<4x32xf32>
    %477 = arith.maximumf %475, %476 : vector<4x32xf32>
    %478 = arith.truncf %477 : vector<4x32xf32> to vector<4x32xbf16>
    %c0_480 = arith.constant 0 : index
    %c0_481 = arith.constant 0 : index
    %479 = vector.load %arg19[%c0_480, %c0_481] : memref<1x32xf32, #tpu.memory_space<vmem>>, vector<1x32xf32>
    %480 = vector.broadcast %479 : vector<1x32xf32> to vector<4x32xf32>
    %481 = arith.addf %450, %480 : vector<4x32xf32>
    %cst_482 = arith.constant 0.000000e+00 : f32
    %482 = vector.broadcast %cst_482 : f32 to vector<4x32xf32>
    %483 = arith.maximumf %481, %482 : vector<4x32xf32>
    %484 = arith.truncf %483 : vector<4x32xf32> to vector<4x32xbf16>
    %c0_483 = arith.constant 0 : index
    %c0_484 = arith.constant 0 : index
    %485 = vector.load %arg19[%c0_483, %c0_484] : memref<1x32xf32, #tpu.memory_space<vmem>>, vector<1x32xf32>
    %486 = vector.broadcast %485 : vector<1x32xf32> to vector<4x32xf32>
    %487 = arith.addf %457, %486 : vector<4x32xf32>
    %cst_485 = arith.constant 0.000000e+00 : f32
    %488 = vector.broadcast %cst_485 : f32 to vector<4x32xf32>
    %489 = arith.maximumf %487, %488 : vector<4x32xf32>
    %490 = arith.truncf %489 : vector<4x32xf32> to vector<4x32xbf16>
    %c0_486 = arith.constant 0 : index
    %c0_487 = arith.constant 0 : index
    %491 = vector.load %arg19[%c0_486, %c0_487] : memref<1x32xf32, #tpu.memory_space<vmem>>, vector<1x32xf32>
    %492 = vector.broadcast %491 : vector<1x32xf32> to vector<4x32xf32>
    %493 = arith.addf %472, %492 : vector<4x32xf32>
    %cst_488 = arith.constant 0.000000e+00 : f32
    %494 = vector.broadcast %cst_488 : f32 to vector<4x32xf32>
    %495 = arith.maximumf %493, %494 : vector<4x32xf32>
    %496 = arith.truncf %495 : vector<4x32xf32> to vector<4x32xbf16>
    %c0_489 = arith.constant 0 : index
    %c0_490 = arith.constant 0 : index
    %c0_491 = arith.constant 0 : index
    %c0_492 = arith.constant 0 : index
    %497 = vector.load %arg20[%c0_489, %c0_490, %c0_491, %c0_492] : memref<4x4x16x4xbf16, #tpu.memory_space<vmem>>, vector<1x1x16x4xbf16>
    %498 = vector.shape_cast %497 : vector<1x1x16x4xbf16> to vector<16x4xbf16>
    %cst_493 = arith.constant dense<0.000000e+00> : vector<16x32xf32>
    %499 = tpu.matmul %498, %478, %cst_493 {dimension_numbers = #tpu.dot_dimension_numbers<[1], [0], [0], [1], [0, 0, 1, 1], [], []>} : vector<16x4xbf16>, vector<4x32xbf16>, vector<16x32xf32> -> vector<16x32xf32>
    %c0_494 = arith.constant 0 : index
    %c1_495 = arith.constant 1 : index
    %c0_496 = arith.constant 0 : index
    %c0_497 = arith.constant 0 : index
    %500 = vector.load %arg20[%c0_494, %c1_495, %c0_496, %c0_497] : memref<4x4x16x4xbf16, #tpu.memory_space<vmem>>, vector<1x1x16x4xbf16>
    %501 = vector.shape_cast %500 : vector<1x1x16x4xbf16> to vector<16x4xbf16>
    %cst_498 = arith.constant dense<0.000000e+00> : vector<16x32xf32>
    %502 = tpu.matmul %501, %484, %cst_498 {dimension_numbers = #tpu.dot_dimension_numbers<[1], [0], [0], [1], [0, 0, 1, 1], [], []>} : vector<16x4xbf16>, vector<4x32xbf16>, vector<16x32xf32> -> vector<16x32xf32>
    %503 = arith.addf %499, %502 : vector<16x32xf32>
    %c0_499 = arith.constant 0 : index
    %c2_500 = arith.constant 2 : index
    %c0_501 = arith.constant 0 : index
    %c0_502 = arith.constant 0 : index
    %504 = vector.load %arg20[%c0_499, %c2_500, %c0_501, %c0_502] : memref<4x4x16x4xbf16, #tpu.memory_space<vmem>>, vector<1x1x16x4xbf16>
    %505 = vector.shape_cast %504 : vector<1x1x16x4xbf16> to vector<16x4xbf16>
    %cst_503 = arith.constant dense<0.000000e+00> : vector<16x32xf32>
    %506 = tpu.matmul %505, %490, %cst_503 {dimension_numbers = #tpu.dot_dimension_numbers<[1], [0], [0], [1], [0, 0, 1, 1], [], []>} : vector<16x4xbf16>, vector<4x32xbf16>, vector<16x32xf32> -> vector<16x32xf32>
    %507 = arith.addf %503, %506 : vector<16x32xf32>
    %c0_504 = arith.constant 0 : index
    %c3_505 = arith.constant 3 : index
    %c0_506 = arith.constant 0 : index
    %c0_507 = arith.constant 0 : index
    %508 = vector.load %arg20[%c0_504, %c3_505, %c0_506, %c0_507] : memref<4x4x16x4xbf16, #tpu.memory_space<vmem>>, vector<1x1x16x4xbf16>
    %509 = vector.shape_cast %508 : vector<1x1x16x4xbf16> to vector<16x4xbf16>
    %cst_508 = arith.constant dense<0.000000e+00> : vector<16x32xf32>
    %510 = tpu.matmul %509, %496, %cst_508 {dimension_numbers = #tpu.dot_dimension_numbers<[1], [0], [0], [1], [0, 0, 1, 1], [], []>} : vector<16x4xbf16>, vector<4x32xbf16>, vector<16x32xf32> -> vector<16x32xf32>
    %511 = arith.addf %507, %510 : vector<16x32xf32>
    %512 = arith.truncf %511 : vector<16x32xf32> to vector<16x32xbf16>
    %c1_509 = arith.constant 1 : index
    %c0_510 = arith.constant 0 : index
    %c0_511 = arith.constant 0 : index
    %c0_512 = arith.constant 0 : index
    %513 = vector.load %arg20[%c1_509, %c0_510, %c0_511, %c0_512] : memref<4x4x16x4xbf16, #tpu.memory_space<vmem>>, vector<1x1x16x4xbf16>
    %514 = vector.shape_cast %513 : vector<1x1x16x4xbf16> to vector<16x4xbf16>
    %cst_513 = arith.constant dense<0.000000e+00> : vector<16x32xf32>
    %515 = tpu.matmul %514, %478, %cst_513 {dimension_numbers = #tpu.dot_dimension_numbers<[1], [0], [0], [1], [0, 0, 1, 1], [], []>} : vector<16x4xbf16>, vector<4x32xbf16>, vector<16x32xf32> -> vector<16x32xf32>
    %c1_514 = arith.constant 1 : index
    %c1_515 = arith.constant 1 : index
    %c0_516 = arith.constant 0 : index
    %c0_517 = arith.constant 0 : index
    %516 = vector.load %arg20[%c1_514, %c1_515, %c0_516, %c0_517] : memref<4x4x16x4xbf16, #tpu.memory_space<vmem>>, vector<1x1x16x4xbf16>
    %517 = vector.shape_cast %516 : vector<1x1x16x4xbf16> to vector<16x4xbf16>
    %cst_518 = arith.constant dense<0.000000e+00> : vector<16x32xf32>
    %518 = tpu.matmul %517, %484, %cst_518 {dimension_numbers = #tpu.dot_dimension_numbers<[1], [0], [0], [1], [0, 0, 1, 1], [], []>} : vector<16x4xbf16>, vector<4x32xbf16>, vector<16x32xf32> -> vector<16x32xf32>
    %519 = arith.addf %515, %518 : vector<16x32xf32>
    %c1_519 = arith.constant 1 : index
    %c2_520 = arith.constant 2 : index
    %c0_521 = arith.constant 0 : index
    %c0_522 = arith.constant 0 : index
    %520 = vector.load %arg20[%c1_519, %c2_520, %c0_521, %c0_522] : memref<4x4x16x4xbf16, #tpu.memory_space<vmem>>, vector<1x1x16x4xbf16>
    %521 = vector.shape_cast %520 : vector<1x1x16x4xbf16> to vector<16x4xbf16>
    %cst_523 = arith.constant dense<0.000000e+00> : vector<16x32xf32>
    %522 = tpu.matmul %521, %490, %cst_523 {dimension_numbers = #tpu.dot_dimension_numbers<[1], [0], [0], [1], [0, 0, 1, 1], [], []>} : vector<16x4xbf16>, vector<4x32xbf16>, vector<16x32xf32> -> vector<16x32xf32>
    %523 = arith.addf %519, %522 : vector<16x32xf32>
    %c1_524 = arith.constant 1 : index
    %c3_525 = arith.constant 3 : index
    %c0_526 = arith.constant 0 : index
    %c0_527 = arith.constant 0 : index
    %524 = vector.load %arg20[%c1_524, %c3_525, %c0_526, %c0_527] : memref<4x4x16x4xbf16, #tpu.memory_space<vmem>>, vector<1x1x16x4xbf16>
    %525 = vector.shape_cast %524 : vector<1x1x16x4xbf16> to vector<16x4xbf16>
    %cst_528 = arith.constant dense<0.000000e+00> : vector<16x32xf32>
    %526 = tpu.matmul %525, %496, %cst_528 {dimension_numbers = #tpu.dot_dimension_numbers<[1], [0], [0], [1], [0, 0, 1, 1], [], []>} : vector<16x4xbf16>, vector<4x32xbf16>, vector<16x32xf32> -> vector<16x32xf32>
    %527 = arith.addf %523, %526 : vector<16x32xf32>
    %528 = arith.truncf %527 : vector<16x32xf32> to vector<16x32xbf16>
    %c2_529 = arith.constant 2 : index
    %c0_530 = arith.constant 0 : index
    %c0_531 = arith.constant 0 : index
    %c0_532 = arith.constant 0 : index
    %529 = vector.load %arg20[%c2_529, %c0_530, %c0_531, %c0_532] : memref<4x4x16x4xbf16, #tpu.memory_space<vmem>>, vector<1x1x16x4xbf16>
    %530 = vector.shape_cast %529 : vector<1x1x16x4xbf16> to vector<16x4xbf16>
    %cst_533 = arith.constant dense<0.000000e+00> : vector<16x32xf32>
    %531 = tpu.matmul %530, %478, %cst_533 {dimension_numbers = #tpu.dot_dimension_numbers<[1], [0], [0], [1], [0, 0, 1, 1], [], []>} : vector<16x4xbf16>, vector<4x32xbf16>, vector<16x32xf32> -> vector<16x32xf32>
    %c2_534 = arith.constant 2 : index
    %c1_535 = arith.constant 1 : index
    %c0_536 = arith.constant 0 : index
    %c0_537 = arith.constant 0 : index
    %532 = vector.load %arg20[%c2_534, %c1_535, %c0_536, %c0_537] : memref<4x4x16x4xbf16, #tpu.memory_space<vmem>>, vector<1x1x16x4xbf16>
    %533 = vector.shape_cast %532 : vector<1x1x16x4xbf16> to vector<16x4xbf16>
    %cst_538 = arith.constant dense<0.000000e+00> : vector<16x32xf32>
    %534 = tpu.matmul %533, %484, %cst_538 {dimension_numbers = #tpu.dot_dimension_numbers<[1], [0], [0], [1], [0, 0, 1, 1], [], []>} : vector<16x4xbf16>, vector<4x32xbf16>, vector<16x32xf32> -> vector<16x32xf32>
    %535 = arith.addf %531, %534 : vector<16x32xf32>
    %c2_539 = arith.constant 2 : index
    %c2_540 = arith.constant 2 : index
    %c0_541 = arith.constant 0 : index
    %c0_542 = arith.constant 0 : index
    %536 = vector.load %arg20[%c2_539, %c2_540, %c0_541, %c0_542] : memref<4x4x16x4xbf16, #tpu.memory_space<vmem>>, vector<1x1x16x4xbf16>
    %537 = vector.shape_cast %536 : vector<1x1x16x4xbf16> to vector<16x4xbf16>
    %cst_543 = arith.constant dense<0.000000e+00> : vector<16x32xf32>
    %538 = tpu.matmul %537, %490, %cst_543 {dimension_numbers = #tpu.dot_dimension_numbers<[1], [0], [0], [1], [0, 0, 1, 1], [], []>} : vector<16x4xbf16>, vector<4x32xbf16>, vector<16x32xf32> -> vector<16x32xf32>
    %539 = arith.addf %535, %538 : vector<16x32xf32>
    %c2_544 = arith.constant 2 : index
    %c3_545 = arith.constant 3 : index
    %c0_546 = arith.constant 0 : index
    %c0_547 = arith.constant 0 : index
    %540 = vector.load %arg20[%c2_544, %c3_545, %c0_546, %c0_547] : memref<4x4x16x4xbf16, #tpu.memory_space<vmem>>, vector<1x1x16x4xbf16>
    %541 = vector.shape_cast %540 : vector<1x1x16x4xbf16> to vector<16x4xbf16>
    %cst_548 = arith.constant dense<0.000000e+00> : vector<16x32xf32>
    %542 = tpu.matmul %541, %496, %cst_548 {dimension_numbers = #tpu.dot_dimension_numbers<[1], [0], [0], [1], [0, 0, 1, 1], [], []>} : vector<16x4xbf16>, vector<4x32xbf16>, vector<16x32xf32> -> vector<16x32xf32>
    %543 = arith.addf %539, %542 : vector<16x32xf32>
    %544 = arith.truncf %543 : vector<16x32xf32> to vector<16x32xbf16>
    %c3_549 = arith.constant 3 : index
    %c0_550 = arith.constant 0 : index
    %c0_551 = arith.constant 0 : index
    %c0_552 = arith.constant 0 : index
    %545 = vector.load %arg20[%c3_549, %c0_550, %c0_551, %c0_552] : memref<4x4x16x4xbf16, #tpu.memory_space<vmem>>, vector<1x1x16x4xbf16>
    %546 = vector.shape_cast %545 : vector<1x1x16x4xbf16> to vector<16x4xbf16>
    %cst_553 = arith.constant dense<0.000000e+00> : vector<16x32xf32>
    %547 = tpu.matmul %546, %478, %cst_553 {dimension_numbers = #tpu.dot_dimension_numbers<[1], [0], [0], [1], [0, 0, 1, 1], [], []>} : vector<16x4xbf16>, vector<4x32xbf16>, vector<16x32xf32> -> vector<16x32xf32>
    %c3_554 = arith.constant 3 : index
    %c1_555 = arith.constant 1 : index
    %c0_556 = arith.constant 0 : index
    %c0_557 = arith.constant 0 : index
    %548 = vector.load %arg20[%c3_554, %c1_555, %c0_556, %c0_557] : memref<4x4x16x4xbf16, #tpu.memory_space<vmem>>, vector<1x1x16x4xbf16>
    %549 = vector.shape_cast %548 : vector<1x1x16x4xbf16> to vector<16x4xbf16>
    %cst_558 = arith.constant dense<0.000000e+00> : vector<16x32xf32>
    %550 = tpu.matmul %549, %484, %cst_558 {dimension_numbers = #tpu.dot_dimension_numbers<[1], [0], [0], [1], [0, 0, 1, 1], [], []>} : vector<16x4xbf16>, vector<4x32xbf16>, vector<16x32xf32> -> vector<16x32xf32>
    %551 = arith.addf %547, %550 : vector<16x32xf32>
    %c3_559 = arith.constant 3 : index
    %c2_560 = arith.constant 2 : index
    %c0_561 = arith.constant 0 : index
    %c0_562 = arith.constant 0 : index
    %552 = vector.load %arg20[%c3_559, %c2_560, %c0_561, %c0_562] : memref<4x4x16x4xbf16, #tpu.memory_space<vmem>>, vector<1x1x16x4xbf16>
    %553 = vector.shape_cast %552 : vector<1x1x16x4xbf16> to vector<16x4xbf16>
    %cst_563 = arith.constant dense<0.000000e+00> : vector<16x32xf32>
    %554 = tpu.matmul %553, %490, %cst_563 {dimension_numbers = #tpu.dot_dimension_numbers<[1], [0], [0], [1], [0, 0, 1, 1], [], []>} : vector<16x4xbf16>, vector<4x32xbf16>, vector<16x32xf32> -> vector<16x32xf32>
    %555 = arith.addf %551, %554 : vector<16x32xf32>
    %c3_564 = arith.constant 3 : index
    %c3_565 = arith.constant 3 : index
    %c0_566 = arith.constant 0 : index
    %c0_567 = arith.constant 0 : index
    %556 = vector.load %arg20[%c3_564, %c3_565, %c0_566, %c0_567] : memref<4x4x16x4xbf16, #tpu.memory_space<vmem>>, vector<1x1x16x4xbf16>
    %557 = vector.shape_cast %556 : vector<1x1x16x4xbf16> to vector<16x4xbf16>
    %cst_568 = arith.constant dense<0.000000e+00> : vector<16x32xf32>
    %558 = tpu.matmul %557, %496, %cst_568 {dimension_numbers = #tpu.dot_dimension_numbers<[1], [0], [0], [1], [0, 0, 1, 1], [], []>} : vector<16x4xbf16>, vector<4x32xbf16>, vector<16x32xf32> -> vector<16x32xf32>
    %559 = arith.addf %555, %558 : vector<16x32xf32>
    %560 = arith.truncf %559 : vector<16x32xf32> to vector<16x32xbf16>
    %c0_569 = arith.constant 0 : index
    %c0_570 = arith.constant 0 : index
    %c0_571 = arith.constant 0 : index
    %561 = vector.load %arg21[%c0_569, %c0_570, %c0_571] : memref<9x32x16xbf16, #tpu.memory_space<vmem>>, vector<1x32x16xbf16>
    %562 = vector.shape_cast %561 : vector<1x32x16xbf16> to vector<32x16xbf16>
    %cst_572 = arith.constant dense<0.000000e+00> : vector<16x16xf32>
    %563 = tpu.matmul %512, %562, %cst_572 {dimension_numbers = #tpu.dot_dimension_numbers<[1], [0], [0], [1], [0, 0, 1, 1], [], []>} : vector<16x32xbf16>, vector<32x16xbf16>, vector<16x16xf32> -> vector<16x16xf32>
    %c1_573 = arith.constant 1 : index
    %c0_574 = arith.constant 0 : index
    %c0_575 = arith.constant 0 : index
    %564 = vector.load %arg21[%c1_573, %c0_574, %c0_575] : memref<9x32x16xbf16, #tpu.memory_space<vmem>>, vector<1x32x16xbf16>
    %565 = vector.shape_cast %564 : vector<1x32x16xbf16> to vector<32x16xbf16>
    %cst_576 = arith.constant dense<0.000000e+00> : vector<16x16xf32>
    %566 = tpu.matmul %512, %565, %cst_576 {dimension_numbers = #tpu.dot_dimension_numbers<[1], [0], [0], [1], [0, 0, 1, 1], [], []>} : vector<16x32xbf16>, vector<32x16xbf16>, vector<16x16xf32> -> vector<16x16xf32>
    %c2_577 = arith.constant 2 : index
    %c0_578 = arith.constant 0 : index
    %c0_579 = arith.constant 0 : index
    %567 = vector.load %arg21[%c2_577, %c0_578, %c0_579] : memref<9x32x16xbf16, #tpu.memory_space<vmem>>, vector<1x32x16xbf16>
    %568 = vector.shape_cast %567 : vector<1x32x16xbf16> to vector<32x16xbf16>
    %cst_580 = arith.constant dense<0.000000e+00> : vector<16x16xf32>
    %569 = tpu.matmul %528, %568, %cst_580 {dimension_numbers = #tpu.dot_dimension_numbers<[1], [0], [0], [1], [0, 0, 1, 1], [], []>} : vector<16x32xbf16>, vector<32x16xbf16>, vector<16x16xf32> -> vector<16x16xf32>
    %570 = arith.addf %566, %569 : vector<16x16xf32>
    %c3_581 = arith.constant 3 : index
    %c0_582 = arith.constant 0 : index
    %c0_583 = arith.constant 0 : index
    %571 = vector.load %arg21[%c3_581, %c0_582, %c0_583] : memref<9x32x16xbf16, #tpu.memory_space<vmem>>, vector<1x32x16xbf16>
    %572 = vector.shape_cast %571 : vector<1x32x16xbf16> to vector<32x16xbf16>
    %cst_584 = arith.constant dense<0.000000e+00> : vector<16x16xf32>
    %573 = tpu.matmul %512, %572, %cst_584 {dimension_numbers = #tpu.dot_dimension_numbers<[1], [0], [0], [1], [0, 0, 1, 1], [], []>} : vector<16x32xbf16>, vector<32x16xbf16>, vector<16x16xf32> -> vector<16x16xf32>
    %c4_585 = arith.constant 4 : index
    %c0_586 = arith.constant 0 : index
    %c0_587 = arith.constant 0 : index
    %574 = vector.load %arg21[%c4_585, %c0_586, %c0_587] : memref<9x32x16xbf16, #tpu.memory_space<vmem>>, vector<1x32x16xbf16>
    %575 = vector.shape_cast %574 : vector<1x32x16xbf16> to vector<32x16xbf16>
    %cst_588 = arith.constant dense<0.000000e+00> : vector<16x16xf32>
    %576 = tpu.matmul %544, %575, %cst_588 {dimension_numbers = #tpu.dot_dimension_numbers<[1], [0], [0], [1], [0, 0, 1, 1], [], []>} : vector<16x32xbf16>, vector<32x16xbf16>, vector<16x16xf32> -> vector<16x16xf32>
    %577 = arith.addf %573, %576 : vector<16x16xf32>
    %c5_589 = arith.constant 5 : index
    %c0_590 = arith.constant 0 : index
    %c0_591 = arith.constant 0 : index
    %578 = vector.load %arg21[%c5_589, %c0_590, %c0_591] : memref<9x32x16xbf16, #tpu.memory_space<vmem>>, vector<1x32x16xbf16>
    %579 = vector.shape_cast %578 : vector<1x32x16xbf16> to vector<32x16xbf16>
    %cst_592 = arith.constant dense<0.000000e+00> : vector<16x16xf32>
    %580 = tpu.matmul %512, %579, %cst_592 {dimension_numbers = #tpu.dot_dimension_numbers<[1], [0], [0], [1], [0, 0, 1, 1], [], []>} : vector<16x32xbf16>, vector<32x16xbf16>, vector<16x16xf32> -> vector<16x16xf32>
    %c6_593 = arith.constant 6 : index
    %c0_594 = arith.constant 0 : index
    %c0_595 = arith.constant 0 : index
    %581 = vector.load %arg21[%c6_593, %c0_594, %c0_595] : memref<9x32x16xbf16, #tpu.memory_space<vmem>>, vector<1x32x16xbf16>
    %582 = vector.shape_cast %581 : vector<1x32x16xbf16> to vector<32x16xbf16>
    %cst_596 = arith.constant dense<0.000000e+00> : vector<16x16xf32>
    %583 = tpu.matmul %528, %582, %cst_596 {dimension_numbers = #tpu.dot_dimension_numbers<[1], [0], [0], [1], [0, 0, 1, 1], [], []>} : vector<16x32xbf16>, vector<32x16xbf16>, vector<16x16xf32> -> vector<16x16xf32>
    %584 = arith.addf %580, %583 : vector<16x16xf32>
    %c7_597 = arith.constant 7 : index
    %c0_598 = arith.constant 0 : index
    %c0_599 = arith.constant 0 : index
    %585 = vector.load %arg21[%c7_597, %c0_598, %c0_599] : memref<9x32x16xbf16, #tpu.memory_space<vmem>>, vector<1x32x16xbf16>
    %586 = vector.shape_cast %585 : vector<1x32x16xbf16> to vector<32x16xbf16>
    %cst_600 = arith.constant dense<0.000000e+00> : vector<16x16xf32>
    %587 = tpu.matmul %544, %586, %cst_600 {dimension_numbers = #tpu.dot_dimension_numbers<[1], [0], [0], [1], [0, 0, 1, 1], [], []>} : vector<16x32xbf16>, vector<32x16xbf16>, vector<16x16xf32> -> vector<16x16xf32>
    %588 = arith.addf %584, %587 : vector<16x16xf32>
    %c8_601 = arith.constant 8 : index
    %c0_602 = arith.constant 0 : index
    %c0_603 = arith.constant 0 : index
    %589 = vector.load %arg21[%c8_601, %c0_602, %c0_603] : memref<9x32x16xbf16, #tpu.memory_space<vmem>>, vector<1x32x16xbf16>
    %590 = vector.shape_cast %589 : vector<1x32x16xbf16> to vector<32x16xbf16>
    %cst_604 = arith.constant dense<0.000000e+00> : vector<16x16xf32>
    %591 = tpu.matmul %560, %590, %cst_604 {dimension_numbers = #tpu.dot_dimension_numbers<[1], [0], [0], [1], [0, 0, 1, 1], [], []>} : vector<16x32xbf16>, vector<32x16xbf16>, vector<16x16xf32> -> vector<16x16xf32>
    %592 = arith.addf %588, %591 : vector<16x16xf32>
    %c0_605 = arith.constant 0 : index
    %c0_606 = arith.constant 0 : index
    %593 = vector.load %arg22[%c0_605, %c0_606] : memref<1x16xf32, #tpu.memory_space<vmem>>, vector<1x16xf32>
    %594 = vector.broadcast %593 : vector<1x16xf32> to vector<16x16xf32>
    %595 = arith.addf %563, %594 : vector<16x16xf32>
    %cst_607 = arith.constant 0.000000e+00 : f32
    %596 = vector.broadcast %cst_607 : f32 to vector<16x16xf32>
    %597 = arith.maximumf %595, %596 : vector<16x16xf32>
    %598 = arith.truncf %597 : vector<16x16xf32> to vector<16x16xbf16>
    %c0_608 = arith.constant 0 : index
    %c0_609 = arith.constant 0 : index
    %599 = vector.load %arg22[%c0_608, %c0_609] : memref<1x16xf32, #tpu.memory_space<vmem>>, vector<1x16xf32>
    %600 = vector.broadcast %599 : vector<1x16xf32> to vector<16x16xf32>
    %601 = arith.addf %570, %600 : vector<16x16xf32>
    %cst_610 = arith.constant 0.000000e+00 : f32
    %602 = vector.broadcast %cst_610 : f32 to vector<16x16xf32>
    %603 = arith.maximumf %601, %602 : vector<16x16xf32>
    %604 = arith.truncf %603 : vector<16x16xf32> to vector<16x16xbf16>
    %c0_611 = arith.constant 0 : index
    %c0_612 = arith.constant 0 : index
    %605 = vector.load %arg22[%c0_611, %c0_612] : memref<1x16xf32, #tpu.memory_space<vmem>>, vector<1x16xf32>
    %606 = vector.broadcast %605 : vector<1x16xf32> to vector<16x16xf32>
    %607 = arith.addf %577, %606 : vector<16x16xf32>
    %cst_613 = arith.constant 0.000000e+00 : f32
    %608 = vector.broadcast %cst_613 : f32 to vector<16x16xf32>
    %609 = arith.maximumf %607, %608 : vector<16x16xf32>
    %610 = arith.truncf %609 : vector<16x16xf32> to vector<16x16xbf16>
    %c0_614 = arith.constant 0 : index
    %c0_615 = arith.constant 0 : index
    %611 = vector.load %arg22[%c0_614, %c0_615] : memref<1x16xf32, #tpu.memory_space<vmem>>, vector<1x16xf32>
    %612 = vector.broadcast %611 : vector<1x16xf32> to vector<16x16xf32>
    %613 = arith.addf %592, %612 : vector<16x16xf32>
    %cst_616 = arith.constant 0.000000e+00 : f32
    %614 = vector.broadcast %cst_616 : f32 to vector<16x16xf32>
    %615 = arith.maximumf %613, %614 : vector<16x16xf32>
    %616 = arith.truncf %615 : vector<16x16xf32> to vector<16x16xbf16>
    %c0_617 = arith.constant 0 : index
    %c0_618 = arith.constant 0 : index
    %c0_619 = arith.constant 0 : index
    %c0_620 = arith.constant 0 : index
    %617 = vector.load %arg23[%c0_617, %c0_618, %c0_619, %c0_620] : memref<4x4x64x16xbf16, #tpu.memory_space<vmem>>, vector<1x1x64x16xbf16>
    %618 = vector.shape_cast %617 : vector<1x1x64x16xbf16> to vector<64x16xbf16>
    %cst_621 = arith.constant dense<0.000000e+00> : vector<64x16xf32>
    %619 = tpu.matmul %618, %598, %cst_621 {dimension_numbers = #tpu.dot_dimension_numbers<[1], [0], [0], [1], [0, 0, 1, 1], [], []>} : vector<64x16xbf16>, vector<16x16xbf16>, vector<64x16xf32> -> vector<64x16xf32>
    %c0_622 = arith.constant 0 : index
    %c1_623 = arith.constant 1 : index
    %c0_624 = arith.constant 0 : index
    %c0_625 = arith.constant 0 : index
    %620 = vector.load %arg23[%c0_622, %c1_623, %c0_624, %c0_625] : memref<4x4x64x16xbf16, #tpu.memory_space<vmem>>, vector<1x1x64x16xbf16>
    %621 = vector.shape_cast %620 : vector<1x1x64x16xbf16> to vector<64x16xbf16>
    %cst_626 = arith.constant dense<0.000000e+00> : vector<64x16xf32>
    %622 = tpu.matmul %621, %604, %cst_626 {dimension_numbers = #tpu.dot_dimension_numbers<[1], [0], [0], [1], [0, 0, 1, 1], [], []>} : vector<64x16xbf16>, vector<16x16xbf16>, vector<64x16xf32> -> vector<64x16xf32>
    %623 = arith.addf %619, %622 : vector<64x16xf32>
    %c0_627 = arith.constant 0 : index
    %c2_628 = arith.constant 2 : index
    %c0_629 = arith.constant 0 : index
    %c0_630 = arith.constant 0 : index
    %624 = vector.load %arg23[%c0_627, %c2_628, %c0_629, %c0_630] : memref<4x4x64x16xbf16, #tpu.memory_space<vmem>>, vector<1x1x64x16xbf16>
    %625 = vector.shape_cast %624 : vector<1x1x64x16xbf16> to vector<64x16xbf16>
    %cst_631 = arith.constant dense<0.000000e+00> : vector<64x16xf32>
    %626 = tpu.matmul %625, %610, %cst_631 {dimension_numbers = #tpu.dot_dimension_numbers<[1], [0], [0], [1], [0, 0, 1, 1], [], []>} : vector<64x16xbf16>, vector<16x16xbf16>, vector<64x16xf32> -> vector<64x16xf32>
    %627 = arith.addf %623, %626 : vector<64x16xf32>
    %c0_632 = arith.constant 0 : index
    %c3_633 = arith.constant 3 : index
    %c0_634 = arith.constant 0 : index
    %c0_635 = arith.constant 0 : index
    %628 = vector.load %arg23[%c0_632, %c3_633, %c0_634, %c0_635] : memref<4x4x64x16xbf16, #tpu.memory_space<vmem>>, vector<1x1x64x16xbf16>
    %629 = vector.shape_cast %628 : vector<1x1x64x16xbf16> to vector<64x16xbf16>
    %cst_636 = arith.constant dense<0.000000e+00> : vector<64x16xf32>
    %630 = tpu.matmul %629, %616, %cst_636 {dimension_numbers = #tpu.dot_dimension_numbers<[1], [0], [0], [1], [0, 0, 1, 1], [], []>} : vector<64x16xbf16>, vector<16x16xbf16>, vector<64x16xf32> -> vector<64x16xf32>
    %631 = arith.addf %627, %630 : vector<64x16xf32>
    %632 = arith.truncf %631 : vector<64x16xf32> to vector<64x16xbf16>
    %c1_637 = arith.constant 1 : index
    %c0_638 = arith.constant 0 : index
    %c0_639 = arith.constant 0 : index
    %c0_640 = arith.constant 0 : index
    %633 = vector.load %arg23[%c1_637, %c0_638, %c0_639, %c0_640] : memref<4x4x64x16xbf16, #tpu.memory_space<vmem>>, vector<1x1x64x16xbf16>
    %634 = vector.shape_cast %633 : vector<1x1x64x16xbf16> to vector<64x16xbf16>
    %cst_641 = arith.constant dense<0.000000e+00> : vector<64x16xf32>
    %635 = tpu.matmul %634, %598, %cst_641 {dimension_numbers = #tpu.dot_dimension_numbers<[1], [0], [0], [1], [0, 0, 1, 1], [], []>} : vector<64x16xbf16>, vector<16x16xbf16>, vector<64x16xf32> -> vector<64x16xf32>
    %c1_642 = arith.constant 1 : index
    %c1_643 = arith.constant 1 : index
    %c0_644 = arith.constant 0 : index
    %c0_645 = arith.constant 0 : index
    %636 = vector.load %arg23[%c1_642, %c1_643, %c0_644, %c0_645] : memref<4x4x64x16xbf16, #tpu.memory_space<vmem>>, vector<1x1x64x16xbf16>
    %637 = vector.shape_cast %636 : vector<1x1x64x16xbf16> to vector<64x16xbf16>
    %cst_646 = arith.constant dense<0.000000e+00> : vector<64x16xf32>
    %638 = tpu.matmul %637, %604, %cst_646 {dimension_numbers = #tpu.dot_dimension_numbers<[1], [0], [0], [1], [0, 0, 1, 1], [], []>} : vector<64x16xbf16>, vector<16x16xbf16>, vector<64x16xf32> -> vector<64x16xf32>
    %639 = arith.addf %635, %638 : vector<64x16xf32>
    %c1_647 = arith.constant 1 : index
    %c2_648 = arith.constant 2 : index
    %c0_649 = arith.constant 0 : index
    %c0_650 = arith.constant 0 : index
    %640 = vector.load %arg23[%c1_647, %c2_648, %c0_649, %c0_650] : memref<4x4x64x16xbf16, #tpu.memory_space<vmem>>, vector<1x1x64x16xbf16>
    %641 = vector.shape_cast %640 : vector<1x1x64x16xbf16> to vector<64x16xbf16>
    %cst_651 = arith.constant dense<0.000000e+00> : vector<64x16xf32>
    %642 = tpu.matmul %641, %610, %cst_651 {dimension_numbers = #tpu.dot_dimension_numbers<[1], [0], [0], [1], [0, 0, 1, 1], [], []>} : vector<64x16xbf16>, vector<16x16xbf16>, vector<64x16xf32> -> vector<64x16xf32>
    %643 = arith.addf %639, %642 : vector<64x16xf32>
    %c1_652 = arith.constant 1 : index
    %c3_653 = arith.constant 3 : index
    %c0_654 = arith.constant 0 : index
    %c0_655 = arith.constant 0 : index
    %644 = vector.load %arg23[%c1_652, %c3_653, %c0_654, %c0_655] : memref<4x4x64x16xbf16, #tpu.memory_space<vmem>>, vector<1x1x64x16xbf16>
    %645 = vector.shape_cast %644 : vector<1x1x64x16xbf16> to vector<64x16xbf16>
    %cst_656 = arith.constant dense<0.000000e+00> : vector<64x16xf32>
    %646 = tpu.matmul %645, %616, %cst_656 {dimension_numbers = #tpu.dot_dimension_numbers<[1], [0], [0], [1], [0, 0, 1, 1], [], []>} : vector<64x16xbf16>, vector<16x16xbf16>, vector<64x16xf32> -> vector<64x16xf32>
    %647 = arith.addf %643, %646 : vector<64x16xf32>
    %648 = arith.truncf %647 : vector<64x16xf32> to vector<64x16xbf16>
    %c2_657 = arith.constant 2 : index
    %c0_658 = arith.constant 0 : index
    %c0_659 = arith.constant 0 : index
    %c0_660 = arith.constant 0 : index
    %649 = vector.load %arg23[%c2_657, %c0_658, %c0_659, %c0_660] : memref<4x4x64x16xbf16, #tpu.memory_space<vmem>>, vector<1x1x64x16xbf16>
    %650 = vector.shape_cast %649 : vector<1x1x64x16xbf16> to vector<64x16xbf16>
    %cst_661 = arith.constant dense<0.000000e+00> : vector<64x16xf32>
    %651 = tpu.matmul %650, %598, %cst_661 {dimension_numbers = #tpu.dot_dimension_numbers<[1], [0], [0], [1], [0, 0, 1, 1], [], []>} : vector<64x16xbf16>, vector<16x16xbf16>, vector<64x16xf32> -> vector<64x16xf32>
    %c2_662 = arith.constant 2 : index
    %c1_663 = arith.constant 1 : index
    %c0_664 = arith.constant 0 : index
    %c0_665 = arith.constant 0 : index
    %652 = vector.load %arg23[%c2_662, %c1_663, %c0_664, %c0_665] : memref<4x4x64x16xbf16, #tpu.memory_space<vmem>>, vector<1x1x64x16xbf16>
    %653 = vector.shape_cast %652 : vector<1x1x64x16xbf16> to vector<64x16xbf16>
    %cst_666 = arith.constant dense<0.000000e+00> : vector<64x16xf32>
    %654 = tpu.matmul %653, %604, %cst_666 {dimension_numbers = #tpu.dot_dimension_numbers<[1], [0], [0], [1], [0, 0, 1, 1], [], []>} : vector<64x16xbf16>, vector<16x16xbf16>, vector<64x16xf32> -> vector<64x16xf32>
    %655 = arith.addf %651, %654 : vector<64x16xf32>
    %c2_667 = arith.constant 2 : index
    %c2_668 = arith.constant 2 : index
    %c0_669 = arith.constant 0 : index
    %c0_670 = arith.constant 0 : index
    %656 = vector.load %arg23[%c2_667, %c2_668, %c0_669, %c0_670] : memref<4x4x64x16xbf16, #tpu.memory_space<vmem>>, vector<1x1x64x16xbf16>
    %657 = vector.shape_cast %656 : vector<1x1x64x16xbf16> to vector<64x16xbf16>
    %cst_671 = arith.constant dense<0.000000e+00> : vector<64x16xf32>
    %658 = tpu.matmul %657, %610, %cst_671 {dimension_numbers = #tpu.dot_dimension_numbers<[1], [0], [0], [1], [0, 0, 1, 1], [], []>} : vector<64x16xbf16>, vector<16x16xbf16>, vector<64x16xf32> -> vector<64x16xf32>
    %659 = arith.addf %655, %658 : vector<64x16xf32>
    %c2_672 = arith.constant 2 : index
    %c3_673 = arith.constant 3 : index
    %c0_674 = arith.constant 0 : index
    %c0_675 = arith.constant 0 : index
    %660 = vector.load %arg23[%c2_672, %c3_673, %c0_674, %c0_675] : memref<4x4x64x16xbf16, #tpu.memory_space<vmem>>, vector<1x1x64x16xbf16>
    %661 = vector.shape_cast %660 : vector<1x1x64x16xbf16> to vector<64x16xbf16>
    %cst_676 = arith.constant dense<0.000000e+00> : vector<64x16xf32>
    %662 = tpu.matmul %661, %616, %cst_676 {dimension_numbers = #tpu.dot_dimension_numbers<[1], [0], [0], [1], [0, 0, 1, 1], [], []>} : vector<64x16xbf16>, vector<16x16xbf16>, vector<64x16xf32> -> vector<64x16xf32>
    %663 = arith.addf %659, %662 : vector<64x16xf32>
    %664 = arith.truncf %663 : vector<64x16xf32> to vector<64x16xbf16>
    %c3_677 = arith.constant 3 : index
    %c0_678 = arith.constant 0 : index
    %c0_679 = arith.constant 0 : index
    %c0_680 = arith.constant 0 : index
    %665 = vector.load %arg23[%c3_677, %c0_678, %c0_679, %c0_680] : memref<4x4x64x16xbf16, #tpu.memory_space<vmem>>, vector<1x1x64x16xbf16>
    %666 = vector.shape_cast %665 : vector<1x1x64x16xbf16> to vector<64x16xbf16>
    %cst_681 = arith.constant dense<0.000000e+00> : vector<64x16xf32>
    %667 = tpu.matmul %666, %598, %cst_681 {dimension_numbers = #tpu.dot_dimension_numbers<[1], [0], [0], [1], [0, 0, 1, 1], [], []>} : vector<64x16xbf16>, vector<16x16xbf16>, vector<64x16xf32> -> vector<64x16xf32>
    %c3_682 = arith.constant 3 : index
    %c1_683 = arith.constant 1 : index
    %c0_684 = arith.constant 0 : index
    %c0_685 = arith.constant 0 : index
    %668 = vector.load %arg23[%c3_682, %c1_683, %c0_684, %c0_685] : memref<4x4x64x16xbf16, #tpu.memory_space<vmem>>, vector<1x1x64x16xbf16>
    %669 = vector.shape_cast %668 : vector<1x1x64x16xbf16> to vector<64x16xbf16>
    %cst_686 = arith.constant dense<0.000000e+00> : vector<64x16xf32>
    %670 = tpu.matmul %669, %604, %cst_686 {dimension_numbers = #tpu.dot_dimension_numbers<[1], [0], [0], [1], [0, 0, 1, 1], [], []>} : vector<64x16xbf16>, vector<16x16xbf16>, vector<64x16xf32> -> vector<64x16xf32>
    %671 = arith.addf %667, %670 : vector<64x16xf32>
    %c3_687 = arith.constant 3 : index
    %c2_688 = arith.constant 2 : index
    %c0_689 = arith.constant 0 : index
    %c0_690 = arith.constant 0 : index
    %672 = vector.load %arg23[%c3_687, %c2_688, %c0_689, %c0_690] : memref<4x4x64x16xbf16, #tpu.memory_space<vmem>>, vector<1x1x64x16xbf16>
    %673 = vector.shape_cast %672 : vector<1x1x64x16xbf16> to vector<64x16xbf16>
    %cst_691 = arith.constant dense<0.000000e+00> : vector<64x16xf32>
    %674 = tpu.matmul %673, %610, %cst_691 {dimension_numbers = #tpu.dot_dimension_numbers<[1], [0], [0], [1], [0, 0, 1, 1], [], []>} : vector<64x16xbf16>, vector<16x16xbf16>, vector<64x16xf32> -> vector<64x16xf32>
    %675 = arith.addf %671, %674 : vector<64x16xf32>
    %c3_692 = arith.constant 3 : index
    %c3_693 = arith.constant 3 : index
    %c0_694 = arith.constant 0 : index
    %c0_695 = arith.constant 0 : index
    %676 = vector.load %arg23[%c3_692, %c3_693, %c0_694, %c0_695] : memref<4x4x64x16xbf16, #tpu.memory_space<vmem>>, vector<1x1x64x16xbf16>
    %677 = vector.shape_cast %676 : vector<1x1x64x16xbf16> to vector<64x16xbf16>
    %cst_696 = arith.constant dense<0.000000e+00> : vector<64x16xf32>
    %678 = tpu.matmul %677, %616, %cst_696 {dimension_numbers = #tpu.dot_dimension_numbers<[1], [0], [0], [1], [0, 0, 1, 1], [], []>} : vector<64x16xbf16>, vector<16x16xbf16>, vector<64x16xf32> -> vector<64x16xf32>
    %679 = arith.addf %675, %678 : vector<64x16xf32>
    %680 = arith.truncf %679 : vector<64x16xf32> to vector<64x16xbf16>
    %c0_697 = arith.constant 0 : index
    %c0_698 = arith.constant 0 : index
    %c0_699 = arith.constant 0 : index
    %681 = vector.load %arg24[%c0_697, %c0_698, %c0_699] : memref<9x16x3xbf16, #tpu.memory_space<vmem>>, vector<1x16x3xbf16>
    %682 = vector.shape_cast %681 : vector<1x16x3xbf16> to vector<16x3xbf16>
    %cst_700 = arith.constant dense<0.000000e+00> : vector<64x3xf32>
    %683 = tpu.matmul %632, %682, %cst_700 {dimension_numbers = #tpu.dot_dimension_numbers<[1], [0], [0], [1], [0, 0, 1, 1], [], []>} : vector<64x16xbf16>, vector<16x3xbf16>, vector<64x3xf32> -> vector<64x3xf32>
    %c1_701 = arith.constant 1 : index
    %c0_702 = arith.constant 0 : index
    %c0_703 = arith.constant 0 : index
    %684 = vector.load %arg24[%c1_701, %c0_702, %c0_703] : memref<9x16x3xbf16, #tpu.memory_space<vmem>>, vector<1x16x3xbf16>
    %685 = vector.shape_cast %684 : vector<1x16x3xbf16> to vector<16x3xbf16>
    %cst_704 = arith.constant dense<0.000000e+00> : vector<64x3xf32>
    %686 = tpu.matmul %632, %685, %cst_704 {dimension_numbers = #tpu.dot_dimension_numbers<[1], [0], [0], [1], [0, 0, 1, 1], [], []>} : vector<64x16xbf16>, vector<16x3xbf16>, vector<64x3xf32> -> vector<64x3xf32>
    %c2_705 = arith.constant 2 : index
    %c0_706 = arith.constant 0 : index
    %c0_707 = arith.constant 0 : index
    %687 = vector.load %arg24[%c2_705, %c0_706, %c0_707] : memref<9x16x3xbf16, #tpu.memory_space<vmem>>, vector<1x16x3xbf16>
    %688 = vector.shape_cast %687 : vector<1x16x3xbf16> to vector<16x3xbf16>
    %cst_708 = arith.constant dense<0.000000e+00> : vector<64x3xf32>
    %689 = tpu.matmul %648, %688, %cst_708 {dimension_numbers = #tpu.dot_dimension_numbers<[1], [0], [0], [1], [0, 0, 1, 1], [], []>} : vector<64x16xbf16>, vector<16x3xbf16>, vector<64x3xf32> -> vector<64x3xf32>
    %690 = arith.addf %686, %689 : vector<64x3xf32>
    %c3_709 = arith.constant 3 : index
    %c0_710 = arith.constant 0 : index
    %c0_711 = arith.constant 0 : index
    %691 = vector.load %arg24[%c3_709, %c0_710, %c0_711] : memref<9x16x3xbf16, #tpu.memory_space<vmem>>, vector<1x16x3xbf16>
    %692 = vector.shape_cast %691 : vector<1x16x3xbf16> to vector<16x3xbf16>
    %cst_712 = arith.constant dense<0.000000e+00> : vector<64x3xf32>
    %693 = tpu.matmul %632, %692, %cst_712 {dimension_numbers = #tpu.dot_dimension_numbers<[1], [0], [0], [1], [0, 0, 1, 1], [], []>} : vector<64x16xbf16>, vector<16x3xbf16>, vector<64x3xf32> -> vector<64x3xf32>
    %c4_713 = arith.constant 4 : index
    %c0_714 = arith.constant 0 : index
    %c0_715 = arith.constant 0 : index
    %694 = vector.load %arg24[%c4_713, %c0_714, %c0_715] : memref<9x16x3xbf16, #tpu.memory_space<vmem>>, vector<1x16x3xbf16>
    %695 = vector.shape_cast %694 : vector<1x16x3xbf16> to vector<16x3xbf16>
    %cst_716 = arith.constant dense<0.000000e+00> : vector<64x3xf32>
    %696 = tpu.matmul %664, %695, %cst_716 {dimension_numbers = #tpu.dot_dimension_numbers<[1], [0], [0], [1], [0, 0, 1, 1], [], []>} : vector<64x16xbf16>, vector<16x3xbf16>, vector<64x3xf32> -> vector<64x3xf32>
    %697 = arith.addf %693, %696 : vector<64x3xf32>
    %c5_717 = arith.constant 5 : index
    %c0_718 = arith.constant 0 : index
    %c0_719 = arith.constant 0 : index
    %698 = vector.load %arg24[%c5_717, %c0_718, %c0_719] : memref<9x16x3xbf16, #tpu.memory_space<vmem>>, vector<1x16x3xbf16>
    %699 = vector.shape_cast %698 : vector<1x16x3xbf16> to vector<16x3xbf16>
    %cst_720 = arith.constant dense<0.000000e+00> : vector<64x3xf32>
    %700 = tpu.matmul %632, %699, %cst_720 {dimension_numbers = #tpu.dot_dimension_numbers<[1], [0], [0], [1], [0, 0, 1, 1], [], []>} : vector<64x16xbf16>, vector<16x3xbf16>, vector<64x3xf32> -> vector<64x3xf32>
    %c6_721 = arith.constant 6 : index
    %c0_722 = arith.constant 0 : index
    %c0_723 = arith.constant 0 : index
    %701 = vector.load %arg24[%c6_721, %c0_722, %c0_723] : memref<9x16x3xbf16, #tpu.memory_space<vmem>>, vector<1x16x3xbf16>
    %702 = vector.shape_cast %701 : vector<1x16x3xbf16> to vector<16x3xbf16>
    %cst_724 = arith.constant dense<0.000000e+00> : vector<64x3xf32>
    %703 = tpu.matmul %648, %702, %cst_724 {dimension_numbers = #tpu.dot_dimension_numbers<[1], [0], [0], [1], [0, 0, 1, 1], [], []>} : vector<64x16xbf16>, vector<16x3xbf16>, vector<64x3xf32> -> vector<64x3xf32>
    %704 = arith.addf %700, %703 : vector<64x3xf32>
    %c7_725 = arith.constant 7 : index
    %c0_726 = arith.constant 0 : index
    %c0_727 = arith.constant 0 : index
    %705 = vector.load %arg24[%c7_725, %c0_726, %c0_727] : memref<9x16x3xbf16, #tpu.memory_space<vmem>>, vector<1x16x3xbf16>
    %706 = vector.shape_cast %705 : vector<1x16x3xbf16> to vector<16x3xbf16>
    %cst_728 = arith.constant dense<0.000000e+00> : vector<64x3xf32>
    %707 = tpu.matmul %664, %706, %cst_728 {dimension_numbers = #tpu.dot_dimension_numbers<[1], [0], [0], [1], [0, 0, 1, 1], [], []>} : vector<64x16xbf16>, vector<16x3xbf16>, vector<64x3xf32> -> vector<64x3xf32>
    %708 = arith.addf %704, %707 : vector<64x3xf32>
    %c8_729 = arith.constant 8 : index
    %c0_730 = arith.constant 0 : index
    %c0_731 = arith.constant 0 : index
    %709 = vector.load %arg24[%c8_729, %c0_730, %c0_731] : memref<9x16x3xbf16, #tpu.memory_space<vmem>>, vector<1x16x3xbf16>
    %710 = vector.shape_cast %709 : vector<1x16x3xbf16> to vector<16x3xbf16>
    %cst_732 = arith.constant dense<0.000000e+00> : vector<64x3xf32>
    %711 = tpu.matmul %680, %710, %cst_732 {dimension_numbers = #tpu.dot_dimension_numbers<[1], [0], [0], [1], [0, 0, 1, 1], [], []>} : vector<64x16xbf16>, vector<16x3xbf16>, vector<64x3xf32> -> vector<64x3xf32>
    %712 = arith.addf %708, %711 : vector<64x3xf32>
    %c0_733 = arith.constant 0 : index
    %c0_734 = arith.constant 0 : index
    %713 = vector.load %arg25[%c0_733, %c0_734] : memref<1x3xf32, #tpu.memory_space<vmem>>, vector<1x3xf32>
    %714 = vector.broadcast %713 : vector<1x3xf32> to vector<64x3xf32>
    %715 = arith.addf %683, %714 : vector<64x3xf32>
    %716 = arith.negf %715 : vector<64x3xf32>
    %717 = math.exp %716 : vector<64x3xf32>
    %cst_735 = arith.constant 1.000000e+00 : f32
    %718 = vector.broadcast %cst_735 : f32 to vector<64x3xf32>
    %719 = arith.addf %718, %717 : vector<64x3xf32>
    %720 = arith.divf %718, %719 : vector<64x3xf32>
    %c0_736 = arith.constant 0 : index
    %c0_737 = arith.constant 0 : index
    %c0_738 = arith.constant 0 : index
    %721 = vector.load %arg26[%c0_736, %c0_737, %c0_738] : memref<4x64x3xf32, #tpu.memory_space<vmem>>, vector<1x64x3xf32>
    %722 = vector.shape_cast %721 : vector<1x64x3xf32> to vector<64x3xf32>
    %723 = vector.shape_cast %720 : vector<64x3xf32> to vector<1x64x3xf32>
    tpu.vector_store %arg26[%c0_736, %c0_737, %c0_738], %723 {strides = array<i32>} : memref<4x64x3xf32, #tpu.memory_space<vmem>>, vector<1x64x3xf32>,
    %c0_739 = arith.constant 0 : index
    %c0_740 = arith.constant 0 : index
    %724 = vector.load %arg25[%c0_739, %c0_740] : memref<1x3xf32, #tpu.memory_space<vmem>>, vector<1x3xf32>
    %725 = vector.broadcast %724 : vector<1x3xf32> to vector<64x3xf32>
    %726 = arith.addf %690, %725 : vector<64x3xf32>
    %727 = arith.negf %726 : vector<64x3xf32>
    %728 = math.exp %727 : vector<64x3xf32>
    %cst_741 = arith.constant 1.000000e+00 : f32
    %729 = vector.broadcast %cst_741 : f32 to vector<64x3xf32>
    %730 = arith.addf %729, %728 : vector<64x3xf32>
    %731 = arith.divf %729, %730 : vector<64x3xf32>
    %c1_742 = arith.constant 1 : index
    %c0_743 = arith.constant 0 : index
    %c0_744 = arith.constant 0 : index
    %732 = vector.load %arg26[%c1_742, %c0_743, %c0_744] : memref<4x64x3xf32, #tpu.memory_space<vmem>>, vector<1x64x3xf32>
    %733 = vector.shape_cast %732 : vector<1x64x3xf32> to vector<64x3xf32>
    %734 = vector.shape_cast %731 : vector<64x3xf32> to vector<1x64x3xf32>
    tpu.vector_store %arg26[%c1_742, %c0_743, %c0_744], %734 {strides = array<i32>} : memref<4x64x3xf32, #tpu.memory_space<vmem>>, vector<1x64x3xf32>,
    %c0_745 = arith.constant 0 : index
    %c0_746 = arith.constant 0 : index
    %735 = vector.load %arg25[%c0_745, %c0_746] : memref<1x3xf32, #tpu.memory_space<vmem>>, vector<1x3xf32>
    %736 = vector.broadcast %735 : vector<1x3xf32> to vector<64x3xf32>
    %737 = arith.addf %697, %736 : vector<64x3xf32>
    %738 = arith.negf %737 : vector<64x3xf32>
    %739 = math.exp %738 : vector<64x3xf32>
    %cst_747 = arith.constant 1.000000e+00 : f32
    %740 = vector.broadcast %cst_747 : f32 to vector<64x3xf32>
    %741 = arith.addf %740, %739 : vector<64x3xf32>
    %742 = arith.divf %740, %741 : vector<64x3xf32>
    %c2_748 = arith.constant 2 : index
    %c0_749 = arith.constant 0 : index
    %c0_750 = arith.constant 0 : index
    %743 = vector.load %arg26[%c2_748, %c0_749, %c0_750] : memref<4x64x3xf32, #tpu.memory_space<vmem>>, vector<1x64x3xf32>
    %744 = vector.shape_cast %743 : vector<1x64x3xf32> to vector<64x3xf32>
    %745 = vector.shape_cast %742 : vector<64x3xf32> to vector<1x64x3xf32>
    tpu.vector_store %arg26[%c2_748, %c0_749, %c0_750], %745 {strides = array<i32>} : memref<4x64x3xf32, #tpu.memory_space<vmem>>, vector<1x64x3xf32>,
    %c0_751 = arith.constant 0 : index
    %c0_752 = arith.constant 0 : index
    %746 = vector.load %arg25[%c0_751, %c0_752] : memref<1x3xf32, #tpu.memory_space<vmem>>, vector<1x3xf32>
    %747 = vector.broadcast %746 : vector<1x3xf32> to vector<64x3xf32>
    %748 = arith.addf %712, %747 : vector<64x3xf32>
    %749 = arith.negf %748 : vector<64x3xf32>
    %750 = math.exp %749 : vector<64x3xf32>
    %cst_753 = arith.constant 1.000000e+00 : f32
    %751 = vector.broadcast %cst_753 : f32 to vector<64x3xf32>
    %752 = arith.addf %751, %750 : vector<64x3xf32>
    %753 = arith.divf %751, %752 : vector<64x3xf32>
    %c3_754 = arith.constant 3 : index
    %c0_755 = arith.constant 0 : index
    %c0_756 = arith.constant 0 : index
    %754 = vector.load %arg26[%c3_754, %c0_755, %c0_756] : memref<4x64x3xf32, #tpu.memory_space<vmem>>, vector<1x64x3xf32>
    %755 = vector.shape_cast %754 : vector<1x64x3xf32> to vector<64x3xf32>
    %756 = vector.shape_cast %753 : vector<64x3xf32> to vector<1x64x3xf32>
    tpu.vector_store %arg26[%c3_754, %c0_755, %c0_756], %756 {strides = array<i32>} : memref<4x64x3xf32, #tpu.memory_space<vmem>>, vector<1x64x3xf32>,
    return
  }
  func.func @transform_0(%arg0: i32) -> (i32, i32, i32) {
    %c0_i32 = arith.constant 0 : i32
    %c0_i32_0 = arith.constant 0 : i32
    %c0_i32_1 = arith.constant 0 : i32
    return %arg0, %c0_i32, %c0_i32_0 : i32, i32, i32
  }
  func.func @transform_1(%arg0: i32) -> (i32, i32, i32) {
    %c0_i32 = arith.constant 0 : i32
    %c0_i32_0 = arith.constant 0 : i32
    %c0_i32_1 = arith.constant 0 : i32
    %c0_i32_2 = arith.constant 0 : i32
    return %c0_i32, %c0_i32_0, %c0_i32_1 : i32, i32, i32
  }
  func.func @transform_2(%arg0: i32) -> (i32, i32, i32) {
    %c0_i32 = arith.constant 0 : i32
    %c0_i32_0 = arith.constant 0 : i32
    %c0_i32_1 = arith.constant 0 : i32
    %c0_i32_2 = arith.constant 0 : i32
    return %c0_i32, %c0_i32_0, %c0_i32_1 : i32, i32, i32
  }
  func.func @transform_3(%arg0: i32) -> (i32, i32) {
    %c0_i32 = arith.constant 0 : i32
    %c0_i32_0 = arith.constant 0 : i32
    %c0_i32_1 = arith.constant 0 : i32
    return %c0_i32, %c0_i32_0 : i32, i32
  }
  func.func @transform_4(%arg0: i32) -> (i32, i32, i32) {
    %c0_i32 = arith.constant 0 : i32
    %c0_i32_0 = arith.constant 0 : i32
    %c0_i32_1 = arith.constant 0 : i32
    %c0_i32_2 = arith.constant 0 : i32
    return %c0_i32, %c0_i32_0, %c0_i32_1 : i32, i32, i32
  }
  func.func @transform_5(%arg0: i32) -> (i32, i32, i32) {
    %c0_i32 = arith.constant 0 : i32
    %c0_i32_0 = arith.constant 0 : i32
    %c0_i32_1 = arith.constant 0 : i32
    %c0_i32_2 = arith.constant 0 : i32
    return %c0_i32, %c0_i32_0, %c0_i32_1 : i32, i32, i32
  }
  func.func @transform_6(%arg0: i32) -> (i32, i32) {
    %c0_i32 = arith.constant 0 : i32
    %c0_i32_0 = arith.constant 0 : i32
    %c0_i32_1 = arith.constant 0 : i32
    return %c0_i32, %c0_i32_0 : i32, i32
  }
  func.func @transform_7(%arg0: i32) -> (i32, i32, i32) {
    %c0_i32 = arith.constant 0 : i32
    %c0_i32_0 = arith.constant 0 : i32
    %c0_i32_1 = arith.constant 0 : i32
    %c0_i32_2 = arith.constant 0 : i32
    return %c0_i32, %c0_i32_0, %c0_i32_1 : i32, i32, i32
  }
  func.func @transform_8(%arg0: i32) -> (i32, i32, i32) {
    %c0_i32 = arith.constant 0 : i32
    %c0_i32_0 = arith.constant 0 : i32
    %c0_i32_1 = arith.constant 0 : i32
    %c0_i32_2 = arith.constant 0 : i32
    return %c0_i32, %c0_i32_0, %c0_i32_1 : i32, i32, i32
  }
  func.func @transform_9(%arg0: i32) -> (i32, i32) {
    %c0_i32 = arith.constant 0 : i32
    %c0_i32_0 = arith.constant 0 : i32
    %c0_i32_1 = arith.constant 0 : i32
    return %c0_i32, %c0_i32_0 : i32, i32
  }
  func.func @transform_10(%arg0: i32) -> (i32, i32, i32) {
    %c0_i32 = arith.constant 0 : i32
    %c0_i32_0 = arith.constant 0 : i32
    %c0_i32_1 = arith.constant 0 : i32
    %c0_i32_2 = arith.constant 0 : i32
    return %c0_i32, %c0_i32_0, %c0_i32_1 : i32, i32, i32
  }
  func.func @transform_11(%arg0: i32) -> (i32, i32, i32) {
    %c0_i32 = arith.constant 0 : i32
    %c0_i32_0 = arith.constant 0 : i32
    %c0_i32_1 = arith.constant 0 : i32
    %c0_i32_2 = arith.constant 0 : i32
    return %c0_i32, %c0_i32_0, %c0_i32_1 : i32, i32, i32
  }
  func.func @transform_12(%arg0: i32) -> (i32, i32) {
    %c0_i32 = arith.constant 0 : i32
    %c0_i32_0 = arith.constant 0 : i32
    %c0_i32_1 = arith.constant 0 : i32
    return %c0_i32, %c0_i32_0 : i32, i32
  }
  func.func @transform_13(%arg0: i32) -> (i32, i32, i32, i32) {
    %c0_i32 = arith.constant 0 : i32
    %c0_i32_0 = arith.constant 0 : i32
    %c0_i32_1 = arith.constant 0 : i32
    %c0_i32_2 = arith.constant 0 : i32
    %c0_i32_3 = arith.constant 0 : i32
    return %c0_i32, %c0_i32_0, %c0_i32_1, %c0_i32_2 : i32, i32, i32, i32
  }
  func.func @transform_14(%arg0: i32) -> (i32, i32, i32) {
    %c0_i32 = arith.constant 0 : i32
    %c0_i32_0 = arith.constant 0 : i32
    %c0_i32_1 = arith.constant 0 : i32
    %c0_i32_2 = arith.constant 0 : i32
    return %c0_i32, %c0_i32_0, %c0_i32_1 : i32, i32, i32
  }
  func.func @transform_15(%arg0: i32) -> (i32, i32) {
    %c0_i32 = arith.constant 0 : i32
    %c0_i32_0 = arith.constant 0 : i32
    %c0_i32_1 = arith.constant 0 : i32
    return %c0_i32, %c0_i32_0 : i32, i32
  }
  func.func @transform_16(%arg0: i32) -> (i32, i32, i32, i32) {
    %c0_i32 = arith.constant 0 : i32
    %c0_i32_0 = arith.constant 0 : i32
    %c0_i32_1 = arith.constant 0 : i32
    %c0_i32_2 = arith.constant 0 : i32
    %c0_i32_3 = arith.constant 0 : i32
    return %c0_i32, %c0_i32_0, %c0_i32_1, %c0_i32_2 : i32, i32, i32, i32
  }
  func.func @transform_17(%arg0: i32) -> (i32, i32, i32) {
    %c0_i32 = arith.constant 0 : i32
    %c0_i32_0 = arith.constant 0 : i32
    %c0_i32_1 = arith.constant 0 : i32
    %c0_i32_2 = arith.constant 0 : i32
    return %c0_i32, %c0_i32_0, %c0_i32_1 : i32, i32, i32
  }
  func.func @transform_18(%arg0: i32) -> (i32, i32) {
    %c0_i32 = arith.constant 0 : i32
    %c0_i32_0 = arith.constant 0 : i32
    %c0_i32_1 = arith.constant 0 : i32
    return %c0_i32, %c0_i32_0 : i32, i32
  }
  func.func @transform_19(%arg0: i32) -> (i32, i32, i32, i32) {
    %c0_i32 = arith.constant 0 : i32
    %c0_i32_0 = arith.constant 0 : i32
    %c0_i32_1 = arith.constant 0 : i32
    %c0_i32_2 = arith.constant 0 : i32
    %c0_i32_3 = arith.constant 0 : i32
    return %c0_i32, %c0_i32_0, %c0_i32_1, %c0_i32_2 : i32, i32, i32, i32
  }
  func.func @transform_20(%arg0: i32) -> (i32, i32, i32) {
    %c0_i32 = arith.constant 0 : i32
    %c0_i32_0 = arith.constant 0 : i32
    %c0_i32_1 = arith.constant 0 : i32
    %c0_i32_2 = arith.constant 0 : i32
    return %c0_i32, %c0_i32_0, %c0_i32_1 : i32, i32, i32
  }
  func.func @transform_21(%arg0: i32) -> (i32, i32) {
    %c0_i32 = arith.constant 0 : i32
    %c0_i32_0 = arith.constant 0 : i32
    %c0_i32_1 = arith.constant 0 : i32
    return %c0_i32, %c0_i32_0 : i32, i32
  }
  func.func @transform_22(%arg0: i32) -> (i32, i32, i32, i32) {
    %c0_i32 = arith.constant 0 : i32
    %c0_i32_0 = arith.constant 0 : i32
    %c0_i32_1 = arith.constant 0 : i32
    %c0_i32_2 = arith.constant 0 : i32
    %c0_i32_3 = arith.constant 0 : i32
    return %c0_i32, %c0_i32_0, %c0_i32_1, %c0_i32_2 : i32, i32, i32, i32
  }
  func.func @transform_23(%arg0: i32) -> (i32, i32, i32) {
    %c0_i32 = arith.constant 0 : i32
    %c0_i32_0 = arith.constant 0 : i32
    %c0_i32_1 = arith.constant 0 : i32
    %c0_i32_2 = arith.constant 0 : i32
    return %c0_i32, %c0_i32_0, %c0_i32_1 : i32, i32, i32
  }
  func.func @transform_24(%arg0: i32) -> (i32, i32) {
    %c0_i32 = arith.constant 0 : i32
    %c0_i32_0 = arith.constant 0 : i32
    %c0_i32_1 = arith.constant 0 : i32
    return %c0_i32, %c0_i32_0 : i32, i32
  }
  func.func @transform_25(%arg0: i32) -> (i32, i32, i32) {
    %c0_i32 = arith.constant 0 : i32
    %c0_i32_0 = arith.constant 0 : i32
    %c0_i32_1 = arith.constant 0 : i32
    return %c0_i32, %arg0, %c0_i32_0 : i32, i32, i32
  }
}

</mosaic_0001>

<bundles_post_ra>
// kernel: cae_forward.1
= control target key start
LH: loop header
LB: loop body
LE: loop exit
PB: predicated region body
PF: predicated region fallthrough
CT: control target
= control target key end

     0   :  { %s20315_s0 = inlined_call_operand.vmem [shape: bf16[2,256,3], index: 0, kind: input, shape index: {}]   ;;  %s20316_s1 = inlined_call_operand.vmem [shape: bf16[9,64,256], index: 1, kind: input, shape index: {}]   ;;  %s20317_s2 = inlined_call_operand.vmem [shape: bf16[9,3,16], index: 2, kind: input, shape index: {}]   ;;  %s20318_s3 = inlined_call_operand.vmem [shape: f32[1,16], index: 3, kind: input, shape index: {}]   ;;  %s20319_s4 = inlined_call_operand.vmem [shape: bf16[9,16,64], index: 4, kind: input, shape index: {}]   ;;  %s20320_s5 = inlined_call_operand.vmem [shape: bf16[9,16,32], index: 5, kind: input, shape index: {}]   ;;  %s20321_s6 = inlined_call_operand.vmem [shape: f32[1,32], index: 6, kind: input, shape index: {}]   ;;  %s20322_s7 = inlined_call_operand.vmem [shape: bf16[9,4,16], index: 7, kind: input, shape index: {}]   ;;  %s20323_s8 = inlined_call_operand.vmem [shape: bf16[9,32,64], index: 8, kind: input, shape index: {}]   ;;  %s20324_s9 = inlined_call_operand.vmem [shape: f32[1,64], index: 9, kind: input, shape index: {}]   ;;  %s20325_s10 = inlined_call_operand.vmem [shape: bf16[9,1,4], index: 10, kind: input, shape index: {}]   ;;  %s20326_s11 = inlined_call_operand.vmem [shape: bf16[9,64,128], index: 11, kind: input, shape index: {}]   ;;  %s20327_s12 = inlined_call_operand.vmem [shape: f32[1,128], index: 12, kind: input, shape index: {}]   ;;  %s20328_s13 = inlined_call_operand.vmem [shape: bf16[4,1,1,1], index: 13, kind: input, shape index: {}]   ;;  %s20329_s14 = inlined_call_operand.vmem [shape: bf16[9,128,64], index: 14, kind: input, shape index: {}]   ;;  %s20330_s15 = inlined_call_operand.vmem [shape: f32[1,64], index: 15, kind: input, shape index: {}]   ;;  %s20331_s16 = inlined_call_operand.vmem [shape: bf16[4,4,4,1], index: 16, kind: input, shape index: {}]   ;;  %s20332_s17 = inlined_call_operand.vmem [shape: bf16[9,64,32], index: 17, kind: input, shape index: {}]   ;;  %s20333_s18 = inlined_call_operand.vmem [shape: f32[1,32], index: 18, kind: input, shape index: {}]   ;;  %s20334_s19 = inlined_call_operand.vmem [shape: bf16[4,4,16,4], index: 19, kind: input, shape index: {}]   ;;  %s20335_s20 = inlined_call_operand.vmem [shape: bf16[9,32,16], index: 20, kind: input, shape index: {}]   ;;  %s20336_s21 = inlined_call_operand.vmem [shape: f32[1,16], index: 21, kind: input, shape index: {}]   ;;  %s20337_s22 = inlined_call_operand.vmem [shape: bf16[4,4,64,16], index: 22, kind: input, shape index: {}]   ;;  %s20338_s23 = inlined_call_operand.vmem [shape: bf16[9,16,3], index: 23, kind: input, shape index: {}]   ;;  %s20339_s24 = inlined_call_operand.vmem [shape: f32[1,3], index: 24, kind: input, shape index: {}]   ;;  %s20340_s25 = inlined_call_operand.vmem [shape: f32[4,128,3], index: 25, kind: output, shape index: {}]  }
   0x1   :  { %20352 = sst [smem:[#allocation6_spill]] %s20315_s0 }
   0x2   :  { %20353 = sst [smem:[#allocation7_spill]] %s20316_s1 }
   0x3   :  { %20354 = sst [smem:[#allocation8_spill]] %s20317_s2 }
   0x4   :  { %20355 = sst [smem:[#allocation9_spill]] %s20318_s3 }
   0x5   :  { %20356 = sst [smem:[#allocation10_spill]] %s20319_s4 }
   0x6   :  { %20357 = sst [smem:[#allocation11_spill]] %s20320_s5 }
   0x7   :  { %20358 = sst [smem:[#allocation12_spill]] %s20321_s6 }
   0x8   :  { %20359 = sst [smem:[#allocation13_spill]] %s20322_s7 }
   0x9   :  { %20360 = sst [smem:[#allocation14_spill]] %s20323_s8 }
   0xa   :  { %20361 = sst [smem:[#allocation15_spill]] %s20324_s9 }
   0xb   :  { %s17503_s29 = smov 0   ;;  %s17505_s2 = smov 0  }
   0xc   :  { %s17507_s6 = smov 0  }
   0xd LB: > { %20362 = sst [smem:[#allocation3_spill]] %s17363_s2  ;;  %s17516_s30 = sadd.s32 4294967295, %s17367_s6   ;;  %s17367_s6 = sphi %s17507_s6, %s20376_s6   ;;  %s17363_s2 = sphi %s17505_s2, %s20378_s2   ;;  %s17359_s29 = sphi %s17503_s29, %s20377_s29  }
   0xe   : > { %s17518_s7 = sadd.s32 1, %s17367_s6   ;;  %s572_s26 = sadd.s32 1, %s17363_s2 }
   0xf   : > { %20363 = sst [smem:[#allocation4_spill]] %s17518_s7  ;;  %s569_s3 = ssub.s32 %s17367_s6, %s17518_s7 }
  0x10   : > { %p570_p0 = scmp.eq.s32.totalorder %s569_s3, 0  ;;  %p582_p1 = scmp.ne.s32.totalorder %s17363_s2, %s17359_s29 }
  0x11   : > { %p583_p2 = scmp.eq.s32.totalorder %s17516_s30, 1  ;;  %p12842_p3 = scmp.ge.s32.totalorder %s17367_s6, 1 }
  0x12   : > { %s17526_s1 = scalar_select %p570_p0, %s17363_s2, %s572_s26  }
  0x13   : > { %p17528_p4 = por %p583_p2, %p582_p1  ;;  %p687_p5 = scmp.lt.s32.totalorder %s17367_s6, 3 }
  0x14   : > { %20364 = sst [smem:[#allocation5_spill]] %s17526_s1 }
  0x15   : > { %p688_p6 = pnand %p12842_p3, %p687_p5 }
  0x16   : > { %p754_p7 = scmp.lt.s32.totalorder (!%p688_p6), %s17516_s30, 1  ;;  %s20366_s28 = sld [smem:[#allocation7_spill]] (!%p688_p6)  ;;  %vm1140_vm0 = vcmask (!%p688_p6), 1040384   ;;  %vm1141_vm1 = vcmask (!%p688_p6), 1041408   ;;  %v17369_v51 = vmov (!%p688_p6), 65535   ;;  %vm1127_vm2 = vcmask (!%p688_p6), 23552  }
  0x17   : > { %691 = sbr.rel (%p688_p6) target bundleno = 7097 (0x1bb9), region = 120  ;;  %s20367_s2 = sld [smem:[#allocation6_spill]] (!%p688_p6)  ;;  %v1142_v52 = vsel (!%p688_p6), %vm1140_vm0, 4294967295, %v17369_v51  ;;  %vm17371_vm3 = vmmov (!%p688_p6), 0   ;;  %vm2782_vm4 = vcmask (!%p688_p6), 523264   ;;  %vm2892_vm5 = vcmask (!%p688_p6), 130048  }
  0x18   : > { %s20368_s5 = sld [smem:[#allocation8_spill]] (!%p688_p6)  ;;  %v17776_v54 = vsel (!%p688_p6), %vm1141_vm1, %v1142_v52, 0  ;;  %s20369_s7 = sld [smem:[#allocation9_spill]] (!%p688_p6)  ;;  %vm3867_vm6 = vcmask (!%p688_p6), 261120   ;;  %vm4726_vm7 = vcmask (!%p688_p6), 31744   ;;  %vm5837_vm8 = vcmask (!%p688_p6), 7168  }
  0x19   : > { %s20370_s26 = sld [smem:[#allocation10_spill]] (!%p688_p6)  ;;  %s20371_s4 = sld [smem:[#allocation11_spill]] (!%p688_p6) }
  0x1c   : > { %v16795_v0 = vld [vmem:[%s20366_s28 + $0x44] ss:$8 sps:$4 sm:$0xff] (!%p688_p6)   ;;  %v16793_v18 = vld [vmem:[%s20366_s28 + $0x40] ss:$8 sps:$4 sm:$0xff] (!%p688_p6)   ;;  %v16796_v20 = vld [vmem:[%s20366_s28 + $0x54] ss:$8 sps:$4 sm:$0xff] (!%p688_p6)  }
  0x1d   : > { %1088 = vmatprep.mubr.bf16.mxu1 (!%p688_p6), %v16795_v0  ;;  %v16801_v1 = vld [vmem:[%s20366_s28 + $0x4] ss:$8 sps:$4 sm:$0xff] (!%p688_p6)   ;;  %v16799_v19 = vld [vmem:[%s20366_s28] ss:$8 sps:$4 sm:$0xff] (!%p688_p6)   ;;  %v16805_v21 = vld [vmem:[%s20366_s28 + $0x14] ss:$8 sps:$4 sm:$0xff] (!%p688_p6)  }
  0x1e   : > { %s755_s9 = scalar_select %p754_p7, %s17516_s30, 1  ;;  %969 = vmatprep.mubr.bf16.mxu0 %v16801_v1  ;;  %v16798_v22 = vld [vmem:[%s20366_s28 + $0x50] ss:$8 sps:$4 sm:$0xff]   ;;  %v16802_v24 = vld [vmem:[%s20366_s28 + $0x64] ss:$8 sps:$4 sm:$0xff]  }
  0x1f   : > { %v16809_v23 = vld [vmem:[%s20366_s28 + $0x10] ss:$8 sps:$4 sm:$0xff]   ;;  %v16811_v25 = vld [vmem:[%s20366_s28 + $0x24] ss:$8 sps:$4 sm:$0xff]   ;;  %v16804_v26 = vld [vmem:[%s20366_s28 + $0x60] ss:$8 sps:$4 sm:$0xff]  }
  0x20   : > { %s14159_s3 = sshll.u32 %s755_s9, 7  ;;  %v16816_v27 = vld [vmem:[%s20366_s28 + $0x20] ss:$8 sps:$4 sm:$0xff]   ;;  %v16807_v28 = vld [vmem:[%s20366_s28 + $0x74] ss:$8 sps:$4 sm:$0xff]   ;;  %s20372_s9 = sld [smem:[#allocation12_spill]] }
  0x21   : > { %s17543_s6 = scalar_lea.vmem %s20367_s2, %s14159_s3  ;;  %v16817_v29 = vld [vmem:[%s20366_s28 + $0x34] ss:$8 sps:$4 sm:$0xff]   ;;  %v16810_v30 = vld [vmem:[%s20366_s28 + $0x70] ss:$8 sps:$4 sm:$0xff]   ;;  %v16815_v32 = vld [vmem:[%s20366_s28 + $0x84] ss:$8 sps:$4 sm:$0xff]  }
  0x22   : > { %v17546_v2 = vld [vmem:[%s17543_s6 + $0x40] sm:$0xff]   ;;  %v17553_v4 = vld [vmem:[%s17543_s6 + $0x48] sm:$0xff]   ;;  %v17563_v6 = vld [vmem:[%s17543_s6 + $0x50] sm:$0xff]   ;;  %s20373_s3 = sld [smem:[#allocation13_spill]] }
  0x23   : > { %v17549_v3 = vld [vmem:[%s17543_s6] sm:$0xff]   ;;  %14201 = vmatprep.subr.bf16.mxu1 %v17546_v2  ;;  %14161 = vmatprep.subr.bf16.mxu0 %v17546_v2  ;;  %v17558_v5 = vld [vmem:[%s17543_s6 + $0x8] sm:$0xff]   ;;  %v17568_v7 = vld [vmem:[%s17543_s6 + $0x10] sm:$0xff]  }
  0x24   : > { %14202 = vmatpush3.bf16.msra.mxu1 %v17549_v3  ;;  %14162 = vmatpush3.bf16.msra.mxu0 %v17549_v3  ;;  %v17573_v8 = vld [vmem:[%s17543_s6 + $0x58] sm:$0xff]   ;;  %v17583_v10 = vld [vmem:[%s17543_s6 + $0x60] sm:$0xff]   ;;  %v17593_v12 = vld [vmem:[%s17543_s6 + $0x68] sm:$0xff]  }
  0x25   : > { %14203 = vmatprep.subr.bf16.mxu1 %v17553_v4  ;;  %14163 = vmatprep.subr.bf16.mxu0 %v17553_v4  ;;  %v17578_v9 = vld [vmem:[%s17543_s6 + $0x18] sm:$0xff]   ;;  %v17588_v11 = vld [vmem:[%s17543_s6 + $0x20] sm:$0xff]   ;;  %v17598_v13 = vld [vmem:[%s17543_s6 + $0x28] sm:$0xff]  }
  0x26   : > { %v17603_v14 = vld [vmem:[%s17543_s6 + $0x70] sm:$0xff]   ;;  %v17613_v16 = vld [vmem:[%s17543_s6 + $0x78] sm:$0xff]   ;;  %v16813_v33 = vld [vmem:[%s20366_s28 + $0x80] ss:$8 sps:$4 sm:$0xff]  }
  0x27   : > { %v17608_v15 = vld [vmem:[%s17543_s6 + $0x30] sm:$0xff]   ;;  %v17618_v17 = vld [vmem:[%s17543_s6 + $0x38] sm:$0xff]   ;;  %v16823_v36 = vld [vmem:[%s20366_s28 + $0xa4] ss:$8 sps:$4 sm:$0xff]  }
  0x28   : > { %14204 = vmatpush3.bf16.msra.mxu1 %v17558_v5  ;;  %14164 = vmatpush3.bf16.msra.mxu0 %v17558_v5  ;;  %v16821_v31 = vld [vmem:[%s20366_s28 + $0x30] ss:$8 sps:$4 sm:$0xff]   ;;  %v16819_v34 = vld [vmem:[%s20366_s28 + $0x94] ss:$8 sps:$4 sm:$0xff]   ;;  %v16825_v37 = vld [vmem:[%s20366_s28 + $0xa0] ss:$8 sps:$4 sm:$0xff]  }
  0x29   : > { %14205 = vmatprep.subr.bf16.mxu1 %v17563_v6  ;;  %14165 = vmatprep.subr.bf16.mxu0 %v17563_v6  ;;  %v16822_v35 = vld [vmem:[%s20366_s28 + $0x90] ss:$8 sps:$4 sm:$0xff]   ;;  %v16826_v38 = vld [vmem:[%s20366_s28 + $0xb4] ss:$8 sps:$4 sm:$0xff]   ;;  %v16831_v40 = vld [vmem:[%s20366_s28 + $0xc4] ss:$8 sps:$4 sm:$0xff]  }
  0x2a   : > { %v16828_v39 = vld [vmem:[%s20366_s28 + $0xb0] ss:$8 sps:$4 sm:$0xff]   ;;  %v16829_v41 = vld [vmem:[%s20366_s28 + $0xc0] ss:$8 sps:$4 sm:$0xff]   ;;  %v16832_v42 = vld [vmem:[%s20366_s28 + $0xd4] ss:$8 sps:$4 sm:$0xff]  }
  0x2b   : > { %v16834_v43 = vld [vmem:[%s20366_s28 + $0xd0] ss:$8 sps:$4 sm:$0xff]   ;;  %v16835_v44 = vld [vmem:[%s20366_s28 + $0xe4] ss:$8 sps:$4 sm:$0xff]   ;;  %v16837_v45 = vld [vmem:[%s20366_s28 + $0xe0] ss:$8 sps:$4 sm:$0xff]  }
  0x2c   : > { %14206 = vmatpush3.bf16.msra.mxu1 %v17568_v7  ;;  %14166 = vmatpush3.bf16.msra.mxu0 %v17568_v7  ;;  %v16838_v46 = vld [vmem:[%s20366_s28 + $0xf4] ss:$8 sps:$4 sm:$0xff]   ;;  %v16840_v47 = vld [vmem:[%s20366_s28 + $0xf0] ss:$8 sps:$4 sm:$0xff]   ;;  %v16843_v48 = vld [vmem:[%s20366_s28 + $0x104] ss:$8 sps:$4 sm:$0xff]  }
  0x2d   : > { %14207 = vmatprep.subr.bf16.mxu1 %v17573_v8  ;;  %14167 = vmatprep.subr.bf16.mxu0 %v17573_v8  ;;  %v16841_v49 = vld [vmem:[%s20366_s28 + $0x100] ss:$8 sps:$4 sm:$0xff]   ;;  %v16844_v50 = vld [vmem:[%s20366_s28 + $0x114] ss:$8 sps:$4 sm:$0xff]   ;;  %v16846_v56 = vld [vmem:[%s20366_s28 + $0x110] ss:$8 sps:$4 sm:$0xff]  }
  0x2e   : > { %v12886_v53 = vld [vmem:[%s20368_s5 + $0x2] sm:$0x3]  ;;  %v16847_v57 = vld [vmem:[%s20366_s28 + $0x124] ss:$8 sps:$4 sm:$0xff]   ;;  %v17794_v59 = vld [vmem:[%s17543_s6 + $0x50] sm:$0xff]  }
  0x2f   : > { %v1145_v55 = vand.u32 %v12886_v53, %v17776_v54  ;;  %v17790_v58 = vld [vmem:[%s17543_s6 + $0x8] sm:$0xff]   ;;  %v17798_v60 = vld [vmem:[%s17543_s6 + $0x10] sm:$0xff]   ;;  %v17805_v62 = vld [vmem:[%s17543_s6 + $0x58] sm:$0xff]  }
  0x30   : > { %14208 = vmatpush3.bf16.msra.mxu1 %v17578_v9  ;;  %14168 = vmatpush3.bf16.msra.mxu0 %v17578_v9  ;;  %v16849_v61 = vld [vmem:[%s20366_s28 + $0x120] ss:$8 sps:$4 sm:$0xff]   ;;  %v16850_v63 = vld [vmem:[%s20366_s28 + $0x134] ss:$8 sps:$4 sm:$0xff]  }
  0x31   : > { %14209 = vmatprep.subr.bf16.mxu1 %v17583_v10  ;;  %14169 = vmatprep.subr.bf16.mxu0 %v17583_v10  ;;  %v17812_v0 = vld [vmem:[%s17543_s6 + $0x18] sm:$0xff]   ;;  %v17816_v1 = vld [vmem:[%s17543_s6 + $0x60] sm:$0xff]  }
  0x34   : > { %14210 = vmatpush3.bf16.msra.mxu1 %v17588_v11  ;;  %14170 = vmatpush3.bf16.msra.mxu0 %v17588_v11 }
  0x35   : > { %14211 = vmatprep.subr.bf16.mxu1 %v17593_v12  ;;  %14171 = vmatprep.subr.bf16.mxu0 %v17593_v12 }
  0x38   : > { %14212 = vmatpush3.bf16.msra.mxu1 %v17598_v13  ;;  %14172 = vmatpush3.bf16.msra.mxu0 %v17598_v13 }
  0x39   : > { %14213 = vmatprep.subr.bf16.mxu1 %v17603_v14  ;;  %14173 = vmatprep.subr.bf16.mxu0 %v17603_v14 }
  0x3c   : > { %14214 = vmatpush3.bf16.msra.mxu1 %v17608_v15  ;;  %14174 = vmatpush3.bf16.msra.mxu0 %v17608_v15 }
  0x3d   : > { %14215 = vmatprep.subr.bf16.mxu1 %v17613_v16  ;;  %14175 = vmatprep.subr.bf16.mxu0 %v17613_v16 }
  0x40   : > { %14216 = vmatpush3.bf16.msra.mxu1 %v17618_v17  ;;  %14176 = vmatpush3.bf16.msra.mxu0 %v17618_v17 }
  0x41   : > { %14251 = vmatprep.subr.bf16.mxu1 %v17546_v2  ;;  %15087 = vmatprep.subr.bf16.mxu0 %v1145_v55 }
  0x43   : > { %1089 = vmatmul.mubr.bf16.vlgmr.msra.gmra.mrb[0].mxu1 %v16793_v18  ;;  %970 = vmatmul.mubr.bf16.vlgmr.msra.gmra.mrb[0].mxu0 %v16799_v19 }
  0x44   : > { %14252 = vmatpush3.bf16.msra.mxu1 %v17549_v3  ;;  %1096 = vmatprep.mubr.bf16.mxu1 %v16796_v20 }
  0x45   : > { %14253 = vmatprep.subr.bf16.mxu1 %v17553_v4  ;;  %977 = vmatprep.mubr.bf16.mxu0 %v16805_v21 }
  0x46   : > { %15088 = vmatpush3.bf16.msra.mxu0 %v1145_v55 }
  0x48   : > { %14254 = vmatpush3.bf16.msra.mxu1 %v17558_v5 }
  0x49   : > { %14255 = vmatprep.subr.bf16.mxu1 %v17563_v6 }
  0x4b   : > { %1097 = vmatmul.mubr.bf16.gmra.mrb[4].mxu1 %v16798_v22  ;;  %978 = vmatmul.mubr.bf16.gmra.mrb[4].mxu0 %v16809_v23 }
  0x4c   : > { %14256 = vmatpush3.bf16.msra.mxu1 %v17568_v7  ;;  %1104 = vmatprep.mubr.bf16.mxu1 %v16802_v24 }
  0x4d   : > { %14257 = vmatprep.subr.bf16.mxu1 %v17573_v8  ;;  %985 = vmatprep.mubr.bf16.mxu0 %v16811_v25  ;;  %v16856_v25 = vld [vmem:[%s20366_s28 + $0x194] ss:$8 sps:$4 sm:$0xff]  }
  0x50   : > { %14258 = vmatpush3.bf16.msra.mxu1 %v17578_v9 }
  0x51   : > { %14259 = vmatprep.subr.bf16.mxu1 %v17583_v10 }
  0x53   : > { %1105 = vmatmul.mubr.bf16.gmra.mrb[8].mxu1 %v16804_v26  ;;  %986 = vmatmul.mubr.bf16.gmra.mrb[8].mxu0 %v16816_v27 }
  0x54   : > { %14260 = vmatpush3.bf16.msra.mxu1 %v17588_v11  ;;  %1112 = vmatprep.mubr.bf16.mxu1 %v16807_v28  ;;  %v16858_v28 = vld [vmem:[%s20366_s28 + $0x190] ss:$8 sps:$4 sm:$0xff]  }
  0x55   : > { %14261 = vmatprep.subr.bf16.mxu1 %v17593_v12  ;;  %993 = vmatprep.mubr.bf16.mxu0 %v16817_v29 }
  0x58   : > { %14262 = vmatpush3.bf16.msra.mxu1 %v17598_v13 }
  0x59   : > { %14263 = vmatprep.subr.bf16.mxu1 %v17603_v14 }
  0x5b   : > { %1113 = vmatmul.mubr.bf16.gmra.mrb[12].mxu1 %v16810_v30  ;;  %994 = vmatmul.mubr.bf16.gmra.mrb[12].mxu0 %v16821_v31 }
  0x5c   : > { %14264 = vmatpush3.bf16.msra.mxu1 %v17608_v15  ;;  %1373 = vmatprep.mubr.bf16.mxu1 %v16815_v32 }
  0x5d   : > { %14265 = vmatprep.subr.bf16.mxu1 %v17613_v16 }
  0x60   : > { %14266 = vmatpush3.bf16.msra.mxu1 %v17618_v17 }
  0x61   : > { %14296 = vmatprep.subr.bf16.mxu1 %v17546_v2 }
  0x63   : > { %1374 = vmatmul.mubr.bf16.vlgmr.msra.gmra.mrb[16].mxu1 %v16813_v33 }
  0x64   : > { %14297 = vmatpush3.bf16.msra.mxu1 %v17549_v3  ;;  %1381 = vmatprep.mubr.bf16.mxu1 %v16819_v34 }
  0x65   : > { %14298 = vmatprep.subr.bf16.mxu1 %v17553_v4 }
  0x68   : > { %14299 = vmatpush3.bf16.msra.mxu1 %v17558_v5 }
  0x69   : > { %14300 = vmatprep.subr.bf16.mxu1 %v17563_v6 }
  0x6b   : > { %1382 = vmatmul.mubr.bf16.gmra.mrb[20].mxu1 %v16822_v35 }
  0x6c   : > { %14301 = vmatpush3.bf16.msra.mxu1 %v17568_v7  ;;  %1389 = vmatprep.mubr.bf16.mxu1 %v16823_v36 }
  0x6d   : > { %14302 = vmatprep.subr.bf16.mxu1 %v17573_v8 }
  0x70   : > { %14303 = vmatpush3.bf16.msra.mxu1 %v17578_v9 }
  0x71   : > { %14304 = vmatprep.subr.bf16.mxu1 %v17583_v10 }
  0x73   : > { %1390 = vmatmul.mubr.bf16.gmra.mrb[24].mxu1 %v16825_v37 }
  0x74   : > { %14305 = vmatpush3.bf16.msra.mxu1 %v17588_v11  ;;  %1397 = vmatprep.mubr.bf16.mxu1 %v16826_v38 }
  0x75   : > { %14306 = vmatprep.subr.bf16.mxu1 %v17593_v12 }
  0x78   : > { %14307 = vmatpush3.bf16.msra.mxu1 %v17598_v13 }
  0x79   : > { %14308 = vmatprep.subr.bf16.mxu1 %v17603_v14 }
  0x7b   : > { %1398 = vmatmul.mubr.bf16.gmra.mrb[28].mxu1 %v16828_v39 }
  0x7c   : > { %14309 = vmatpush3.bf16.msra.mxu1 %v17608_v15  ;;  %1581 = vmatprep.mubr.bf16.mxu1 %v16831_v40 }
  0x7d   : > { %14310 = vmatprep.subr.bf16.mxu1 %v17613_v16 }
  0x80   : > { %14311 = vmatpush3.bf16.msra.mxu1 %v17618_v17 }
  0x81   : > { %14341 = vmatprep.subr.bf16.mxu1 %v17546_v2 }
  0x83   : > { %1582 = vmatmul.mubr.bf16.vlgmr.msra.gmra.mrb[32].mxu1 %v16829_v41  ;;  %v16862_v41 = vld [vmem:[%s20366_s28 + $0x1a4] ss:$8 sps:$4 sm:$0xff]  }
  0x84   : > { %14342 = vmatpush3.bf16.msra.mxu1 %v17549_v3  ;;  %1589 = vmatprep.mubr.bf16.mxu1 %v16832_v42 }
  0x85   : > { %14343 = vmatprep.subr.bf16.mxu1 %v17553_v4 }
  0x88   : > { %14344 = vmatpush3.bf16.msra.mxu1 %v17558_v5  ;;  %v1006_v5 = vld [vmem:[%s20368_s5] sm:$0x3] }
  0x89   : > { %14345 = vmatprep.subr.bf16.mxu1 %v17563_v6  ;;  %v17834_v6 = vand.u32 %v17776_v54, %v1006_v5 }
  0x8b   : > { %1590 = vmatmul.mubr.bf16.gmra.mrb[36].mxu1 %v16834_v43  ;;  %15097 = vmatprep.subr.bf16.mxu0 %v17834_v6 }
  0x8c   : > { %14346 = vmatpush3.bf16.msra.mxu1 %v17568_v7  ;;  %1597 = vmatprep.mubr.bf16.mxu1 %v16835_v44  ;;  %v17837_v7 = vld [vmem:[%s17543_s6 + $0x28] sm:$0xff]   ;;  %v12911_v44 = vld [vmem:[%s20368_s5 + $0x4] sm:$0x3] }
  0x8d   : > { %14347 = vmatprep.subr.bf16.mxu1 %v17573_v8  ;;  %v17841_v8 = vld [vmem:[%s17543_s6 + $0x70] sm:$0xff]  }
  0x90   : > { %14348 = vmatpush3.bf16.msra.mxu1 %v17578_v9  ;;  %v17846_v9 = vld [vmem:[%s17543_s6 + $0x30] sm:$0xff]  }
  0x91   : > { %14349 = vmatprep.subr.bf16.mxu1 %v17583_v10  ;;  %v17850_v10 = vld [vmem:[%s17543_s6 + $0x78] sm:$0xff]  }
  0x93   : > { %1598 = vmatmul.mubr.bf16.gmra.mrb[40].mxu1 %v16837_v45  ;;  %v16864_v45 = vld [vmem:[%s20366_s28 + $0x1a0] ss:$8 sps:$4 sm:$0xff]  }
  0x94   : > { %14350 = vmatpush3.bf16.msra.mxu1 %v17588_v11  ;;  %1605 = vmatprep.mubr.bf16.mxu1 %v16838_v46  ;;  %v17854_v11 = vld [vmem:[%s17543_s6 + $0x38] sm:$0xff]  }
  0x95   : > { %14351 = vmatprep.subr.bf16.mxu1 %v17593_v12  ;;  %v17858_v12 = vld [vmem:[%s17543_s6 + $0x40] sm:$0xff]  }
  0x98   : > { %14352 = vmatpush3.bf16.msra.mxu1 %v17598_v13  ;;  %v16855_v13 = vld [vmem:[%s20366_s28 + $0x184] ss:$8 sps:$4 sm:$0xff]  }
  0x99   : > { %14353 = vmatprep.subr.bf16.mxu1 %v17603_v14  ;;  %v16853_v14 = vld [vmem:[%s20366_s28 + $0x180] ss:$8 sps:$4 sm:$0xff]  }
  0x9b   : > { %1606 = vmatmul.mubr.bf16.gmra.mrb[44].mxu1 %v16840_v47 }
  0x9c   : > { %14354 = vmatpush3.bf16.msra.mxu1 %v17608_v15  ;;  %1789 = vmatprep.mubr.bf16.mxu1 %v16843_v48  ;;  %v17868_v15 = vld [vmem:[%s17543_s6] sm:$0xff]  }
  0x9d   : > { %14355 = vmatprep.subr.bf16.mxu1 %v17613_v16  ;;  %v17872_v16 = vld [vmem:[%s17543_s6 + $0x48] sm:$0xff]  }
  0xa0   : > { %14356 = vmatpush3.bf16.msra.mxu1 %v17618_v17 }
  0xa1   : > { %14431 = vmatprep.subr.bf16.mxu1 %v17546_v2  ;;  %v17820_v2 = vld [vmem:[%s17543_s6 + $0x20] sm:$0xff]  }
  0xa3   : > { %1790 = vmatmul.mubr.bf16.vlgmr.msra.gmra.mrb[48].mxu1 %v16841_v49 }
  0xa4   : > { %1797 = vmatprep.mubr.bf16.mxu1 %v16844_v50  ;;  %14432 = vmatpush3.bf16.msra.mxu1 %v17549_v3  ;;  %v16852_v3 = vld [vmem:[%s20366_s28 + $0x130] ss:$8 sps:$4 sm:$0xff]   ;;  %v17910_v50 = vand.u32 %v12911_v44, %v17776_v54 }
  0xa5   : > { %14433 = vmatprep.subr.bf16.mxu1 %v17553_v4  ;;  %v17827_v4 = vld [vmem:[%s17543_s6 + $0x68] sm:$0xff]  }
  0xa8   : > { %14434 = vmatpush3.bf16.msra.mxu1 %v17790_v58 }
  0xa9   : > { %14435 = vmatprep.subr.bf16.mxu1 %v17794_v59 }
  0xab   : > { %1798 = vmatmul.mubr.bf16.gmra.mrb[52].mxu1 %v16846_v56  ;;  %v16867_v56 = vld [vmem:[%s20366_s28 + $0x1b4] ss:$8 sps:$4 sm:$0xff]  }
  0xac   : > { %1805 = vmatprep.mubr.bf16.mxu1 %v16847_v57  ;;  %14436 = vmatpush3.bf16.msra.mxu1 %v17798_v60 }
  0xad   : > { %14437 = vmatprep.subr.bf16.mxu1 %v17805_v62 }
  0xb0   : > { %14438 = vmatpush3.bf16.msra.mxu1 %v17812_v0 }
  0xb1   : > { %14439 = vmatprep.subr.bf16.mxu1 %v17816_v1 }
  0xb3   : > { %1806 = vmatmul.mubr.bf16.gmra.mrb[56].mxu1 %v16849_v61 }
  0xb4   : > { %1813 = vmatprep.mubr.bf16.mxu1 %v16850_v63  ;;  %14440 = vmatpush3.bf16.msra.mxu1 %v17820_v2 }
  0xb5   : > { %14441 = vmatprep.subr.bf16.mxu1 %v17827_v4 }
  0xb8   : > { %14442 = vmatpush3.bf16.msra.mxu1 %v17837_v7 }
  0xb9   : > { %14443 = vmatprep.subr.bf16.mxu1 %v17841_v8 }
  0xbb   : > { %1814 = vmatmul.mubr.bf16.gmra.mrb[60].mxu1 %v16852_v3 }
  0xbc   : > { %14444 = vmatpush3.bf16.msra.mxu1 %v17846_v9  ;;  %2205 = vmatprep.mubr.bf16.mxu1 %v16855_v13 }
  0xbd   : > { %14445 = vmatprep.subr.bf16.mxu1 %v17850_v10 }
  0xc0   : > { %14446 = vmatpush3.bf16.msra.mxu1 %v17854_v11 }
  0xc1   : > { %14476 = vmatprep.subr.bf16.mxu1 %v17858_v12 }
  0xc3   : > { %2206 = vmatmul.mubr.bf16.vlgmr.msra.gmra.mrb[64].mxu1 %v16853_v14 }
  0xc4   : > { %14477 = vmatpush3.bf16.msra.mxu1 %v17868_v15  ;;  %2213 = vmatprep.mubr.bf16.mxu1 %v16856_v25  ;;  %v16873_v25 = vld [vmem:[%s20366_s28 + $0x1c0] ss:$8 sps:$4 sm:$0xff]  }
  0xc5   : > { %14478 = vmatprep.subr.bf16.mxu1 %v17872_v16 }
  0xc8   : > { %14479 = vmatpush3.bf16.msra.mxu1 %v17790_v58 }
  0xc9   : > { %14480 = vmatprep.subr.bf16.mxu1 %v17794_v59 }
  0xcb   : > { %2214 = vmatmul.mubr.bf16.gmra.mrb[68].mxu1 %v16858_v28 }
  0xcc   : > { %14481 = vmatpush3.bf16.msra.mxu1 %v17798_v60  ;;  %2221 = vmatprep.mubr.bf16.mxu1 %v16862_v41 }
  0xcd   : > { %14482 = vmatprep.subr.bf16.mxu1 %v17805_v62 }
  0xd0   : > { %14483 = vmatpush3.bf16.msra.mxu1 %v17812_v0 }
  0xd1   : > { %14484 = vmatprep.subr.bf16.mxu1 %v17816_v1 }
  0xd3   : > { %2222 = vmatmul.mubr.bf16.gmra.mrb[72].mxu1 %v16864_v45 }
  0xd4   : > { %14485 = vmatpush3.bf16.msra.mxu1 %v17820_v2  ;;  %2229 = vmatprep.mubr.bf16.mxu1 %v16867_v56 }
  0xd5   : > { %14486 = vmatprep.subr.bf16.mxu1 %v17827_v4 }
  0xd8   : > { %14487 = vmatpush3.bf16.msra.mxu1 %v17837_v7 }
  0xd9   : > { %14488 = vmatprep.subr.bf16.mxu1 %v17841_v8 }
  0xdc   : > { %14489 = vmatpush3.bf16.msra.mxu1 %v17846_v9 }
  0xdd   : > { %14490 = vmatprep.subr.bf16.mxu1 %v17850_v10 }
  0xe0   : > { %14491 = vmatpush3.bf16.msra.mxu1 %v17854_v11 }
  0xe1   : > { %14521 = vmatprep.subr.bf16.mxu1 %v17858_v12 }
 0x116   : > { %v14217_v17 = vpop.f32.mrb[0].mxu1  ;;  %v14177_v18 = vpop.f32.mrb[0].mxu0 }
 0x117   : > { %v14218_v19 = vpop.f32.mrb[1].mxu1  ;;  %v14178_v20 = vpop.f32.mrb[1].mxu0 }
 0x118   : > { %v14219_v21 = vadd.f32 %v14218_v19, %v14217_v17  ;;  %v14220_v22 = vpop.f32.mrb[2].mxu1  ;;  %v17875_v23 = vadd.f32 %v14178_v20, %v14177_v18  ;;  %v14180_v24 = vpop.f32.mrb[2].mxu0 }
 0x119   : > { %v14221_v26 = vpop.f32.mrb[3].mxu1  ;;  %v14181_v27 = vpop.f32.mrb[3].mxu0 }
 0x11a   : > { %v14222_v29 = vadd.f32 %v14221_v26, %v14220_v22  ;;  %v17885_v30 = vadd.f32 %v14181_v27, %v14180_v24  ;;  %v16875_v26 = vld [vmem:[%s20366_s28 + $0x1c4] ss:$8 sps:$4 sm:$0xff]  }
 0x11c   : > { %v1121_v31 = vpack.c.bf16 %v14222_v29, %v14219_v21  ;;  %v1002_v32 = vpack.c.bf16 %v17885_v30, %v17875_v23  ;;  %v16882_v23 = vld [vmem:[%s20366_s28 + $0x1d0] ss:$8 sps:$4 sm:$0xff]  }
 0x11e   : > { %v14223_v33 = vpop.f32.mrb[4].mxu1  ;;  %15089 = vmatprep.mubr.msk.bf16.mxu0 %vm1127_vm2, %v1121_v31  ;;  %v14183_v34 = vpop.f32.mrb[4].mxu0 }
 0x11f   : > { %v14224_v35 = vpop.f32.mrb[5].mxu1  ;;  %v14184_v36 = vpop.f32.mrb[5].mxu0 }
 0x120   : > { %v14225_v37 = vadd.f32 %v14224_v35, %v14223_v33  ;;  %v14226_v38 = vpop.f32.mrb[6].mxu1  ;;  %v17892_v39 = vadd.f32 %v14184_v36, %v14183_v34  ;;  %v14186_v40 = vpop.f32.mrb[6].mxu0 }
 0x121   : > { %v14227_v42 = vpop.f32.mrb[7].mxu1  ;;  %v14187_v43 = vpop.f32.mrb[7].mxu0 }
 0x122   : > { %v14228_v46 = vadd.f32 %v14227_v42, %v14226_v38  ;;  %v17905_v47 = vadd.f32 %v14187_v43, %v14186_v40  ;;  %v16879_v42 = vld [vmem:[%s20366_s28 + $0x1d4] ss:$8 sps:$4 sm:$0xff]  }
 0x124   : > { %v1122_v48 = vpack.c.bf16 %v14228_v46, %v14225_v37  ;;  %v1003_v49 = vpack.c.bf16 %v17905_v47, %v17892_v39  ;;  %v12932_v46 = vld [vmem:[%s20368_s5 + $0x6] sm:$0x3]  ;;  %v16886_v39 = vld [vmem:[%s20366_s28 + $0x1f4] ss:$8 sps:$4 sm:$0xff]  }
 0x126   : > { %v14229_v51 = vpop.f32.mrb[8].mxu1  ;;  %15090 = vmatmul.mubr.msk.bf16.vlgmr.msra.gmra.mrb[16].mxu0 %vm1127_vm2, %v1122_v48  ;;  %v14189_v52 = vpop.f32.mrb[8].mxu0  ;;  %v1633_v48 = vand.u32 %v12932_v46, %v17776_v54 }
 0x127   : > { %v14230_v53 = vpop.f32.mrb[9].mxu1  ;;  %v14190_v55 = vpop.f32.mrb[9].mxu0  ;;  %15098 = vmatpush3.bf16.msra.mxu0 %v17834_v6  ;;  %v16870_v6 = vld [vmem:[%s20366_s28 + $0x1b0] ss:$8 sps:$4 sm:$0xff]  }
 0x128   : > { %v14231_v57 = vadd.f32 %v14230_v53, %v14229_v51  ;;  %v14232_v61 = vpop.f32.mrb[10].mxu1  ;;  %v17919_v63 = vadd.f32 %v14190_v55, %v14189_v52  ;;  %v14192_v3 = vpop.f32.mrb[10].mxu0  ;;  %15107 = vmatprep.subr.bf16.mxu0 %v17910_v50  ;;  %2230 = vmatmul.mubr.bf16.gmra.mrb[76].mxu1 %v16870_v6  ;;  %v16883_v51 = vld [vmem:[%s20366_s28 + $0x1e4] ss:$8 sps:$4 sm:$0xff]   ;;  %v16888_v55 = vld [vmem:[%s20366_s28 + $0x1f0] ss:$8 sps:$4 sm:$0xff]  }
 0x129   : > { %v14233_v5 = vpop.f32.mrb[11].mxu1  ;;  %v14193_v13 = vpop.f32.mrb[11].mxu0  ;;  %2413 = vmatprep.mubr.bf16.mxu1 %v16875_v26 }
 0x12a   : > { %v14234_v14 = vadd.f32 %v14233_v5, %v14232_v61  ;;  %v14194_v17 = vadd.f32 %v14193_v13, %v14192_v3 }
 0x12c   : > { %v1123_v18 = vpack.c.bf16 %v14234_v14, %v14231_v57  ;;  %v1004_v19 = vpack.c.bf16 %v14194_v17, %v17919_v63 }
 0x12e   : > { %v14235_v20 = vpop.f32.mrb[12].mxu1  ;;  %15093 = vmatprep.mubr.msk.bf16.mxu0 %vm1127_vm2, %v1123_v18  ;;  %v14195_v21 = vpop.f32.mrb[12].mxu0 }
 0x12f   : > { %v14236_v22 = vpop.f32.mrb[13].mxu1  ;;  %v14196_v24 = vpop.f32.mrb[13].mxu0 }
 0x130   : > { %v14237_v27 = vadd.f32 %v14236_v22, %v14235_v20  ;;  %v14238_v28 = vpop.f32.mrb[14].mxu1  ;;  %v14197_v29 = vadd.f32 %v14196_v24, %v14195_v21  ;;  %v14198_v31 = vpop.f32.mrb[14].mxu0  ;;  %2414 = vmatmul.mubr.bf16.vlgmr.msra.gmra.mrb[80].mxu1 %v16873_v25  ;;  %v16894_v20 = vld [vmem:[%s20366_s28 + $0x210] ss:$8 sps:$4 sm:$0xff]  }
 0x131   : > { %v14239_v33 = vpop.f32.mrb[15].mxu1  ;;  %v14199_v34 = vpop.f32.mrb[15].mxu0  ;;  %14522 = vmatpush3.bf16.msra.mxu1 %v17868_v15  ;;  %2421 = vmatprep.mubr.bf16.mxu1 %v16879_v42 }
 0x132   : > { %v14240_v35 = vadd.f32 %v14239_v33, %v14238_v28  ;;  %v14200_v36 = vadd.f32 %v14199_v34, %v14198_v31  ;;  %14523 = vmatprep.subr.bf16.mxu1 %v17872_v16  ;;  %v16898_v34 = vld [vmem:[%s20366_s28 + $0x234] ss:$8 sps:$4 sm:$0xff]  }
 0x134   : > { %v1124_v37 = vpack.c.bf16 %v14240_v35, %v14237_v27  ;;  %v1005_v38 = vpack.c.bf16 %v14200_v36, %v14197_v29  ;;  %v16897_v29 = vld [vmem:[%s20366_s28 + $0x220] ss:$8 sps:$4 sm:$0xff]  }
 0x135   : > { %14524 = vmatpush3.bf16.msra.mxu1 %v17790_v58 }
 0x136   : > { %15094 = vmatmul.mubr.msk.bf16.gmra.mrb[20].mxu0 %vm1127_vm2, %v1124_v37  ;;  %v14267_v40 = vpop.f32.mrb[16].mxu1  ;;  %14525 = vmatprep.subr.bf16.mxu1 %v17794_v59 }
 0x137   : > { %v14268_v41 = vpop.f32.mrb[17].mxu1  ;;  %15099 = vmatprep.mubr.msk.bf16.mxu0 %vm1127_vm2, %v1002_v32 }
 0x138   : > { %v14270_v43 = vpop.f32.mrb[18].mxu1  ;;  %v14269_v44 = vadd.f32 %v14268_v41, %v14267_v40  ;;  %2422 = vmatmul.mubr.bf16.gmra.mrb[84].mxu1 %v16882_v23  ;;  %v16900_v41 = vld [vmem:[%s20366_s28 + $0x230] ss:$8 sps:$4 sm:$0xff]  }
 0x139   : > { %v14271_v45 = vpop.f32.mrb[19].mxu1  ;;  %14526 = vmatpush3.bf16.msra.mxu1 %v17798_v60  ;;  %v16885_v60 = vld [vmem:[%s20366_s28 + $0x1e0] ss:$8 sps:$4 sm:$0xff]   ;;  %2429 = vmatprep.mubr.bf16.mxu1 %v16883_v51 }
 0x13a   : > { %v14272_v30 = vadd.f32 %v14271_v45, %v14270_v43  ;;  %14527 = vmatprep.subr.bf16.mxu1 %v17805_v62 }
 0x13c   : > { %v1406_v32 = vpack.c.bf16 %v14272_v30, %v14269_v44 }
 0x13d   : > { %14528 = vmatpush3.bf16.msra.mxu1 %v17812_v0 }
 0x13e   : > { %15100 = vmatmul.mubr.msk.bf16.vlgmr.msra.gmra.mrb[16].mxu0 %vm1127_vm2, %v1003_v49  ;;  %v14273_v58 = vpop.f32.mrb[20].mxu1  ;;  %14529 = vmatprep.subr.bf16.mxu1 %v17816_v1 }
 0x13f   : > { %v14274_v59 = vpop.f32.mrb[21].mxu1  ;;  %15103 = vmatprep.mubr.msk.bf16.mxu0 %vm1127_vm2, %v1004_v19  ;;  %15108 = vmatpush3.bf16.msra.mxu0 %v17910_v50 }
 0x140   : > { %v14275_v62 = vadd.f32 %v14274_v59, %v14273_v58  ;;  %v14276_v52 = vpop.f32.mrb[22].mxu1  ;;  %15117 = vmatprep.subr.bf16.mxu0 %v1633_v48  ;;  %2430 = vmatmul.mubr.bf16.gmra.mrb[88].mxu1 %v16885_v60 }
 0x141   : > { %v14277_v47 = vpop.f32.mrb[23].mxu1  ;;  %14530 = vmatpush3.bf16.msra.mxu1 %v17820_v2  ;;  %2437 = vmatprep.mubr.bf16.mxu1 %v16886_v39  ;;  %v16891_v2 = vld [vmem:[%s20366_s28 + $0x204] ss:$8 sps:$4 sm:$0xff]  }
 0x142   : > { %v14278_v49 = vadd.f32 %v14277_v47, %v14276_v52  ;;  %14531 = vmatprep.subr.bf16.mxu1 %v17827_v4  ;;  %v12953_v4 = vld [vmem:[%s20368_s5 + $0x8] sm:$0x3] }
 0x143   : > { %v1841_v3 = vand.u32 %v12953_v4, %v17776_v54 }
 0x144   : > { %v1407_v50 = vpack.c.bf16 %v14278_v49, %v14275_v62 }
 0x145   : > { %14532 = vmatpush3.bf16.msra.mxu1 %v17837_v7 }
 0x146   : > { %15104 = vmatmul.mubr.msk.bf16.gmra.mrb[20].mxu0 %vm1127_vm2, %v1005_v38  ;;  %v14279_v53 = vpop.f32.mrb[24].mxu1  ;;  %14533 = vmatprep.subr.bf16.mxu1 %v17841_v8  ;;  %v16889_v8 = vld [vmem:[%s20366_s28 + $0x200] ss:$8 sps:$4 sm:$0xff]  }
 0x147   : > { %v14280_v0 = vpop.f32.mrb[25].mxu1  ;;  %15109 = vmatprep.mubr.msk.bf16.mxu0 %vm1127_vm2, %v1406_v32 }
 0x148   : > { %v14281_v56 = vadd.f32 %v14280_v0, %v14279_v53  ;;  %v14282_v1 = vpop.f32.mrb[26].mxu1  ;;  %2438 = vmatmul.mubr.bf16.gmra.mrb[92].mxu1 %v16888_v55 }
 0x149   : > { %v14283_v57 = vpop.f32.mrb[27].mxu1  ;;  %14534 = vmatpush3.bf16.msra.mxu1 %v17846_v9  ;;  %2621 = vmatprep.mubr.bf16.mxu1 %v16891_v2  ;;  %v16892_v9 = vld [vmem:[%s20366_s28 + $0x214] ss:$8 sps:$4 sm:$0xff]  }
 0x14a   : > { %v14284_v61 = vadd.f32 %v14283_v57, %v14282_v1  ;;  %14535 = vmatprep.subr.bf16.mxu1 %v17850_v10 }
 0x14c   : > { %v1408_v63 = vpack.c.bf16 %v14284_v61, %v14281_v56 }
 0x14d   : > { %14536 = vmatpush3.bf16.msra.mxu1 %v17854_v11  ;;  %v16895_v11 = vld [vmem:[%s20366_s28 + $0x224] ss:$8 sps:$4 sm:$0xff]  }
 0x14e   : > { %v14285_v7 = vpop.f32.mrb[28].mxu1  ;;  %15110 = vmatmul.mubr.msk.bf16.vlgmr.msra.gmra.mrb[16].mxu0 %vm1127_vm2, %v1407_v50 }
 0x14f   : > { %v14286_v5 = vpop.f32.mrb[29].mxu1  ;;  %15113 = vmatprep.mubr.msk.bf16.mxu0 %vm1127_vm2, %v1408_v63  ;;  %15118 = vmatpush3.bf16.msra.mxu0 %v1633_v48 }
 0x150   : > { %v14287_v13 = vadd.f32 %v14286_v5, %v14285_v7  ;;  %v14288_v6 = vpop.f32.mrb[30].mxu1  ;;  %15127 = vmatprep.subr.bf16.mxu0 %v1841_v3  ;;  %2622 = vmatmul.mubr.bf16.vlgmr.msra.gmra.mrb[96].mxu1 %v16889_v8  ;;  %v17332_v5 = vld [vmem:[%s17543_s6 + $0x8] sm:$0xff]   ;;  %v17333_v8 = vld [vmem:[%s17543_s6 + $0x50] sm:$0xff]  }
 0x151   : > { %v14289_v10 = vpop.f32.mrb[31].mxu1  ;;  %2629 = vmatprep.mubr.bf16.mxu1 %v16892_v9  ;;  %v17334_v9 = vld [vmem:[%s17543_s6 + $0x10] sm:$0xff]  }
 0x152   : > { %v14290_v14 = vadd.f32 %v14289_v10, %v14288_v6  ;;  %v17335_v10 = vld [vmem:[%s17543_s6 + $0x58] sm:$0xff]  }
 0x154   : > { %v1409_v17 = vpack.c.bf16 %v14290_v14, %v14287_v13 }
 0x156   : > { %15114 = vmatmul.mubr.msk.bf16.gmra.mrb[20].mxu0 %vm1127_vm2, %v1409_v17  ;;  %v14312_v18 = vpop.f32.mrb[32].mxu1 }
 0x157   : > { %v14313_v19 = vpop.f32.mrb[33].mxu1 }
 0x158   : > { %v14314_v21 = vadd.f32 %v14313_v19, %v14312_v18  ;;  %v14315_v22 = vpop.f32.mrb[34].mxu1  ;;  %2630 = vmatmul.mubr.bf16.gmra.mrb[100].mxu1 %v16894_v20  ;;  %v17336_v19 = vld [vmem:[%s17543_s6 + $0x18] sm:$0xff]   ;;  %v16861_v20 = vld [vmem:[%s20366_s28 + $0x144] ss:$8 sps:$4 sm:$0xff]  }
 0x159   : > { %v14316_v24 = vpop.f32.mrb[35].mxu1  ;;  %2637 = vmatprep.mubr.bf16.mxu1 %v16895_v11  ;;  %v17338_v11 = vld [vmem:[%s17543_s6 + $0x20] sm:$0xff]  }
 0x15a   : > { %v14317_v25 = vadd.f32 %v14316_v24, %v14315_v22  ;;  %v17339_v24 = vld [vmem:[%s17543_s6 + $0x68] sm:$0xff]  }
 0x15c   : > { %v1614_v26 = vpack.c.bf16 %v14317_v25, %v14314_v21  ;;  %v17337_v21 = vld [vmem:[%s17543_s6 + $0x60] sm:$0xff]   ;;  %v17340_v25 = vld [vmem:[%s17543_s6 + $0x28] sm:$0xff]  }
 0x15e   : > { %v14318_v27 = vpop.f32.mrb[36].mxu1  ;;  %15119 = vmatprep.mubr.msk.bf16.mxu0 %vm1127_vm2, %v1614_v26  ;;  %v17341_v26 = vld [vmem:[%s17543_s6 + $0x70] sm:$0xff]  }
 0x15f   : > { %v14319_v28 = vpop.f32.mrb[37].mxu1 }
 0x160   : > { %v14320_v31 = vadd.f32 %v14319_v28, %v14318_v27  ;;  %v14321_v33 = vpop.f32.mrb[38].mxu1  ;;  %2638 = vmatmul.mubr.bf16.gmra.mrb[104].mxu1 %v16897_v29  ;;  %v17342_v27 = vld [vmem:[%s17543_s6 + $0x30] sm:$0xff]   ;;  %v17343_v28 = vld [vmem:[%s17543_s6 + $0x78] sm:$0xff]   ;;  %v16859_v29 = vld [vmem:[%s20366_s28 + $0x140] ss:$8 sps:$4 sm:$0xff]  }
 0x161   : > { %v14322_v35 = vpop.f32.mrb[39].mxu1  ;;  %2645 = vmatprep.mubr.bf16.mxu1 %v16898_v34  ;;  %v16869_v34 = vld [vmem:[%s20366_s28 + $0x150] ss:$8 sps:$4 sm:$0xff]  }
 0x162   : > { %v14323_v36 = vadd.f32 %v14322_v35, %v14321_v33  ;;  %v16865_v33 = vld [vmem:[%s20366_s28 + $0x154] ss:$8 sps:$4 sm:$0xff]   ;;  %v16871_v35 = vld [vmem:[%s20366_s28 + $0x164] ss:$8 sps:$4 sm:$0xff]  }
 0x164   : > { %v1615_v37 = vpack.c.bf16 %v14323_v36, %v14320_v31  ;;  %v17344_v31 = vld [vmem:[%s17543_s6 + $0x38] sm:$0xff]   ;;  %v16876_v36 = vld [vmem:[%s20366_s28 + $0x160] ss:$8 sps:$4 sm:$0xff]  }
 0x166   : > { %v14324_v38 = vpop.f32.mrb[40].mxu1  ;;  %15120 = vmatmul.mubr.msk.bf16.vlgmr.msra.gmra.mrb[16].mxu0 %vm1127_vm2, %v1615_v37  ;;  %v16877_v37 = vld [vmem:[%s20366_s28 + $0x174] ss:$8 sps:$4 sm:$0xff]  }
 0x167   : > { %v14325_v40 = vpop.f32.mrb[41].mxu1  ;;  %15128 = vmatpush3.bf16.msra.mxu0 %v1841_v3 }
 0x168   : > { %v14326_v42 = vadd.f32 %v14325_v40, %v14324_v38  ;;  %v14327_v43 = vpop.f32.mrb[42].mxu1  ;;  %14386 = vmatprep.subr.bf16.mxu0 %v17858_v12  ;;  %2646 = vmatmul.mubr.bf16.gmra.mrb[108].mxu1 %v16900_v41  ;;  %v16881_v38 = vld [vmem:[%s20366_s28 + $0x170] ss:$8 sps:$4 sm:$0xff]  }
 0x169   : > { %v14328_v44 = vpop.f32.mrb[43].mxu1 }
 0x16a   : > { %v14329_v45 = vadd.f32 %v14328_v44, %v14327_v43 }
 0x16c   : > { %v1616_v46 = vpack.c.bf16 %v14329_v45, %v14326_v42 }
 0x16e   : > { %v14330_v23 = vpop.f32.mrb[44].mxu1  ;;  %15123 = vmatprep.mubr.msk.bf16.mxu0 %vm1127_vm2, %v1616_v46 }
 0x16f   : > { %v14331_v30 = vpop.f32.mrb[45].mxu1 }
 0x170   : > { %v14333_v32 = vpop.f32.mrb[46].mxu1  ;;  %v14332_v48 = vadd.f32 %v14331_v30, %v14330_v23 }
 0x171   : > { %v14334_v58 = vpop.f32.mrb[47].mxu1 }
 0x172   : > { %v14335_v51 = vadd.f32 %v14334_v58, %v14333_v32 }
 0x174   : > { %v1617_v59 = vpack.c.bf16 %v14335_v51, %v14332_v48 }
 0x176   : > { %15124 = vmatmul.mubr.msk.bf16.gmra.mrb[20].mxu0 %vm1127_vm2, %v1617_v59  ;;  %v14357_v60 = vpop.f32.mrb[48].mxu1 }
 0x177   : > { %v14358_v62 = vpop.f32.mrb[49].mxu1 }
 0x178   : > { %v14360_v52 = vpop.f32.mrb[50].mxu1  ;;  %v14359_v39 = vadd.f32 %v14358_v62, %v14357_v60 }
 0x179   : > { %v14361_v12 = vpop.f32.mrb[51].mxu1 }
 0x17a   : > { %v14362_v47 = vadd.f32 %v14361_v12, %v14360_v52 }
 0x17c   : > { %v1822_v49 = vpack.c.bf16 %v14362_v47, %v14359_v39 }
 0x17e   : > { %v14363_v50 = vpop.f32.mrb[52].mxu1  ;;  %15129 = vmatprep.mubr.msk.bf16.mxu0 %vm1127_vm2, %v1822_v49 }
 0x17f   : > { %v14364_v53 = vpop.f32.mrb[53].mxu1 }
 0x180   : > { %v14365_v0 = vadd.f32 %v14364_v53, %v14363_v50  ;;  %v14366_v55 = vpop.f32.mrb[54].mxu1 }
 0x181   : > { %v14367_v56 = vpop.f32.mrb[55].mxu1 }
 0x182   : > { %v14368_v1 = vadd.f32 %v14367_v56, %v14366_v55  ;;  %v12974_v55 = vld [vmem:[%s20368_s5 + $0xa] sm:$0x3] }
 0x184   : > { %v1823_v2 = vpack.c.bf16 %v14368_v1, %v14365_v0  ;;  %v2049_v1 = vand.u32 %v12974_v55, %v17776_v54 }
 0x186   : > { %15130 = vmatmul.mubr.msk.bf16.vlgmr.msra.gmra.mrb[16].mxu0 %vm1127_vm2, %v1823_v2  ;;  %v14369_v57 = vpop.f32.mrb[56].mxu1 }
 0x187   : > { %14387 = vmatpush3.bf16.msra.mxu0 %v17868_v15  ;;  %v14370_v4 = vpop.f32.mrb[57].mxu1 }
 0x188   : > { %14388 = vmatprep.subr.bf16.mxu0 %v17872_v16  ;;  %v14372_v61 = vpop.f32.mrb[58].mxu1  ;;  %v14371_v63 = vadd.f32 %v14370_v4, %v14369_v57 }
 0x189   : > { %v14373_v3 = vpop.f32.mrb[59].mxu1 }
 0x18a   : > { %v14374_v7 = vadd.f32 %v14373_v3, %v14372_v61 }
 0x18b   : > { %14389 = vmatpush3.bf16.msra.mxu0 %v17332_v5 }
 0x18c   : > { %14390 = vmatprep.subr.bf16.mxu0 %v17333_v8  ;;  %v1824_v13 = vpack.c.bf16 %v14374_v7, %v14371_v63 }
 0x18e   : > { %v14375_v6 = vpop.f32.mrb[60].mxu1  ;;  %15133 = vmatprep.mubr.msk.bf16.mxu0 %vm1127_vm2, %v1824_v13 }
 0x18f   : > { %14391 = vmatpush3.bf16.msra.mxu0 %v17334_v9  ;;  %v14376_v15 = vpop.f32.mrb[61].mxu1 }
 0x190   : > { %14392 = vmatprep.subr.bf16.mxu0 %v17335_v10  ;;  %v14377_v16 = vadd.f32 %v14376_v15, %v14375_v6  ;;  %v14378_v14 = vpop.f32.mrb[62].mxu1 }
 0x191   : > { %v14379_v17 = vpop.f32.mrb[63].mxu1 }
 0x192   : > { %v14380_v18 = vadd.f32 %v14379_v17, %v14378_v14 }
 0x193   : > { %14393 = vmatpush3.bf16.msra.mxu0 %v17336_v19 }
 0x194   : > { %14394 = vmatprep.subr.bf16.mxu0 %v17337_v21  ;;  %v1825_v22 = vpack.c.bf16 %v14380_v18, %v14377_v16 }
 0x196   : > { %15134 = vmatmul.mubr.msk.bf16.gmra.mrb[20].mxu0 %vm1127_vm2, %v1825_v22  ;;  %v14447_v40 = vpop.f32.mrb[64].mxu1 }
 0x197   : > { %14395 = vmatpush3.bf16.msra.mxu0 %v17338_v11  ;;  %1997 = vmatprep.mubr.bf16.mxu0 %v16861_v20  ;;  %v14448_v41 = vpop.f32.mrb[65].mxu1  ;;  %v12995_v11 = vld [vmem:[%s20368_s5 + $0xc] sm:$0x3] }
 0x198   : > { %14396 = vmatprep.subr.bf16.mxu0 %v17339_v24  ;;  %v18068_v42 = vadd.f32 %v14448_v41, %v14447_v40  ;;  %v14450_v43 = vpop.f32.mrb[66].mxu1 }
 0x199   : > { %v14451_v44 = vpop.f32.mrb[67].mxu1 }
 0x19a   : > { %v18070_v45 = vadd.f32 %v14451_v44, %v14450_v43 }
 0x19b   : > { %14397 = vmatpush3.bf16.msra.mxu0 %v17340_v25  ;;  %v2257_v25 = vand.u32 %v12995_v11, %v17776_v54 }
 0x19c   : > { %14398 = vmatprep.subr.bf16.mxu0 %v17341_v26  ;;  %v2238_v46 = vpack.c.bf16 %v18070_v45, %v18068_v42  ;;  %v13042_v42 = vld [vmem:[%s20369_s7] ss:$0 sm:$0xff]  ;;  %s20375_s7 = sld [smem:[#allocation15_spill]] }
 0x19e   : > { %v14453_v23 = vpop.f32.mrb[68].mxu1 }
 0x19f   : > { %14399 = vmatpush3.bf16.msra.mxu0 %v17342_v27  ;;  %v14454_v30 = vpop.f32.mrb[69].mxu1 }
 0x1a0   : > { %14400 = vmatprep.subr.bf16.mxu0 %v17343_v28  ;;  %v18074_v32 = vadd.f32 %v14454_v30, %v14453_v23  ;;  %v14456_v48 = vpop.f32.mrb[70].mxu1 }
 0x1a1   : > { %v14457_v58 = vpop.f32.mrb[71].mxu1 }
 0x1a2   : > { %v18076_v51 = vadd.f32 %v14457_v58, %v14456_v48 }
 0x1a3   : > { %14401 = vmatpush3.bf16.msra.mxu0 %v17344_v31 }
 0x1a4   : > { %v2239_v59 = vpack.c.bf16 %v18076_v51, %v18074_v32  ;;  %15137 = vmatprep.subr.bf16.mxu0 %v2049_v1 }
 0x1a6   : > { %1998 = vmatmul.mubr.bf16.vlgmr.msra.gmra.mrb[24].mxu0 %v16859_v29  ;;  %v14459_v60 = vpop.f32.mrb[72].mxu1 }
 0x1a7   : > { %2005 = vmatprep.mubr.bf16.mxu0 %v16865_v33  ;;  %v14460_v62 = vpop.f32.mrb[73].mxu1  ;;  %15138 = vmatpush3.bf16.msra.mxu0 %v2049_v1 }
 0x1a8   : > { %v14462_v52 = vpop.f32.mrb[74].mxu1  ;;  %v18080_v12 = vadd.f32 %v14460_v62, %v14459_v60  ;;  %15147 = vmatprep.subr.bf16.mxu0 %v2257_v25 }
 0x1a9   : > { %v14463_v39 = vpop.f32.mrb[75].mxu1 }
 0x1aa   : > { %v18082_v47 = vadd.f32 %v14463_v39, %v14462_v52 }
 0x1ac   : > { %v2240_v49 = vpack.c.bf16 %v18082_v47, %v18080_v12 }
 0x1ae   : > { %2006 = vmatmul.mubr.bf16.gmra.mrb[28].mxu0 %v16869_v34 }
 0x1af   : > { %2013 = vmatprep.mubr.bf16.mxu0 %v16871_v35 }
 0x1b6   : > { %2014 = vmatmul.mubr.bf16.gmra.mrb[32].mxu0 %v16876_v36 }
 0x1b7   : > { %2021 = vmatprep.mubr.bf16.mxu0 %v16877_v37 }
 0x1be   : > { %2022 = vmatmul.mubr.bf16.gmra.mrb[36].mxu0 %v16881_v38 }
 0x1fb   : > { %v14465_v50 = vpop.f32.mrb[76].mxu1 }
 0x1fc   : > { %v14466_v53 = vpop.f32.mrb[77].mxu1 }
 0x1fd   : > { %v14468_v0 = vpop.f32.mrb[78].mxu1  ;;  %v18090_v2 = vadd.f32 %v14466_v53, %v14465_v50 }
 0x1fe   : > { %v14469_v56 = vpop.f32.mrb[79].mxu1 }
 0x1ff   : > { %v18092_v57 = vadd.f32 %v14469_v56, %v14468_v0 }
 0x201   : > { %v2241_v4 = vpack.c.bf16 %v18092_v57, %v18090_v2 }
 0x203   : > { %v14492_v61 = vpop.f32.mrb[80].mxu1 }
 0x204   : > { %v14493_v63 = vpop.f32.mrb[81].mxu1 }
 0x205   : > { %v14495_v3 = vpop.f32.mrb[82].mxu1  ;;  %v18096_v5 = vadd.f32 %v14493_v63, %v14492_v61 }
 0x206   : > { %v14496_v7 = vpop.f32.mrb[83].mxu1 }
 0x207   : > { %v18098_v8 = vadd.f32 %v14496_v7, %v14495_v3 }
 0x209   : > { %v2446_v13 = vpack.c.bf16 %v18098_v8, %v18096_v5 }
 0x20b   : > { %v14498_v6 = vpop.f32.mrb[84].mxu1 }
 0x20c   : > { %v14499_v9 = vpop.f32.mrb[85].mxu1 }
 0x20d   : > { %v14501_v15 = vpop.f32.mrb[86].mxu1  ;;  %v18102_v16 = vadd.f32 %v14499_v9, %v14498_v6 }
 0x20e   : > { %v14502_v10 = vpop.f32.mrb[87].mxu1 }
 0x20f   : > { %v18104_v14 = vadd.f32 %v14502_v10, %v14501_v15 }
 0x211   : > { %v2447_v17 = vpack.c.bf16 %v18104_v14, %v18102_v16 }
 0x213   : > { %v14504_v18 = vpop.f32.mrb[88].mxu1 }
 0x214   : > { %v14505_v19 = vpop.f32.mrb[89].mxu1 }
 0x215   : > { %v14507_v20 = vpop.f32.mrb[90].mxu1  ;;  %v18108_v22 = vadd.f32 %v14505_v19, %v14504_v18 }
 0x216   : > { %v14508_v21 = vpop.f32.mrb[91].mxu1 }
 0x217   : > { %v18113_v24 = vadd.f32 %v14508_v21, %v14507_v20 }
 0x219   : > { %v2448_v26 = vpack.c.bf16 %v18113_v24, %v18108_v22 }
 0x21b   : > { %v14510_v27 = vpop.f32.mrb[92].mxu1 }
 0x21c   : > { %v14511_v28 = vpop.f32.mrb[93].mxu1 }
 0x21d   : > { %v14513_v29 = vpop.f32.mrb[94].mxu1  ;;  %v18118_v33 = vadd.f32 %v14511_v28, %v14510_v27 }
 0x21e   : > { %v14514_v31 = vpop.f32.mrb[95].mxu1 }
 0x21f   : > { %v18120_v34 = vadd.f32 %v14514_v31, %v14513_v29 }
 0x221   : > { %v2449_v35 = vpack.c.bf16 %v18120_v34, %v18118_v33 }
 0x223   : > { %v14537_v36 = vpop.f32.mrb[96].mxu1 }
 0x224   : > { %v14538_v37 = vpop.f32.mrb[97].mxu1 }
 0x225   : > { %v14540_v38 = vpop.f32.mrb[98].mxu1  ;;  %v18124_v41 = vadd.f32 %v14538_v37, %v14537_v36 }
 0x226   : > { %v14541_v40 = vpop.f32.mrb[99].mxu1 }
 0x227   : > { %v18126_v43 = vadd.f32 %v14541_v40, %v14540_v38  ;;  %v13016_v38 = vld [vmem:[%s20368_s5 + $0xe] sm:$0x3] }
 0x229   : > { %v2654_v44 = vpack.c.bf16 %v18126_v43, %v18124_v41 }
 0x22b   : > { %v14543_v23 = vpop.f32.mrb[100].mxu1 }
 0x22c   : > { %v14544_v30 = vpop.f32.mrb[101].mxu1 }
 0x22d   : > { %v14546_v48 = vpop.f32.mrb[102].mxu1  ;;  %v18130_v60 = vadd.f32 %v14544_v30, %v14543_v23  ;;  %v2465_v30 = vand.u32 %v13016_v38, %v17776_v54  ;;  %v16905_v38 = vld [vmem:[%s20370_s26 + $0x10] sm:$0xff]  }
 0x22e   : > { %v14547_v58 = vpop.f32.mrb[103].mxu1 }
 0x22f   : > { %v18132_v62 = vadd.f32 %v14547_v58, %v14546_v48 }
 0x231   : > { %v2655_v52 = vpack.c.bf16 %v18132_v62, %v18130_v60 }
 0x233   : > { %v14549_v39 = vpop.f32.mrb[104].mxu1 }
 0x234   : > { %v14550_v50 = vpop.f32.mrb[105].mxu1 }
 0x235   : > { %v14552_v53 = vpop.f32.mrb[106].mxu1  ;;  %v14551_v55 = vadd.f32 %v14550_v50, %v14549_v39 }
 0x236   : > { %v14553_v0 = vpop.f32.mrb[107].mxu1 }
 0x237   : > { %v14554_v56 = vadd.f32 %v14553_v0, %v14552_v53 }
 0x239   : > { %v2656_v1 = vpack.c.bf16 %v14554_v56, %v14551_v55 }
 0x23b   : > { %v14555_v61 = vpop.f32.mrb[108].mxu1 }
 0x23c   : > { %v14556_v63 = vpop.f32.mrb[109].mxu1 }
 0x23d   : > { %v14558_v3 = vpop.f32.mrb[110].mxu1  ;;  %v14557_v7 = vadd.f32 %v14556_v63, %v14555_v61 }
 0x23e   : > { %v14559_v6 = vpop.f32.mrb[111].mxu1 }
 0x23f   : > { %v14560_v9 = vadd.f32 %v14559_v6, %v14558_v3 }
 0x241   : > { %v2657_v15 = vpack.c.bf16 %v14560_v9, %v14557_v7 }
 0x279   : > { %v14402_v10 = vpop.f32.mrb[24].mxu0 }
 0x27a   : > { %v14403_v18 = vpop.f32.mrb[25].mxu0 }
 0x27b   : > { %v14404_v19 = vadd.f32 %v14403_v18, %v14402_v10  ;;  %v14405_v20 = vpop.f32.mrb[26].mxu0  ;;  %v16904_v18 = vld [vmem:[%s20371_s4] sm:$0xff]  }
 0x27c   : > { %v14406_v21 = vpop.f32.mrb[27].mxu0 }
 0x27d   : > { %v14407_v11 = vadd.f32 %v14406_v21, %v14405_v20 }
 0x27f   : > { %v2030_v27 = vpack.c.bf16 %v14407_v11, %v14404_v19 }
 0x281   : > { %v14408_v28 = vpop.f32.mrb[28].mxu0  ;;  %15139 = vmatprep.mubr.msk.bf16.mxu0 %vm1127_vm2, %v2030_v27 }
 0x282   : > { %v14409_v29 = vpop.f32.mrb[29].mxu0 }
 0x283   : > { %v14410_v31 = vadd.f32 %v14409_v29, %v14408_v28  ;;  %v14411_v36 = vpop.f32.mrb[30].mxu0 }
 0x284   : > { %v14412_v37 = vpop.f32.mrb[31].mxu0 }
 0x285   : > { %v14413_v40 = vadd.f32 %v14412_v37, %v14411_v36 }
 0x287   : > { %v2031_v23 = vpack.c.bf16 %v14413_v40, %v14410_v31  ;;  %v16906_v40 = vld [vmem:[%s20370_s26 + $0x18] sm:$0xff]  }
 0x289   : > { %v14414_v48 = vpop.f32.mrb[32].mxu0  ;;  %15140 = vmatmul.mubr.msk.bf16.vlgmr.msra.gmra.mrb[16].mxu0 %vm1127_vm2, %v2031_v23  ;;  %v16907_v23 = vld [vmem:[%s20371_s4 + $0x10] sm:$0xff]  }
 0x28a   : > { %v14415_v58 = vpop.f32.mrb[33].mxu0  ;;  %15148 = vmatpush3.bf16.msra.mxu0 %v2257_v25  ;;  %v13037_v25 = vld [vmem:[%s20368_s5 + $0x10] sm:$0x3] }
 0x28b   : > { %v14416_v39 = vadd.f32 %v14415_v58, %v14414_v48  ;;  %v14417_v50 = vpop.f32.mrb[34].mxu0  ;;  %15157 = vmatprep.subr.bf16.mxu0 %v2465_v30  ;;  %v2673_v10 = vand.u32 %v13037_v25, %v17776_v54  ;;  %v17370_v54 = vmov 0.0  }
 0x28c   : > { %v14418_v53 = vpop.f32.mrb[35].mxu0  ;;  %15189 = vmatprep.subr.bf16.mxu1 %v17370_v54  ;;  %15197 = vmatprep.mubr.msk.bf16.mxu1 %vm17371_vm3, %v17370_v54 }
 0x28d   : > { %v14419_v0 = vadd.f32 %v14418_v53, %v14417_v50 }
 0x28f   : > { %v2032_v55 = vpack.c.bf16 %v14419_v0, %v14416_v39 }
 0x291   : > { %v14420_v56 = vpop.f32.mrb[36].mxu0  ;;  %15143 = vmatprep.mubr.msk.bf16.mxu0 %vm1127_vm2, %v2032_v55 }
 0x292   : > { %v14421_v61 = vpop.f32.mrb[37].mxu0 }
 0x293   : > { %v14422_v63 = vadd.f32 %v14421_v61, %v14420_v56  ;;  %v14423_v3 = vpop.f32.mrb[38].mxu0 }
 0x294   : > { %v14424_v7 = vpop.f32.mrb[39].mxu0 }
 0x295   : > { %v14425_v6 = vadd.f32 %v14424_v7, %v14423_v3 }
 0x297   : > { %v2033_v9 = vpack.c.bf16 %v14425_v6, %v14422_v63 }
 0x299   : > { %15144 = vmatmul.mubr.msk.bf16.gmra.mrb[20].mxu0 %vm1127_vm2, %v2033_v9 }
 0x29a   : > { %15149 = vmatprep.mubr.msk.bf16.mxu0 %vm1127_vm2, %v2238_v46 }
 0x2a1   : > { %15150 = vmatmul.mubr.msk.bf16.vlgmr.msra.gmra.mrb[16].mxu0 %vm1127_vm2, %v2239_v59 }
 0x2a2   : > { %15153 = vmatprep.mubr.msk.bf16.mxu0 %vm1127_vm2, %v2240_v49  ;;  %15158 = vmatpush3.bf16.msra.mxu0 %v2465_v30  ;;  %v16908_v30 = vld [vmem:[%s20371_s4 + $0x18] sm:$0xff]  }
 0x2a3   : > { %15167 = vmatprep.subr.bf16.mxu0 %v2673_v10 }
 0x2a9   : > { %15154 = vmatmul.mubr.msk.bf16.gmra.mrb[20].mxu0 %vm1127_vm2, %v2241_v4 }
 0x2aa   : > { %15159 = vmatprep.mubr.msk.bf16.mxu0 %vm1127_vm2, %v2446_v13 }
 0x2b1   : > { %15160 = vmatmul.mubr.msk.bf16.vlgmr.msra.gmra.mrb[16].mxu0 %vm1127_vm2, %v2447_v17 }
 0x2b2   : > { %15163 = vmatprep.mubr.msk.bf16.mxu0 %vm1127_vm2, %v2448_v26  ;;  %15168 = vmatpush3.bf16.msra.mxu0 %v2673_v10 }
 0x2b3   : > { %15177 = vmatprep.subr.bf16.mxu0 %v17370_v54 }
 0x2b9   : > { %15164 = vmatmul.mubr.msk.bf16.gmra.mrb[20].mxu0 %vm1127_vm2, %v2449_v35 }
 0x2ba   : > { %15169 = vmatprep.mubr.msk.bf16.mxu0 %vm1127_vm2, %v2654_v44 }
 0x2c1   : > { %15170 = vmatmul.mubr.msk.bf16.vlgmr.msra.gmra.mrb[16].mxu0 %vm1127_vm2, %v2655_v52  ;;  %v16901_v52 = vld [vmem:[%s20370_s26] sm:$0xff]  }
 0x2c2   : > { %15173 = vmatprep.mubr.msk.bf16.mxu0 %vm1127_vm2, %v2656_v1  ;;  %v16902_v1 = vld [vmem:[%s20370_s26 + $0x8] sm:$0xff]  }
 0x2c9   : > { %15174 = vmatmul.mubr.msk.bf16.gmra.mrb[20].mxu0 %vm1127_vm2, %v2657_v15  ;;  %v16903_v15 = vld [vmem:[%s20371_s4 + $0x8] sm:$0xff]  }
 0x2ca   : > { %15185 = vmatprep.mubr.msk.bf16.mxu0 %vm17371_vm3, %v17370_v54 }
 0x394   : > { %v15171_v45 = vpop.f32.mrb[16].mxu0 }
 0x395   : > { %v2757_v46 = vadd.f32 %v15171_v45, %v13042_v42  ;;  %v2709_v32 = vpop.f32.mrb[17].mxu0 }
 0x396   : > { %v2755_v51 = vadd.f32 %v13042_v42, %v2709_v32  ;;  %v15172_v59 = vpop.f32.mrb[18].mxu0 }
 0x397   : > { %v2758_v12 = vadd.f32 %v15172_v59, %v13042_v42  ;;  %v2712_v47 = vpop.f32.mrb[19].mxu0  ;;  %v2765_v2 = vmax.f32 %v2757_v46, 0.0  ;;  %v16910_v59 = vld [vmem:[%s20371_s4 + $0x20] sm:$0xff]  }
 0x398   : > { %v2756_v49 = vadd.f32 %v13042_v42, %v2712_v47  ;;  %v2763_v4 = vmax.f32 %v2755_v51, 0.0  ;;  %v16909_v51 = vld [vmem:[%s20370_s26 + $0x20] sm:$0xff]  }
 0x399   : > { %v2766_v57 = vmax.f32 %v2758_v12, 0.0 }
 0x39a   : > { %v2764_v5 = vmax.f32 %v2756_v49, 0.0 }
 0x39b   : > { %v18199_v8 = vpack.c.bf16 %v2766_v57, %v2765_v2 }
 0x39c   : > { %v18201_v13 = vpack.c.bf16 %v2764_v5, %v2763_v4  ;;  %v15175_v16 = vpop.f32.mrb[20].mxu0 }
 0x39d   : > { %v2761_v14 = vadd.f32 %v15175_v16, %v13042_v42  ;;  %v2725_v17 = vpop.f32.mrb[21].mxu0 }
 0x39e   : > { %v2759_v22 = vadd.f32 %v13042_v42, %v2725_v17  ;;  %v15176_v24 = vpop.f32.mrb[22].mxu0  ;;  %15178 = vmatpush3.bf16.msra.mxu0 %v18201_v13  ;;  %15190 = vmatpush3.bf16.msra.mxu1 %v18201_v13 }
 0x39f   : > { %v2762_v26 = vadd.f32 %v15176_v24, %v13042_v42  ;;  %v2728_v33 = vpop.f32.mrb[23].mxu0  ;;  %15179 = vmatprep.subr.bf16.mxu0 %v17370_v54  ;;  %15191 = vmatprep.subr.bf16.mxu1 %v17370_v54  ;;  %v2769_v35 = vmax.f32 %v2761_v14, 0.0 }
 0x3a0   : > { %v2760_v34 = vadd.f32 %v13042_v42, %v2728_v33  ;;  %v2767_v43 = vmax.f32 %v2759_v22, 0.0 }
 0x3a1   : > { %v2770_v41 = vmax.f32 %v2762_v26, 0.0 }
 0x3a2   : > { %v2768_v44 = vmax.f32 %v2760_v34, 0.0  ;;  %15180 = vmatpush3.bf16.msra.mxu0 %v18199_v8  ;;  %15192 = vmatpush3.bf16.msra.mxu1 %v18199_v8 }
 0x3a3   : > { %v18209_v60 = vpack.c.bf16 %v2770_v41, %v2769_v35  ;;  %15181 = vmatprep.subr.bf16.mxu0 %v17370_v54  ;;  %15193 = vmatprep.subr.bf16.mxu1 %v17370_v54 }
 0x3a4   : > { %v18213_v62 = vpack.c.bf16 %v2768_v44, %v2767_v43  ;;  %v16911_v43 = vld [vmem:[%s20370_s26 + $0x28] sm:$0xff]  }
 0x3a5   : > { %v16912_v44 = vld [vmem:[%s20371_s4 + $0x28] sm:$0xff]  }
 0x3a6   : > { %15182 = vmatpush3.bf16.msra.mxu0 %v18213_v62  ;;  %15194 = vmatpush3.bf16.msra.mxu1 %v18213_v62 }
 0x3a7   : > { %15183 = vmatprep.subr.bf16.mxu0 %v17370_v54  ;;  %15195 = vmatprep.subr.bf16.mxu1 %v17370_v54 }
 0x3aa   : > { %15184 = vmatpush3.bf16.msra.mxu0 %v18209_v60  ;;  %15196 = vmatpush3.bf16.msra.mxu1 %v18209_v60 }
 0x3ab   : > { %15201 = vmatprep.subr.bf16.mxu0 %v17370_v54  ;;  %15207 = vmatprep.subr.bf16.mxu1 %v17370_v54 }
 0x3ad   : > { %15186 = vmatmul.mubr.msk.bf16.vlgmr.msra.gmra.mrb[40].mxu0 %vm2782_vm4, %v16901_v52  ;;  %15198 = vmatmul.mubr.msk.bf16.vlgmr.msra.gmra.mrb[112].mxu1 %vm2782_vm4, %v16902_v1 }
 0x3ae   : > { %15203 = vmatprep.mubr.msk.bf16.mxu0 %vm17371_vm3, %v17370_v54  ;;  %15209 = vmatprep.mubr.msk.bf16.mxu1 %vm17371_vm3, %v17370_v54 }
 0x3af   : > { %15202 = vmatpush3.bf16.msra.mxu0 %v16903_v15  ;;  %15208 = vmatpush3.bf16.msra.mxu1 %v16904_v18 }
 0x3b0   : > { %15213 = vmatprep.subr.bf16.mxu0 %v17370_v54  ;;  %15225 = vmatprep.subr.bf16.mxu1 %v17370_v54 }
 0x480   : > { %v2820_v19 = vpop.f32.mrb[40].mxu0  ;;  %v2875_v20 = vpop.f32.mrb[112].mxu1 }
 0x481   : > { %v15187_v21 = vpop.f32.mrb[41].mxu0  ;;  %v15199_v11 = vpop.f32.mrb[113].mxu1 }
 0x482   : > { %v2823_v27 = vpop.f32.mrb[42].mxu0  ;;  %v2878_v28 = vpop.f32.mrb[114].mxu1 }
 0x483   : > { %v2827_v29 = vpack.c.bf16 %v2823_v27, %v2820_v19  ;;  %v2882_v31 = vpack.c.bf16 %v2878_v28, %v2875_v20  ;;  %v15200_v36 = vpop.f32.mrb[115].mxu1  ;;  %v15188_v37 = vpop.f32.mrb[43].mxu0 }
 0x484   : > { %v16914_v36 = vld [vmem:[%s20371_s4 + $0x30] sm:$0xff]  }
 0x485   : > { %15204 = vmatmul.mubr.msk.bf16.vlgmr.msra.gmra.mrb[44].mxu0 %vm2892_vm5, %v2882_v31  ;;  %15210 = vmatmul.mubr.msk.bf16.vlgmr.msra.gmra.mrb[116].mxu1 %vm2892_vm5, %v2827_v29  ;;  %v16913_v31 = vld [vmem:[%s20370_s26 + $0x30] sm:$0xff]  }
 0x486   : > { %15214 = vmatpush3.bf16.msra.mxu0 %v18201_v13  ;;  %15221 = vmatprep.mubr.msk.bf16.mxu0 %vm17371_vm3, %v17370_v54 }
 0x487   : > { %15215 = vmatprep.subr.bf16.mxu0 %v17370_v54  ;;  %15227 = vmatprep.mubr.msk.bf16.mxu1 %vm17371_vm3, %v17370_v54 }
 0x488   : > { %15226 = vmatpush3.bf16.msra.mxu1 %v16907_v23 }
 0x489   : > { %15261 = vmatprep.subr.bf16.mxu1 %v17370_v54 }
 0x48a   : > { %15216 = vmatpush3.bf16.msra.mxu0 %v18199_v8 }
 0x48b   : > { %15217 = vmatprep.subr.bf16.mxu0 %v17370_v54 }
 0x48e   : > { %15218 = vmatpush3.bf16.msra.mxu0 %v18213_v62 }
 0x48f   : > { %15219 = vmatprep.subr.bf16.mxu0 %v17370_v54 }
 0x492   : > { %15220 = vmatpush3.bf16.msra.mxu0 %v18209_v60 }
 0x493   : > { %15231 = vmatprep.subr.bf16.mxu0 %v17370_v54 }
 0x495   : > { %15222 = vmatmul.mubr.msk.bf16.vlgmr.msra.gmra.mrb[48].mxu0 %vm2782_vm4, %v16905_v38 }
 0x496   : > { %15232 = vmatpush3.bf16.msra.mxu0 %v18201_v13  ;;  %15239 = vmatprep.mubr.msk.bf16.mxu0 %vm17371_vm3, %v17370_v54 }
 0x497   : > { %15233 = vmatprep.subr.bf16.mxu0 %v17370_v54 }
 0x49a   : > { %15234 = vmatpush3.bf16.msra.mxu0 %v18199_v8 }
 0x49b   : > { %15235 = vmatprep.subr.bf16.mxu0 %v17370_v54 }
 0x49e   : > { %15236 = vmatpush3.bf16.msra.mxu0 %v18213_v62 }
 0x49f   : > { %15237 = vmatprep.subr.bf16.mxu0 %v17370_v54 }
 0x4a2   : > { %15238 = vmatpush3.bf16.msra.mxu0 %v18209_v60 }
 0x4a3   : > { %15243 = vmatprep.subr.bf16.mxu0 %v17370_v54 }
 0x4a5   : > { %15240 = vmatmul.mubr.msk.bf16.vlgmr.msra.gmra.mrb[52].mxu0 %vm2782_vm4, %v16906_v40 }
 0x4a6   : > { %15245 = vmatprep.mubr.msk.bf16.mxu0 %vm17371_vm3, %v17370_v54  ;;  %15244 = vmatpush3.bf16.msra.mxu0 %v16908_v30 }
 0x4a7   : > { %15249 = vmatprep.subr.bf16.mxu0 %v17370_v54 }
 0x558   : > { %v2930_v48 = vpop.f32.mrb[44].mxu0  ;;  %v2980_v58 = vpop.f32.mrb[116].mxu1 }
 0x559   : > { %v2981_v39 = vadd.f32 %v2980_v58, %v2930_v48  ;;  %v15205_v50 = vpop.f32.mrb[45].mxu0  ;;  %v15211_v53 = vpop.f32.mrb[117].mxu1 }
 0x55a   : > { %v2933_v0 = vpop.f32.mrb[46].mxu0  ;;  %v2983_v55 = vpop.f32.mrb[118].mxu1 }
 0x55b   : > { %v2984_v56 = vadd.f32 %v2983_v55, %v2933_v0  ;;  %v15206_v61 = vpop.f32.mrb[47].mxu0  ;;  %v15212_v63 = vpop.f32.mrb[119].mxu1  ;;  %v16915_v55 = vld [vmem:[%s20370_s26 + $0x38] sm:$0xff]  }
 0x568   : > { %v3032_v3 = vpop.f32.mrb[48].mxu0 }
 0x569   : > { %v15223_v7 = vpop.f32.mrb[49].mxu0 }
 0x56a   : > { %v3035_v6 = vpop.f32.mrb[50].mxu0 }
 0x56b   : > { %v3039_v9 = vpack.c.bf16 %v3035_v6, %v3032_v3  ;;  %v15224_v25 = vpop.f32.mrb[51].mxu0 }
 0x56d   : > { %15228 = vmatmul.mubr.msk.bf16.vlgmr.msra.gmra.mrb[120].mxu1 %vm2892_vm5, %v3039_v9 }
 0x56e   : > { %15263 = vmatprep.mubr.msk.bf16.mxu1 %vm17371_vm3, %v17370_v54  ;;  %15262 = vmatpush3.bf16.msra.mxu1 %v16910_v59 }
 0x56f   : > { %15267 = vmatprep.subr.bf16.mxu1 %v17370_v54 }
 0x578   : > { %v3140_v10 = vpop.f32.mrb[52].mxu0 }
 0x579   : > { %v15241_v42 = vpop.f32.mrb[53].mxu0 }
 0x57a   : > { %v3143_v45 = vpop.f32.mrb[54].mxu0 }
 0x57b   : > { %v3147_v46 = vpack.c.bf16 %v3143_v45, %v3140_v10  ;;  %v15242_v32 = vpop.f32.mrb[55].mxu0 }
 0x57c   : > { %v16917_v32 = vld [vmem:[%s20370_s26 + $0x40] sm:$0xff]  }
 0x57d   : > { %15246 = vmatmul.mubr.msk.bf16.vlgmr.msra.gmra.mrb[56].mxu0 %vm2892_vm5, %v3147_v46 }
 0x57e   : > { %15250 = vmatpush3.bf16.msra.mxu0 %v18201_v13  ;;  %15257 = vmatprep.mubr.msk.bf16.mxu0 %vm17371_vm3, %v17370_v54 }
 0x57f   : > { %15251 = vmatprep.subr.bf16.mxu0 %v17370_v54 }
 0x582   : > { %15252 = vmatpush3.bf16.msra.mxu0 %v18199_v8 }
 0x583   : > { %15253 = vmatprep.subr.bf16.mxu0 %v17370_v54 }
 0x586   : > { %15254 = vmatpush3.bf16.msra.mxu0 %v18213_v62 }
 0x587   : > { %15255 = vmatprep.subr.bf16.mxu0 %v17370_v54 }
 0x58a   : > { %15256 = vmatpush3.bf16.msra.mxu0 %v18209_v60 }
 0x58b   : > { %15279 = vmatprep.subr.bf16.mxu0 %v17370_v54 }
 0x58d   : > { %15258 = vmatmul.mubr.msk.bf16.vlgmr.msra.gmra.mrb[60].mxu0 %vm2782_vm4, %v16909_v51 }
 0x58e   : > { %15281 = vmatprep.mubr.msk.bf16.mxu0 %vm17371_vm3, %v17370_v54  ;;  %15280 = vmatpush3.bf16.msra.mxu0 %v16912_v44  ;;  %v13113_v44 = vld [vmem:[%s20373_s3 + $0x2] sm:$0x3] }
 0x58f   : > { %15285 = vmatprep.subr.bf16.mxu0 %v17370_v54 }
 0x640   : > { %v3086_v12 = vpop.f32.mrb[120].mxu1 }
 0x641   : > { %v3093_v47 = vadd.f32 %v3086_v12, %v2981_v39  ;;  %v15229_v49 = vpop.f32.mrb[121].mxu1 }
 0x642   : > { %v3089_v2 = vpop.f32.mrb[122].mxu1 }
 0x643   : > { %v3094_v57 = vadd.f32 %v3089_v2, %v2984_v56  ;;  %v15230_v4 = vpop.f32.mrb[123].mxu1  ;;  %v16916_v56 = vld [vmem:[%s20371_s4 + $0x38] sm:$0xff]  }
 0x650   : > { %v3194_v5 = vpop.f32.mrb[56].mxu0 }
 0x651   : > { %v3201_v16 = vadd.f32 %v3194_v5, %v3093_v47  ;;  %v15247_v14 = vpop.f32.mrb[57].mxu0 }
 0x652   : > { %v3197_v17 = vpop.f32.mrb[58].mxu0 }
 0x653   : > { %v3202_v22 = vadd.f32 %v3197_v17, %v3094_v57  ;;  %v15248_v24 = vpop.f32.mrb[59].mxu0 }
 0x660   : > { %v3248_v26 = vpop.f32.mrb[60].mxu0 }
 0x661   : > { %v15259_v33 = vpop.f32.mrb[61].mxu0 }
 0x662   : > { %v3251_v34 = vpop.f32.mrb[62].mxu0 }
 0x663   : > { %v3255_v35 = vpack.c.bf16 %v3251_v34, %v3248_v26  ;;  %v15260_v41 = vpop.f32.mrb[63].mxu0 }
 0x665   : > { %15264 = vmatmul.mubr.msk.bf16.vlgmr.msra.gmra.mrb[124].mxu1 %vm2892_vm5, %v3255_v35 }
 0x666   : > { %15268 = vmatpush3.bf16.msra.mxu1 %v18201_v13  ;;  %15275 = vmatprep.mubr.msk.bf16.mxu1 %vm17371_vm3, %v17370_v54 }
 0x667   : > { %15269 = vmatprep.subr.bf16.mxu1 %v17370_v54 }
 0x66a   : > { %15270 = vmatpush3.bf16.msra.mxu1 %v18199_v8 }
 0x66b   : > { %15271 = vmatprep.subr.bf16.mxu1 %v17370_v54 }
 0x66e   : > { %15272 = vmatpush3.bf16.msra.mxu1 %v18213_v62 }
 0x66f   : > { %15273 = vmatprep.subr.bf16.mxu1 %v17370_v54 }
 0x672   : > { %15274 = vmatpush3.bf16.msra.mxu1 %v18209_v60 }
 0x673   : > { %15297 = vmatprep.subr.bf16.mxu1 %v17370_v54 }
 0x675   : > { %15276 = vmatmul.mubr.msk.bf16.vlgmr.msra.gmra.mrb[128].mxu1 %vm2782_vm4, %v16911_v43 }
 0x676   : > { %15299 = vmatprep.mubr.msk.bf16.mxu1 %vm17371_vm3, %v17370_v54  ;;  %15298 = vmatpush3.bf16.msra.mxu1 %v16914_v36 }
 0x677   : > { %15303 = vmatprep.subr.bf16.mxu1 %v17370_v54 }
 0x738   : > { %v3302_v52 = vpop.f32.mrb[124].mxu1 }
 0x739   : > { %v3309_v1 = vadd.f32 %v3302_v52, %v3201_v16  ;;  %v15265_v15 = vpop.f32.mrb[125].mxu1  ;;  %v13111_v16 = vld [vmem:[%s20372_s9] ss:$0 sm:$0xff]  ;;  %s20374_s9 = sld [smem:[#allocation14_spill]] }
 0x73a   : > { %v3305_v18 = vpop.f32.mrb[126].mxu1  ;;  %v3755_v52 = vld [vmem:[%s20373_s3] sm:$0x3] }
 0x73b   : > { %v3310_v19 = vadd.f32 %v3305_v18, %v3202_v22  ;;  %v15266_v20 = vpop.f32.mrb[127].mxu1 }
 0x73f   : > { %v16920_v15 = vld [vmem:[%s20374_s9 + $0x18] sm:$0xff]   ;;  %v16921_v18 = vld [vmem:[%s20374_s9] sm:$0xff]  }
 0x748   : > { %v3356_v21 = vpop.f32.mrb[128].mxu1 }
 0x749   : > { %v15277_v11 = vpop.f32.mrb[129].mxu1 }
 0x74a   : > { %v3359_v27 = vpop.f32.mrb[130].mxu1 }
 0x74b   : > { %v3363_v28 = vpack.c.bf16 %v3359_v27, %v3356_v21  ;;  %v15278_v29 = vpop.f32.mrb[131].mxu1 }
 0x74d   : > { %15282 = vmatmul.mubr.msk.bf16.vlgmr.msra.gmra.mrb[64].mxu0 %vm2892_vm5, %v3363_v28 }
 0x74e   : > { %15286 = vmatpush3.bf16.msra.mxu0 %v18201_v13  ;;  %15293 = vmatprep.mubr.msk.bf16.mxu0 %vm17371_vm3, %v17370_v54 }
 0x74f   : > { %15287 = vmatprep.subr.bf16.mxu0 %v17370_v54 }
 0x752   : > { %15288 = vmatpush3.bf16.msra.mxu0 %v18199_v8 }
 0x753   : > { %15289 = vmatprep.subr.bf16.mxu0 %v17370_v54 }
 0x756   : > { %15290 = vmatpush3.bf16.msra.mxu0 %v18213_v62 }
 0x757   : > { %15291 = vmatprep.subr.bf16.mxu0 %v17370_v54 }
 0x75a   : > { %15292 = vmatpush3.bf16.msra.mxu0 %v18209_v60 }
 0x75b   : > { %15315 = vmatprep.subr.bf16.mxu0 %v17370_v54 }
 0x75d   : > { %15294 = vmatmul.mubr.msk.bf16.vlgmr.msra.gmra.mrb[68].mxu0 %vm2782_vm4, %v16913_v31 }
 0x75e   : > { %15317 = vmatprep.mubr.msk.bf16.mxu0 %vm17371_vm3, %v17370_v54  ;;  %15316 = vmatpush3.bf16.msra.mxu0 %v16916_v56 }
 0x75f   : > { %15321 = vmatprep.subr.bf16.mxu0 %v17370_v54 }
 0x820   : > { %v3410_v37 = vpop.f32.mrb[64].mxu0 }
 0x821   : > { %v3417_v38 = vadd.f32 %v3410_v37, %v3309_v1  ;;  %v15283_v40 = vpop.f32.mrb[65].mxu0  ;;  %v16919_v1 = vld [vmem:[%s20374_s9 + $0x10] sm:$0xff]  }
 0x822   : > { %v3413_v23 = vpop.f32.mrb[66].mxu0  ;;  %v13125_v40 = vld [vmem:[%s20373_s3 + $0x4] sm:$0x3] }
 0x823   : > { %v3418_v30 = vadd.f32 %v3413_v23, %v3310_v19  ;;  %v15284_v48 = vpop.f32.mrb[67].mxu0  ;;  %v16922_v19 = vld [vmem:[%s20374_s9 + $0x8] sm:$0xff]   ;;  %v13134_v23 = vld [vmem:[%s20373_s3 + $0x6] sm:$0x3] }
 0x824   : > { %v13152_v48 = vld [vmem:[%s20373_s3 + $0xa] sm:$0x3] }
 0x830   : > { %v3464_v58 = vpop.f32.mrb[68].mxu0 }
 0x831   : > { %v15295_v39 = vpop.f32.mrb[69].mxu0 }
 0x832   : > { %v3467_v50 = vpop.f32.mrb[70].mxu0  ;;  %v13170_v39 = vld [vmem:[%s20373_s3 + $0xe] sm:$0x3] }
 0x833   : > { %v3471_v53 = vpack.c.bf16 %v3467_v50, %v3464_v58  ;;  %v15296_v0 = vpop.f32.mrb[71].mxu0  ;;  %v13161_v58 = vld [vmem:[%s20373_s3 + $0xc] sm:$0x3]  ;;  %v13179_v50 = vld [vmem:[%s20373_s3 + $0x10] sm:$0x3] }
 0x834   : > { %v16924_v0 = vld [vmem:[%s20374_s9 + $0x28] sm:$0xff]  }
 0x835   : > { %15300 = vmatmul.mubr.msk.bf16.vlgmr.msra.gmra.mrb[132].mxu1 %vm2892_vm5, %v3471_v53  ;;  %v16923_v53 = vld [vmem:[%s20374_s9 + $0x20] sm:$0xff]  }
 0x836   : > { %15304 = vmatpush3.bf16.msra.mxu1 %v18201_v13  ;;  %15311 = vmatprep.mubr.msk.bf16.mxu1 %vm17371_vm3, %v17370_v54 }
 0x837   : > { %15305 = vmatprep.subr.bf16.mxu1 %v17370_v54 }
 0x83a   : > { %15306 = vmatpush3.bf16.msra.mxu1 %v18199_v8 }
 0x83b   : > { %15307 = vmatprep.subr.bf16.mxu1 %v17370_v54 }
 0x83e   : > { %15308 = vmatpush3.bf16.msra.mxu1 %v18213_v62 }
 0x83f   : > { %15309 = vmatprep.subr.bf16.mxu1 %v17370_v54 }
 0x842   : > { %15310 = vmatpush3.bf16.msra.mxu1 %v18209_v60 }
 0x843   : > { %15333 = vmatprep.subr.bf16.mxu1 %v17370_v54 }
 0x845   : > { %15312 = vmatmul.mubr.msk.bf16.vlgmr.msra.gmra.mrb[136].mxu1 %vm2782_vm4, %v16915_v55 }
 0x846   : > { %15335 = vmatprep.mubr.msk.bf16.mxu1 %vm17371_vm3, %v17370_v54 }
 0x908   : > { %v3518_v61 = vpop.f32.mrb[132].mxu1 }
 0x909   : > { %v3525_v63 = vadd.f32 %v3518_v61, %v3417_v38  ;;  %v15301_v3 = vpop.f32.mrb[133].mxu1 }
 0x90a   : > { %v3521_v7 = vpop.f32.mrb[134].mxu1 }
 0x90b   : > { %v3526_v6 = vadd.f32 %v3521_v7, %v3418_v30  ;;  %v15302_v9 = vpop.f32.mrb[135].mxu1  ;;  %v13143_v30 = vld [vmem:[%s20373_s3 + $0x8] sm:$0x3] }
 0x918   : > { %v3572_v25 = vpop.f32.mrb[136].mxu1 }
 0x919   : > { %v15313_v10 = vpop.f32.mrb[137].mxu1 }
 0x91a   : > { %v3575_v42 = vpop.f32.mrb[138].mxu1 }
 0x91b   : > { %v3579_v45 = vpack.c.bf16 %v3575_v42, %v3572_v25  ;;  %v15314_v46 = vpop.f32.mrb[139].mxu1  ;;  %v16925_v42 = vld [vmem:[%s20374_s9 + $0x30] sm:$0xff]  }
 0x91d   : > { %15318 = vmatmul.mubr.msk.bf16.vlgmr.msra.gmra.mrb[72].mxu0 %vm2892_vm5, %v3579_v45 }
 0x91e   : > { %15322 = vmatpush3.bf16.msra.mxu0 %v18201_v13  ;;  %15329 = vmatprep.mubr.msk.bf16.mxu0 %vm17371_vm3, %v17370_v54 }
 0x91f   : > { %15323 = vmatprep.subr.bf16.mxu0 %v17370_v54 }
 0x922   : > { %15324 = vmatpush3.bf16.msra.mxu0 %v18199_v8  ;;  %v16918_v8 = vld [vmem:[%s20371_s4 + $0x40] sm:$0xff]   ;;  %s751_s4 = sand.u32 1, %s17359_s29   ;;  %s14160_s29 = sshll.u32 (%p17528_p4), %s17516_s30, 6 }
 0x923   : > { %15325 = vmatprep.subr.bf16.mxu0 %v17370_v54  ;;  %15334 = vmatpush3.bf16.msra.mxu1 %v16918_v8  ;;  %s12843_s1 = sshll.u32 %s751_s4, 8 }
 0x924   : > { %15339 = vmatprep.subr.bf16.mxu1 %v17370_v54  ;;  %s20143_s3 = scalar_lea.vmem [#allocation2], %s12843_s1 }
 0x926   : > { %15326 = vmatpush3.bf16.msra.mxu0 %v18213_v62 }
 0x927   : > { %15327 = vmatprep.subr.bf16.mxu0 %v17370_v54 }
 0x92a   : > { %15328 = vmatpush3.bf16.msra.mxu0 %v18209_v60 }
 0x92b   : > { %15345 = vmatprep.subr.bf16.mxu0 %v17370_v54 }
 0x92d   : > { %15330 = vmatmul.mubr.msk.bf16.vlgmr.msra.gmra.mrb[76].mxu0 %vm2782_vm4, %v16917_v32 }
 0x92e   : > { %15347 = vmatprep.mubr.msk.bf16.mxu0 %vm17371_vm3, %v17370_v54 }
 0x9f0   : > { %v3626_v13 = vpop.f32.mrb[72].mxu0 }
 0x9f1   : > { %v3633_v62 = vadd.f32 %v3626_v13, %v3525_v63  ;;  %v15319_v51 = vpop.f32.mrb[73].mxu0  ;;  %v16926_v13 = vld [vmem:[%s20374_s9 + $0x38] sm:$0xff]  }
 0x9f2   : > { %v3629_v59 = vpop.f32.mrb[74].mxu0  ;;  %v16927_v51 = vld [vmem:[%s20374_s9 + $0x40] sm:$0xff]  }
 0x9f3   : > { %v3634_v12 = vadd.f32 %v3629_v59, %v3526_v6  ;;  %v15320_v60 = vpop.f32.mrb[75].mxu0 }
 0xa00   : > { %v3680_v47 = vpop.f32.mrb[76].mxu0 }
 0xa01   : > { %v15331_v49 = vpop.f32.mrb[77].mxu0 }
 0xa02   : > { %v3683_v2 = vpop.f32.mrb[78].mxu0  ;;  %v16928_v49 = vld [vmem:[%s20374_s9 + $0x48] sm:$0xff]  }
 0xa03   : > { %v3687_v57 = vpack.c.bf16 %v3683_v2, %v3680_v47  ;;  %v15332_v4 = vpop.f32.mrb[79].mxu0 }
 0xa05   : > { %15336 = vmatmul.mubr.msk.bf16.vlgmr.msra.gmra.mrb[140].mxu1 %vm2892_vm5, %v3687_v57  ;;  %v16929_v57 = vld [vmem:[%s20374_s9 + $0x50] sm:$0xff]  }
 0xa06   : > { %15341 = vmatprep.mubr.msk.bf16.mxu1 %vm17371_vm3, %v17370_v54 }
 0xad8   : > { %v3734_v5 = vpop.f32.mrb[140].mxu1 }
 0xad9   : > { %v3741_v14 = vadd.f32 %v3734_v5, %v3633_v62  ;;  %v15337_v17 = vpop.f32.mrb[141].mxu1 }
 0xada   : > { %v3737_v22 = vpop.f32.mrb[142].mxu1  ;;  %v16930_v17 = vld [vmem:[%s20374_s9 + $0x58] sm:$0xff]  }
 0xadb   : > { %v3750_v24 = vadd.f32 %v13111_v16, %v3741_v14  ;;  %v3742_v26 = vadd.f32 %v3737_v22, %v3634_v12  ;;  %v15338_v33 = vpop.f32.mrb[143].mxu1 }
 0xadd   : > { %v3751_v34 = vadd.f32 %v13111_v16, %v3742_v26  ;;  %v3752_v35 = vmax.f32 %v3750_v24, 0.0  ;;  %v16931_v24 = vld [vmem:[%s20374_s9 + $0x60] sm:$0xff]  }
 0xadf   : > { %v3753_v41 = vmax.f32 %v3751_v34, 0.0 }
 0xae1   : > { %v18399_v43 = vpack.c.bf16 %v3753_v41, %v3752_v35  ;;  %v16932_v41 = vld [vmem:[%s20374_s9 + $0x68] sm:$0xff]  }
 0xae3   : > { %15340 = vmatpush3.bf16.msra.mxu1 %v18399_v43  ;;  %15346 = vmatpush3.bf16.msra.mxu0 %v18399_v43 }
 0xae4   : > { %15351 = vmatprep.subr.bf16.mxu1 %v17370_v54  ;;  %15359 = vmatprep.subr.bf16.mxu0 %v17370_v54 }
 0xae6   : > { %15348 = vmatmul.mubr.msk.bf16.vlgmr.msra.gmra.mrb[80].mxu0 %vm2892_vm5, %v13113_v44  ;;  %15342 = vmatmul.mubr.msk.bf16.vlgmr.msra.gmra.mrb[144].mxu1 %vm2892_vm5, %v3755_v52  ;;  %v16933_v44 = vld [vmem:[%s20374_s9 + $0x70] sm:$0xff]  }
 0xae7   : > { %15352 = vmatpush3.bf16.msra.mxu1 %v16919_v1  ;;  %15355 = vmatprep.mubr.msk.bf16.mxu1 %vm17371_vm3, %v17370_v54 }
 0xae8   : > { %15353 = vmatprep.subr.bf16.mxu1 %v17370_v54  ;;  %15363 = vmatprep.mubr.msk.bf16.mxu0 %vm17371_vm3, %v17370_v54 }
 0xae9   : > { %15360 = vmatpush3.bf16.msra.mxu0 %v16921_v18 }
 0xaea   : > { %15361 = vmatprep.subr.bf16.mxu0 %v17370_v54 }
 0xaeb   : > { %15354 = vmatpush3.bf16.msra.mxu1 %v16920_v15 }
 0xaec   : > { %15367 = vmatprep.subr.bf16.mxu1 %v17370_v54 }
 0xaed   : > { %15362 = vmatpush3.bf16.msra.mxu0 %v16922_v19  ;;  %v16934_v19 = vld [vmem:[%s20374_s9 + $0x78] sm:$0xff]  }
 0xaee   : > { %15373 = vmatprep.subr.bf16.mxu0 %v17370_v54 }
 0xbb9   : > { %v3843_v20 = vpop.f32.mrb[80].mxu0  ;;  %v3793_v21 = vpop.f32.mrb[144].mxu1 }
 0xbba   : > { %v3849_v11 = vpack.c.bf16 %v3843_v20, %v3843_v20  ;;  %v15349_v27 = vpop.f32.mrb[81].mxu0  ;;  %v3799_v28 = vpack.c.bf16 %v3793_v21, %v3793_v21  ;;  %v15343_v29 = vpop.f32.mrb[145].mxu1  ;;  %v16935_v21 = vld [vmem:[%s20374_s9 + $0x80] sm:$0xff]  }
 0xbbb   : > { %v3846_v31 = vpop.f32.mrb[82].mxu0  ;;  %v3796_v36 = vpop.f32.mrb[146].mxu1 }
 0xbbc   : > { %15356 = vmatmul.mubr.msk.bf16.vlgmr.msra.gmra.mrb[148].mxu1 %vm3867_vm6, %v3849_v11  ;;  %v15350_v37 = vpop.f32.mrb[83].mxu0  ;;  %15364 = vmatmul.mubr.msk.bf16.vlgmr.msra.gmra.mrb[84].mxu0 %vm3867_vm6, %v3799_v28  ;;  %v15344_v38 = vpop.f32.mrb[147].mxu1  ;;  %v16936_v31 = vld [vmem:[%s20374_s9 + $0x88] sm:$0xff]  }
 0xbbd   : > { %15368 = vmatpush3.bf16.msra.mxu1 %v18399_v43  ;;  %15369 = vmatprep.mubr.msk.bf16.mxu1 %vm17371_vm3, %v17370_v54 }
 0xbbe   : > { %15381 = vmatprep.subr.bf16.mxu1 %v17370_v54  ;;  %15377 = vmatprep.mubr.msk.bf16.mxu0 %vm17371_vm3, %v17370_v54 }
 0xbbf   : > { %15374 = vmatpush3.bf16.msra.mxu0 %v16923_v53 }
 0xbc0   : > { %15375 = vmatprep.subr.bf16.mxu0 %v17370_v54 }
 0xbc3   : > { %15376 = vmatpush3.bf16.msra.mxu0 %v16924_v0 }
 0xbc4   : > { %15370 = vmatmul.mubr.msk.bf16.vlgmr.msra.gmra.mrb[152].mxu1 %vm2892_vm5, %v13125_v40  ;;  %15387 = vmatprep.subr.bf16.mxu0 %v17370_v54 }
 0xbc5   : > { %15382 = vmatpush3.bf16.msra.mxu1 %v18399_v43  ;;  %15383 = vmatprep.mubr.msk.bf16.mxu1 %vm17371_vm3, %v17370_v54 }
 0xbc6   : > { %15395 = vmatprep.subr.bf16.mxu1 %v17370_v54 }
 0xbcc   : > { %15384 = vmatmul.mubr.msk.bf16.vlgmr.msra.gmra.mrb[156].mxu1 %vm2892_vm5, %v13134_v23 }
 0xbcd   : > { %15396 = vmatpush3.bf16.msra.mxu1 %v18399_v43  ;;  %15397 = vmatprep.mubr.msk.bf16.mxu1 %vm17371_vm3, %v17370_v54 }
 0xbce   : > { %15409 = vmatprep.subr.bf16.mxu1 %v17370_v54 }
 0xbd4   : > { %15398 = vmatmul.mubr.msk.bf16.vlgmr.msra.gmra.mrb[160].mxu1 %vm2892_vm5, %v13143_v30 }
 0xbd5   : > { %15410 = vmatpush3.bf16.msra.mxu1 %v18399_v43  ;;  %15411 = vmatprep.mubr.msk.bf16.mxu1 %vm17371_vm3, %v17370_v54 }
 0xbd6   : > { %15423 = vmatprep.subr.bf16.mxu1 %v17370_v54 }
 0xbdc   : > { %15412 = vmatmul.mubr.msk.bf16.vlgmr.msra.gmra.mrb[164].mxu1 %vm2892_vm5, %v13152_v48 }
 0xbdd   : > { %15424 = vmatpush3.bf16.msra.mxu1 %v18399_v43  ;;  %15425 = vmatprep.mubr.msk.bf16.mxu1 %vm17371_vm3, %v17370_v54 }
 0xbde   : > { %15437 = vmatprep.subr.bf16.mxu1 %v17370_v54 }
 0xbe4   : > { %15426 = vmatmul.mubr.msk.bf16.vlgmr.msra.gmra.mrb[168].mxu1 %vm2892_vm5, %v13161_v58 }
 0xbe5   : > { %15438 = vmatpush3.bf16.msra.mxu1 %v18399_v43  ;;  %15439 = vmatprep.mubr.msk.bf16.mxu1 %vm17371_vm3, %v17370_v54 }
 0xbe6   : > { %15451 = vmatprep.subr.bf16.mxu1 %v17370_v54 }
 0xbec   : > { %15440 = vmatmul.mubr.msk.bf16.vlgmr.msra.gmra.mrb[172].mxu1 %vm2892_vm5, %v13170_v39 }
 0xbed   : > { %15452 = vmatpush3.bf16.msra.mxu1 %v18399_v43  ;;  %15453 = vmatprep.mubr.msk.bf16.mxu1 %vm17371_vm3, %v17370_v54 }
 0xbee   : > { %15465 = vmatprep.subr.bf16.mxu1 %v17370_v54 }
 0xbf4   : > { %15454 = vmatmul.mubr.msk.bf16.vlgmr.msra.gmra.mrb[176].mxu1 %vm2892_vm5, %v13179_v50 }
 0xbf5   : > { %15467 = vmatprep.mubr.msk.bf16.mxu1 %vm17371_vm3, %v17370_v54 }
 0xc8f   : > { %v3905_v55 = vpop.f32.mrb[148].mxu1  ;;  %v3960_v56 = vpop.f32.mrb[84].mxu0 }
 0xc90   : > { %v15357_v61 = vpop.f32.mrb[149].mxu1  ;;  %v18503_v63 = vadd.f32 %v3960_v56, %v3905_v55  ;;  %v15365_v3 = vpop.f32.mrb[85].mxu0 }
 0xc91   : > { %v3908_v7 = vpop.f32.mrb[150].mxu1  ;;  %v3963_v6 = vpop.f32.mrb[86].mxu0 }
 0xc92   : > { %v15358_v9 = vpop.f32.mrb[151].mxu1  ;;  %v15366_v25 = vpop.f32.mrb[87].mxu0 }
 0xc97   : > { %v4005_v10 = vpop.f32.mrb[152].mxu1 }
 0xc98   : > { %v4011_v45 = vpack.c.bf16 %v4005_v10, %v4005_v10  ;;  %v15371_v46 = vpop.f32.mrb[153].mxu1 }
 0xc99   : > { %v4008_v32 = vpop.f32.mrb[154].mxu1 }
 0xc9a   : > { %15378 = vmatmul.mubr.msk.bf16.vlgmr.msra.gmra.mrb[88].mxu0 %vm3867_vm6, %v4011_v45  ;;  %v15372_v8 = vpop.f32.mrb[155].mxu1 }
 0xc9b   : > { %15388 = vmatpush3.bf16.msra.mxu0 %v16925_v42  ;;  %15391 = vmatprep.mubr.msk.bf16.mxu0 %vm17371_vm3, %v17370_v54 }
 0xc9c   : > { %15389 = vmatprep.subr.bf16.mxu0 %v17370_v54 }
 0xc9f   : > { %v4112_v62 = vpop.f32.mrb[156].mxu1  ;;  %15390 = vmatpush3.bf16.msra.mxu0 %v16926_v13 }
 0xca0   : > { %v4118_v59 = vpack.c.bf16 %v4112_v62, %v4112_v62  ;;  %v15385_v12 = vpop.f32.mrb[157].mxu1  ;;  %15401 = vmatprep.subr.bf16.mxu0 %v17370_v54 }
 0xca1   : > { %v4115_v60 = vpop.f32.mrb[158].mxu1 }
 0xca2   : > { %15392 = vmatmul.mubr.msk.bf16.vlgmr.msra.gmra.mrb[92].mxu0 %vm3867_vm6, %v4118_v59  ;;  %v15386_v47 = vpop.f32.mrb[159].mxu1 }
 0xca3   : > { %15402 = vmatpush3.bf16.msra.mxu0 %v16927_v51  ;;  %15405 = vmatprep.mubr.msk.bf16.mxu0 %vm17371_vm3, %v17370_v54 }
 0xca4   : > { %15403 = vmatprep.subr.bf16.mxu0 %v17370_v54 }
 0xca7   : > { %v4219_v2 = vpop.f32.mrb[160].mxu1  ;;  %15404 = vmatpush3.bf16.msra.mxu0 %v16928_v49 }
 0xca8   : > { %v4225_v4 = vpack.c.bf16 %v4219_v2, %v4219_v2  ;;  %v15399_v5 = vpop.f32.mrb[161].mxu1  ;;  %15415 = vmatprep.subr.bf16.mxu0 %v17370_v54 }
 0xca9   : > { %v4222_v16 = vpop.f32.mrb[162].mxu1 }
 0xcaa   : > { %15406 = vmatmul.mubr.msk.bf16.vlgmr.msra.gmra.mrb[96].mxu0 %vm3867_vm6, %v4225_v4  ;;  %v15400_v14 = vpop.f32.mrb[163].mxu1 }
 0xcab   : > { %15416 = vmatpush3.bf16.msra.mxu0 %v16929_v57  ;;  %15419 = vmatprep.mubr.msk.bf16.mxu0 %vm17371_vm3, %v17370_v54  ;;  %v13188_v57 = vld [vmem:[%s20375_s7] ss:$0 sm:$0xff]  ;;  %s20242_s7 = scalar_lea.vmem (%p17528_p4), %s20340_s25, %s14160_s29 }
 0xcac   : > { %15417 = vmatprep.subr.bf16.mxu0 %v17370_v54 }
 0xcaf   : > { %v4326_v22 = vpop.f32.mrb[164].mxu1  ;;  %15418 = vmatpush3.bf16.msra.mxu0 %v16930_v17 }
 0xcb0   : > { %v4332_v26 = vpack.c.bf16 %v4326_v22, %v4326_v22  ;;  %v15413_v33 = vpop.f32.mrb[165].mxu1  ;;  %15429 = vmatprep.subr.bf16.mxu0 %v17370_v54 }
 0xcb1   : > { %v4329_v34 = vpop.f32.mrb[166].mxu1  ;;  %v13190_v33 = vld [vmem:[%s20325_s10 + $0x1] sm:$0x1] }
 0xcb2   : > { %15420 = vmatmul.mubr.msk.bf16.vlgmr.msra.gmra.mrb[100].mxu0 %vm3867_vm6, %v4332_v26  ;;  %v15414_v35 = vpop.f32.mrb[167].mxu1  ;;  %v4725_v34 = vld [vmem:[%s20325_s10] sm:$0x1] }
 0xcb3   : > { %15430 = vmatpush3.bf16.msra.mxu0 %v16931_v24  ;;  %15433 = vmatprep.mubr.msk.bf16.mxu0 %vm17371_vm3, %v17370_v54  ;;  %v16937_v35 = vld [vmem:[%s20326_s11 + $0x20] sm:$0xff]  }
 0xcb4   : > { %15431 = vmatprep.subr.bf16.mxu0 %v17370_v54 }
 0xcb7   : > { %v4433_v43 = vpop.f32.mrb[168].mxu1  ;;  %15432 = vmatpush3.bf16.msra.mxu0 %v16932_v41  ;;  %v16939_v41 = vld [vmem:[%s20326_s11] sm:$0xff]  }
 0xcb8   : > { %v4439_v52 = vpack.c.bf16 %v4433_v43, %v4433_v43  ;;  %v15427_v1 = vpop.f32.mrb[169].mxu1  ;;  %15443 = vmatprep.subr.bf16.mxu0 %v17370_v54  ;;  %v16938_v43 = vld [vmem:[%s20326_s11 + $0x28] sm:$0xff]  }
 0xcb9   : > { %v4436_v15 = vpop.f32.mrb[170].mxu1  ;;  %v16942_v1 = vld [vmem:[%s20326_s11 + $0x38] sm:$0xff]  }
 0xcba   : > { %15434 = vmatmul.mubr.msk.bf16.vlgmr.msra.gmra.mrb[104].mxu0 %vm3867_vm6, %v4439_v52  ;;  %v15428_v18 = vpop.f32.mrb[171].mxu1  ;;  %v16940_v52 = vld [vmem:[%s20326_s11 + $0x30] sm:$0xff]  }
 0xcbb   : > { %15444 = vmatpush3.bf16.msra.mxu0 %v16933_v44  ;;  %15447 = vmatprep.mubr.msk.bf16.mxu0 %vm17371_vm3, %v17370_v54  ;;  %v16941_v44 = vld [vmem:[%s20326_s11 + $0x8] sm:$0xff]   ;;  %v16943_v15 = vld [vmem:[%s20326_s11 + $0x10] sm:$0xff]   ;;  %v16944_v18 = vld [vmem:[%s20326_s11 + $0x18] sm:$0xff]  }
 0xcbc   : > { %15445 = vmatprep.subr.bf16.mxu0 %v17370_v54 }
 0xcbf   : > { %v4540_v20 = vpop.f32.mrb[172].mxu1  ;;  %15446 = vmatpush3.bf16.msra.mxu0 %v16934_v19 }
 0xcc0   : > { %v4546_v11 = vpack.c.bf16 %v4540_v20, %v4540_v20  ;;  %v15441_v27 = vpop.f32.mrb[173].mxu1  ;;  %15457 = vmatprep.subr.bf16.mxu0 %v17370_v54 }
 0xcc1   : > { %v4543_v28 = vpop.f32.mrb[174].mxu1 }
 0xcc2   : > { %15448 = vmatmul.mubr.msk.bf16.vlgmr.msra.gmra.mrb[108].mxu0 %vm3867_vm6, %v4546_v11  ;;  %v15442_v29 = vpop.f32.mrb[175].mxu1 }
 0xcc3   : > { %15458 = vmatpush3.bf16.msra.mxu0 %v16935_v21  ;;  %15461 = vmatprep.mubr.msk.bf16.mxu0 %vm17371_vm3, %v17370_v54  ;;  %v16945_v29 = vld [vmem:[%s20326_s11 + $0x40] sm:$0xff]  }
 0xcc4   : > { %15459 = vmatprep.subr.bf16.mxu0 %v17370_v54 }
 0xcc7   : > { %v4647_v36 = vpop.f32.mrb[176].mxu1  ;;  %15460 = vmatpush3.bf16.msra.mxu0 %v16936_v31 }
 0xcc8   : > { %v4653_v37 = vpack.c.bf16 %v4647_v36, %v4647_v36  ;;  %v15455_v38 = vpop.f32.mrb[177].mxu1  ;;  %15471 = vmatprep.subr.bf16.mxu0 %v17370_v54 }
 0xcc9   : > { %v4650_v40 = vpop.f32.mrb[178].mxu1 }
 0xcca   : > { %15462 = vmatmul.mubr.msk.bf16.vlgmr.msra.gmra.mrb[112].mxu0 %vm3867_vm6, %v4653_v37  ;;  %v15456_v23 = vpop.f32.mrb[179].mxu1  ;;  %v16946_v40 = vld [vmem:[%s20326_s11 + $0x48] sm:$0xff]  }
 0xccb   : > { %15473 = vmatprep.mubr.msk.bf16.mxu0 %vm17371_vm3, %v17370_v54  ;;  %v13210_v23 = vld [vmem:[%s20325_s10 + $0x2] sm:$0x1] }
 0xd6d   : > { %v4066_v30 = vpop.f32.mrb[88].mxu0 }
 0xd6e   : > { %v4072_v48 = vadd.f32 %v4066_v30, %v18503_v63  ;;  %v15379_v58 = vpop.f32.mrb[89].mxu0  ;;  %v13225_v30 = vld [vmem:[%s20325_s10 + $0x3] sm:$0x1] }
 0xd6f   : > { %v4069_v39 = vpop.f32.mrb[90].mxu0  ;;  %v16948_v58 = vld [vmem:[%s20326_s11 + $0x60] sm:$0xff]  }
 0xd70   : > { %v15380_v50 = vpop.f32.mrb[91].mxu0  ;;  %v16949_v39 = vld [vmem:[%s20326_s11 + $0x58] sm:$0xff]  }
 0xd71   : > { %v16950_v50 = vld [vmem:[%s20326_s11 + $0x68] sm:$0xff]  }
 0xd75   : > { %v4173_v53 = vpop.f32.mrb[92].mxu0 }
 0xd76   : > { %v4179_v0 = vadd.f32 %v4173_v53, %v4072_v48  ;;  %v15393_v55 = vpop.f32.mrb[93].mxu0  ;;  %v16947_v48 = vld [vmem:[%s20326_s11 + $0x50] sm:$0xff]  }
 0xd77   : > { %v4176_v56 = vpop.f32.mrb[94].mxu0  ;;  %v16951_v53 = vld [vmem:[%s20326_s11 + $0x70] sm:$0xff]  }
 0xd78   : > { %v15394_v61 = vpop.f32.mrb[95].mxu0 }
 0xd7d   : > { %v4280_v3 = vpop.f32.mrb[96].mxu0 }
 0xd7e   : > { %v4286_v7 = vadd.f32 %v4280_v3, %v4179_v0  ;;  %v15407_v6 = vpop.f32.mrb[97].mxu0  ;;  %v16952_v0 = vld [vmem:[%s20326_s11 + $0x78] sm:$0xff]  }
 0xd7f   : > { %v4283_v9 = vpop.f32.mrb[98].mxu0 }
 0xd80   : > { %v15408_v25 = vpop.f32.mrb[99].mxu0 }
 0xd85   : > { %v4387_v10 = vpop.f32.mrb[100].mxu0 }
 0xd86   : > { %v4393_v42 = vadd.f32 %v4387_v10, %v4286_v7  ;;  %v15421_v45 = vpop.f32.mrb[101].mxu0 }
 0xd87   : > { %v4390_v46 = vpop.f32.mrb[102].mxu0 }
 0xd88   : > { %v15422_v32 = vpop.f32.mrb[103].mxu0 }
 0xd8d   : > { %v4494_v8 = vpop.f32.mrb[104].mxu0 }
 0xd8e   : > { %v4500_v63 = vadd.f32 %v4494_v8, %v4393_v42  ;;  %v15435_v13 = vpop.f32.mrb[105].mxu0 }
 0xd8f   : > { %v4497_v62 = vpop.f32.mrb[106].mxu0  ;;  %v13240_v13 = vld [vmem:[%s20325_s10 + $0x4] sm:$0x1] }
 0xd90   : > { %v15436_v51 = vpop.f32.mrb[107].mxu0 }
 0xd91   : > { %v16953_v51 = vld [vmem:[%s20326_s11 + $0x80] sm:$0xff]  }
 0xd95   : > { %v4601_v59 = vpop.f32.mrb[108].mxu0 }
 0xd96   : > { %v4607_v12 = vadd.f32 %v4601_v59, %v4500_v63  ;;  %v15449_v60 = vpop.f32.mrb[109].mxu0 }
 0xd97   : > { %v4604_v47 = vpop.f32.mrb[110].mxu0 }
 0xd98   : > { %v15450_v49 = vpop.f32.mrb[111].mxu0  ;;  %v16954_v47 = vld [vmem:[%s20326_s11 + $0x88] sm:$0xff]  }
 0xd99   : > { %v13255_v49 = vld [vmem:[%s20325_s10 + $0x5] sm:$0x1] }
 0xd9d   : > { %v4708_v2 = vpop.f32.mrb[112].mxu0 }
 0xd9e   : > { %v4714_v4 = vadd.f32 %v4708_v2, %v4607_v12  ;;  %v15463_v5 = vpop.f32.mrb[113].mxu0  ;;  %v16955_v2 = vld [vmem:[%s20326_s11 + $0x90] sm:$0xff]  }
 0xd9f   : > { %v4711_v16 = vpop.f32.mrb[114].mxu0  ;;  %v16958_v5 = vld [vmem:[%s20326_s11 + $0xa8] sm:$0xff]  }
 0xda0   : > { %v4722_v14 = vadd.f32 %v13188_v57, %v4714_v4  ;;  %v15464_v17 = vpop.f32.mrb[115].mxu0  ;;  %v16956_v57 = vld [vmem:[%s20326_s11 + $0xa0] sm:$0xff]   ;;  %v16957_v4 = vld [vmem:[%s20326_s11 + $0x98] sm:$0xff]   ;;  %v16959_v16 = vld [vmem:[%s20326_s11 + $0xb0] sm:$0xff]  }
 0xda2   : > { %v4723_v22 = vmax.f32 %v4722_v14, 0.0  ;;  %v16960_v14 = vld [vmem:[%s20326_s11 + $0xb8] sm:$0xff]  }
 0xda4   : > { %v4724_v24 = vpack.c.bf16 %v4723_v22, %v4723_v22 }
 0xda6   : > { %v18579_v26 = vsel %vm1141_vm1, %v4724_v24, 0 }
 0xda7   : > { %15466 = vmatpush3.bf16.msra.mxu1 %v18579_v26  ;;  %15472 = vmatpush3.bf16.msra.mxu0 %v18579_v26 }
 0xda8   : > { %15477 = vmatprep.subr.bf16.mxu1 %v17370_v54  ;;  %15489 = vmatprep.subr.bf16.mxu0 %v17370_v54 }
 0xdaa   : > { %15474 = vmatmul.mubr.msk.bf16.vlgmr.msra.gmra.mrb[116].mxu0 %vm4726_vm7, %v13190_v33  ;;  %15468 = vmatmul.mubr.msk.bf16.vlgmr.msra.gmra.mrb[180].mxu1 %vm4726_vm7, %v4725_v34 }
 0xdab   : > { %15478 = vmatpush3.bf16.msra.mxu1 %v16937_v35  ;;  %15490 = vmatpush3.bf16.msra.mxu0 %v16939_v41 }
 0xdac   : > { %15479 = vmatprep.subr.bf16.mxu1 %v17370_v54  ;;  %15491 = vmatprep.subr.bf16.mxu0 %v17370_v54 }
 0xdad   : > { %15485 = vmatprep.mubr.msk.bf16.mxu1 %vm17371_vm3, %v17370_v54  ;;  %15497 = vmatprep.mubr.msk.bf16.mxu0 %vm17371_vm3, %v17370_v54 }
 0xdaf   : > { %15480 = vmatpush3.bf16.msra.mxu1 %v16938_v43  ;;  %15492 = vmatpush3.bf16.msra.mxu0 %v16941_v44 }
 0xdb0   : > { %15481 = vmatprep.subr.bf16.mxu1 %v17370_v54  ;;  %15493 = vmatprep.subr.bf16.mxu0 %v17370_v54 }
 0xdb3   : > { %15482 = vmatpush3.bf16.msra.mxu1 %v16940_v52  ;;  %15494 = vmatpush3.bf16.msra.mxu0 %v16943_v15 }
 0xdb4   : > { %15483 = vmatprep.subr.bf16.mxu1 %v17370_v54  ;;  %15495 = vmatprep.subr.bf16.mxu0 %v17370_v54 }
 0xdb7   : > { %15484 = vmatpush3.bf16.msra.mxu1 %v16942_v1  ;;  %15496 = vmatpush3.bf16.msra.mxu0 %v16944_v18 }
 0xdb8   : > { %15501 = vmatprep.subr.bf16.mxu1 %v17370_v54  ;;  %15507 = vmatprep.subr.bf16.mxu0 %v17370_v54 }
 0xe7d   : > { %v4821_v19 = vpop.f32.mrb[116].mxu0  ;;  %v4767_v20 = vpop.f32.mrb[180].mxu1 }
 0xe7e   : > { %v4827_v21 = vpack.c.bf16 %v4821_v19, %v4821_v19  ;;  %v15475_v11 = vpop.f32.mrb[117].mxu0  ;;  %v4773_v27 = vpack.c.bf16 %v4767_v20, %v4767_v20  ;;  %v15469_v28 = vpop.f32.mrb[181].mxu1 }
 0xe7f   : > { %v4824_v31 = vpop.f32.mrb[118].mxu0  ;;  %v4770_v36 = vpop.f32.mrb[182].mxu1  ;;  %v13270_v11 = vld [vmem:[%s20325_s10 + $0x6] sm:$0x1] }
 0xe80   : > { %15486 = vmatmul.mubr.msk.bf16.vlgmr.msra.gmra.mrb[184].mxu1 %vm2782_vm4, %v4827_v21  ;;  %v15476_v37 = vpop.f32.mrb[119].mxu0  ;;  %15498 = vmatmul.mubr.msk.bf16.vlgmr.msra.gmra.mrb[120].mxu0 %vm2782_vm4, %v4773_v27  ;;  %v15470_v38 = vpop.f32.mrb[183].mxu1  ;;  %v16961_v28 = vld [vmem:[%s20326_s11 + $0xc0] sm:$0xff]  }
 0xe81   : > { %15502 = vmatpush3.bf16.msra.mxu1 %v18579_v26  ;;  %15503 = vmatprep.mubr.msk.bf16.mxu1 %vm17371_vm3, %v17370_v54  ;;  %v16962_v37 = vld [vmem:[%s20326_s11 + $0xc8] sm:$0xff]   ;;  %v13285_v38 = vld [vmem:[%s20325_s10 + $0x7] sm:$0x1] }
 0xe82   : > { %15519 = vmatprep.subr.bf16.mxu1 %v17370_v54  ;;  %15508 = vmatpush3.bf16.msra.mxu0 %v16945_v29 }
 0xe83   : > { %15509 = vmatprep.subr.bf16.mxu0 %v17370_v54  ;;  %15515 = vmatprep.mubr.msk.bf16.mxu0 %vm17371_vm3, %v17370_v54 }
 0xe86   : > { %15510 = vmatpush3.bf16.msra.mxu0 %v16946_v40  ;;  %v16963_v40 = vld [vmem:[%s20326_s11 + $0xd0] sm:$0xff]  }
 0xe87   : > { %15511 = vmatprep.subr.bf16.mxu0 %v17370_v54 }
 0xe88   : > { %15504 = vmatmul.mubr.msk.bf16.vlgmr.msra.gmra.mrb[188].mxu1 %vm4726_vm7, %v13210_v23  ;;  %v16964_v23 = vld [vmem:[%s20326_s11 + $0xe0] sm:$0xff]  }
 0xe89   : > { %15520 = vmatpush3.bf16.msra.mxu1 %v18579_v26  ;;  %15521 = vmatprep.mubr.msk.bf16.mxu1 %vm17371_vm3, %v17370_v54 }
 0xe8a   : > { %15525 = vmatprep.subr.bf16.mxu1 %v17370_v54  ;;  %15512 = vmatpush3.bf16.msra.mxu0 %v16947_v48  ;;  %v16966_v48 = vld [vmem:[%s20326_s11 + $0xe8] sm:$0xff]  }
 0xe8b   : > { %15513 = vmatprep.subr.bf16.mxu0 %v17370_v54 }
 0xe8e   : > { %15514 = vmatpush3.bf16.msra.mxu0 %v16949_v39  ;;  %v16968_v39 = vld [vmem:[%s20326_s11 + $0xf8] sm:$0xff]  }
 0xe8f   : > { %15537 = vmatprep.subr.bf16.mxu0 %v17370_v54 }
 0xe90   : > { %15522 = vmatmul.mubr.msk.bf16.vlgmr.msra.gmra.mrb[192].mxu1 %vm4726_vm7, %v13225_v30  ;;  %v16965_v30 = vld [vmem:[%s20326_s11 + $0xd8] sm:$0xff]  }
 0xe91   : > { %15533 = vmatprep.mubr.msk.bf16.mxu1 %vm17371_vm3, %v17370_v54  ;;  %15526 = vmatpush3.bf16.msra.mxu1 %v16948_v58  ;;  %v16967_v58 = vld [vmem:[%s20326_s11 + $0xf0] sm:$0xff]  }
 0xe92   : > { %15527 = vmatprep.subr.bf16.mxu1 %v17370_v54 }
 0xe95   : > { %15528 = vmatpush3.bf16.msra.mxu1 %v16950_v50 }
 0xe96   : > { %15529 = vmatprep.subr.bf16.mxu1 %v17370_v54 }
 0xe99   : > { %15530 = vmatpush3.bf16.msra.mxu1 %v16951_v53 }
 0xe9a   : > { %15531 = vmatprep.subr.bf16.mxu1 %v17370_v54 }
 0xe9d   : > { %15532 = vmatpush3.bf16.msra.mxu1 %v16952_v0 }
 0xe9e   : > { %15555 = vmatprep.subr.bf16.mxu1 %v17370_v54 }
 0xf53   : > { %v4898_v55 = vpop.f32.mrb[184].mxu1  ;;  %v4965_v56 = vpop.f32.mrb[120].mxu0 }
 0xf54   : > { %v15487_v61 = vpop.f32.mrb[185].mxu1  ;;  %v4966_v3 = vadd.f32 %v4965_v56, %v4898_v55  ;;  %v15499_v7 = vpop.f32.mrb[121].mxu0 }
 0xf55   : > { %v4901_v6 = vpop.f32.mrb[186].mxu1  ;;  %v4968_v9 = vpop.f32.mrb[122].mxu0 }
 0xf56   : > { %v15488_v25 = vpop.f32.mrb[187].mxu1  ;;  %v15500_v10 = vpop.f32.mrb[123].mxu0 }
 0xf5b   : > { %v5010_v42 = vpop.f32.mrb[188].mxu1 }
 0xf5c   : > { %v5016_v45 = vpack.c.bf16 %v5010_v42, %v5010_v42  ;;  %v15505_v46 = vpop.f32.mrb[189].mxu1 }
 0xf5d   : > { %v5013_v32 = vpop.f32.mrb[190].mxu1 }
 0xf5e   : > { %15516 = vmatmul.mubr.msk.bf16.vlgmr.msra.gmra.mrb[124].mxu0 %vm2782_vm4, %v5016_v45  ;;  %v15506_v8 = vpop.f32.mrb[191].mxu1 }
 0xf5f   : > { %15538 = vmatpush3.bf16.msra.mxu0 %v18579_v26  ;;  %15539 = vmatprep.mubr.msk.bf16.mxu0 %vm17371_vm3, %v17370_v54  ;;  %v13300_v8 = vld [vmem:[%s20325_s10 + $0x8] sm:$0x1] }
 0xf60   : > { %15543 = vmatprep.subr.bf16.mxu0 %v17370_v54 }
 0xf63   : > { %v5133_v63 = vpop.f32.mrb[192].mxu1 }
 0xf64   : > { %v5139_v62 = vpack.c.bf16 %v5133_v63, %v5133_v63  ;;  %v15523_v59 = vpop.f32.mrb[193].mxu1  ;;  %v16969_v63 = vld [vmem:[%s20326_s11 + $0x100] sm:$0xff]  }
 0xf65   : > { %v5136_v12 = vpop.f32.mrb[194].mxu1  ;;  %v16970_v59 = vld [vmem:[%s20326_s11 + $0x108] sm:$0xff]  }
 0xf66   : > { %15534 = vmatmul.mubr.msk.bf16.vlgmr.msra.gmra.mrb[196].mxu1 %vm2782_vm4, %v5139_v62  ;;  %15540 = vmatmul.mubr.msk.bf16.vlgmr.msra.gmra.mrb[128].mxu0 %vm4726_vm7, %v13240_v13  ;;  %v15524_v60 = vpop.f32.mrb[195].mxu1  ;;  %v16971_v12 = vld [vmem:[%s20326_s11 + $0x110] sm:$0xff]  }
 0xf67   : > { %15556 = vmatpush3.bf16.msra.mxu1 %v18579_v26  ;;  %15557 = vmatprep.mubr.msk.bf16.mxu1 %vm17371_vm3, %v17370_v54  ;;  %v16972_v60 = vld [vmem:[%s20326_s11 + $0x118] sm:$0xff]  }
 0xf68   : > { %15544 = vmatpush3.bf16.msra.mxu0 %v16953_v51  ;;  %15561 = vmatprep.subr.bf16.mxu1 %v17370_v54 }
 0xf69   : > { %15545 = vmatprep.subr.bf16.mxu0 %v17370_v54  ;;  %15551 = vmatprep.mubr.msk.bf16.mxu0 %vm17371_vm3, %v17370_v54 }
 0xf6c   : > { %15546 = vmatpush3.bf16.msra.mxu0 %v16954_v47 }
 0xf6d   : > { %15547 = vmatprep.subr.bf16.mxu0 %v17370_v54 }
 0xf6e   : > { %15558 = vmatmul.mubr.msk.bf16.vlgmr.msra.gmra.mrb[200].mxu1 %vm4726_vm7, %v13255_v49 }
 0xf6f   : > { %15569 = vmatprep.mubr.msk.bf16.mxu1 %vm17371_vm3, %v17370_v54  ;;  %15562 = vmatpush3.bf16.msra.mxu1 %v16956_v57 }
 0xf70   : > { %15548 = vmatpush3.bf16.msra.mxu0 %v16955_v2  ;;  %15563 = vmatprep.subr.bf16.mxu1 %v17370_v54 }
 0xf71   : > { %15549 = vmatprep.subr.bf16.mxu0 %v17370_v54 }
 0xf73   : > { %15564 = vmatpush3.bf16.msra.mxu1 %v16958_v5 }
 0xf74   : > { %15550 = vmatpush3.bf16.msra.mxu0 %v16957_v4  ;;  %15565 = vmatprep.subr.bf16.mxu1 %v17370_v54 }
 0xf75   : > { %15573 = vmatprep.subr.bf16.mxu0 %v17370_v54 }
 0xf77   : > { %15566 = vmatpush3.bf16.msra.mxu1 %v16959_v16 }
 0xf78   : > { %15567 = vmatprep.subr.bf16.mxu1 %v17370_v54 }
 0xf7b   : > { %15568 = vmatpush3.bf16.msra.mxu1 %v16960_v14 }
 0xf7c   : > { %15591 = vmatprep.subr.bf16.mxu1 %v17370_v54 }
0x1031   : > { %v5087_v17 = vpop.f32.mrb[124].mxu0 }
0x1032   : > { %v5093_v22 = vadd.f32 %v5087_v17, %v4966_v3  ;;  %v15517_v24 = vpop.f32.mrb[125].mxu0 }
0x1033   : > { %v5090_v33 = vpop.f32.mrb[126].mxu0 }
0x1034   : > { %v15518_v34 = vpop.f32.mrb[127].mxu0 }
0x1039   : > { %v5210_v35 = vpop.f32.mrb[196].mxu1  ;;  %v5256_v41 = vpop.f32.mrb[128].mxu0 }
0x103a   : > { %v5216_v43 = vadd.f32 %v5210_v35, %v5093_v22  ;;  %v5262_v44 = vpack.c.bf16 %v5256_v41, %v5256_v41  ;;  %v15541_v52 = vpop.f32.mrb[129].mxu0  ;;  %v15535_v1 = vpop.f32.mrb[197].mxu1 }
0x103b   : > { %v5259_v15 = vpop.f32.mrb[130].mxu0  ;;  %v5213_v18 = vpop.f32.mrb[198].mxu1 }
0x103c   : > { %15552 = vmatmul.mubr.msk.bf16.vlgmr.msra.gmra.mrb[132].mxu0 %vm2782_vm4, %v5262_v44  ;;  %v15542_v19 = vpop.f32.mrb[131].mxu0  ;;  %v15536_v20 = vpop.f32.mrb[199].mxu1  ;;  %v5832_v44 = vld [vmem:[%s20327_s12] sm:$0x1] }
0x103d   : > { %15574 = vmatpush3.bf16.msra.mxu0 %v18579_v26  ;;  %15575 = vmatprep.mubr.msk.bf16.mxu0 %vm17371_vm3, %v17370_v54 }
0x103e   : > { %15579 = vmatprep.subr.bf16.mxu0 %v17370_v54 }
0x1041   : > { %v5379_v21 = vpop.f32.mrb[200].mxu1 }
0x1042   : > { %v5385_v27 = vpack.c.bf16 %v5379_v21, %v5379_v21  ;;  %v15559_v29 = vpop.f32.mrb[201].mxu1  ;;  %v17372_v21 = vmov 0  }
0x1043   : > { %v5382_v31 = vpop.f32.mrb[202].mxu1  ;;  %v5836_v29 = vld [vmem:[%s20328_s13] sm:$0x1] }
0x1044   : > { %15570 = vmatmul.mubr.msk.bf16.vlgmr.msra.gmra.mrb[204].mxu1 %vm2782_vm4, %v5385_v27  ;;  %15576 = vmatmul.mubr.msk.bf16.vlgmr.msra.gmra.mrb[136].mxu0 %vm4726_vm7, %v13270_v11  ;;  %v15560_v36 = vpop.f32.mrb[203].mxu1  ;;  %v18828_v11 = vsel %vm1140_vm0, 65535, %v17372_v21  ;;  %v13318_v31 = vld [vmem:[%s20328_s13 + $0x2] sm:$0x1]  ;;  %v17009_v21 = vld [vmem:[%s20329_s14 + $0x188] sm:$0xff]  }
0x1045   : > { %15592 = vmatpush3.bf16.msra.mxu1 %v18579_v26  ;;  %15593 = vmatprep.mubr.msk.bf16.mxu1 %vm17371_vm3, %v17370_v54  ;;  %v16975_v36 = vld [vmem:[%s20329_s14 + $0x80] sm:$0xff]  }
0x1046   : > { %15580 = vmatpush3.bf16.msra.mxu0 %v16961_v28  ;;  %15597 = vmatprep.subr.bf16.mxu1 %v17370_v54 }
0x1047   : > { %15581 = vmatprep.subr.bf16.mxu0 %v17370_v54  ;;  %15587 = vmatprep.mubr.msk.bf16.mxu0 %vm17371_vm3, %v17370_v54 }
0x104a   : > { %15582 = vmatpush3.bf16.msra.mxu0 %v16962_v37  ;;  %v16977_v37 = vld [vmem:[%s20329_s14 + $0x88] sm:$0xff]  }
0x104b   : > { %15583 = vmatprep.subr.bf16.mxu0 %v17370_v54 }
0x104c   : > { %15594 = vmatmul.mubr.msk.bf16.vlgmr.msra.gmra.mrb[208].mxu1 %vm4726_vm7, %v13285_v38  ;;  %v13316_v38 = vld [vmem:[%s20328_s13 + $0x1] sm:$0x1] }
0x104d   : > { %15605 = vmatprep.mubr.msk.bf16.mxu1 %vm17371_vm3, %v17370_v54  ;;  %15598 = vmatpush3.bf16.msra.mxu1 %v16964_v23  ;;  %v16981_v23 = vld [vmem:[%s20329_s14 + $0x98] sm:$0xff]  }
0x104e   : > { %15584 = vmatpush3.bf16.msra.mxu0 %v16963_v40  ;;  %15599 = vmatprep.subr.bf16.mxu1 %v17370_v54  ;;  %v16979_v40 = vld [vmem:[%s20329_s14 + $0x90] sm:$0xff]  }
0x104f   : > { %15585 = vmatprep.subr.bf16.mxu0 %v17370_v54 }
0x1051   : > { %15600 = vmatpush3.bf16.msra.mxu1 %v16966_v48  ;;  %v16973_v48 = vld [vmem:[%s20329_s14 + $0x40] sm:$0xff]  }
0x1052   : > { %15586 = vmatpush3.bf16.msra.mxu0 %v16965_v30  ;;  %15601 = vmatprep.subr.bf16.mxu1 %v17370_v54  ;;  %v13320_v30 = vld [vmem:[%s20328_s13 + $0x3] sm:$0x1] }
0x1053   : > { %15609 = vmatprep.subr.bf16.mxu0 %v17370_v54 }
0x1055   : > { %15602 = vmatpush3.bf16.msra.mxu1 %v16967_v58  ;;  %v16983_v58 = vld [vmem:[%s20329_s14 + $0xa0] sm:$0xff]  }
0x1056   : > { %15603 = vmatprep.subr.bf16.mxu1 %v17370_v54 }
0x1059   : > { %15604 = vmatpush3.bf16.msra.mxu1 %v16968_v39  ;;  %v16974_v39 = vld [vmem:[%s20329_s14 + $0x48] sm:$0xff]  }
0x105a   : > { %15627 = vmatprep.subr.bf16.mxu1 %v17370_v54 }
0x110f   : > { %v5333_v50 = vpop.f32.mrb[132].mxu0 }
0x1110   : > { %v5339_v53 = vadd.f32 %v5333_v50, %v5216_v43  ;;  %v15553_v0 = vpop.f32.mrb[133].mxu0  ;;  %v16985_v50 = vld [vmem:[%s20329_s14 + $0xa8] sm:$0xff]  }
0x1111   : > { %v5336_v55 = vpop.f32.mrb[134].mxu0  ;;  %v16978_v0 = vld [vmem:[%s20329_s14 + $0x58] sm:$0xff]  }
0x1112   : > { %v15554_v56 = vpop.f32.mrb[135].mxu0  ;;  %v16980_v55 = vld [vmem:[%s20329_s14 + $0x60] sm:$0xff]  }
0x1113   : > { %v16982_v56 = vld [vmem:[%s20329_s14 + $0x68] sm:$0xff]  }
0x1117   : > { %v5456_v61 = vpop.f32.mrb[204].mxu1  ;;  %v5502_v3 = vpop.f32.mrb[136].mxu0 }
0x1118   : > { %v5462_v7 = vadd.f32 %v5456_v61, %v5339_v53  ;;  %v5508_v6 = vpack.c.bf16 %v5502_v3, %v5502_v3  ;;  %v15577_v9 = vpop.f32.mrb[137].mxu0  ;;  %v15571_v25 = vpop.f32.mrb[205].mxu1  ;;  %v16976_v53 = vld [vmem:[%s20329_s14 + $0x50] sm:$0xff]   ;;  %v16986_v3 = vld [vmem:[%s20329_s14 + $0x78] sm:$0xff]  }
0x1119   : > { %v5505_v10 = vpop.f32.mrb[138].mxu0  ;;  %v5459_v42 = vpop.f32.mrb[206].mxu1  ;;  %v16984_v61 = vld [vmem:[%s20329_s14 + $0x70] sm:$0xff]   ;;  %v16988_v25 = vld [vmem:[%s20329_s14 + $0xc0] sm:$0xff]  }
0x111a   : > { %15588 = vmatmul.mubr.msk.bf16.vlgmr.msra.gmra.mrb[140].mxu0 %vm2782_vm4, %v5508_v6  ;;  %v15578_v45 = vpop.f32.mrb[139].mxu0  ;;  %v15572_v46 = vpop.f32.mrb[207].mxu1  ;;  %v16989_v6 = vld [vmem:[%s20329_s14 + $0xb8] sm:$0xff]  }
0x111b   : > { %15610 = vmatpush3.bf16.msra.mxu0 %v18579_v26  ;;  %15611 = vmatprep.mubr.msk.bf16.mxu0 %vm17371_vm3, %v17370_v54 }
0x111c   : > { %15615 = vmatprep.subr.bf16.mxu0 %v17370_v54 }
0x111f   : > { %v5625_v32 = vpop.f32.mrb[208].mxu1 }
0x1120   : > { %v5631_v13 = vpack.c.bf16 %v5625_v32, %v5625_v32  ;;  %v15595_v62 = vpop.f32.mrb[209].mxu1 }
0x1121   : > { %v5628_v51 = vpop.f32.mrb[210].mxu1  ;;  %v16990_v62 = vld [vmem:[%s20329_s14 + $0xc8] sm:$0xff]  }
0x1122   : > { %15606 = vmatmul.mubr.msk.bf16.vlgmr.msra.gmra.mrb[212].mxu1 %vm2782_vm4, %v5631_v13  ;;  %15612 = vmatmul.mubr.msk.bf16.vlgmr.msra.gmra.mrb[144].mxu0 %vm4726_vm7, %v13300_v8  ;;  %v15596_v26 = vpop.f32.mrb[211].mxu1 }
0x1123   : > { %15616 = vmatpush3.bf16.msra.mxu0 %v16969_v63  ;;  %15623 = vmatprep.mubr.msk.bf16.mxu0 %vm17371_vm3, %v17370_v54  ;;  %v16991_v26 = vld [vmem:[%s20329_s14 + $0x100] sm:$0xff]  }
0x1124   : > { %15617 = vmatprep.subr.bf16.mxu0 %v17370_v54  ;;  %15629 = vmatprep.mubr.msk.bf16.mxu1 %vm17371_vm3, %v17370_v54 }
0x1127   : > { %15618 = vmatpush3.bf16.msra.mxu0 %v16970_v59  ;;  %v16992_v59 = vld [vmem:[%s20329_s14 + $0xd0] sm:$0xff]  }
0x1128   : > { %15619 = vmatprep.subr.bf16.mxu0 %v17370_v54 }
0x112b   : > { %15620 = vmatpush3.bf16.msra.mxu0 %v16971_v12 }
0x112c   : > { %15621 = vmatprep.subr.bf16.mxu0 %v17370_v54 }
0x112f   : > { %15622 = vmatpush3.bf16.msra.mxu0 %v16972_v60 }
0x1130   : > { %15639 = vmatprep.subr.bf16.mxu0 %v17370_v54 }
0x11ed   : > { %v5579_v47 = vpop.f32.mrb[140].mxu0 }
0x11ee   : > { %v5585_v49 = vadd.f32 %v5579_v47, %v5462_v7  ;;  %v15589_v2 = vpop.f32.mrb[141].mxu0  ;;  %v16987_v7 = vld [vmem:[%s20329_s14 + $0xb0] sm:$0xff]  }
0x11ef   : > { %v5582_v57 = vpop.f32.mrb[142].mxu0  ;;  %v16993_v2 = vld [vmem:[%s20329_s14 + $0x108] sm:$0xff]  }
0x11f0   : > { %v15590_v4 = vpop.f32.mrb[143].mxu0  ;;  %v16994_v57 = vld [vmem:[%s20329_s14 + $0xd8] sm:$0xff]  }
0x11f1   : > { %v16995_v4 = vld [vmem:[%s20329_s14 + $0x110] sm:$0xff]  }
0x11f5   : > { %v5702_v5 = vpop.f32.mrb[212].mxu1  ;;  %v5748_v16 = vpop.f32.mrb[144].mxu0 }
0x11f6   : > { %v5708_v14 = vadd.f32 %v5702_v5, %v5585_v49  ;;  %v5754_v17 = vpack.c.bf16 %v5748_v16, %v5748_v16  ;;  %v15613_v22 = vpop.f32.mrb[145].mxu0  ;;  %v15607_v24 = vpop.f32.mrb[213].mxu1  ;;  %v16996_v5 = vld [vmem:[%s20329_s14 + $0xe0] sm:$0xff]  }
0x11f7   : > { %v5751_v33 = vpop.f32.mrb[146].mxu0  ;;  %v5705_v34 = vpop.f32.mrb[214].mxu1  ;;  %v16997_v24 = vld [vmem:[%s20329_s14 + $0x118] sm:$0xff]  }
0x11f8   : > { %15624 = vmatmul.mubr.msk.bf16.vlgmr.msra.gmra.mrb[148].mxu0 %vm2782_vm4, %v5754_v17  ;;  %v15614_v35 = vpop.f32.mrb[147].mxu0  ;;  %v15608_v41 = vpop.f32.mrb[215].mxu1  ;;  %v16998_v33 = vld [vmem:[%s20329_s14 + $0xe8] sm:$0xff]   ;;  %v16999_v34 = vld [vmem:[%s20329_s14 + $0x120] sm:$0xff]  }
0x11f9   : > { %15641 = vmatprep.mubr.msk.bf16.mxu0 %vm17371_vm3, %v17370_v54  ;;  %v17000_v35 = vld [vmem:[%s20329_s14 + $0xf0] sm:$0xff]   ;;  %v17001_v41 = vld [vmem:[%s20329_s14 + $0x128] sm:$0xff]  }
0x12cb   : > { %v5825_v43 = vpop.f32.mrb[148].mxu0 }
0x12cc   : > { %v5831_v52 = vadd.f32 %v5825_v43, %v5708_v14  ;;  %v15625_v1 = vpop.f32.mrb[149].mxu0  ;;  %v17002_v43 = vld [vmem:[%s20329_s14 + $0xf8] sm:$0xff]  }
0x12cd   : > { %v5828_v15 = vpop.f32.mrb[150].mxu0  ;;  %v17005_v1 = vld [vmem:[%s20329_s14 + $0x138] sm:$0xff]  }
0x12ce   : > { %v5833_v18 = vadd.f32 %v5832_v44, %v5831_v52  ;;  %v15626_v19 = vpop.f32.mrb[151].mxu0  ;;  %v17003_v44 = vld [vmem:[%s20329_s14 + $0x130] sm:$0xff]   ;;  %v17004_v52 = vld [vmem:[%s20329_s14 + $0x140] sm:$0xff]   ;;  %v17006_v15 = vld [vmem:[%s20329_s14 + $0x148] sm:$0xff]  }
0x12cf   : > { %v17007_v19 = vld [vmem:[%s20329_s14 + $0x180] sm:$0xff]  }
0x12d0   : > { %v5834_v20 = vmax.f32 %v5833_v18, 0.0 }
0x12d2   : > { %v5835_v27 = vpack.c.bf16 %v5834_v20, %v5834_v20  ;;  %v17008_v20 = vld [vmem:[%s20329_s14 + $0x150] sm:$0xff]  }
0x12d4   : > { %v5844_v28 = vand.u32 %v18828_v11, %v5835_v27  ;;  %v17010_v27 = vld [vmem:[%s20329_s14 + $0x158] sm:$0xff]  }
0x12d6   : > { %15628 = vmatpush3.bf16.msra.mxu1 %v5844_v28  ;;  %15640 = vmatpush3.bf16.msra.mxu0 %v5844_v28 }
0x12d7   : > { %15633 = vmatprep.subr.bf16.mxu1 %v17370_v54  ;;  %15651 = vmatprep.subr.bf16.mxu0 %v17370_v54 }
0x12d9   : > { %15630 = vmatmul.mubr.msk.bf16.vlgmr.msra.gmra.mrb[216].mxu1 %vm5837_vm8, %v5836_v29  ;;  %15642 = vmatmul.mubr.msk.bf16.vlgmr.msra.gmra.mrb[152].mxu0 %vm5837_vm8, %v13318_v31  ;;  %v17012_v29 = vld [vmem:[%s20329_s14 + $0x160] sm:$0xff]   ;;  %v17013_v31 = vld [vmem:[%s20329_s14 + $0x198] sm:$0xff]  }
0x12da   : > { %15634 = vmatpush3.bf16.msra.mxu1 %v5844_v28  ;;  %15635 = vmatprep.mubr.msk.bf16.mxu1 %vm17371_vm3, %v17370_v54 }
0x12db   : > { %15645 = vmatprep.subr.bf16.mxu1 %v17370_v54  ;;  %15652 = vmatpush3.bf16.msra.mxu0 %v16975_v36  ;;  %v17014_v36 = vld [vmem:[%s20329_s14 + $0x168] sm:$0xff]  }
0x12dc   : > { %15653 = vmatprep.subr.bf16.mxu0 %v17370_v54  ;;  %15667 = vmatprep.mubr.msk.bf16.mxu0 %vm17371_vm3, %v17370_v54 }
0x12df   : > { %15654 = vmatpush3.bf16.msra.mxu0 %v16977_v37  ;;  %v17015_v37 = vld [vmem:[%s20329_s14 + $0x1a0] sm:$0xff]  }
0x12e0   : > { %15655 = vmatprep.subr.bf16.mxu0 %v17370_v54 }
0x12e1   : > { %15636 = vmatmul.mubr.msk.bf16.vlgmr.msra.gmra.mrb[220].mxu1 %vm5837_vm8, %v13316_v38  ;;  %v17016_v38 = vld [vmem:[%s20329_s14 + $0x170] sm:$0xff]  }
0x12e2   : > { %15646 = vmatpush3.bf16.msra.mxu1 %v5844_v28  ;;  %15647 = vmatprep.mubr.msk.bf16.mxu1 %vm17371_vm3, %v17370_v54  ;;  %v17011_v28 = vld [vmem:[%s20329_s14 + $0x190] sm:$0xff]  }
0x12e3   : > { %15671 = vmatprep.subr.bf16.mxu1 %v17370_v54  ;;  %15656 = vmatpush3.bf16.msra.mxu0 %v16979_v40  ;;  %v17017_v40 = vld [vmem:[%s20329_s14 + $0x1a8] sm:$0xff]  }
0x12e4   : > { %15657 = vmatprep.subr.bf16.mxu0 %v17370_v54 }
0x12e7   : > { %15658 = vmatpush3.bf16.msra.mxu0 %v16981_v23  ;;  %v17018_v23 = vld [vmem:[%s20329_s14 + $0x178] sm:$0xff]  }
0x12e8   : > { %15659 = vmatprep.subr.bf16.mxu0 %v17370_v54 }
0x12e9   : > { %15648 = vmatmul.mubr.msk.bf16.vlgmr.msra.gmra.mrb[224].mxu1 %vm5837_vm8, %v13320_v30  ;;  %v17019_v30 = vld [vmem:[%s20329_s14 + $0x1b0] sm:$0xff]  }
0x12ea   : > { %15672 = vmatpush3.bf16.msra.mxu1 %v16973_v48  ;;  %15687 = vmatprep.mubr.msk.bf16.mxu1 %vm17371_vm3, %v17370_v54  ;;  %v17022_v48 = vld [vmem:[%s20329_s14 + $0x200] sm:$0xff]  }
0x12eb   : > { %15673 = vmatprep.subr.bf16.mxu1 %v17370_v54  ;;  %15660 = vmatpush3.bf16.msra.mxu0 %v16983_v58  ;;  %v17020_v58 = vld [vmem:[%s20329_s14 + $0x1b8] sm:$0xff]  }
0x12ec   : > { %15661 = vmatprep.subr.bf16.mxu0 %v17370_v54 }
0x12ee   : > { %15674 = vmatpush3.bf16.msra.mxu1 %v16974_v39  ;;  %v17024_v39 = vld [vmem:[%s20329_s14 + $0x208] sm:$0xff]  }
0x12ef   : > { %15675 = vmatprep.subr.bf16.mxu1 %v17370_v54  ;;  %15662 = vmatpush3.bf16.msra.mxu0 %v16985_v50  ;;  %v17021_v50 = vld [vmem:[%s20329_s14 + $0x1c0] sm:$0xff]  }
0x12f0   : > { %15663 = vmatprep.subr.bf16.mxu0 %v17370_v54 }
0x12f2   : > { %15676 = vmatpush3.bf16.msra.mxu1 %v16976_v53  ;;  %v17026_v53 = vld [vmem:[%s20329_s14 + $0x210] sm:$0xff]  }
0x12f3   : > { %15677 = vmatprep.subr.bf16.mxu1 %v17370_v54  ;;  %15664 = vmatpush3.bf16.msra.mxu0 %v16987_v7  ;;  %v17032_v7 = vld [vmem:[%s20329_s14 + $0x228] sm:$0xff]  }
0x12f4   : > { %15665 = vmatprep.subr.bf16.mxu0 %v17370_v54 }
0x12f6   : > { %15678 = vmatpush3.bf16.msra.mxu1 %v16978_v0  ;;  %v17023_v0 = vld [vmem:[%s20329_s14 + $0x1c8] sm:$0xff]  }
0x12f7   : > { %15679 = vmatprep.subr.bf16.mxu1 %v17370_v54  ;;  %15666 = vmatpush3.bf16.msra.mxu0 %v16989_v6  ;;  %v17029_v6 = vld [vmem:[%s20329_s14 + $0x1e0] sm:$0xff]  }
0x12f8   : > { %15691 = vmatprep.subr.bf16.mxu0 %v17370_v54 }
0x12fa   : > { %15680 = vmatpush3.bf16.msra.mxu1 %v16980_v55  ;;  %v17028_v55 = vld [vmem:[%s20329_s14 + $0x218] sm:$0xff]  }
0x12fb   : > { %15681 = vmatprep.subr.bf16.mxu1 %v17370_v54 }
0x12fe   : > { %15682 = vmatpush3.bf16.msra.mxu1 %v16982_v56  ;;  %v17025_v56 = vld [vmem:[%s20329_s14 + $0x1d0] sm:$0xff]  }
0x12ff   : > { %15683 = vmatprep.subr.bf16.mxu1 %v17370_v54 }
0x1302   : > { %15684 = vmatpush3.bf16.msra.mxu1 %v16984_v61  ;;  %v17030_v61 = vld [vmem:[%s20329_s14 + $0x220] sm:$0xff]  }
0x1303   : > { %15685 = vmatprep.subr.bf16.mxu1 %v17370_v54 }
0x1306   : > { %15686 = vmatpush3.bf16.msra.mxu1 %v16986_v3  ;;  %v17027_v3 = vld [vmem:[%s20329_s14 + $0x1d8] sm:$0xff]  }
0x1307   : > { %15711 = vmatprep.subr.bf16.mxu1 %v17370_v54 }
0x13ac   : > { %v5880_v9 = vpop.f32.mrb[216].mxu1  ;;  %v18926_v10 = vpop.f32.mrb[152].mxu0 }
0x13ad   : > { %v18928_v42 = vpack.c.bf16 %v5880_v9, %v5880_v9  ;;  %v15631_v45 = vpop.f32.mrb[217].mxu1  ;;  %v15643_v46 = vpop.f32.mrb[153].mxu0  ;;  %v19012_v18 = vpack.c.bf16 %v18926_v10, %v18926_v10  ;;  %v17034_v9 = vld [vmem:[%s20329_s14 + $0x230] sm:$0xff]   ;;  %v17036_v10 = vld [vmem:[%s20329_s14 + $0x238] sm:$0xff]  }
0x13ae   : > { %v5883_v32 = vpop.f32.mrb[218].mxu1  ;;  %v5975_v8 = vpop.f32.mrb[154].mxu0  ;;  %v17033_v46 = vld [vmem:[%s20329_s14 + $0x1f0] sm:$0xff]  }
0x13af   : > { %15688 = vmatmul.mubr.bf16.vlgmr.msra.gmra.mrb[228].mxu1 %v18928_v42  ;;  %v15632_v63 = vpop.f32.mrb[219].mxu1  ;;  %v15644_v13 = vpop.f32.mrb[155].mxu0  ;;  %v17035_v32 = vld [vmem:[%s20329_s14 + $0x1f8] sm:$0xff]   ;;  %v17037_v8 = vld [vmem:[%s20329_s14] sm:$0xff]  }
0x13b0   : > { %15712 = vmatpush3.bf16.msra.mxu1 %v16988_v25  ;;  %15727 = vmatprep.mubr.msk.bf16.mxu1 %vm17371_vm3, %v17370_v54  ;;  %v17031_v25 = vld [vmem:[%s20329_s14 + $0x1e8] sm:$0xff]   ;;  %v17039_v13 = vld [vmem:[%s20329_s14 + $0x10] sm:$0xff]  }
0x13b1   : > { %15713 = vmatprep.subr.bf16.mxu1 %v17370_v54  ;;  %v17038_v63 = vld [vmem:[%s20329_s14 + $0x8] sm:$0xff]  }
0x13b4   : > { %15714 = vmatpush3.bf16.msra.mxu1 %v16990_v62  ;;  %v5926_v51 = vpop.f32.mrb[220].mxu1  ;;  %v17040_v62 = vld [vmem:[%s20329_s14 + $0x18] sm:$0xff]  }
0x13b5   : > { %v18943_v12 = vpack.c.bf16 %v5926_v51, %v5926_v51  ;;  %v15637_v60 = vpop.f32.mrb[221].mxu1  ;;  %15715 = vmatprep.subr.bf16.mxu1 %v17370_v54  ;;  %v17041_v51 = vld [vmem:[%s20329_s14 + $0x20] sm:$0xff]  }
0x13b6   : > { %v5929_v47 = vpop.f32.mrb[222].mxu1 }
0x13b7   : > { %15668 = vmatmul.mubr.bf16.vlgmr.msra.gmra.mrb[156].mxu0 %v18943_v12  ;;  %v15638_v49 = vpop.f32.mrb[223].mxu1 }
0x13b8   : > { %15692 = vmatpush3.bf16.msra.mxu0 %v16991_v26  ;;  %15716 = vmatpush3.bf16.msra.mxu1 %v16992_v59  ;;  %v17042_v26 = vld [vmem:[%s20329_s14 + $0x28] sm:$0xff]   ;;  %v17043_v59 = vld [vmem:[%s20329_s14 + $0x30] sm:$0xff]  }
0x13b9   : > { %15693 = vmatprep.subr.bf16.mxu0 %v17370_v54  ;;  %15717 = vmatprep.subr.bf16.mxu1 %v17370_v54 }
0x13ba   : > { %15707 = vmatprep.mubr.msk.bf16.mxu0 %vm17371_vm3, %v17370_v54 }
0x13bc   : > { %15694 = vmatpush3.bf16.msra.mxu0 %v16993_v2  ;;  %15718 = vmatpush3.bf16.msra.mxu1 %v16994_v57  ;;  %v18963_v16 = vpop.f32.mrb[224].mxu1 }
0x13bd   : > { %15695 = vmatprep.subr.bf16.mxu0 %v17370_v54  ;;  %15719 = vmatprep.subr.bf16.mxu1 %v17370_v54  ;;  %v15649_v14 = vpop.f32.mrb[225].mxu1  ;;  %v6024_v45 = vpack.c.bf16 %v18963_v16, %v18963_v16 }
0x13be   : > { %v6021_v17 = vpop.f32.mrb[226].mxu1 }
0x13bf   : > { %v15650_v22 = vpop.f32.mrb[227].mxu1 }
0x13c0   : > { %15696 = vmatpush3.bf16.msra.mxu0 %v16995_v4  ;;  %15720 = vmatpush3.bf16.msra.mxu1 %v16996_v5  ;;  %v19190_v4 = vld [vmem:[%s20330_s15] sm:$0x1] }
0x13c1   : > { %15697 = vmatprep.subr.bf16.mxu0 %v17370_v54  ;;  %15721 = vmatprep.subr.bf16.mxu1 %v17370_v54 }
0x13c4   : > { %15698 = vmatpush3.bf16.msra.mxu0 %v16997_v24  ;;  %15722 = vmatpush3.bf16.msra.mxu1 %v16998_v33 }
0x13c5   : > { %15699 = vmatprep.subr.bf16.mxu0 %v17370_v54  ;;  %15723 = vmatprep.subr.bf16.mxu1 %v17370_v54 }
0x13c8   : > { %15700 = vmatpush3.bf16.msra.mxu0 %v16999_v34  ;;  %15724 = vmatpush3.bf16.msra.mxu1 %v17000_v35  ;;  %v13522_v34 = vld [vmem:[%s20331_s16 + $0x2] sm:$0x3]  ;;  %v13530_v35 = vld [vmem:[%s20331_s16 + $0xa] sm:$0x3] }
0x13c9   : > { %15701 = vmatprep.subr.bf16.mxu0 %v17370_v54  ;;  %15725 = vmatprep.subr.bf16.mxu1 %v17370_v54 }
0x13cc   : > { %15702 = vmatpush3.bf16.msra.mxu0 %v17001_v41  ;;  %15726 = vmatpush3.bf16.msra.mxu1 %v17002_v43 }
0x13cd   : > { %15703 = vmatprep.subr.bf16.mxu0 %v17370_v54  ;;  %15751 = vmatprep.subr.bf16.mxu1 %v17370_v54 }
0x13cf   : > { %15728 = vmatmul.mubr.bf16.vlgmr.msra.gmra.mrb[232].mxu1 %v18928_v42 }
0x13d0   : > { %15704 = vmatpush3.bf16.msra.mxu0 %v17003_v44  ;;  %15752 = vmatpush3.bf16.msra.mxu1 %v17004_v52 }
0x13d1   : > { %15705 = vmatprep.subr.bf16.mxu0 %v17370_v54  ;;  %15753 = vmatprep.subr.bf16.mxu1 %v17370_v54 }
0x13d2   : > { %15767 = vmatprep.mubr.msk.bf16.mxu1 %vm17371_vm3, %v17370_v54 }
0x13d4   : > { %15706 = vmatpush3.bf16.msra.mxu0 %v17005_v1  ;;  %15754 = vmatpush3.bf16.msra.mxu1 %v17006_v15 }
0x13d5   : > { %15731 = vmatprep.subr.bf16.mxu0 %v17370_v54  ;;  %15755 = vmatprep.subr.bf16.mxu1 %v17370_v54 }
0x13d7   : > { %15708 = vmatmul.mubr.bf16.vlgmr.msra.gmra.mrb[160].mxu0 %v19012_v18 }
0x13d8   : > { %15732 = vmatpush3.bf16.msra.mxu0 %v17007_v19  ;;  %15756 = vmatpush3.bf16.msra.mxu1 %v17008_v20 }
0x13d9   : > { %15733 = vmatprep.subr.bf16.mxu0 %v17370_v54  ;;  %15757 = vmatprep.subr.bf16.mxu1 %v17370_v54 }
0x13da   : > { %15747 = vmatprep.mubr.msk.bf16.mxu0 %vm17371_vm3, %v17370_v54 }
0x13dc   : > { %15734 = vmatpush3.bf16.msra.mxu0 %v17009_v21  ;;  %15758 = vmatpush3.bf16.msra.mxu1 %v17010_v27 }
0x13dd   : > { %15735 = vmatprep.subr.bf16.mxu0 %v17370_v54  ;;  %15759 = vmatprep.subr.bf16.mxu1 %v17370_v54 }
0x13e0   : > { %15736 = vmatpush3.bf16.msra.mxu0 %v17011_v28  ;;  %15760 = vmatpush3.bf16.msra.mxu1 %v17012_v29 }
0x13e1   : > { %15737 = vmatprep.subr.bf16.mxu0 %v17370_v54  ;;  %15761 = vmatprep.subr.bf16.mxu1 %v17370_v54 }
0x13e4   : > { %15738 = vmatpush3.bf16.msra.mxu0 %v17013_v31  ;;  %15762 = vmatpush3.bf16.msra.mxu1 %v17014_v36 }
0x13e5   : > { %15739 = vmatprep.subr.bf16.mxu0 %v17370_v54  ;;  %15763 = vmatprep.subr.bf16.mxu1 %v17370_v54 }
0x13e8   : > { %15740 = vmatpush3.bf16.msra.mxu0 %v17015_v37  ;;  %15764 = vmatpush3.bf16.msra.mxu1 %v17016_v38 }
0x13e9   : > { %15741 = vmatprep.subr.bf16.mxu0 %v17370_v54  ;;  %15765 = vmatprep.subr.bf16.mxu1 %v17370_v54 }
0x13ec   : > { %15742 = vmatpush3.bf16.msra.mxu0 %v17017_v40  ;;  %15766 = vmatpush3.bf16.msra.mxu1 %v17018_v23 }
0x13ed   : > { %15743 = vmatprep.subr.bf16.mxu0 %v17370_v54  ;;  %15791 = vmatprep.subr.bf16.mxu1 %v17370_v54 }
0x13ef   : > { %15768 = vmatmul.mubr.bf16.vlgmr.msra.gmra.mrb[236].mxu1 %v18928_v42 }
0x13f0   : > { %15744 = vmatpush3.bf16.msra.mxu0 %v17019_v30  ;;  %15792 = vmatpush3.bf16.msra.mxu1 %v17022_v48 }
0x13f1   : > { %15745 = vmatprep.subr.bf16.mxu0 %v17370_v54  ;;  %15793 = vmatprep.subr.bf16.mxu1 %v17370_v54 }
0x13f2   : > { %15807 = vmatprep.mubr.msk.bf16.mxu1 %vm17371_vm3, %v17370_v54 }
0x13f4   : > { %15746 = vmatpush3.bf16.msra.mxu0 %v17020_v58  ;;  %15794 = vmatpush3.bf16.msra.mxu1 %v17024_v39 }
0x13f5   : > { %15771 = vmatprep.subr.bf16.mxu0 %v17370_v54  ;;  %15795 = vmatprep.subr.bf16.mxu1 %v17370_v54 }
0x13f7   : > { %15748 = vmatmul.mubr.bf16.vlgmr.msra.gmra.mrb[164].mxu0 %v18943_v12  ;;  %v17044_v12 = vld [vmem:[%s20329_s14 + $0x38] sm:$0xff]  }
0x13f8   : > { %15772 = vmatpush3.bf16.msra.mxu0 %v17021_v50  ;;  %15796 = vmatpush3.bf16.msra.mxu1 %v17026_v53 }
0x13f9   : > { %15773 = vmatprep.subr.bf16.mxu0 %v17370_v54  ;;  %15797 = vmatprep.subr.bf16.mxu1 %v17370_v54 }
0x13fa   : > { %15787 = vmatprep.mubr.msk.bf16.mxu0 %vm17371_vm3, %v17370_v54 }
0x13fc   : > { %15774 = vmatpush3.bf16.msra.mxu0 %v17023_v0  ;;  %15798 = vmatpush3.bf16.msra.mxu1 %v17028_v55 }
0x13fd   : > { %15775 = vmatprep.subr.bf16.mxu0 %v17370_v54  ;;  %15799 = vmatprep.subr.bf16.mxu1 %v17370_v54 }
0x1400   : > { %15776 = vmatpush3.bf16.msra.mxu0 %v17025_v56  ;;  %15800 = vmatpush3.bf16.msra.mxu1 %v17030_v61 }
0x1401   : > { %15777 = vmatprep.subr.bf16.mxu0 %v17370_v54  ;;  %15801 = vmatprep.subr.bf16.mxu1 %v17370_v54 }
0x1404   : > { %15778 = vmatpush3.bf16.msra.mxu0 %v17027_v3  ;;  %15802 = vmatpush3.bf16.msra.mxu1 %v17032_v7 }
0x1405   : > { %15779 = vmatprep.subr.bf16.mxu0 %v17370_v54  ;;  %15803 = vmatprep.subr.bf16.mxu1 %v17370_v54 }
0x1408   : > { %15780 = vmatpush3.bf16.msra.mxu0 %v17029_v6  ;;  %15804 = vmatpush3.bf16.msra.mxu1 %v17034_v9 }
0x1409   : > { %15781 = vmatprep.subr.bf16.mxu0 %v17370_v54  ;;  %15805 = vmatprep.subr.bf16.mxu1 %v17370_v54 }
0x140c   : > { %15782 = vmatpush3.bf16.msra.mxu0 %v17031_v25  ;;  %15806 = vmatpush3.bf16.msra.mxu1 %v17036_v10 }
0x140d   : > { %15783 = vmatprep.subr.bf16.mxu0 %v17370_v54  ;;  %15831 = vmatprep.subr.bf16.mxu1 %v17370_v54 }
0x140f   : > { %15808 = vmatmul.mubr.bf16.vlgmr.msra.gmra.mrb[240].mxu1 %v6024_v45 }
0x1410   : > { %15784 = vmatpush3.bf16.msra.mxu0 %v17033_v46  ;;  %15833 = vmatprep.mubr.msk.bf16.mxu1 %vm17371_vm3, %v17370_v54 }
0x1411   : > { %15785 = vmatprep.subr.bf16.mxu0 %v17370_v54 }
0x1414   : > { %15786 = vmatpush3.bf16.msra.mxu0 %v17035_v32 }
0x1415   : > { %15811 = vmatprep.subr.bf16.mxu0 %v17370_v54 }
0x1417   : > { %15788 = vmatmul.mubr.bf16.vlgmr.msra.gmra.mrb[168].mxu0 %v19012_v18 }
0x1418   : > { %15812 = vmatpush3.bf16.msra.mxu0 %v17037_v8  ;;  %15827 = vmatprep.mubr.msk.bf16.mxu0 %vm17371_vm3, %v17370_v54 }
0x1419   : > { %15813 = vmatprep.subr.bf16.mxu0 %v17370_v54 }
0x141c   : > { %15814 = vmatpush3.bf16.msra.mxu0 %v17038_v63  ;;  %v6983_v63 = vld [vmem:[%s20331_s16] sm:$0x3] }
0x141d   : > { %15815 = vmatprep.subr.bf16.mxu0 %v17370_v54 }
0x1420   : > { %15816 = vmatpush3.bf16.msra.mxu0 %v17039_v13  ;;  %v13529_v13 = vld [vmem:[%s20331_s16 + $0x8] sm:$0x3] }
0x1421   : > { %15817 = vmatprep.subr.bf16.mxu0 %v17370_v54 }
0x1424   : > { %15818 = vmatpush3.bf16.msra.mxu0 %v17040_v62 }
0x1425   : > { %15819 = vmatprep.subr.bf16.mxu0 %v17370_v54 }
0x1428   : > { %15820 = vmatpush3.bf16.msra.mxu0 %v17041_v51 }
0x1429   : > { %15821 = vmatprep.subr.bf16.mxu0 %v17370_v54 }
0x142c   : > { %15822 = vmatpush3.bf16.msra.mxu0 %v17042_v26 }
0x142d   : > { %15823 = vmatprep.subr.bf16.mxu0 %v17370_v54 }
0x1430   : > { %15824 = vmatpush3.bf16.msra.mxu0 %v17043_v59 }
0x1431   : > { %15825 = vmatprep.subr.bf16.mxu0 %v17370_v54 }
0x1434   : > { %15826 = vmatpush3.bf16.msra.mxu0 %v17044_v12  ;;  %v13525_v12 = vld [vmem:[%s20331_s16 + $0x4] sm:$0x3] }
0x1435   : > { %15855 = vmatprep.subr.bf16.mxu0 %v17370_v54 }
0x1437   : > { %15828 = vmatmul.mubr.bf16.vlgmr.msra.gmra.mrb[172].mxu0 %v18928_v42 }
0x1438   : > { %15857 = vmatprep.mubr.msk.bf16.mxu0 %vm17371_vm3, %v17370_v54 }
0x1482   : > { %v6245_v60 = vpop.f32.mrb[228].mxu1 }
0x1483   : > { %v15689_v47 = vpop.f32.mrb[229].mxu1 }
0x1484   : > { %v6248_v49 = vpop.f32.mrb[230].mxu1 }
0x1485   : > { %v15690_v2 = vpop.f32.mrb[231].mxu1  ;;  %v13535_v49 = vld [vmem:[%s20331_s16 + $0xe] sm:$0x3] }
0x1486   : > { %v13538_v2 = vld [vmem:[%s20331_s16 + $0x12] sm:$0x3] }
0x148a   : > { %v6157_v57 = vpop.f32.mrb[156].mxu0 }
0x148b   : > { %v6246_v5 = vadd.f32 %v6245_v60, %v6157_v57  ;;  %v15669_v16 = vpop.f32.mrb[157].mxu0  ;;  %v13533_v60 = vld [vmem:[%s20331_s16 + $0xc] sm:$0x3]  ;;  %v13546_v57 = vld [vmem:[%s20331_s16 + $0x1a] sm:$0x3] }
0x148c   : > { %v6160_v14 = vpop.f32.mrb[158].mxu0  ;;  %v13541_v16 = vld [vmem:[%s20331_s16 + $0x14] sm:$0x3] }
0x148d   : > { %v6974_v17 = vadd.f32 %v19190_v4, %v6246_v5  ;;  %v15670_v22 = vpop.f32.mrb[159].mxu0  ;;  %v13545_v5 = vld [vmem:[%s20331_s16 + $0x18] sm:$0x3]  ;;  %v13549_v14 = vld [vmem:[%s20331_s16 + $0x1c] sm:$0x3] }
0x148e   : > { %v13551_v22 = vld [vmem:[%s20331_s16 + $0x1e] sm:$0x3] }
0x148f   : > { %v6975_v42 = vmax.f32 %v6974_v17, 0.0  ;;  %v13543_v17 = vld [vmem:[%s20331_s16 + $0x16] sm:$0x3] }
0x1491   : > { %v6976_v24 = vpack.c.bf16 %v6975_v42, %v6975_v42  ;;  %v17045_v42 = vld [vmem:[%s20332_s17 + $0x40] sm:$0xff]  }
0x1493   : > { %v19194_v33 = vand.u32 %v6976_v24, %v18828_v11  ;;  %v17046_v24 = vld [vmem:[%s20332_s17 + $0x48] sm:$0xff]  }
0x1495   : > { %15832 = vmatpush3.bf16.msra.mxu1 %v19194_v33  ;;  %15856 = vmatpush3.bf16.msra.mxu0 %v19194_v33 }
0x1496   : > { %15837 = vmatprep.subr.bf16.mxu1 %v17370_v54  ;;  %15861 = vmatprep.subr.bf16.mxu0 %v17370_v54 }
0x1498   : > { %15834 = vmatmul.mubr.msk.bf16.vlgmr.msra.gmra.mrb[244].mxu1 %vm5837_vm8, %v13522_v34  ;;  %15858 = vmatmul.mubr.msk.bf16.vlgmr.msra.gmra.mrb[176].mxu0 %vm5837_vm8, %v13530_v35  ;;  %v17048_v34 = vld [vmem:[%s20332_s17 + $0x58] sm:$0xff]   ;;  %v17056_v35 = vld [vmem:[%s20332_s17 + $0x80] sm:$0xff]  }
0x1499   : > { %15839 = vmatprep.mubr.msk.bf16.mxu1 %vm17371_vm3, %v17370_v54  ;;  %15863 = vmatprep.mubr.msk.bf16.mxu0 %vm17371_vm3, %v17370_v54 }
0x14a2   : > { %v6455_v41 = vpop.f32.mrb[232].mxu1 }
0x14a3   : > { %v15729_v43 = vpop.f32.mrb[233].mxu1 }
0x14a4   : > { %v6458_v44 = vpop.f32.mrb[234].mxu1  ;;  %v17060_v43 = vld [vmem:[%s20332_s17 + $0x90] sm:$0xff]  }
0x14a5   : > { %v15730_v52 = vpop.f32.mrb[235].mxu1  ;;  %v17062_v44 = vld [vmem:[%s20332_s17 + $0x98] sm:$0xff]  }
0x14aa   : > { %v6367_v1 = vpop.f32.mrb[160].mxu0 }
0x14ab   : > { %v6456_v15 = vadd.f32 %v6455_v41, %v6367_v1  ;;  %v15709_v18 = vpop.f32.mrb[161].mxu0  ;;  %v17058_v41 = vld [vmem:[%s20332_s17 + $0x88] sm:$0xff]  }
0x14ac   : > { %v6370_v19 = vpop.f32.mrb[162].mxu0 }
0x14ad   : > { %v15710_v20 = vpop.f32.mrb[163].mxu0  ;;  %v6977_v61 = vadd.f32 %v19190_v4, %v6456_v15  ;;  %v17049_v15 = vld [vmem:[%s20332_s17 + $0x20] sm:$0xff]  }
0x14af   : > { %v6978_v25 = vmax.f32 %v6977_v61, 0.0 }
0x14b1   : > { %v6979_v32 = vpack.c.bf16 %v6978_v25, %v6978_v25 }
0x14b3   : > { %v7084_v62 = vand.u32 %v6979_v32, %v18828_v11  ;;  %v17067_v32 = vld [vmem:[%s20332_s17 + $0xd0] sm:$0xff]  }
0x14c2   : > { %v6665_v21 = vpop.f32.mrb[236].mxu1 }
0x14c3   : > { %v15769_v27 = vpop.f32.mrb[237].mxu1 }
0x14c4   : > { %v6668_v28 = vpop.f32.mrb[238].mxu1 }
0x14c5   : > { %v15770_v29 = vpop.f32.mrb[239].mxu1 }
0x14ca   : > { %v6577_v31 = vpop.f32.mrb[164].mxu0 }
0x14cb   : > { %v6666_v36 = vadd.f32 %v6665_v21, %v6577_v31  ;;  %v15749_v37 = vpop.f32.mrb[165].mxu0  ;;  %v17050_v31 = vld [vmem:[%s20332_s17 + $0x28] sm:$0xff]  }
0x14cc   : > { %v6580_v38 = vpop.f32.mrb[166].mxu0  ;;  %v17052_v37 = vld [vmem:[%s20332_s17 + $0x38] sm:$0xff]  }
0x14cd   : > { %v15750_v40 = vpop.f32.mrb[167].mxu0  ;;  %v17053_v38 = vld [vmem:[%s20332_s17 + $0x60] sm:$0xff]  }
0x14e2   : > { %v6876_v23 = vpop.f32.mrb[240].mxu1 }
0x14e3   : > { %v15809_v30 = vpop.f32.mrb[241].mxu1 }
0x14e4   : > { %v6879_v48 = vpop.f32.mrb[242].mxu1  ;;  %v17055_v30 = vld [vmem:[%s20332_s17 + $0x70] sm:$0xff]  }
0x14e5   : > { %v15810_v58 = vpop.f32.mrb[243].mxu1  ;;  %v17057_v48 = vld [vmem:[%s20332_s17 + $0x78] sm:$0xff]  }
0x14e6   : > { %v17059_v58 = vld [vmem:[%s20332_s17 + $0xa0] sm:$0xff]  }
0x14ea   : > { %v6770_v39 = vpop.f32.mrb[168].mxu0 }
0x14eb   : > { %v6776_v50 = vadd.f32 %v6770_v39, %v6666_v36  ;;  %v15789_v53 = vpop.f32.mrb[169].mxu0  ;;  %v17051_v36 = vld [vmem:[%s20332_s17 + $0x30] sm:$0xff]   ;;  %v17061_v39 = vld [vmem:[%s20332_s17 + $0xa8] sm:$0xff]  }
0x14ec   : > { %v6773_v0 = vpop.f32.mrb[170].mxu0 }
0x14ed   : > { %v6882_v55 = vadd.f32 %v6876_v23, %v6776_v50  ;;  %v15790_v56 = vpop.f32.mrb[171].mxu0  ;;  %v17054_v23 = vld [vmem:[%s20332_s17 + $0x68] sm:$0xff]   ;;  %v17063_v50 = vld [vmem:[%s20332_s17 + $0xb0] sm:$0xff]   ;;  %v17064_v0 = vld [vmem:[%s20332_s17 + $0xc0] sm:$0xff]  }
0x14ef   : > { %v6980_v51 = vadd.f32 %v19190_v4, %v6882_v55  ;;  %v17065_v55 = vld [vmem:[%s20332_s17 + $0xb8] sm:$0xff]  }
0x14f1   : > { %v6981_v26 = vmax.f32 %v6980_v51, 0.0  ;;  %v17076_v51 = vld [vmem:[%s20332_s17 + $0x118] sm:$0xff]  }
0x14f3   : > { %v6982_v59 = vpack.c.bf16 %v6981_v26, %v6981_v26  ;;  %v17071_v26 = vld [vmem:[%s20332_s17 + $0xe8] sm:$0xff]  }
0x14f5   : > { %v7133_v47 = vand.u32 %v6982_v59, %v18828_v11 }
0x150a   : > { %v6966_v3 = vpop.f32.mrb[172].mxu0 }
0x150b   : > { %v6967_v7 = vadd.f32 %v6966_v3, %v19190_v4  ;;  %v15829_v6 = vpop.f32.mrb[173].mxu0  ;;  %v13537_v4 = vld [vmem:[%s20331_s16 + $0x10] sm:$0x3] }
0x150c   : > { %v6969_v9 = vpop.f32.mrb[174].mxu0 }
0x150d   : > { %v6972_v10 = vmax.f32 %v6967_v7, 0.0  ;;  %v15830_v45 = vpop.f32.mrb[175].mxu0 }
0x150e   : > { %v17066_v45 = vld [vmem:[%s20332_s17 + $0xc8] sm:$0xff]  }
0x150f   : > { %v6973_v46 = vpack.c.bf16 %v6972_v10, %v6972_v10 }
0x1511   : > { %v7036_v8 = vand.u32 %v6973_v46, %v18828_v11  ;;  %v13527_v11 = vld [vmem:[%s20331_s16 + $0x6] sm:$0x3] }
0x1512   : > { %v17070_v46 = vld [vmem:[%s20332_s17 + $0x100] sm:$0xff]  }
0x1513   : > { %15838 = vmatpush3.bf16.msra.mxu1 %v7036_v8  ;;  %15862 = vmatpush3.bf16.msra.mxu0 %v7036_v8 }
0x1514   : > { %15843 = vmatprep.subr.bf16.mxu1 %v17370_v54  ;;  %15867 = vmatprep.subr.bf16.mxu0 %v17370_v54 }
0x1516   : > { %15840 = vmatmul.mubr.msk.bf16.vlgmr.msra.gmra.mrb[244].mxu1 %vm5837_vm8, %v6983_v63  ;;  %15864 = vmatmul.mubr.msk.bf16.vlgmr.msra.gmra.mrb[176].mxu0 %vm5837_vm8, %v13529_v13  ;;  %v17068_v63 = vld [vmem:[%s20332_s17 + $0xd8] sm:$0xff]   ;;  %v17074_v13 = vld [vmem:[%s20332_s17 + $0x110] sm:$0xff]  }
0x1517   : > { %15844 = vmatpush3.bf16.msra.mxu1 %v7084_v62  ;;  %15868 = vmatpush3.bf16.msra.mxu0 %v7084_v62 }
0x1518   : > { %15845 = vmatprep.mubr.msk.bf16.mxu1 %vm17371_vm3, %v17370_v54  ;;  %15849 = vmatprep.subr.bf16.mxu1 %v17370_v54 }
0x1519   : > { %15869 = vmatprep.mubr.msk.bf16.mxu0 %vm17371_vm3, %v17370_v54  ;;  %15873 = vmatprep.subr.bf16.mxu0 %v17370_v54 }
0x1522   : > { %15846 = vmatmul.mubr.msk.bf16.vlgmr.msra.gmra.mrb[244].mxu1 %vm5837_vm8, %v13525_v12  ;;  %15870 = vmatmul.mubr.msk.bf16.vlgmr.msra.gmra.mrb[176].mxu0 %vm5837_vm8, %v13533_v60  ;;  %v17073_v12 = vld [vmem:[%s20332_s17 + $0xf0] sm:$0xff]   ;;  %v17075_v60 = vld [vmem:[%s20332_s17 + $0xf8] sm:$0xff]  }
0x1523   : > { %15850 = vmatpush3.bf16.msra.mxu1 %v7133_v47  ;;  %15874 = vmatpush3.bf16.msra.mxu0 %v7133_v47 }
0x1524   : > { %15851 = vmatprep.mubr.msk.bf16.mxu1 %vm17371_vm3, %v17370_v54  ;;  %15875 = vmatprep.mubr.msk.bf16.mxu0 %vm17371_vm3, %v17370_v54 }
0x1525   : > { %15879 = vmatprep.subr.bf16.mxu1 %v17370_v54  ;;  %15903 = vmatprep.subr.bf16.mxu0 %v17370_v54 }
0x152e   : > { %15852 = vmatmul.mubr.msk.bf16.vlgmr.msra.gmra.mrb[244].mxu1 %vm5837_vm8, %v13527_v11  ;;  %15876 = vmatmul.mubr.msk.bf16.vlgmr.msra.gmra.mrb[176].mxu0 %vm5837_vm8, %v13535_v49  ;;  %v17078_v11 = vld [vmem:[%s20332_s17 + $0x8] sm:$0xff]   ;;  %v17079_v49 = vld [vmem:[%s20332_s17 + $0x10] sm:$0xff]  }
0x152f   : > { %15880 = vmatpush3.bf16.msra.mxu1 %v19194_v33  ;;  %15904 = vmatpush3.bf16.msra.mxu0 %v19194_v33  ;;  %v17047_v33 = vld [vmem:[%s20332_s17 + $0x50] sm:$0xff]  }
0x1530   : > { %15881 = vmatprep.mubr.msk.bf16.mxu1 %vm17371_vm3, %v17370_v54  ;;  %15885 = vmatprep.subr.bf16.mxu1 %v17370_v54 }
0x1531   : > { %15905 = vmatprep.mubr.msk.bf16.mxu0 %vm17371_vm3, %v17370_v54  ;;  %15909 = vmatprep.subr.bf16.mxu0 %v17370_v54 }
0x1536   : > { %15882 = vmatmul.mubr.msk.bf16.vlgmr.msra.gmra.mrb[248].mxu1 %vm5837_vm8, %v13538_v2  ;;  %15906 = vmatmul.mubr.msk.bf16.vlgmr.msra.gmra.mrb[180].mxu0 %vm5837_vm8, %v13546_v57  ;;  %v17080_v2 = vld [vmem:[%s20332_s17 + $0x18] sm:$0xff]  }
0x1537   : > { %15886 = vmatpush3.bf16.msra.mxu1 %v7036_v8  ;;  %15910 = vmatpush3.bf16.msra.mxu0 %v7036_v8  ;;  %v17072_v8 = vld [vmem:[%s20332_s17 + $0x108] sm:$0xff]  }
0x1538   : > { %15887 = vmatprep.mubr.msk.bf16.mxu1 %vm17371_vm3, %v17370_v54  ;;  %15891 = vmatprep.subr.bf16.mxu1 %v17370_v54 }
0x1539   : > { %15911 = vmatprep.mubr.msk.bf16.mxu0 %vm17371_vm3, %v17370_v54  ;;  %15915 = vmatprep.subr.bf16.mxu0 %v17370_v54 }
0x1542   : > { %15888 = vmatmul.mubr.msk.bf16.vlgmr.msra.gmra.mrb[248].mxu1 %vm5837_vm8, %v13537_v4  ;;  %15912 = vmatmul.mubr.msk.bf16.vlgmr.msra.gmra.mrb[180].mxu0 %vm5837_vm8, %v13545_v5 }
0x1543   : > { %15892 = vmatpush3.bf16.msra.mxu1 %v7084_v62  ;;  %15916 = vmatpush3.bf16.msra.mxu0 %v7084_v62  ;;  %v17069_v62 = vld [vmem:[%s20332_s17 + $0xe0] sm:$0xff]  }
0x1544   : > { %15893 = vmatprep.mubr.msk.bf16.mxu1 %vm17371_vm3, %v17370_v54  ;;  %15897 = vmatprep.subr.bf16.mxu1 %v17370_v54 }
0x1545   : > { %15917 = vmatprep.mubr.msk.bf16.mxu0 %vm17371_vm3, %v17370_v54  ;;  %15921 = vmatprep.subr.bf16.mxu0 %v17370_v54 }
0x154e   : > { %15894 = vmatmul.mubr.msk.bf16.vlgmr.msra.gmra.mrb[248].mxu1 %vm5837_vm8, %v13541_v16  ;;  %15918 = vmatmul.mubr.msk.bf16.vlgmr.msra.gmra.mrb[180].mxu0 %vm5837_vm8, %v13549_v14 }
0x154f   : > { %15898 = vmatpush3.bf16.msra.mxu1 %v7133_v47  ;;  %15922 = vmatpush3.bf16.msra.mxu0 %v7133_v47  ;;  %v17077_v47 = vld [vmem:[%s20332_s17] sm:$0xff]  }
0x1550   : > { %15899 = vmatprep.mubr.msk.bf16.mxu1 %vm17371_vm3, %v17370_v54  ;;  %15923 = vmatprep.mubr.msk.bf16.mxu0 %vm17371_vm3, %v17370_v54 }
0x1551   : > { %15927 = vmatprep.subr.bf16.mxu1 %v17370_v54  ;;  %15951 = vmatprep.subr.bf16.mxu0 %v17370_v54 }
0x155a   : > { %15900 = vmatmul.mubr.msk.bf16.vlgmr.msra.gmra.mrb[248].mxu1 %vm5837_vm8, %v13543_v17  ;;  %15924 = vmatmul.mubr.msk.bf16.vlgmr.msra.gmra.mrb[180].mxu0 %vm5837_vm8, %v13551_v22  ;;  %v19502_v17 = vld [vmem:[%s20333_s18] ss:$0 sm:$0xff] }
0x155b   : > { %15928 = vmatpush3.bf16.msra.mxu1 %v17045_v42  ;;  %15935 = vmatprep.mubr.msk.bf16.mxu1 %vm17371_vm3, %v17370_v54 }
0x155c   : > { %15929 = vmatprep.subr.bf16.mxu1 %v17370_v54  ;;  %15959 = vmatprep.mubr.msk.bf16.mxu0 %vm17371_vm3, %v17370_v54 }
0x155d   : > { %15952 = vmatpush3.bf16.msra.mxu0 %v17056_v35 }
0x155e   : > { %15953 = vmatprep.subr.bf16.mxu0 %v17370_v54 }
0x155f   : > { %15930 = vmatpush3.bf16.msra.mxu1 %v17046_v24 }
0x1560   : > { %15931 = vmatprep.subr.bf16.mxu1 %v17370_v54 }
0x1561   : > { %15954 = vmatpush3.bf16.msra.mxu0 %v17058_v41 }
0x1562   : > { %15955 = vmatprep.subr.bf16.mxu0 %v17370_v54 }
0x1563   : > { %15932 = vmatpush3.bf16.msra.mxu1 %v17047_v33 }
0x1564   : > { %15933 = vmatprep.subr.bf16.mxu1 %v17370_v54 }
0x1565   : > { %15956 = vmatpush3.bf16.msra.mxu0 %v17060_v43 }
0x1566   : > { %15957 = vmatprep.subr.bf16.mxu0 %v17370_v54 }
0x1567   : > { %15934 = vmatpush3.bf16.msra.mxu1 %v17048_v34 }
0x1568   : > { %15939 = vmatprep.subr.bf16.mxu1 %v17370_v54 }
0x1569   : > { %15958 = vmatpush3.bf16.msra.mxu0 %v17062_v44  ;;  %v17081_v44 = vld [vmem:[%s20334_s19 + $0x8] sm:$0xff]  }
0x156a   : > { %15975 = vmatprep.subr.bf16.mxu0 %v17370_v54 }
0x1601   : > { %v7169_v52 = vpop.f32.mrb[244].mxu1  ;;  %v7352_v1 = vpop.f32.mrb[176].mxu0 }
0x1602   : > { %v19353_v18 = vpack.c.bf16 %v7352_v1, %v7352_v1  ;;  %v15853_v19 = vpop.f32.mrb[245].mxu1  ;;  %v15877_v20 = vpop.f32.mrb[177].mxu0  ;;  %v19374_v40 = vpack.c.bf16 %v7169_v52, %v7169_v52  ;;  %v17082_v52 = vld [vmem:[%s20334_s19 + $0x28] sm:$0xff]  }
0x1603   : > { %v7172_v21 = vpop.f32.mrb[246].mxu1  ;;  %v7355_v27 = vpop.f32.mrb[178].mxu0 }
0x1604   : > { %v15854_v28 = vpop.f32.mrb[247].mxu1  ;;  %15936 = vmatmul.mubr.msk.bf16.vlgmr.msra.gmra.mrb[252].mxu1 %vm2782_vm4, %v19353_v18  ;;  %v15878_v29 = vpop.f32.mrb[179].mxu0 }
0x1605   : > { %15940 = vmatpush3.bf16.msra.mxu1 %v17049_v15  ;;  %15947 = vmatprep.mubr.msk.bf16.mxu1 %vm17371_vm3, %v17370_v54 }
0x1606   : > { %15941 = vmatprep.subr.bf16.mxu1 %v17370_v54 }
0x1609   : > { %15942 = vmatpush3.bf16.msra.mxu1 %v17050_v31 }
0x160a   : > { %15943 = vmatprep.subr.bf16.mxu1 %v17370_v54 }
0x160d   : > { %15944 = vmatpush3.bf16.msra.mxu1 %v17051_v36 }
0x160e   : > { %15945 = vmatprep.subr.bf16.mxu1 %v17370_v54 }
0x1611   : > { %15946 = vmatpush3.bf16.msra.mxu1 %v17052_v37 }
0x1612   : > { %15963 = vmatprep.subr.bf16.mxu1 %v17370_v54 }
0x1614   : > { %15948 = vmatmul.mubr.msk.bf16.vlgmr.msra.gmra.mrb[0].mxu1 %vm2782_vm4, %v19374_v40 }
0x1615   : > { %15964 = vmatpush3.bf16.msra.mxu1 %v17053_v38  ;;  %15971 = vmatprep.mubr.msk.bf16.mxu1 %vm17371_vm3, %v17370_v54 }
0x1616   : > { %15965 = vmatprep.subr.bf16.mxu1 %v17370_v54 }
0x1619   : > { %15966 = vmatpush3.bf16.msra.mxu1 %v17054_v23 }
0x161a   : > { %15967 = vmatprep.subr.bf16.mxu1 %v17370_v54 }
0x161d   : > { %15968 = vmatpush3.bf16.msra.mxu1 %v17055_v30 }
0x161e   : > { %15969 = vmatprep.subr.bf16.mxu1 %v17370_v54 }
0x1621   : > { %15970 = vmatpush3.bf16.msra.mxu1 %v17057_v48 }
0x1622   : > { %15987 = vmatprep.subr.bf16.mxu1 %v17370_v54 }
0x1624   : > { %15972 = vmatmul.mubr.msk.bf16.vlgmr.msra.gmra.mrb[4].mxu1 %vm2782_vm4, %v19374_v40 }
0x1625   : > { %15988 = vmatpush3.bf16.msra.mxu1 %v17059_v58  ;;  %15995 = vmatprep.mubr.msk.bf16.mxu1 %vm17371_vm3, %v17370_v54 }
0x1626   : > { %15989 = vmatprep.subr.bf16.mxu1 %v17370_v54 }
0x1629   : > { %15990 = vmatpush3.bf16.msra.mxu1 %v17061_v39 }
0x162a   : > { %15991 = vmatprep.subr.bf16.mxu1 %v17370_v54 }
0x162d   : > { %15992 = vmatpush3.bf16.msra.mxu1 %v17063_v50  ;;  %v7535_v53 = vpop.f32.mrb[248].mxu1  ;;  %v7718_v56 = vpop.f32.mrb[180].mxu0 }
0x162e   : > { %v7542_v61 = vpack.c.bf16 %v7535_v53, %v7535_v53  ;;  %v15901_v3 = vpop.f32.mrb[249].mxu1  ;;  %15993 = vmatprep.subr.bf16.mxu1 %v17370_v54  ;;  %v15925_v7 = vpop.f32.mrb[181].mxu0  ;;  %v7725_v59 = vpack.c.bf16 %v7718_v56, %v7718_v56 }
0x162f   : > { %v7538_v6 = vpop.f32.mrb[250].mxu1  ;;  %v7721_v9 = vpop.f32.mrb[182].mxu0 }
0x1630   : > { %v15902_v25 = vpop.f32.mrb[251].mxu1  ;;  %15960 = vmatmul.mubr.msk.bf16.vlgmr.msra.gmra.mrb[184].mxu0 %vm2782_vm4, %v7542_v61  ;;  %v15926_v10 = vpop.f32.mrb[183].mxu0 }
0x1631   : > { %15976 = vmatpush3.bf16.msra.mxu0 %v17064_v0  ;;  %15994 = vmatpush3.bf16.msra.mxu1 %v17065_v55 }
0x1632   : > { %15977 = vmatprep.subr.bf16.mxu0 %v17370_v54  ;;  %15983 = vmatprep.mubr.msk.bf16.mxu0 %vm17371_vm3, %v17370_v54 }
0x1633   : > { %16011 = vmatprep.subr.bf16.mxu1 %v17370_v54 }
0x1634   : > { %15996 = vmatmul.mubr.msk.bf16.vlgmr.msra.gmra.mrb[8].mxu1 %vm2782_vm4, %v19374_v40 }
0x1635   : > { %15978 = vmatpush3.bf16.msra.mxu0 %v17066_v45  ;;  %16012 = vmatpush3.bf16.msra.mxu1 %v17070_v46 }
0x1636   : > { %15979 = vmatprep.subr.bf16.mxu0 %v17370_v54  ;;  %16013 = vmatprep.subr.bf16.mxu1 %v17370_v54 }
0x1637   : > { %16019 = vmatprep.mubr.msk.bf16.mxu1 %vm17371_vm3, %v17370_v54 }
0x1639   : > { %15980 = vmatpush3.bf16.msra.mxu0 %v17067_v32  ;;  %16014 = vmatpush3.bf16.msra.mxu1 %v17072_v8 }
0x163a   : > { %15981 = vmatprep.subr.bf16.mxu0 %v17370_v54  ;;  %16015 = vmatprep.subr.bf16.mxu1 %v17370_v54 }
0x163d   : > { %15982 = vmatpush3.bf16.msra.mxu0 %v17068_v63  ;;  %16016 = vmatpush3.bf16.msra.mxu1 %v17074_v13 }
0x163e   : > { %15999 = vmatprep.subr.bf16.mxu0 %v17370_v54  ;;  %16017 = vmatprep.subr.bf16.mxu1 %v17370_v54 }
0x1640   : > { %15984 = vmatmul.mubr.msk.bf16.vlgmr.msra.gmra.mrb[188].mxu0 %vm2782_vm4, %v19353_v18 }
0x1641   : > { %16000 = vmatpush3.bf16.msra.mxu0 %v17069_v62  ;;  %16007 = vmatprep.mubr.msk.bf16.mxu0 %vm17371_vm3, %v17370_v54 }
0x1642   : > { %16001 = vmatprep.subr.bf16.mxu0 %v17370_v54  ;;  %16018 = vmatpush3.bf16.msra.mxu1 %v17076_v51 }
0x1643   : > { %16035 = vmatprep.subr.bf16.mxu1 %v17370_v54 }
0x1645   : > { %16002 = vmatpush3.bf16.msra.mxu0 %v17071_v26  ;;  %16020 = vmatmul.mubr.msk.bf16.vlgmr.msra.gmra.mrb[12].mxu1 %vm2782_vm4, %v7725_v59  ;;  %v17083_v26 = vld [vmem:[%s20334_s19] sm:$0xff]  }
0x1646   : > { %16003 = vmatprep.subr.bf16.mxu0 %v17370_v54  ;;  %16037 = vmatprep.mubr.msk.bf16.mxu1 %vm17371_vm3, %v17370_v54  ;;  %v17084_v59 = vld [vmem:[%s20334_s19 + $0x20] sm:$0xff]  }
0x1649   : > { %16004 = vmatpush3.bf16.msra.mxu0 %v17073_v12 }
0x164a   : > { %16005 = vmatprep.subr.bf16.mxu0 %v17370_v54 }
0x164d   : > { %16006 = vmatpush3.bf16.msra.mxu0 %v17075_v60 }
0x164e   : > { %16023 = vmatprep.subr.bf16.mxu0 %v17370_v54 }
0x1650   : > { %16008 = vmatmul.mubr.msk.bf16.vlgmr.msra.gmra.mrb[192].mxu0 %vm2782_vm4, %v7542_v61 }
0x1651   : > { %16024 = vmatpush3.bf16.msra.mxu0 %v17077_v47  ;;  %16031 = vmatprep.mubr.msk.bf16.mxu0 %vm17371_vm3, %v17370_v54 }
0x1652   : > { %16025 = vmatprep.subr.bf16.mxu0 %v17370_v54 }
0x1655   : > { %16026 = vmatpush3.bf16.msra.mxu0 %v17078_v11 }
0x1656   : > { %16027 = vmatprep.subr.bf16.mxu0 %v17370_v54 }
0x1659   : > { %16028 = vmatpush3.bf16.msra.mxu0 %v17079_v49  ;;  %v17085_v49 = vld [vmem:[%s20334_s19 + $0x10] sm:$0xff]  }
0x165a   : > { %16029 = vmatprep.subr.bf16.mxu0 %v17370_v54 }
0x165d   : > { %16030 = vmatpush3.bf16.msra.mxu0 %v17080_v2  ;;  %v17086_v2 = vld [vmem:[%s20334_s19 + $0x30] sm:$0xff]  }
0x165e   : > { %16059 = vmatprep.subr.bf16.mxu0 %v17370_v54 }
0x1660   : > { %16032 = vmatmul.mubr.msk.bf16.vlgmr.msra.gmra.mrb[196].mxu0 %vm2782_vm4, %v19374_v40 }
0x1661   : > { %16061 = vmatprep.mubr.msk.bf16.mxu0 %vm17371_vm3, %v17370_v54 }
0x16d7   : > { %v7813_v57 = vpop.f32.mrb[252].mxu1 }
0x16d8   : > { %v15937_v4 = vpop.f32.mrb[253].mxu1 }
0x16d9   : > { %v7816_v5 = vpop.f32.mrb[254].mxu1  ;;  %v17087_v4 = vld [vmem:[%s20334_s19 + $0x18] sm:$0xff]  }
0x16da   : > { %v15938_v16 = vpop.f32.mrb[255].mxu1  ;;  %v17088_v5 = vld [vmem:[%s20334_s19 + $0x38] sm:$0xff]  }
0x16db   : > { %v17089_v16 = vld [vmem:[%s20334_s19 + $0x48] sm:$0xff]  }
0x16e7   : > { %v7880_v14 = vpop.f32.mrb[0].mxu1 }
0x16e8   : > { %v7881_v22 = vadd.f32 %v7880_v14, %v7813_v57  ;;  %v15949_v42 = vpop.f32.mrb[1].mxu1  ;;  %v17090_v14 = vld [vmem:[%s20334_s19 + $0x68] sm:$0xff]  }
0x16e9   : > { %v7883_v24 = vpop.f32.mrb[2].mxu1  ;;  %v17093_v42 = vld [vmem:[%s20334_s19 + $0x50] sm:$0xff]  }
0x16ea   : > { %v8405_v33 = vadd.f32 %v19502_v17, %v7881_v22  ;;  %v15950_v34 = vpop.f32.mrb[3].mxu1  ;;  %v17092_v22 = vld [vmem:[%s20334_s19 + $0x60] sm:$0xff]   ;;  %v17094_v24 = vld [vmem:[%s20334_s19 + $0x70] sm:$0xff]  }
0x16eb   : > { %v17096_v34 = vld [vmem:[%s20334_s19 + $0x78] sm:$0xff]  }
0x16ec   : > { %v8406_v35 = vmax.f32 %v8405_v33, 0.0  ;;  %v17095_v33 = vld [vmem:[%s20334_s19 + $0x58] sm:$0xff]  }
0x16ee   : > { %v8407_v41 = vpack.c.bf16 %v8406_v35, %v8406_v35  ;;  %v17097_v35 = vld [vmem:[%s20335_s20 + $0x20] sm:$0xff]  }
0x16f0   : > { %v19506_v43 = vsel %vm1141_vm1, %v8407_v41, 0  ;;  %v17098_v41 = vld [vmem:[%s20335_s20 + $0x28] sm:$0xff]  }
0x16f1   : > { %16036 = vmatpush3.bf16.msra.mxu1 %v19506_v43  ;;  %16060 = vmatpush3.bf16.msra.mxu0 %v19506_v43 }
0x16f2   : > { %16041 = vmatprep.subr.bf16.mxu1 %v17370_v54  ;;  %16065 = vmatprep.subr.bf16.mxu0 %v17370_v54 }
0x16f4   : > { %16038 = vmatmul.mubr.msk.bf16.vlgmr.msra.gmra.mrb[16].mxu1 %vm4726_vm7, %v17081_v44  ;;  %16062 = vmatmul.mubr.msk.bf16.vlgmr.msra.gmra.mrb[200].mxu0 %vm4726_vm7, %v17082_v52  ;;  %v17106_v44 = vld [vmem:[%s20335_s20 + $0x48] sm:$0xff]  }
0x16f5   : > { %16043 = vmatprep.mubr.msk.bf16.mxu1 %vm17371_vm3, %v17370_v54  ;;  %16067 = vmatprep.mubr.msk.bf16.mxu0 %vm17371_vm3, %v17370_v54 }
0x16f7   : > { %v8029_v1 = vpop.f32.mrb[4].mxu1 }
0x16f8   : > { %v15973_v15 = vpop.f32.mrb[5].mxu1 }
0x16f9   : > { %v8032_v18 = vpop.f32.mrb[6].mxu1 }
0x16fa   : > { %v15974_v19 = vpop.f32.mrb[7].mxu1 }
0x1703   : > { %v7965_v20 = vpop.f32.mrb[184].mxu0 }
0x1704   : > { %v8030_v21 = vadd.f32 %v8029_v1, %v7965_v20  ;;  %v15961_v27 = vpop.f32.mrb[185].mxu0 }
0x1705   : > { %v7968_v28 = vpop.f32.mrb[186].mxu0 }
0x1706   : > { %v15962_v29 = vpop.f32.mrb[187].mxu0  ;;  %v8408_v9 = vadd.f32 %v19502_v17, %v8030_v21  ;;  %v17099_v21 = vld [vmem:[%s20335_s20 + $0x10] sm:$0xff]  }
0x1707   : > { %v8175_v31 = vpop.f32.mrb[8].mxu1 }
0x1708   : > { %v15997_v36 = vpop.f32.mrb[9].mxu1  ;;  %v8409_v32 = vmax.f32 %v8408_v9, 0.0  ;;  %v17108_v9 = vld [vmem:[%s20335_s20 + $0x68] sm:$0xff]  }
0x1709   : > { %v8178_v37 = vpop.f32.mrb[10].mxu1  ;;  %v17100_v36 = vld [vmem:[%s20335_s20 + $0x18] sm:$0xff]  }
0x170a   : > { %v15998_v38 = vpop.f32.mrb[11].mxu1  ;;  %v8410_v62 = vpack.c.bf16 %v8409_v32, %v8409_v32  ;;  %v17101_v37 = vld [vmem:[%s20335_s20 + $0x30] sm:$0xff]   ;;  %v17115_v32 = vld [vmem:[%s20337_s22 + $0x20] sm:$0xff]  }
0x170b   : > { %v17102_v38 = vld [vmem:[%s20335_s20 + $0x38] sm:$0xff]  }
0x170c   : > { %v8535_v60 = vsel %vm1141_vm1, %v8410_v62, 0 }
0x1713   : > { %v8111_v40 = vpop.f32.mrb[188].mxu0 }
0x1714   : > { %v8176_v23 = vadd.f32 %v8175_v31, %v8111_v40  ;;  %v15985_v30 = vpop.f32.mrb[189].mxu0  ;;  %v17103_v40 = vld [vmem:[%s20335_s20 + $0x50] sm:$0xff]  }
0x1715   : > { %v8114_v48 = vpop.f32.mrb[190].mxu0  ;;  %v17110_v30 = vld [vmem:[%s20335_s20 + $0x80] sm:$0xff]  }
0x1716   : > { %v15986_v58 = vpop.f32.mrb[191].mxu0  ;;  %v17112_v48 = vld [vmem:[%s20335_s20 + $0x88] sm:$0xff]  }
0x1718   : > { %v8325_v39 = vpop.f32.mrb[12].mxu1 }
0x1719   : > { %v16021_v50 = vpop.f32.mrb[13].mxu1 }
0x171a   : > { %v8328_v53 = vpop.f32.mrb[14].mxu1 }
0x171b   : > { %v16022_v0 = vpop.f32.mrb[15].mxu1 }
0x1723   : > { %v8248_v55 = vpop.f32.mrb[192].mxu0 }
0x1724   : > { %v8254_v56 = vadd.f32 %v8248_v55, %v8176_v23  ;;  %v16009_v61 = vpop.f32.mrb[193].mxu0  ;;  %v17104_v23 = vld [vmem:[%s20335_s20 + $0x58] sm:$0xff]   ;;  %v17107_v55 = vld [vmem:[%s20335_s20 + $0x60] sm:$0xff]  }
0x1725   : > { %v8251_v3 = vpop.f32.mrb[194].mxu0 }
0x1726   : > { %v8331_v7 = vadd.f32 %v8325_v39, %v8254_v56  ;;  %v16010_v6 = vpop.f32.mrb[195].mxu0 }
0x1728   : > { %v8411_v12 = vadd.f32 %v19502_v17, %v8331_v7 }
0x172a   : > { %v8412_v47 = vmax.f32 %v8411_v12, 0.0 }
0x172c   : > { %v8413_v11 = vpack.c.bf16 %v8412_v47, %v8412_v47 }
0x172e   : > { %v8592_v57 = vsel %vm1141_vm1, %v8413_v11, 0 }
0x1733   : > { %v8397_v25 = vpop.f32.mrb[196].mxu0 }
0x1734   : > { %v8398_v10 = vadd.f32 %v19502_v17, %v8397_v25  ;;  %v16033_v45 = vpop.f32.mrb[197].mxu0  ;;  %v17091_v17 = vld [vmem:[%s20334_s19 + $0x40] sm:$0xff]   ;;  %v17109_v25 = vld [vmem:[%s20335_s20 + $0x70] sm:$0xff]  }
0x1735   : > { %v8400_v46 = vpop.f32.mrb[198].mxu0  ;;  %v17113_v45 = vld [vmem:[%s20335_s20] sm:$0xff]  }
0x1736   : > { %v8403_v8 = vmax.f32 %v8398_v10, 0.0  ;;  %v16034_v63 = vpop.f32.mrb[199].mxu0  ;;  %v17111_v10 = vld [vmem:[%s20335_s20 + $0x78] sm:$0xff]   ;;  %v17114_v46 = vld [vmem:[%s20335_s20 + $0x8] sm:$0xff]  }
0x1738   : > { %v8404_v13 = vpack.c.bf16 %v8403_v8, %v8403_v8  ;;  %v17116_v8 = vld [vmem:[%s20337_s22 + $0xa0] sm:$0xff]  }
0x173a   : > { %v8480_v51 = vsel %vm1141_vm1, %v8404_v13, 0 }
0x173b   : > { %16042 = vmatpush3.bf16.msra.mxu1 %v8480_v51  ;;  %16066 = vmatpush3.bf16.msra.mxu0 %v8480_v51 }
0x173c   : > { %16047 = vmatprep.subr.bf16.mxu1 %v17370_v54  ;;  %16071 = vmatprep.subr.bf16.mxu0 %v17370_v54 }
0x173e   : > { %16044 = vmatmul.mubr.msk.bf16.vlgmr.msra.gmra.mrb[16].mxu1 %vm4726_vm7, %v17083_v26  ;;  %16068 = vmatmul.mubr.msk.bf16.vlgmr.msra.gmra.mrb[200].mxu0 %vm4726_vm7, %v17084_v59  ;;  %v19740_v26 = vld [vmem:[%s20336_s21] ss:$0 sm:$0xff] }
0x173f   : > { %16048 = vmatpush3.bf16.msra.mxu1 %v8535_v60  ;;  %16072 = vmatpush3.bf16.msra.mxu0 %v8535_v60 }
0x1740   : > { %16049 = vmatprep.mubr.msk.bf16.mxu1 %vm17371_vm3, %v17370_v54  ;;  %16053 = vmatprep.subr.bf16.mxu1 %v17370_v54 }
0x1741   : > { %16073 = vmatprep.mubr.msk.bf16.mxu0 %vm17371_vm3, %v17370_v54  ;;  %16077 = vmatprep.subr.bf16.mxu0 %v17370_v54 }
0x174a   : > { %16050 = vmatmul.mubr.msk.bf16.vlgmr.msra.gmra.mrb[16].mxu1 %vm4726_vm7, %v17085_v49  ;;  %16074 = vmatmul.mubr.msk.bf16.vlgmr.msra.gmra.mrb[200].mxu0 %vm4726_vm7, %v17086_v2 }
0x174b   : > { %16054 = vmatpush3.bf16.msra.mxu1 %v8592_v57  ;;  %16078 = vmatpush3.bf16.msra.mxu0 %v8592_v57 }
0x174c   : > { %16055 = vmatprep.mubr.msk.bf16.mxu1 %vm17371_vm3, %v17370_v54  ;;  %16079 = vmatprep.mubr.msk.bf16.mxu0 %vm17371_vm3, %v17370_v54 }
0x174d   : > { %16083 = vmatprep.subr.bf16.mxu1 %v17370_v54  ;;  %16107 = vmatprep.subr.bf16.mxu0 %v17370_v54 }
0x1756   : > { %16056 = vmatmul.mubr.msk.bf16.vlgmr.msra.gmra.mrb[16].mxu1 %vm4726_vm7, %v17087_v4  ;;  %16080 = vmatmul.mubr.msk.bf16.vlgmr.msra.gmra.mrb[200].mxu0 %vm4726_vm7, %v17088_v5 }
0x1757   : > { %16084 = vmatpush3.bf16.msra.mxu1 %v19506_v43  ;;  %16108 = vmatpush3.bf16.msra.mxu0 %v19506_v43  ;;  %v17105_v43 = vld [vmem:[%s20335_s20 + $0x40] sm:$0xff]  }
0x1758   : > { %16085 = vmatprep.mubr.msk.bf16.mxu1 %vm17371_vm3, %v17370_v54  ;;  %16089 = vmatprep.subr.bf16.mxu1 %v17370_v54 }
0x1759   : > { %16109 = vmatprep.mubr.msk.bf16.mxu0 %vm17371_vm3, %v17370_v54  ;;  %16113 = vmatprep.subr.bf16.mxu0 %v17370_v54 }
0x175e   : > { %16086 = vmatmul.mubr.msk.bf16.vlgmr.msra.gmra.mrb[20].mxu1 %vm4726_vm7, %v17089_v16  ;;  %16110 = vmatmul.mubr.msk.bf16.vlgmr.msra.gmra.mrb[204].mxu0 %vm4726_vm7, %v17090_v14 }
0x175f   : > { %16090 = vmatpush3.bf16.msra.mxu1 %v8480_v51  ;;  %16114 = vmatpush3.bf16.msra.mxu0 %v8480_v51 }
0x1760   : > { %16091 = vmatprep.mubr.msk.bf16.mxu1 %vm17371_vm3, %v17370_v54  ;;  %16095 = vmatprep.subr.bf16.mxu1 %v17370_v54 }
0x1761   : > { %16115 = vmatprep.mubr.msk.bf16.mxu0 %vm17371_vm3, %v17370_v54  ;;  %16119 = vmatprep.subr.bf16.mxu0 %v17370_v54 }
0x176a   : > { %16092 = vmatmul.mubr.msk.bf16.vlgmr.msra.gmra.mrb[20].mxu1 %vm4726_vm7, %v17091_v17  ;;  %16116 = vmatmul.mubr.msk.bf16.vlgmr.msra.gmra.mrb[204].mxu0 %vm4726_vm7, %v17092_v22 }
0x176b   : > { %16096 = vmatpush3.bf16.msra.mxu1 %v8535_v60  ;;  %16120 = vmatpush3.bf16.msra.mxu0 %v8535_v60 }
0x176c   : > { %16097 = vmatprep.mubr.msk.bf16.mxu1 %vm17371_vm3, %v17370_v54  ;;  %16101 = vmatprep.subr.bf16.mxu1 %v17370_v54 }
0x176d   : > { %16121 = vmatprep.mubr.msk.bf16.mxu0 %vm17371_vm3, %v17370_v54  ;;  %16125 = vmatprep.subr.bf16.mxu0 %v17370_v54 }
0x1776   : > { %16098 = vmatmul.mubr.msk.bf16.vlgmr.msra.gmra.mrb[20].mxu1 %vm4726_vm7, %v17093_v42  ;;  %16122 = vmatmul.mubr.msk.bf16.vlgmr.msra.gmra.mrb[204].mxu0 %vm4726_vm7, %v17094_v24  ;;  %v17117_v42 = vld [vmem:[%s20337_s22 + $0x28] sm:$0xff]  }
0x1777   : > { %16102 = vmatpush3.bf16.msra.mxu1 %v8592_v57  ;;  %16126 = vmatpush3.bf16.msra.mxu0 %v8592_v57  ;;  %v17118_v24 = vld [vmem:[%s20337_s22 + $0xa8] sm:$0xff]  }
0x1778   : > { %16103 = vmatprep.mubr.msk.bf16.mxu1 %vm17371_vm3, %v17370_v54  ;;  %16127 = vmatprep.mubr.msk.bf16.mxu0 %vm17371_vm3, %v17370_v54 }
0x1779   : > { %16131 = vmatprep.subr.bf16.mxu1 %v17370_v54  ;;  %16147 = vmatprep.subr.bf16.mxu0 %v17370_v54 }
0x1782   : > { %16104 = vmatmul.mubr.msk.bf16.vlgmr.msra.gmra.mrb[20].mxu1 %vm4726_vm7, %v17095_v33  ;;  %16128 = vmatmul.mubr.msk.bf16.vlgmr.msra.gmra.mrb[204].mxu0 %vm4726_vm7, %v17096_v34  ;;  %v17119_v33 = vld [vmem:[%s20337_s22 + $0x30] sm:$0xff]  }
0x1783   : > { %16132 = vmatpush3.bf16.msra.mxu1 %v17097_v35  ;;  %16135 = vmatprep.mubr.msk.bf16.mxu1 %vm17371_vm3, %v17370_v54  ;;  %v17120_v34 = vld [vmem:[%s20337_s22 + $0xb0] sm:$0xff]  }
0x1784   : > { %16133 = vmatprep.subr.bf16.mxu1 %v17370_v54  ;;  %16151 = vmatprep.mubr.msk.bf16.mxu0 %vm17371_vm3, %v17370_v54 }
0x1785   : > { %16148 = vmatpush3.bf16.msra.mxu0 %v17105_v43 }
0x1786   : > { %16149 = vmatprep.subr.bf16.mxu0 %v17370_v54 }
0x1787   : > { %16134 = vmatpush3.bf16.msra.mxu1 %v17098_v41 }
0x1788   : > { %16139 = vmatprep.subr.bf16.mxu1 %v17370_v54 }
0x1789   : > { %16150 = vmatpush3.bf16.msra.mxu0 %v17106_v44 }
0x178a   : > { %16163 = vmatprep.subr.bf16.mxu0 %v17370_v54 }
0x1829   : > { %v8628_v52 = vpop.f32.mrb[16].mxu1  ;;  %v8841_v1 = vpop.f32.mrb[200].mxu0 }
0x182a   : > { %v16057_v15 = vpop.f32.mrb[17].mxu1  ;;  %v16081_v18 = vpop.f32.mrb[201].mxu0 }
0x182b   : > { %v8631_v19 = vpop.f32.mrb[18].mxu1  ;;  %v8844_v20 = vpop.f32.mrb[202].mxu0  ;;  %v17123_v15 = vld [vmem:[%s20337_s22] sm:$0xff]  }
0x182c   : > { %v19649_v27 = vpack.c.bf16 %v8631_v19, %v8628_v52  ;;  %v8850_v28 = vpack.c.bf16 %v8844_v20, %v8841_v1  ;;  %v16058_v29 = vpop.f32.mrb[19].mxu1  ;;  %v16082_v31 = vpop.f32.mrb[203].mxu0  ;;  %v17121_v52 = vld [vmem:[%s20337_s22 + $0x38] sm:$0xff]   ;;  %v17124_v18 = vld [vmem:[%s20337_s22 + $0x80] sm:$0xff]  }
0x182d   : > { %v17122_v1 = vld [vmem:[%s20337_s22 + $0xb8] sm:$0xff]  }
0x182e   : > { %16136 = vmatmul.mubr.msk.bf16.vlgmr.msra.gmra.mrb[24].mxu1 %vm3867_vm6, %v8850_v28 }
0x182f   : > { %16140 = vmatpush3.bf16.msra.mxu1 %v17099_v21  ;;  %16143 = vmatprep.mubr.msk.bf16.mxu1 %vm17371_vm3, %v17370_v54 }
0x1830   : > { %16141 = vmatprep.subr.bf16.mxu1 %v17370_v54 }
0x1833   : > { %16142 = vmatpush3.bf16.msra.mxu1 %v17100_v36 }
0x1834   : > { %16155 = vmatprep.subr.bf16.mxu1 %v17370_v54 }
0x1836   : > { %16144 = vmatmul.mubr.msk.bf16.vlgmr.msra.gmra.mrb[28].mxu1 %vm3867_vm6, %v19649_v27 }
0x1837   : > { %16156 = vmatpush3.bf16.msra.mxu1 %v17101_v37  ;;  %16159 = vmatprep.mubr.msk.bf16.mxu1 %vm17371_vm3, %v17370_v54 }
0x1838   : > { %16157 = vmatprep.subr.bf16.mxu1 %v17370_v54 }
0x183b   : > { %16158 = vmatpush3.bf16.msra.mxu1 %v17102_v38 }
0x183c   : > { %16171 = vmatprep.subr.bf16.mxu1 %v17370_v54 }
0x183e   : > { %16160 = vmatmul.mubr.msk.bf16.vlgmr.msra.gmra.mrb[32].mxu1 %vm3867_vm6, %v19649_v27 }
0x183f   : > { %16172 = vmatpush3.bf16.msra.mxu1 %v17103_v40  ;;  %16175 = vmatprep.mubr.msk.bf16.mxu1 %vm17371_vm3, %v17370_v54 }
0x1840   : > { %16173 = vmatprep.subr.bf16.mxu1 %v17370_v54 }
0x1843   : > { %16174 = vmatpush3.bf16.msra.mxu1 %v17104_v23 }
0x1844   : > { %16187 = vmatprep.subr.bf16.mxu1 %v17370_v54 }
0x1846   : > { %16176 = vmatmul.mubr.msk.bf16.vlgmr.msra.gmra.mrb[36].mxu1 %vm3867_vm6, %v19649_v27 }
0x1847   : > { %16188 = vmatpush3.bf16.msra.mxu1 %v17110_v30  ;;  %16191 = vmatprep.mubr.msk.bf16.mxu1 %vm17371_vm3, %v17370_v54 }
0x1848   : > { %16189 = vmatprep.subr.bf16.mxu1 %v17370_v54 }
0x184b   : > { %16190 = vmatpush3.bf16.msra.mxu1 %v17112_v48 }
0x1855   : > { %v9054_v58 = vpop.f32.mrb[20].mxu1  ;;  %v9267_v39 = vpop.f32.mrb[204].mxu0 }
0x1856   : > { %v16105_v50 = vpop.f32.mrb[21].mxu1  ;;  %v16129_v53 = vpop.f32.mrb[205].mxu0 }
0x1857   : > { %v9057_v0 = vpop.f32.mrb[22].mxu1  ;;  %v9270_v56 = vpop.f32.mrb[206].mxu0 }
0x1858   : > { %v9063_v61 = vpack.c.bf16 %v9057_v0, %v9054_v58  ;;  %v16106_v3 = vpop.f32.mrb[23].mxu1  ;;  %v9276_v7 = vpack.c.bf16 %v9270_v56, %v9267_v39  ;;  %v16130_v6 = vpop.f32.mrb[207].mxu0 }
0x185a   : > { %16152 = vmatmul.mubr.msk.bf16.vlgmr.msra.gmra.mrb[208].mxu0 %vm3867_vm6, %v9063_v61  ;;  %16192 = vmatmul.mubr.msk.bf16.vlgmr.msra.gmra.mrb[40].mxu1 %vm3867_vm6, %v9276_v7 }
0x185b   : > { %16164 = vmatpush3.bf16.msra.mxu0 %v17107_v55  ;;  %16167 = vmatprep.mubr.msk.bf16.mxu0 %vm17371_vm3, %v17370_v54 }
0x185c   : > { %16165 = vmatprep.subr.bf16.mxu0 %v17370_v54  ;;  %16205 = vmatprep.mubr.msk.bf16.mxu1 %vm2892_vm5, %v17115_v32 }
0x185f   : > { %16166 = vmatpush3.bf16.msra.mxu0 %v17108_v9 }
0x1860   : > { %16179 = vmatprep.subr.bf16.mxu0 %v17370_v54 }
0x1862   : > { %16168 = vmatmul.mubr.msk.bf16.vlgmr.msra.gmra.mrb[212].mxu0 %vm3867_vm6, %v8850_v28 }
0x1863   : > { %16180 = vmatpush3.bf16.msra.mxu0 %v17109_v25  ;;  %16183 = vmatprep.mubr.msk.bf16.mxu0 %vm17371_vm3, %v17370_v54 }
0x1864   : > { %16181 = vmatprep.subr.bf16.mxu0 %v17370_v54 }
0x1867   : > { %16182 = vmatpush3.bf16.msra.mxu0 %v17111_v10 }
0x1868   : > { %16195 = vmatprep.subr.bf16.mxu0 %v17370_v54 }
0x186a   : > { %16184 = vmatmul.mubr.msk.bf16.vlgmr.msra.gmra.mrb[216].mxu0 %vm3867_vm6, %v9063_v61 }
0x186b   : > { %16196 = vmatpush3.bf16.msra.mxu0 %v17113_v45  ;;  %16199 = vmatprep.mubr.msk.bf16.mxu0 %vm17371_vm3, %v17370_v54 }
0x186c   : > { %16197 = vmatprep.subr.bf16.mxu0 %v17370_v54 }
0x186f   : > { %16198 = vmatpush3.bf16.msra.mxu0 %v17114_v46 }
0x1872   : > { %16200 = vmatmul.mubr.msk.bf16.vlgmr.msra.gmra.mrb[220].mxu0 %vm3867_vm6, %v19649_v27 }
0x1873   : > { %16245 = vmatprep.mubr.msk.bf16.mxu0 %vm2892_vm5, %v17116_v8 }
0x1901   : > { %v9340_v63 = vpop.f32.mrb[24].mxu1 }
0x1902   : > { %v16137_v13 = vpop.f32.mrb[25].mxu1 }
0x1903   : > { %v9343_v62 = vpop.f32.mrb[26].mxu1 }
0x1904   : > { %v16138_v54 = vpop.f32.mrb[27].mxu1 }
0x1909   : > { %v9396_v51 = vpop.f32.mrb[28].mxu1 }
0x190a   : > { %v9397_v59 = vadd.f32 %v9396_v51, %v9340_v63  ;;  %v16145_v12 = vpop.f32.mrb[29].mxu1 }
0x190b   : > { %v9399_v60 = vpop.f32.mrb[30].mxu1 }
0x190c   : > { %v9824_v47 = vadd.f32 %v19740_v26, %v9397_v59  ;;  %v9400_v11 = vadd.f32 %v9399_v60, %v9343_v62  ;;  %v16146_v49 = vpop.f32.mrb[31].mxu1 }
0x190e   : > { %v9825_v2 = vadd.f32 %v19740_v26, %v9400_v11  ;;  %v9826_v57 = vmax.f32 %v9824_v47, 0.0 }
0x1910   : > { %v9827_v4 = vmax.f32 %v9825_v2, 0.0  ;;  %v17125_v2 = vld [vmem:[%s20337_s22 + $0x8] sm:$0xff]  }
0x1911   : > { %v9515_v5 = vpop.f32.mrb[32].mxu1 }
0x1912   : > { %v19744_v16 = vpack.c.bf16 %v9827_v4, %v9826_v57  ;;  %v16161_v14 = vpop.f32.mrb[33].mxu1  ;;  %v17126_v57 = vld [vmem:[%s20337_s22 + $0x88] sm:$0xff]   ;;  %v17128_v4 = vld [vmem:[%s20337_s22 + $0x90] sm:$0xff]  }
0x1913   : > { %v9518_v17 = vpop.f32.mrb[34].mxu1  ;;  %v17130_v14 = vld [vmem:[%s20337_s22 + $0x98] sm:$0xff]  }
0x1914   : > { %v16162_v22 = vpop.f32.mrb[35].mxu1  ;;  %16203 = vmatprep.subr.bf16.mxu1 %v19744_v16  ;;  %16243 = vmatprep.subr.bf16.mxu0 %v19744_v16 }
0x1915   : > { %16204 = vmatpush3.bf16.msra.mxu1 %v19744_v16  ;;  %16244 = vmatpush3.bf16.msra.mxu0 %v19744_v16  ;;  %v17132_v22 = vld [vmem:[%s20337_s22 + $0xc0] sm:$0xff]  }
0x1918   : > { %16206 = vmatmul.mubr.msk.bf16.vlgmr.msra.gmra.mrb[44].mxu1 %vm2892_vm5, %v17117_v42  ;;  %16246 = vmatmul.mubr.msk.bf16.vlgmr.msra.gmra.mrb[224].mxu0 %vm2892_vm5, %v17118_v24  ;;  %v17133_v42 = vld [vmem:[%s20337_s22 + $0x48] sm:$0xff]  }
0x1919   : > { %v9631_v35 = vpop.f32.mrb[36].mxu1  ;;  %16209 = vmatprep.mubr.msk.bf16.mxu1 %vm2892_vm5, %v17119_v33  ;;  %16249 = vmatprep.mubr.msk.bf16.mxu0 %vm2892_vm5, %v17120_v34  ;;  %v17134_v24 = vld [vmem:[%s20337_s22 + $0xc8] sm:$0xff]   ;;  %v17135_v33 = vld [vmem:[%s20337_s22 + $0x50] sm:$0xff]  }
0x191a   : > { %v16177_v41 = vpop.f32.mrb[37].mxu1  ;;  %v17136_v34 = vld [vmem:[%s20337_s22 + $0xd0] sm:$0xff]  }
0x191b   : > { %v9634_v43 = vpop.f32.mrb[38].mxu1  ;;  %v17138_v41 = vld [vmem:[%s20337_s22 + $0xd8] sm:$0xff]  }
0x191c   : > { %v16178_v44 = vpop.f32.mrb[39].mxu1 }
0x191d   : > { %v17140_v44 = vld [vmem:[%s20337_s22 + $0xe0] sm:$0xff]  }
0x1920   : > { %16210 = vmatmul.mubr.msk.bf16.gmra.mrb[48].mxu1 %vm2892_vm5, %v17121_v52  ;;  %16250 = vmatmul.mubr.msk.bf16.gmra.mrb[228].mxu0 %vm2892_vm5, %v17122_v1  ;;  %v17141_v52 = vld [vmem:[%s20337_s22 + $0x68] sm:$0xff]  }
0x1921   : > { %16215 = vmatprep.mubr.msk.bf16.mxu1 %vm2892_vm5, %v17123_v15  ;;  %16255 = vmatprep.mubr.msk.bf16.mxu0 %vm2892_vm5, %v17124_v18  ;;  %v17142_v1 = vld [vmem:[%s20337_s22 + $0xe8] sm:$0xff]   ;;  %v17143_v15 = vld [vmem:[%s20337_s22 + $0x70] sm:$0xff]  }
0x1922   : > { %v17144_v18 = vld [vmem:[%s20337_s22 + $0xf0] sm:$0xff]  }
0x192d   : > { %v9462_v19 = vpop.f32.mrb[208].mxu0  ;;  %v9752_v20 = vpop.f32.mrb[40].mxu1 }
0x192e   : > { %v9516_v21 = vadd.f32 %v9515_v5, %v9462_v19  ;;  %v16153_v27 = vpop.f32.mrb[209].mxu0  ;;  %v16193_v28 = vpop.f32.mrb[41].mxu1  ;;  %v17129_v5 = vld [vmem:[%s20337_s22 + $0x18] sm:$0xff]  }
0x192f   : > { %v9465_v29 = vpop.f32.mrb[210].mxu0  ;;  %v9755_v31 = vpop.f32.mrb[42].mxu1  ;;  %v17145_v19 = vld [vmem:[%s20337_s22 + $0x78] sm:$0xff]   ;;  %v17149_v27 = vld [vmem:[%s20337_s22 + $0x128] sm:$0xff]  }
0x1930   : > { %v9829_v36 = vadd.f32 %v19740_v26, %v9516_v21  ;;  %v9519_v37 = vadd.f32 %v9518_v17, %v9465_v29  ;;  %v16154_v38 = vpop.f32.mrb[211].mxu0  ;;  %v16194_v40 = vpop.f32.mrb[43].mxu1  ;;  %v17131_v17 = vld [vmem:[%s20337_s22 + $0x40] sm:$0xff]   ;;  %v17150_v28 = vld [vmem:[%s20337_s22 + $0x1a8] sm:$0xff]   ;;  %v17151_v29 = vld [vmem:[%s20337_s22 + $0x130] sm:$0xff]  }
0x1931   : > { %v17148_v21 = vld [vmem:[%s20337_s22 + $0x1a0] sm:$0xff]  }
0x1932   : > { %v9830_v23 = vadd.f32 %v19740_v26, %v9519_v37  ;;  %v9831_v30 = vmax.f32 %v9829_v36, 0.0  ;;  %v17153_v36 = vld [vmem:[%s20337_s22 + $0x138] sm:$0xff]   ;;  %v17155_v38 = vld [vmem:[%s20337_s22 + $0x100] sm:$0xff]  }
0x1933   : > { %v17154_v37 = vld [vmem:[%s20337_s22 + $0x1b8] sm:$0xff]   ;;  %v17156_v40 = vld [vmem:[%s20337_s22 + $0x180] sm:$0xff]  }
0x1934   : > { %v9832_v48 = vmax.f32 %v9830_v23, 0.0  ;;  %v17157_v23 = vld [vmem:[%s20337_s22 + $0x108] sm:$0xff]  }
0x1935   : > { %v9578_v58 = vpop.f32.mrb[212].mxu0 }
0x1936   : > { %v19784_v39 = vpack.c.bf16 %v9832_v48, %v9831_v30  ;;  %v9632_v50 = vadd.f32 %v9631_v35, %v9578_v58  ;;  %v16169_v53 = vpop.f32.mrb[213].mxu0  ;;  %v17137_v35 = vld [vmem:[%s20337_s22 + $0x58] sm:$0xff]   ;;  %v17158_v30 = vld [vmem:[%s20337_s22 + $0x188] sm:$0xff]   ;;  %v17159_v48 = vld [vmem:[%s20337_s22 + $0x110] sm:$0xff]  }
0x1937   : > { %v9581_v0 = vpop.f32.mrb[214].mxu0  ;;  %v17160_v58 = vld [vmem:[%s20337_s22 + $0x190] sm:$0xff]   ;;  %v17162_v53 = vld [vmem:[%s20337_s22 + $0x198] sm:$0xff]  }
0x1938   : > { %v9635_v55 = vadd.f32 %v9634_v43, %v9581_v0  ;;  %v16170_v56 = vpop.f32.mrb[215].mxu0  ;;  %v17139_v43 = vld [vmem:[%s20337_s22 + $0x60] sm:$0xff]  }
0x1939   : > { %v17164_v0 = vld [vmem:[%s20337_s22 + $0x1c0] sm:$0xff]   ;;  %v17166_v56 = vld [vmem:[%s20337_s22 + $0x1c8] sm:$0xff]  }
0x193d   : > { %v9689_v61 = vpop.f32.mrb[216].mxu0 }
0x193e   : > { %v9696_v3 = vadd.f32 %v9689_v61, %v9632_v50  ;;  %v16185_v7 = vpop.f32.mrb[217].mxu0  ;;  %v17161_v50 = vld [vmem:[%s20337_s22 + $0x118] sm:$0xff]   ;;  %v17167_v61 = vld [vmem:[%s20337_s22 + $0x150] sm:$0xff]  }
0x193f   : > { %v9692_v6 = vpop.f32.mrb[218].mxu0  ;;  %v17169_v7 = vld [vmem:[%s20337_s22 + $0x158] sm:$0xff]  }
0x1940   : > { %v9759_v9 = vadd.f32 %v9752_v20, %v9696_v3  ;;  %v9697_v25 = vadd.f32 %v9692_v6, %v9635_v55  ;;  %v16186_v10 = vpop.f32.mrb[219].mxu0  ;;  %v17146_v20 = vld [vmem:[%s20337_s22 + $0xf8] sm:$0xff]   ;;  %v17165_v55 = vld [vmem:[%s20337_s22 + $0x148] sm:$0xff]   ;;  %v17168_v3 = vld [vmem:[%s20337_s22 + $0x1d0] sm:$0xff]  }
0x1941   : > { %v17170_v6 = vld [vmem:[%s20337_s22 + $0x1d8] sm:$0xff]   ;;  %v17173_v10 = vld [vmem:[%s20337_s22 + $0x168] sm:$0xff]  }
0x1942   : > { %v9834_v45 = vadd.f32 %v19740_v26, %v9759_v9  ;;  %v9760_v46 = vadd.f32 %v9755_v31, %v9697_v25  ;;  %v17152_v31 = vld [vmem:[%s20337_s22 + $0x1b0] sm:$0xff]   ;;  %v17171_v9 = vld [vmem:[%s20337_s22 + $0x160] sm:$0xff]  }
0x1943   : > { %v17172_v25 = vld [vmem:[%s20337_s22 + $0x1e0] sm:$0xff]  }
0x1944   : > { %v9835_v32 = vadd.f32 %v19740_v26, %v9760_v46  ;;  %v9836_v63 = vmax.f32 %v9834_v45, 0.0  ;;  %v17174_v45 = vld [vmem:[%s20337_s22 + $0x1e8] sm:$0xff]   ;;  %v17175_v46 = vld [vmem:[%s20337_s22 + $0x170] sm:$0xff]  }
0x1945   : > { %v9814_v8 = vpop.f32.mrb[220].mxu0 }
0x1946   : > { %v9837_v13 = vmax.f32 %v9835_v32, 0.0  ;;  %v9815_v62 = vadd.f32 %v19740_v26, %v9814_v8  ;;  %v16201_v54 = vpop.f32.mrb[221].mxu0  ;;  %v17176_v32 = vld [vmem:[%s20337_s22 + $0x1f0] sm:$0xff]   ;;  %v17177_v8 = vld [vmem:[%s20337_s22 + $0x178] sm:$0xff]  }
0x1947   : > { %v9817_v51 = vpop.f32.mrb[222].mxu0  ;;  %v17183_v54 = vld [vmem:[%s20338_s23 + $0x20] sm:$0xff]  }
0x1948   : > { %v19789_v59 = vpack.c.bf16 %v9837_v13, %v9836_v63  ;;  %v9818_v12 = vadd.f32 %v19740_v26, %v9817_v51  ;;  %v16202_v60 = vpop.f32.mrb[223].mxu0  ;;  %v9821_v47 = vmax.f32 %v9815_v62, 0.0  ;;  %v17127_v26 = vld [vmem:[%s20337_s22 + $0x10] sm:$0xff]   ;;  %v17178_v63 = vld [vmem:[%s20337_s22 + $0x1f8] sm:$0xff]   ;;  %v17180_v62 = vld [vmem:[%s20338_s23 + $0x8] sm:$0xff]  }
0x1949   : > { %v17179_v13 = vld [vmem:[%s20338_s23 + $0x10] sm:$0xff]   ;;  %v20050_v51 = vld [vmem:[%s20338_s23 + $0x18] sm:$0xff]  }
0x194a   : > { %v9822_v11 = vmax.f32 %v9818_v12, 0.0 }
0x194c   : > { %v19792_v49 = vpack.c.bf16 %v9822_v11, %v9821_v47 }
0x194e   : > { %16213 = vmatprep.subr.bf16.mxu1 %v19792_v49  ;;  %16253 = vmatprep.subr.bf16.mxu0 %v19792_v49 }
0x194f   : > { %16214 = vmatpush3.bf16.msra.mxu1 %v19792_v49  ;;  %16254 = vmatpush3.bf16.msra.mxu0 %v19792_v49 }
0x1950   : > { %16223 = vmatprep.subr.bf16.mxu1 %v19784_v39  ;;  %16263 = vmatprep.subr.bf16.mxu0 %v19784_v39 }
0x1952   : > { %16216 = vmatmul.mubr.msk.bf16.vlgmr.msra.gmra.mrb[44].mxu1 %vm2892_vm5, %v17125_v2  ;;  %16256 = vmatmul.mubr.msk.bf16.vlgmr.msra.gmra.mrb[224].mxu0 %vm2892_vm5, %v17126_v57 }
0x1953   : > { %16224 = vmatpush3.bf16.msra.mxu1 %v19784_v39  ;;  %16264 = vmatpush3.bf16.msra.mxu0 %v19784_v39 }
0x1954   : > { %16233 = vmatprep.subr.bf16.mxu1 %v19789_v59  ;;  %16273 = vmatprep.subr.bf16.mxu0 %v19789_v59 }
0x1955   : > { %16219 = vmatprep.mubr.msk.bf16.mxu1 %vm2892_vm5, %v17127_v26  ;;  %16259 = vmatprep.mubr.msk.bf16.mxu0 %vm2892_vm5, %v17128_v4 }
0x195a   : > { %16220 = vmatmul.mubr.msk.bf16.gmra.mrb[48].mxu1 %vm2892_vm5, %v17129_v5  ;;  %16260 = vmatmul.mubr.msk.bf16.gmra.mrb[228].mxu0 %vm2892_vm5, %v17130_v14 }
0x195b   : > { %16225 = vmatprep.mubr.msk.bf16.mxu1 %vm2892_vm5, %v17131_v17  ;;  %16265 = vmatprep.mubr.msk.bf16.mxu0 %vm2892_vm5, %v17132_v22  ;;  %v17181_v17 = vld [vmem:[%s20338_s23 + $0x30] sm:$0xff]  }
0x1962   : > { %16226 = vmatmul.mubr.msk.bf16.vlgmr.msra.gmra.mrb[44].mxu1 %vm2892_vm5, %v17133_v42  ;;  %16266 = vmatmul.mubr.msk.bf16.vlgmr.msra.gmra.mrb[224].mxu0 %vm2892_vm5, %v17134_v24 }
0x1963   : > { %16234 = vmatpush3.bf16.msra.mxu1 %v19789_v59  ;;  %16274 = vmatpush3.bf16.msra.mxu0 %v19789_v59 }
0x1964   : > { %16283 = vmatprep.subr.bf16.mxu1 %v19744_v16  ;;  %16323 = vmatprep.subr.bf16.mxu0 %v19744_v16 }
0x1965   : > { %16229 = vmatprep.mubr.msk.bf16.mxu1 %vm2892_vm5, %v17135_v33  ;;  %16269 = vmatprep.mubr.msk.bf16.mxu0 %vm2892_vm5, %v17136_v34 }
0x196a   : > { %16230 = vmatmul.mubr.msk.bf16.gmra.mrb[48].mxu1 %vm2892_vm5, %v17137_v35  ;;  %16270 = vmatmul.mubr.msk.bf16.gmra.mrb[228].mxu0 %vm2892_vm5, %v17138_v41 }
0x196b   : > { %16235 = vmatprep.mubr.msk.bf16.mxu1 %vm2892_vm5, %v17139_v43  ;;  %16275 = vmatprep.mubr.msk.bf16.mxu0 %vm2892_vm5, %v17140_v44 }
0x1972   : > { %16236 = vmatmul.mubr.msk.bf16.vlgmr.msra.gmra.mrb[44].mxu1 %vm2892_vm5, %v17141_v52  ;;  %16276 = vmatmul.mubr.msk.bf16.vlgmr.msra.gmra.mrb[224].mxu0 %vm2892_vm5, %v17142_v1 }
0x1973   : > { %16284 = vmatpush3.bf16.msra.mxu1 %v19744_v16  ;;  %16324 = vmatpush3.bf16.msra.mxu0 %v19744_v16  ;;  %v17147_v16 = vld [vmem:[%s20337_s22 + $0x120] sm:$0xff]  }
0x1974   : > { %16293 = vmatprep.subr.bf16.mxu1 %v19792_v49  ;;  %16333 = vmatprep.subr.bf16.mxu0 %v19792_v49 }
0x1975   : > { %16239 = vmatprep.mubr.msk.bf16.mxu1 %vm2892_vm5, %v17143_v15  ;;  %16279 = vmatprep.mubr.msk.bf16.mxu0 %vm2892_vm5, %v17144_v18  ;;  %v17182_v18 = vld [vmem:[%s20338_s23 + $0x28] sm:$0xff]  }
0x197a   : > { %16240 = vmatmul.mubr.msk.bf16.gmra.mrb[48].mxu1 %vm2892_vm5, %v17145_v19  ;;  %16280 = vmatmul.mubr.msk.bf16.gmra.mrb[228].mxu0 %vm2892_vm5, %v17146_v20  ;;  %v17184_v19 = vld [vmem:[%s20338_s23 + $0x38] sm:$0xff]   ;;  %v17186_v20 = vld [vmem:[%s20338_s23 + $0x40] sm:$0xff]  }
0x197b   : > { %16285 = vmatprep.mubr.msk.bf16.mxu1 %vm2892_vm5, %v17147_v16  ;;  %16325 = vmatprep.mubr.msk.bf16.mxu0 %vm2892_vm5, %v17148_v21 }
0x1982   : > { %16286 = vmatmul.mubr.msk.bf16.vlgmr.msra.gmra.mrb[52].mxu1 %vm2892_vm5, %v17149_v27  ;;  %16326 = vmatmul.mubr.msk.bf16.vlgmr.msra.gmra.mrb[232].mxu0 %vm2892_vm5, %v17150_v28 }
0x1983   : > { %16294 = vmatpush3.bf16.msra.mxu1 %v19792_v49  ;;  %16334 = vmatpush3.bf16.msra.mxu0 %v19792_v49 }
0x1984   : > { %16303 = vmatprep.subr.bf16.mxu1 %v19784_v39  ;;  %16343 = vmatprep.subr.bf16.mxu0 %v19784_v39 }
0x1985   : > { %16289 = vmatprep.mubr.msk.bf16.mxu1 %vm2892_vm5, %v17151_v29  ;;  %16329 = vmatprep.mubr.msk.bf16.mxu0 %vm2892_vm5, %v17152_v31 }
0x198a   : > { %16290 = vmatmul.mubr.msk.bf16.gmra.mrb[56].mxu1 %vm2892_vm5, %v17153_v36  ;;  %16330 = vmatmul.mubr.msk.bf16.gmra.mrb[236].mxu0 %vm2892_vm5, %v17154_v37 }
0x198b   : > { %16295 = vmatprep.mubr.msk.bf16.mxu1 %vm2892_vm5, %v17155_v38  ;;  %16335 = vmatprep.mubr.msk.bf16.mxu0 %vm2892_vm5, %v17156_v40 }
0x1992   : > { %16296 = vmatmul.mubr.msk.bf16.vlgmr.msra.gmra.mrb[52].mxu1 %vm2892_vm5, %v17157_v23  ;;  %16336 = vmatmul.mubr.msk.bf16.vlgmr.msra.gmra.mrb[232].mxu0 %vm2892_vm5, %v17158_v30 }
0x1993   : > { %16304 = vmatpush3.bf16.msra.mxu1 %v19784_v39  ;;  %16344 = vmatpush3.bf16.msra.mxu0 %v19784_v39  ;;  %v17163_v39 = vld [vmem:[%s20337_s22 + $0x140] sm:$0xff]  }
0x1994   : > { %16313 = vmatprep.subr.bf16.mxu1 %v19789_v59  ;;  %16353 = vmatprep.subr.bf16.mxu0 %v19789_v59 }
0x1995   : > { %16299 = vmatprep.mubr.msk.bf16.mxu1 %vm2892_vm5, %v17159_v48  ;;  %16339 = vmatprep.mubr.msk.bf16.mxu0 %vm2892_vm5, %v17160_v58  ;;  %v17187_v48 = vld [vmem:[%s20338_s23] sm:$0xff]  }
0x199a   : > { %16300 = vmatmul.mubr.msk.bf16.gmra.mrb[56].mxu1 %vm2892_vm5, %v17161_v50  ;;  %16340 = vmatmul.mubr.msk.bf16.gmra.mrb[236].mxu0 %vm2892_vm5, %v17162_v53 }
0x199b   : > { %16305 = vmatprep.mubr.msk.bf16.mxu1 %vm2892_vm5, %v17163_v39  ;;  %16345 = vmatprep.mubr.msk.bf16.mxu0 %vm2892_vm5, %v17164_v0 }
0x19a2   : > { %16306 = vmatmul.mubr.msk.bf16.vlgmr.msra.gmra.mrb[52].mxu1 %vm2892_vm5, %v17165_v55  ;;  %16346 = vmatmul.mubr.msk.bf16.vlgmr.msra.gmra.mrb[232].mxu0 %vm2892_vm5, %v17166_v56 }
0x19a3   : > { %16314 = vmatpush3.bf16.msra.mxu1 %v19789_v59  ;;  %16354 = vmatpush3.bf16.msra.mxu0 %v19789_v59 }
0x19a4   : > { %16309 = vmatprep.mubr.msk.bf16.mxu1 %vm2892_vm5, %v17167_v61  ;;  %16349 = vmatprep.mubr.msk.bf16.mxu0 %vm2892_vm5, %v17168_v3 }
0x19a5   : > { %16363 = vmatprep.subr.bf16.mxu1 %v17179_v13  ;;  %16383 = vmatprep.subr.bf16.mxu0 %v17183_v54 }
0x19aa   : > { %16310 = vmatmul.mubr.msk.bf16.gmra.mrb[56].mxu1 %vm2892_vm5, %v17169_v7  ;;  %16350 = vmatmul.mubr.msk.bf16.gmra.mrb[236].mxu0 %vm2892_vm5, %v17170_v6 }
0x19ab   : > { %16315 = vmatprep.mubr.msk.bf16.mxu1 %vm2892_vm5, %v17171_v9  ;;  %16355 = vmatprep.mubr.msk.bf16.mxu0 %vm2892_vm5, %v17172_v25  ;;  %v20132_v25 = vld [vmem:[%s20339_s24] ss:$0 sm:$0xff] }
0x19b2   : > { %16316 = vmatmul.mubr.msk.bf16.vlgmr.msra.gmra.mrb[52].mxu1 %vm2892_vm5, %v17173_v10  ;;  %16356 = vmatmul.mubr.msk.bf16.vlgmr.msra.gmra.mrb[232].mxu0 %vm2892_vm5, %v17174_v45 }
0x19b3   : > { %16319 = vmatprep.mubr.msk.bf16.mxu1 %vm2892_vm5, %v17175_v46  ;;  %16359 = vmatprep.mubr.msk.bf16.mxu0 %vm2892_vm5, %v17176_v32 }
0x19b4   : > { %16364 = vmatpush3.bf16.msra.mxu1 %v17179_v13  ;;  %16384 = vmatpush3.bf16.msra.mxu0 %v17183_v54 }
0x19b5   : > { %16373 = vmatprep.subr.bf16.mxu1 %v17180_v62  ;;  %16393 = vmatprep.subr.bf16.mxu0 %v20050_v51 }
0x19ba   : > { %16320 = vmatmul.mubr.msk.bf16.gmra.mrb[56].mxu1 %vm2892_vm5, %v17177_v8  ;;  %16360 = vmatmul.mubr.msk.bf16.gmra.mrb[236].mxu0 %vm2892_vm5, %v17178_v63 }
0x1a45   : > { %v16237_v59 = vpop.f32.mrb[44].mxu1  ;;  %v16277_v12 = vpop.f32.mrb[224].mxu0 }
0x1a46   : > { %v10239_v60 = vpop.f32.mrb[45].mxu1  ;;  %v10683_v47 = vpop.f32.mrb[225].mxu0 }
0x1a47   : > { %v16238_v11 = vpop.f32.mrb[46].mxu1  ;;  %v16278_v49 = vpop.f32.mrb[226].mxu0 }
0x1a48   : > { %v20053_v2 = vpack.c.bf16 %v16238_v11, %v16237_v59  ;;  %v10723_v57 = vpack.c.bf16 %v16278_v49, %v16277_v12  ;;  %v10242_v26 = vpop.f32.mrb[47].mxu1  ;;  %v10686_v4 = vpop.f32.mrb[227].mxu0 }
0x1a49   : > { %v20055_v5 = vpack.c.bf16 %v10242_v26, %v10239_v60  ;;  %v10722_v14 = vpack.c.bf16 %v10686_v4, %v10683_v47 }
0x1a4b   : > { %16365 = vmatprep.mubr.msk.bf16.mxu1 %vm2892_vm5, %v10722_v14 }
0x1a4c   : > { %16366 = vmatmul.mubr.msk.bf16.vlgmr.msra.gmra.mrb[60].mxu1 %vm2892_vm5, %v10723_v57 }
0x1a4d   : > { %v16241_v22 = vpop.f32.mrb[48].mxu1  ;;  %v16281_v42 = vpop.f32.mrb[228].mxu0  ;;  %16374 = vmatpush3.bf16.msra.mxu1 %v17180_v62 }
0x1a4e   : > { %v10255_v24 = vpop.f32.mrb[49].mxu1  ;;  %v10699_v33 = vpop.f32.mrb[229].mxu0  ;;  %16403 = vmatprep.subr.bf16.mxu1 %v17181_v17 }
0x1a4f   : > { %v16242_v34 = vpop.f32.mrb[50].mxu1  ;;  %v16282_v35 = vpop.f32.mrb[230].mxu0 }
0x1a50   : > { %v20062_v41 = vpack.c.bf16 %v16242_v34, %v16241_v22  ;;  %v10725_v43 = vpack.c.bf16 %v16282_v35, %v16281_v42  ;;  %v10258_v44 = vpop.f32.mrb[51].mxu1  ;;  %v10702_v52 = vpop.f32.mrb[231].mxu0 }
0x1a51   : > { %v20064_v1 = vpack.c.bf16 %v10258_v44, %v10255_v24  ;;  %v10724_v15 = vpack.c.bf16 %v10702_v52, %v10699_v33 }
0x1a53   : > { %16369 = vmatprep.mubr.msk.bf16.mxu1 %vm2892_vm5, %v10724_v15 }
0x1a54   : > { %16370 = vmatmul.mubr.msk.bf16.gmra.mrb[64].mxu1 %vm2892_vm5, %v10725_v43 }
0x1a55   : > { %16375 = vmatprep.mubr.msk.bf16.mxu1 %vm2892_vm5, %v20055_v5 }
0x1a5c   : > { %16376 = vmatmul.mubr.msk.bf16.vlgmr.msra.gmra.mrb[60].mxu1 %vm2892_vm5, %v20053_v2 }
0x1a5d   : > { %16379 = vmatprep.mubr.msk.bf16.mxu1 %vm2892_vm5, %v20064_v1  ;;  %16404 = vmatpush3.bf16.msra.mxu1 %v17181_v17 }
0x1a5e   : > { %16413 = vmatprep.subr.bf16.mxu1 %v17182_v18 }
0x1a64   : > { %16380 = vmatmul.mubr.msk.bf16.gmra.mrb[64].mxu1 %vm2892_vm5, %v20062_v41 }
0x1a65   : > { %16405 = vmatprep.mubr.msk.bf16.mxu1 %vm2892_vm5, %v10722_v14 }
0x1a6c   : > { %16406 = vmatmul.mubr.msk.bf16.vlgmr.msra.gmra.mrb[68].mxu1 %vm2892_vm5, %v10723_v57 }
0x1a6d   : > { %16409 = vmatprep.mubr.msk.bf16.mxu1 %vm2892_vm5, %v10724_v15  ;;  %16414 = vmatpush3.bf16.msra.mxu1 %v17182_v18 }
0x1a6e   : > { %16423 = vmatprep.subr.bf16.mxu1 %v17184_v19 }
0x1a74   : > { %16410 = vmatmul.mubr.msk.bf16.gmra.mrb[72].mxu1 %vm2892_vm5, %v10725_v43 }
0x1a75   : > { %16415 = vmatprep.mubr.msk.bf16.mxu1 %vm2892_vm5, %v20055_v5 }
0x1a7c   : > { %16416 = vmatmul.mubr.msk.bf16.vlgmr.msra.gmra.mrb[68].mxu1 %vm2892_vm5, %v20053_v2 }
0x1a7d   : > { %16419 = vmatprep.mubr.msk.bf16.mxu1 %vm2892_vm5, %v20064_v1  ;;  %16424 = vmatpush3.bf16.msra.mxu1 %v17184_v19 }
0x1a7e   : > { %16433 = vmatprep.subr.bf16.mxu1 %v17186_v20 }
0x1a84   : > { %16420 = vmatmul.mubr.msk.bf16.gmra.mrb[72].mxu1 %vm2892_vm5, %v20062_v41 }
0x1a85   : > { %v16317_v16 = vpop.f32.mrb[52].mxu1  ;;  %v16357_v21 = vpop.f32.mrb[232].mxu0 }
0x1a86   : > { %v11127_v27 = vpop.f32.mrb[53].mxu1  ;;  %v11571_v28 = vpop.f32.mrb[233].mxu0 }
0x1a87   : > { %v16318_v29 = vpop.f32.mrb[54].mxu1  ;;  %v16358_v31 = vpop.f32.mrb[234].mxu0 }
0x1a88   : > { %v11167_v36 = vpack.c.bf16 %v16318_v29, %v16317_v16  ;;  %v11611_v37 = vpack.c.bf16 %v16358_v31, %v16357_v21  ;;  %v11130_v38 = vpop.f32.mrb[55].mxu1  ;;  %v11574_v40 = vpop.f32.mrb[235].mxu0 }
0x1a89   : > { %v11166_v23 = vpack.c.bf16 %v11130_v38, %v11127_v27  ;;  %v11610_v30 = vpack.c.bf16 %v11574_v40, %v11571_v28 }
0x1a8b   : > { %16385 = vmatprep.mubr.msk.bf16.mxu0 %vm2892_vm5, %v11166_v23  ;;  %16425 = vmatprep.mubr.msk.bf16.mxu1 %vm2892_vm5, %v11166_v23 }
0x1a8c   : > { %16386 = vmatmul.mubr.msk.bf16.vlgmr.msra.gmra.mrb[240].mxu0 %vm2892_vm5, %v11167_v36  ;;  %16426 = vmatmul.mubr.msk.bf16.vlgmr.msra.gmra.mrb[68].mxu1 %vm2892_vm5, %v11167_v36 }
0x1a8d   : > { %v16321_v58 = vpop.f32.mrb[56].mxu1  ;;  %v16361_v50 = vpop.f32.mrb[236].mxu0  ;;  %16394 = vmatpush3.bf16.msra.mxu0 %v20050_v51  ;;  %16434 = vmatpush3.bf16.msra.mxu1 %v17186_v20 }
0x1a8e   : > { %v11143_v53 = vpop.f32.mrb[57].mxu1  ;;  %v11587_v39 = vpop.f32.mrb[237].mxu0  ;;  %16443 = vmatprep.subr.bf16.mxu0 %v17187_v48 }
0x1a8f   : > { %v16322_v0 = vpop.f32.mrb[58].mxu1  ;;  %v16362_v55 = vpop.f32.mrb[238].mxu0 }
0x1a90   : > { %v11169_v56 = vpack.c.bf16 %v16322_v0, %v16321_v58  ;;  %v11613_v61 = vpack.c.bf16 %v16362_v55, %v16361_v50  ;;  %v11146_v3 = vpop.f32.mrb[59].mxu1  ;;  %v11590_v7 = vpop.f32.mrb[239].mxu0 }
0x1a91   : > { %v11168_v6 = vpack.c.bf16 %v11146_v3, %v11143_v53  ;;  %v11612_v9 = vpack.c.bf16 %v11590_v7, %v11587_v39 }
0x1a93   : > { %16389 = vmatprep.mubr.msk.bf16.mxu0 %vm2892_vm5, %v11168_v6  ;;  %16429 = vmatprep.mubr.msk.bf16.mxu1 %vm2892_vm5, %v11168_v6 }
0x1a94   : > { %16390 = vmatmul.mubr.msk.bf16.gmra.mrb[244].mxu0 %vm2892_vm5, %v11169_v56  ;;  %16430 = vmatmul.mubr.msk.bf16.gmra.mrb[72].mxu1 %vm2892_vm5, %v11169_v56 }
0x1a95   : > { %16395 = vmatprep.mubr.msk.bf16.mxu0 %vm2892_vm5, %v20055_v5  ;;  %16435 = vmatprep.mubr.msk.bf16.mxu1 %vm2892_vm5, %v11610_v30 }
0x1a9c   : > { %16396 = vmatmul.mubr.msk.bf16.vlgmr.msra.gmra.mrb[240].mxu0 %vm2892_vm5, %v20053_v2  ;;  %16436 = vmatmul.mubr.msk.bf16.vlgmr.msra.gmra.mrb[68].mxu1 %vm2892_vm5, %v11611_v37 }
0x1a9d   : > { %16399 = vmatprep.mubr.msk.bf16.mxu0 %vm2892_vm5, %v20064_v1  ;;  %16439 = vmatprep.mubr.msk.bf16.mxu1 %vm2892_vm5, %v11612_v9 }
0x1a9e   : > { %16444 = vmatpush3.bf16.msra.mxu0 %v17187_v48 }
0x1aa4   : > { %16400 = vmatmul.mubr.msk.bf16.gmra.mrb[244].mxu0 %vm2892_vm5, %v20062_v41  ;;  %16440 = vmatmul.mubr.msk.bf16.gmra.mrb[72].mxu1 %vm2892_vm5, %v11613_v61 }
0x1aa5   : > { %16445 = vmatprep.mubr.msk.bf16.mxu0 %vm2892_vm5, %v20055_v5 }
0x1aac   : > { %16446 = vmatmul.mubr.msk.bf16.vlgmr.msra.gmra.mrb[248].mxu0 %vm2892_vm5, %v20053_v2 }
0x1aad   : > { %16449 = vmatprep.mubr.msk.bf16.mxu0 %vm2892_vm5, %v20064_v1 }
0x1ab4   : > { %16450 = vmatmul.mubr.msk.bf16.gmra.mrb[252].mxu0 %vm2892_vm5, %v20062_v41 }
0x1b2f   : > { %v16377_v10 = vpop.f32.mrb[60].mxu1 }
0x1b30   : > { %v12415_v45 = vadd.f32 %v16377_v10, %v20132_v25  ;;  %v11757_v46 = vpop.f32.mrb[61].mxu1 }
0x1b31   : > { %v12413_v32 = vadd.f32 %v20132_v25, %v11757_v46  ;;  %v16378_v8 = vpop.f32.mrb[62].mxu1 }
0x1b32   : > { %v14106_v63 = vmul.f32 -1.442695, %v12415_v45  ;;  %v12416_v13 = vadd.f32 %v16378_v8, %v20132_v25  ;;  %v11760_v62 = vpop.f32.mrb[63].mxu1 }
0x1b33   : > { %v14104_v54 = vmul.f32 -1.442695, %v12413_v32  ;;  %v12414_v51 = vadd.f32 %v20132_v25, %v11760_v62 }
0x1b34   : > { %17188 = vpow2.f32 %v14106_v63  ;;  %v14107_v59 = vmul.f32 -1.442695, %v12416_v13 }
0x1b35   : > { %17190 = vpow2.f32 %v14104_v54  ;;  %v14105_v12 = vmul.f32 -1.442695, %v12414_v51 }
0x1b36   : > { %17192 = vpow2.f32 %v14107_v59 }
0x1b37   : > { %17194 = vpow2.f32 %v14105_v12  ;;  %v16381_v60 = vpop.f32.mrb[64].mxu1 }
0x1b38   : > { %v12419_v47 = vadd.f32 %v16381_v60, %v20132_v25  ;;  %v11773_v11 = vpop.f32.mrb[65].mxu1 }
0x1b39   : > { %v12417_v49 = vadd.f32 %v20132_v25, %v11773_v11  ;;  %v16382_v2 = vpop.f32.mrb[66].mxu1 }
0x1b3a   : > { %v14110_v57 = vmul.f32 -1.442695, %v12419_v47  ;;  %v12420_v26 = vadd.f32 %v16382_v2, %v20132_v25  ;;  %v11776_v4 = vpop.f32.mrb[67].mxu1 }
0x1b3b   : > { %v14108_v5 = vmul.f32 -1.442695, %v12417_v49  ;;  %v12418_v14 = vadd.f32 %v20132_v25, %v11776_v4 }
0x1b3c   : > { %17196 = vpow2.f32 %v14110_v57  ;;  %v14111_v17 = vmul.f32 -1.442695, %v12420_v26 }
0x1b3d   : > { %17198 = vpow2.f32 %v14108_v5  ;;  %v14109_v22 = vmul.f32 -1.442695, %v12418_v14 }
0x1b3e   : > { %v17189_v42 = vpop.eup %17188  ;;  %17200 = vpow2.f32 %v14111_v17 }
0x1b3f   : > { %v17191_v24 = vpop.eup %17190  ;;  %v12447_v33 = vadd.f32 1.0, %v17189_v42  ;;  %17202 = vpow2.f32 %v14109_v22 }
0x1b40   : > { %v17193_v34 = vpop.eup %17192  ;;  %v12445_v35 = vadd.f32 1.0, %v17191_v24 }
0x1b41   : > { %v17195_v41 = vpop.eup %17194  ;;  %17204 = vrcp.f32 %v12447_v33  ;;  %v12448_v43 = vadd.f32 1.0, %v17193_v34 }
0x1b42   : > { %17206 = vrcp.f32 %v12445_v35  ;;  %v12446_v44 = vadd.f32 1.0, %v17195_v41 }
0x1b43   : > { %17208 = vrcp.f32 %v12448_v43 }
0x1b44   : > { %17210 = vrcp.f32 %v12446_v44 }
0x1b46   : > { %v17197_v52 = vpop.eup %17196 }
0x1b47   : > { %v17199_v1 = vpop.eup %17198  ;;  %v12451_v15 = vadd.f32 1.0, %v17197_v52 }
0x1b48   : > { %v17201_v18 = vpop.eup %17200  ;;  %v12449_v19 = vadd.f32 1.0, %v17199_v1 }
0x1b49   : > { %v17203_v20 = vpop.eup %17202  ;;  %17212 = vrcp.f32 %v12451_v15  ;;  %v12452_v16 = vadd.f32 1.0, %v17201_v18 }
0x1b4a   : > { %17214 = vrcp.f32 %v12449_v19  ;;  %v12450_v21 = vadd.f32 1.0, %v17203_v20 }
0x1b4b   : > { %v17205_v27 = vpop.eup %17204  ;;  %17216 = vrcp.f32 %v12452_v16 }
0x1b4c   : > { %v17207_v28 = vpop.eup %17206  ;;  %14114 = vst.msk [vmem:[%s20143_s3 + $0x50] sm:$0xff] %vm1127_vm2, %v17205_v27  ;;  %17218 = vrcp.f32 %v12450_v21 }
0x1b4d   : > { %v17209_v29 = vpop.eup %17208  ;;  %14112 = vst.msk [vmem:[%s20143_s3 + $0x40] sm:$0xff] %vm1127_vm2, %v17207_v28 }
0x1b4e   : > { %v17211_v31 = vpop.eup %17210  ;;  %14115 = vst.msk [vmem:[%s20143_s3 + $0x58] sm:$0xff] %vm1127_vm2, %v17209_v29 }
0x1b4f   : > { %14113 = vst.msk [vmem:[%s20143_s3 + $0x48] sm:$0xff] %vm1127_vm2, %v17211_v31 }
0x1b53   : > { %v17213_v36 = vpop.eup %17212 }
0x1b54   : > { %v17215_v37 = vpop.eup %17214  ;;  %14118 = vst.msk [vmem:[%s20143_s3 + $0x70] sm:$0xff] %vm1127_vm2, %v17213_v36 }
0x1b55   : > { %v17217_v38 = vpop.eup %17216  ;;  %14116 = vst.msk [vmem:[%s20143_s3 + $0x60] sm:$0xff] %vm1127_vm2, %v17215_v37 }
0x1b56   : > { %v17219_v40 = vpop.eup %17218  ;;  %14119 = vst.msk [vmem:[%s20143_s3 + $0x78] sm:$0xff] %vm1127_vm2, %v17217_v38 }
0x1b57   : > { %14117 = vst.msk [vmem:[%s20143_s3 + $0x68] sm:$0xff] %vm1127_vm2, %v17219_v40 }
0x1b6f   : > { %v16397_v23 = vpop.f32.mrb[240].mxu0  ;;  %v16437_v30 = vpop.f32.mrb[68].mxu1 }
0x1b70   : > { %v12487_v48 = vadd.f32 %v16397_v23, %v20132_v25  ;;  %v12559_v58 = vadd.f32 %v16437_v30, %v20132_v25  ;;  %v11917_v50 = vpop.f32.mrb[241].mxu0  ;;  %v12233_v53 = vpop.f32.mrb[69].mxu1 }
0x1b71   : > { %v12485_v39 = vadd.f32 %v20132_v25, %v11917_v50  ;;  %v12557_v0 = vadd.f32 %v20132_v25, %v12233_v53  ;;  %v16398_v55 = vpop.f32.mrb[242].mxu0  ;;  %v16438_v56 = vpop.f32.mrb[70].mxu1 }
0x1b72   : > { %v14123_v61 = vmul.f32 -1.442695, %v12487_v48  ;;  %v14140_v3 = vmul.f32 -1.442695, %v12559_v58  ;;  %v12488_v7 = vadd.f32 %v16398_v55, %v20132_v25  ;;  %v12560_v6 = vadd.f32 %v16438_v56, %v20132_v25  ;;  %v11920_v9 = vpop.f32.mrb[243].mxu0  ;;  %v12236_v10 = vpop.f32.mrb[71].mxu1 }
0x1b73   : > { %v14121_v45 = vmul.f32 -1.442695, %v12485_v39  ;;  %v14138_v46 = vmul.f32 -1.442695, %v12557_v0  ;;  %v12486_v32 = vadd.f32 %v20132_v25, %v11920_v9  ;;  %v12558_v8 = vadd.f32 %v20132_v25, %v12236_v10 }
0x1b74   : > { %17220 = vpow2.f32 %v14123_v61  ;;  %v14124_v63 = vmul.f32 -1.442695, %v12488_v7  ;;  %v14141_v13 = vmul.f32 -1.442695, %v12560_v6 }
0x1b75   : > { %17222 = vpow2.f32 %v14140_v3  ;;  %v14122_v62 = vmul.f32 -1.442695, %v12486_v32  ;;  %v14139_v54 = vmul.f32 -1.442695, %v12558_v8 }
0x1b76   : > { %17224 = vpow2.f32 %v14121_v45 }
0x1b77   : > { %17226 = vpow2.f32 %v14138_v46  ;;  %v16401_v51 = vpop.f32.mrb[244].mxu0  ;;  %v16441_v59 = vpop.f32.mrb[72].mxu1 }
0x1b78   : > { %17228 = vpow2.f32 %v14124_v63  ;;  %v12491_v12 = vadd.f32 %v16401_v51, %v20132_v25  ;;  %v12563_v60 = vadd.f32 %v16441_v59, %v20132_v25  ;;  %v11933_v47 = vpop.f32.mrb[245].mxu0  ;;  %v12249_v11 = vpop.f32.mrb[73].mxu1 }
0x1b79   : > { %17230 = vpow2.f32 %v14141_v13  ;;  %v12489_v49 = vadd.f32 %v20132_v25, %v11933_v47  ;;  %v12561_v2 = vadd.f32 %v20132_v25, %v12249_v11  ;;  %v16402_v57 = vpop.f32.mrb[246].mxu0  ;;  %v16442_v26 = vpop.f32.mrb[74].mxu1 }
0x1b7a   : > { %17232 = vpow2.f32 %v14122_v62  ;;  %v14127_v4 = vmul.f32 -1.442695, %v12491_v12  ;;  %v14144_v5 = vmul.f32 -1.442695, %v12563_v60  ;;  %v12492_v14 = vadd.f32 %v16402_v57, %v20132_v25  ;;  %v11936_v17 = vpop.f32.mrb[247].mxu0  ;;  %v12252_v22 = vpop.f32.mrb[75].mxu1 }
0x1b7b   : > { %17234 = vpow2.f32 %v14139_v54  ;;  %v14125_v42 = vmul.f32 -1.442695, %v12489_v49  ;;  %v14142_v24 = vmul.f32 -1.442695, %v12561_v2  ;;  %v12564_v23 = vadd.f32 %v16442_v26, %v20132_v25 }
0x1b7c   : > { %17236 = vpow2.f32 %v14127_v4  ;;  %v14128_v33 = vmul.f32 -1.442695, %v12492_v14  ;;  %v12490_v58 = vadd.f32 %v20132_v25, %v11936_v17  ;;  %v12562_v0 = vadd.f32 %v20132_v25, %v12252_v22 }
0x1b7d   : > { %17238 = vpow2.f32 %v14144_v5  ;;  %v14145_v10 = vmul.f32 -1.442695, %v12564_v23 }
0x1b7e   : > { %v17221_v34 = vpop.eup %17220  ;;  %17240 = vpow2.f32 %v14125_v42  ;;  %v14126_v63 = vmul.f32 -1.442695, %v12490_v58  ;;  %v14143_v54 = vmul.f32 -1.442695, %v12562_v0 }
0x1b7f   : > { %v17223_v35 = vpop.eup %17222  ;;  %v12519_v41 = vadd.f32 1.0, %v17221_v34  ;;  %17242 = vpow2.f32 %v14142_v24  ;;  %v16447_v43 = vpop.f32.mrb[248].mxu0 }
0x1b80   : > { %v17225_v44 = vpop.eup %17224  ;;  %v12591_v52 = vadd.f32 1.0, %v17223_v35  ;;  %17244 = vpow2.f32 %v14128_v33  ;;  %v12319_v1 = vpop.f32.mrb[249].mxu0  ;;  %v12328_v3 = vadd.f32 %v16447_v43, %v20132_v25 }
0x1b81   : > { %v17227_v15 = vpop.eup %17226  ;;  %17246 = vrcp.f32 %v12519_v41  ;;  %v12517_v18 = vadd.f32 1.0, %v17225_v44  ;;  %v16448_v19 = vpop.f32.mrb[250].mxu0  ;;  %v12320_v45 = vadd.f32 %v20132_v25, %v12319_v1 }
0x1b82   : > { %v17229_v20 = vpop.eup %17228  ;;  %17248 = vrcp.f32 %v12591_v52  ;;  %v12589_v16 = vadd.f32 1.0, %v17227_v15  ;;  %v12322_v21 = vpop.f32.mrb[251].mxu0  ;;  %v12331_v13 = vadd.f32 %v16448_v19, %v20132_v25  ;;  %v14097_v12 = vmul.f32 -1.442695, %v12328_v3 }
0x1b83   : > { %v17231_v27 = vpop.eup %17230  ;;  %17250 = vrcp.f32 %v12517_v18  ;;  %v12520_v28 = vadd.f32 1.0, %v17229_v20  ;;  %v12323_v51 = vadd.f32 %v20132_v25, %v12322_v21  ;;  %v14095_v11 = vmul.f32 -1.442695, %v12320_v45 }
0x1b84   : > { %v17233_v29 = vpop.eup %17232  ;;  %17252 = vrcp.f32 %v12589_v16  ;;  %v12592_v31 = vadd.f32 1.0, %v17231_v27  ;;  %v14098_v57 = vmul.f32 -1.442695, %v12331_v13 }
0x1b85   : > { %v17235_v36 = vpop.eup %17234  ;;  %17254 = vrcp.f32 %v12520_v28  ;;  %v12518_v37 = vadd.f32 1.0, %v17233_v29  ;;  %v14096_v5 = vmul.f32 -1.442695, %v12323_v51 }
0x1b86   : > { %v17237_v38 = vpop.eup %17236  ;;  %17256 = vrcp.f32 %v12592_v31  ;;  %v12590_v40 = vadd.f32 1.0, %v17235_v36 }
0x1b87   : > { %v17239_v30 = vpop.eup %17238  ;;  %17258 = vrcp.f32 %v12518_v37  ;;  %v12523_v48 = vadd.f32 1.0, %v17237_v38  ;;  %v16451_v50 = vpop.f32.mrb[252].mxu0 }
0x1b88   : > { %v17241_v53 = vpop.eup %17240  ;;  %17260 = vrcp.f32 %v12590_v40  ;;  %v12595_v39 = vadd.f32 1.0, %v17239_v30  ;;  %v12335_v55 = vpop.f32.mrb[253].mxu0  ;;  %v12344_v60 = vadd.f32 %v16451_v50, %v20132_v25 }
0x1b89   : > { %v17243_v56 = vpop.eup %17242  ;;  %17262 = vrcp.f32 %v12523_v48  ;;  %v12521_v61 = vadd.f32 1.0, %v17241_v53  ;;  %v16452_v7 = vpop.f32.mrb[254].mxu0  ;;  %v12336_v49 = vadd.f32 %v20132_v25, %v12335_v55 }
0x1b8a   : > { %v17245_v6 = vpop.eup %17244  ;;  %17264 = vrcp.f32 %v12595_v39  ;;  %v12593_v9 = vadd.f32 1.0, %v17243_v56  ;;  %v12338_v46 = vpop.f32.mrb[255].mxu0  ;;  %v12347_v26 = vadd.f32 %v16452_v7, %v20132_v25  ;;  %v14101_v22 = vmul.f32 -1.442695, %v12344_v60  ;;  %v12741_v60 = vld [vmem:[%s20143_s3 + $0x50] sm:$0xff] (%p17528_p4) }
0x1b8b   : > { %v17247_v32 = vpop.eup %17246  ;;  %17266 = vrcp.f32 %v12521_v61  ;;  %v12524_v8 = vadd.f32 1.0, %v17245_v6  ;;  %v12339_v14 = vadd.f32 %v20132_v25, %v12338_v46  ;;  %v14099_v24 = vmul.f32 -1.442695, %v12336_v49  ;;  %12742 = vst [vmem:[%s20242_s7 + $0x90] sm:$0xff] (%p17528_p4), %v12741_v60  ;;  %v12747_v49 = vld [vmem:[%s20143_s3 + $0x68] sm:$0xff] (%p17528_p4) }
0x1b8c   : > { %v17249_v62 = vpop.eup %17248  ;;  %14131 = vst.msk [vmem:[%s20143_s3 + $0x90] sm:$0xff] %vm1127_vm2, %v17247_v32  ;;  %17268 = vrcp.f32 %v12593_v9  ;;  %v14102_v34 = vmul.f32 -1.442695, %v12347_v26  ;;  %12748 = vst [vmem:[%s20242_s7 + $0xa8] sm:$0xff] (%p17528_p4), %v12747_v49 }
0x1b8d   : > { %v17251_v59 = vpop.eup %17250  ;;  %14148 = vst.msk [vmem:[%s20143_s3 + $0xd0] sm:$0xff] %vm1127_vm2, %v17249_v62  ;;  %17270 = vrcp.f32 %v12524_v8  ;;  %v14100_v35 = vmul.f32 -1.442695, %v12339_v14 }
0x1b8e   : > { %v17253_v47 = vpop.eup %17252  ;;  %14129 = vst.msk [vmem:[%s20143_s3 + $0x80] sm:$0xff] %vm1127_vm2, %v17251_v59  ;;  %17272 = vpow2.f32 %v14145_v10  ;;  %v12737_v59 = vld [vmem:[%s20143_s3 + $0x40] sm:$0xff] (%p17528_p4) }
0x1b8f   : > { %v17255_v2 = vpop.eup %17254  ;;  %14146 = vst.msk [vmem:[%s20143_s3 + $0xc0] sm:$0xff] %vm1127_vm2, %v17253_v47  ;;  %17274 = vpow2.f32 %v14126_v63  ;;  %12738 = vst [vmem:[%s20242_s7 + $0x80] sm:$0xff] (%p17528_p4), %v12737_v59  ;;  %v12743_v47 = vld [vmem:[%s20143_s3 + $0x58] sm:$0xff] (%p17528_p4) }
0x1b90   : > { %v17257_v4 = vpop.eup %17256  ;;  %14132 = vst.msk [vmem:[%s20143_s3 + $0x98] sm:$0xff] %vm1127_vm2, %v17255_v2  ;;  %17276 = vpow2.f32 %v14143_v54  ;;  %12744 = vst [vmem:[%s20242_s7 + $0x98] sm:$0xff] (%p17528_p4), %v12743_v47  ;;  %v12749_v2 = vld [vmem:[%s20143_s3 + $0x70] sm:$0xff] (%p17528_p4) }
0x1b91   : > { %v17259_v17 = vpop.eup %17258  ;;  %14149 = vst.msk [vmem:[%s20143_s3 + $0xd8] sm:$0xff] %vm1127_vm2, %v17257_v4  ;;  %17278 = vpow2.f32 %v14097_v12  ;;  %v12739_v12 = vld [vmem:[%s20143_s3 + $0x48] sm:$0xff] (%p17528_p4)  ;;  %12750 = vst [vmem:[%s20242_s7 + $0xb0] sm:$0xff] (%p17528_p4), %v12749_v2 }
0x1b92   : > { %v17261_v42 = vpop.eup %17260  ;;  %14130 = vst.msk [vmem:[%s20143_s3 + $0x88] sm:$0xff] %vm1127_vm2, %v17259_v17  ;;  %17280 = vpow2.f32 %v14095_v11  ;;  %12740 = vst [vmem:[%s20242_s7 + $0x88] sm:$0xff] (%p17528_p4), %v12739_v12  ;;  %v12745_v11 = vld [vmem:[%s20143_s3 + $0x60] sm:$0xff] (%p17528_p4) }
0x1b93   : > { %v17263_v33 = vpop.eup %17262  ;;  %14147 = vst.msk [vmem:[%s20143_s3 + $0xc8] sm:$0xff] %vm1127_vm2, %v17261_v42  ;;  %17282 = vpow2.f32 %v14098_v57  ;;  %12746 = vst [vmem:[%s20242_s7 + $0xa0] sm:$0xff] (%p17528_p4), %v12745_v11  ;;  %v12751_v57 = vld [vmem:[%s20143_s3 + $0x78] sm:$0xff] (%p17528_p4) }
0x1b94   : > { %v17265_v25 = vpop.eup %17264  ;;  %14135 = vst.msk [vmem:[%s20143_s3 + $0xb0] sm:$0xff] %vm1127_vm2, %v17263_v33  ;;  %17284 = vpow2.f32 %v14096_v5  ;;  %12752 = vst [vmem:[%s20242_s7 + $0xb8] sm:$0xff] (%p17528_p4), %v12751_v57  ;;  %v12757_v5 = vld [vmem:[%s20143_s3 + $0x90] sm:$0xff] (%p17528_p4) }
0x1b95   : > { %v17267_v41 = vpop.eup %17266  ;;  %14152 = vst.msk [vmem:[%s20143_s3 + $0xf0] sm:$0xff] %vm1127_vm2, %v17265_v25  ;;  %17286 = vpow2.f32 %v14101_v22  ;;  %v12753_v26 = vld [vmem:[%s20143_s3 + $0x80] sm:$0xff] (%p17528_p4)  ;;  %12758 = vst [vmem:[%s20242_s7 + $0x110] sm:$0xff] (%p17528_p4), %v12757_v5  ;;  %v12773_v25 = vld [vmem:[%s20143_s3 + $0xd0] sm:$0xff] (%p17528_p4) }
0x1b96   : > { %v17269_v43 = vpop.eup %17268  ;;  %14133 = vst.msk [vmem:[%s20143_s3 + $0xa0] sm:$0xff] %vm1127_vm2, %v17267_v41  ;;  %17288 = vpow2.f32 %v14099_v24  ;;  %12754 = vst [vmem:[%s20242_s7 + $0x100] sm:$0xff] (%p17528_p4), %v12753_v26  ;;  %v12769_v33 = vld [vmem:[%s20143_s3 + $0xc0] sm:$0xff] (%p17528_p4) }
0x1b97   : > { %v17271_v44 = vpop.eup %17270  ;;  %14150 = vst.msk [vmem:[%s20143_s3 + $0xe0] sm:$0xff] %vm1127_vm2, %v17269_v43  ;;  %17290 = vpow2.f32 %v14102_v34  ;;  %v12759_v14 = vld [vmem:[%s20143_s3 + $0x98] sm:$0xff] (%p17528_p4)  ;;  %12770 = vst [vmem:[%s20242_s7 + $0x180] sm:$0xff] (%p17528_p4), %v12769_v33 }
0x1b98   : > { %v17273_v52 = vpop.eup %17272  ;;  %14136 = vst.msk [vmem:[%s20143_s3 + $0xb8] sm:$0xff] %vm1127_vm2, %v17271_v44  ;;  %17292 = vpow2.f32 %v14100_v35  ;;  %12760 = vst [vmem:[%s20242_s7 + $0x118] sm:$0xff] (%p17528_p4), %v12759_v14  ;;  %v12775_v35 = vld [vmem:[%s20143_s3 + $0xd8] sm:$0xff] (%p17528_p4) }
0x1b99   : > { %v17275_v1 = vpop.eup %17274  ;;  %v12596_v15 = vadd.f32 1.0, %v17273_v52  ;;  %v12755_v4 = vld [vmem:[%s20143_s3 + $0x88] sm:$0xff] (%p17528_p4)  ;;  %12774 = vst [vmem:[%s20242_s7 + $0x190] sm:$0xff] (%p17528_p4), %v12773_v25  ;;  %12776 = vst [vmem:[%s20242_s7 + $0x198] sm:$0xff] (%p17528_p4), %v12775_v35 }
0x1b9a   : > { %v17277_v18 = vpop.eup %17276  ;;  %v12522_v19 = vadd.f32 1.0, %v17275_v1  ;;  %12756 = vst [vmem:[%s20242_s7 + $0x108] sm:$0xff] (%p17528_p4), %v12755_v4  ;;  %v12771_v34 = vld [vmem:[%s20143_s3 + $0xc8] sm:$0xff] (%p17528_p4) }
0x1b9b   : > { %v17279_v20 = vpop.eup %17278  ;;  %17294 = vrcp.f32 %v12596_v15  ;;  %v12594_v16 = vadd.f32 1.0, %v17277_v18  ;;  %v12765_v42 = vld [vmem:[%s20143_s3 + $0xb0] sm:$0xff] (%p17528_p4)  ;;  %12772 = vst [vmem:[%s20242_s7 + $0x188] sm:$0xff] (%p17528_p4), %v12771_v34 }
0x1b9c   : > { %v17281_v21 = vpop.eup %17280  ;;  %17296 = vrcp.f32 %v12522_v19  ;;  %v12376_v27 = vadd.f32 1.0, %v17279_v20  ;;  %12766 = vst [vmem:[%s20242_s7 + $0x130] sm:$0xff] (%p17528_p4), %v12765_v42  ;;  %v12781_v44 = vld [vmem:[%s20143_s3 + $0xf0] sm:$0xff] (%p17528_p4) }
0x1b9d   : > { %v17283_v28 = vpop.eup %17282  ;;  %17298 = vrcp.f32 %v12594_v16  ;;  %v12374_v29 = vadd.f32 1.0, %v17281_v21  ;;  %v12761_v17 = vld [vmem:[%s20143_s3 + $0xa0] sm:$0xff] (%p17528_p4)  ;;  %12782 = vst [vmem:[%s20242_s7 + $0x1b0] sm:$0xff] (%p17528_p4), %v12781_v44 }
0x1b9e   : > { %v17285_v31 = vpop.eup %17284  ;;  %17300 = vrcp.f32 %v12376_v27  ;;  %v12377_v36 = vadd.f32 1.0, %v17283_v28  ;;  %12762 = vst [vmem:[%s20242_s7 + $0x120] sm:$0xff] (%p17528_p4), %v12761_v17  ;;  %v12777_v41 = vld [vmem:[%s20143_s3 + $0xe0] sm:$0xff] (%p17528_p4) }
0x1b9f   : > { %v17287_v37 = vpop.eup %17286  ;;  %17302 = vrcp.f32 %v12374_v29  ;;  %v12375_v38 = vadd.f32 1.0, %v17285_v31  ;;  %v12767_v24 = vld [vmem:[%s20143_s3 + $0xb8] sm:$0xff] (%p17528_p4)  ;;  %12778 = vst [vmem:[%s20242_s7 + $0x1a0] sm:$0xff] (%p17528_p4), %v12777_v41 }
0x1ba0   : > { %v17289_v40 = vpop.eup %17288  ;;  %17304 = vrcp.f32 %v12377_v36  ;;  %v12380_v23 = vadd.f32 1.0, %v17287_v37  ;;  %12768 = vst [vmem:[%s20242_s7 + $0x138] sm:$0xff] (%p17528_p4), %v12767_v24 }
0x1ba1   : > { %v17291_v30 = vpop.eup %17290  ;;  %17306 = vrcp.f32 %v12375_v38  ;;  %v12378_v48 = vadd.f32 1.0, %v17289_v40 }
0x1ba2   : > { %v17293_v58 = vpop.eup %17292  ;;  %17308 = vrcp.f32 %v12380_v23  ;;  %v12381_v50 = vadd.f32 1.0, %v17291_v30 }
0x1ba3   : > { %17310 = vrcp.f32 %v12378_v48  ;;  %v12379_v53 = vadd.f32 1.0, %v17293_v58 }
0x1ba4   : > { %17312 = vrcp.f32 %v12381_v50 }
0x1ba5   : > { %v17295_v39 = vpop.eup %17294  ;;  %17314 = vrcp.f32 %v12379_v53 }
0x1ba6   : > { %v17297_v0 = vpop.eup %17296  ;;  %14153 = vst.msk [vmem:[%s20143_s3 + $0xf8] sm:$0xff] %vm1127_vm2, %v17295_v39 }
0x1ba7   : > { %v17299_v55 = vpop.eup %17298  ;;  %14134 = vst.msk [vmem:[%s20143_s3 + $0xa8] sm:$0xff] %vm1127_vm2, %v17297_v0 }
0x1ba8   : > { %v17301_v56 = vpop.eup %17300  ;;  %14151 = vst.msk [vmem:[%s20143_s3 + $0xe8] sm:$0xff] %vm1127_vm2, %v17299_v55 }
0x1ba9   : > { %v17303_v61 = vpop.eup %17302  ;;  %12400 = vst.msk [vmem:[%s20143_s3 + $0x10] sm:$0xff] %vm1127_vm2, %v17301_v56 }
0x1baa   : > { %v17305_v3 = vpop.eup %17304  ;;  %12398 = vst.msk [vmem:[%s20143_s3] sm:$0xff] %vm1127_vm2, %v17303_v61  ;;  %12628 = sbr.rel (!%p17528_p4) target bundleno = 7097 (0x1bb9), region = 124 }
0x1bab   : > { %v17307_v7 = vpop.eup %17306  ;;  %12401 = vst.msk [vmem:[%s20143_s3 + $0x18] sm:$0xff] %vm1127_vm2, %v17305_v3 }
0x1bac   : > { %v17309_v6 = vpop.eup %17308  ;;  %12399 = vst.msk [vmem:[%s20143_s3 + $0x8] sm:$0xff] %vm1127_vm2, %v17307_v7 }
0x1bad   : > { %v17311_v9 = vpop.eup %17310  ;;  %12404 = vst.msk [vmem:[%s20143_s3 + $0x30] sm:$0xff] %vm1127_vm2, %v17309_v6  ;;  %v12783_v52 = vld [vmem:[%s20143_s3 + $0xf8] sm:$0xff] (%p17528_p4) }
0x1bae   : > { %v17313_v10 = vpop.eup %17312  ;;  %12402 = vst.msk [vmem:[%s20143_s3 + $0x20] sm:$0xff] %vm1127_vm2, %v17311_v9  ;;  %v12763_v22 = vld [vmem:[%s20143_s3 + $0xa8] sm:$0xff] (%p17528_p4)  ;;  %12784 = vst [vmem:[%s20242_s7 + $0x1b8] sm:$0xff] (%p17528_p4), %v12783_v52 }
0x1baf   : > { %v17315_v45 = vpop.eup %17314  ;;  %12405 = vst.msk [vmem:[%s20143_s3 + $0x38] sm:$0xff] %vm1127_vm2, %v17313_v10  ;;  %12764 = vst [vmem:[%s20242_s7 + $0x128] sm:$0xff] (%p17528_p4), %v12763_v22  ;;  %v12779_v43 = vld [vmem:[%s20143_s3 + $0xe8] sm:$0xff] (%p17528_p4) }
0x1bb0   : > { %12403 = vst.msk [vmem:[%s20143_s3 + $0x28] sm:$0xff] %vm1127_vm2, %v17315_v45  ;;  %v12725_v8 = vld [vmem:[%s20143_s3 + $0x10] sm:$0xff] (%p17528_p4)  ;;  %12780 = vst [vmem:[%s20242_s7 + $0x1a8] sm:$0xff] (%p17528_p4), %v12779_v43 }
0x1bb1   : > { %v12721_v46 = vld [vmem:[%s20143_s3] sm:$0xff]  ;;  %12726 = vst [vmem:[%s20242_s7 + $0x10] sm:$0xff] %v12725_v8 }
0x1bb2   : > { %v12727_v63 = vld [vmem:[%s20143_s3 + $0x18] sm:$0xff]  ;;  %12722 = vst [vmem:[%s20242_s7] sm:$0xff] %v12721_v46 }
0x1bb3   : > { %v12723_v32 = vld [vmem:[%s20143_s3 + $0x8] sm:$0xff]  ;;  %12728 = vst [vmem:[%s20242_s7 + $0x18] sm:$0xff] %v12727_v63 }
0x1bb4   : > { %12724 = vst [vmem:[%s20242_s7 + $0x8] sm:$0xff] %v12723_v32  ;;  %v12733_v54 = vld [vmem:[%s20143_s3 + $0x30] sm:$0xff] }
0x1bb5   : > { %v12729_v13 = vld [vmem:[%s20143_s3 + $0x20] sm:$0xff]  ;;  %12734 = vst [vmem:[%s20242_s7 + $0x30] sm:$0xff] %v12733_v54 }
0x1bb6   : > { %12730 = vst [vmem:[%s20242_s7 + $0x20] sm:$0xff] %v12729_v13  ;;  %v12735_v51 = vld [vmem:[%s20143_s3 + $0x38] sm:$0xff] }
0x1bb7   : > { %v12731_v62 = vld [vmem:[%s20143_s3 + $0x28] sm:$0xff]  ;;  %12736 = vst [vmem:[%s20242_s7 + $0x38] sm:$0xff] %v12735_v51 }
0x1bb8   : > { %12732 = vst [vmem:[%s20242_s7 + $0x28] sm:$0xff] %v12731_v62 }
0x1bb9 PF: > { %s20376_s6 = sld [smem:[#allocation4_spill]]  ;;  %s20377_s29 = sld [smem:[#allocation3_spill]] }
0x1bba   : > { %s20378_s2 = sld [smem:[#allocation5_spill]] }
0x1bbf   : > { %p32_p8 = scmp.ge.s32.totalorder %s20376_s6, 4  }
0x1bc1   :  { %34 = sbr.rel (!%p32_p8) target bundleno = 13 (0xd), region = 335 }

</bundles_post_ra>
